<compile_context>
chip_gen: v7x
topology: tpu7x:2x2x1
jax: 0.10.0
libtpu: 0.0.40
codegen_flags: <defaults>
</compile_context>

<pallas_src>
import functools

import jax
import jax.numpy as jnp
from jax.experimental import pallas as pl
from jax.experimental.pallas import tpu as pltpu


def _round_up(x, m):
    return ((x + m - 1) // m) * m


def _vmem_budget():
    """Generation-aware (per-call tile budget, vmem_limit_bytes)."""
    try:
        cap = int(getattr(pltpu.get_tpu_info(), "vmem_capacity_bytes",
                          64 * 1024 * 1024))
    except Exception:
        cap = 64 * 1024 * 1024
    if cap >= 100 * 1024 * 1024:                 # v5e / v6e: 128 MiB physical VMEM
        return 24 * 1024 * 1024, 64 * 1024 * 1024
    return 12 * 1024 * 1024, 32 * 1024 * 1024    # v7x: 64 MiB physical VMEM


# ---------------------------------------------------------------------------
# Pallas kernel 1: fused  y = leaky_relu((x @ w) * scale + shift, slope)
#   slope == 1.0 -> no activation; scale/shift fold BatchNorm or Linear bias.
# ---------------------------------------------------------------------------
def _linear_affine_act_kernel(x_ref, w_ref, scale_ref, shift_ref, o_ref, *, slope):
    acc = jnp.dot(x_ref[...], w_ref[...], preferred_element_type=jnp.float32)
    z = acc * scale_ref[...] + shift_ref[...]
    if slope != 1.0:
        z = jnp.maximum(z, slope * z)            # LeakyReLU, single VPU op
    o_ref[...] = z.astype(o_ref.dtype)


def _choose_tm(M, K, N, x_bytes, out_bytes, budget):
    """Row tile: as large as the budget allows; prefer exact divisors of M
    (no padding copy) and even step counts (balanced across v7x's 2 TCs)."""
    per_row = 2 * K * x_bytes + 2 * N * out_bytes + N * 4
    tm_max = min(8192, max(8, budget // max(per_row, 1)))
    tm_max = max(8, (tm_max // 8) * 8)
    if M <= tm_max:
        return _round_up(M, 8)
    lo = max(128, tm_max // 8)
    best = None
    for cand in range(tm_max, lo - 1, -8):
        if M % cand == 0:
            if (M // cand) % 2 == 0:             # even number of grid steps
                return cand
            if best is None:
                best = cand
    return best if best is not None else tm_max


def linear_affine_act(x, w, scale=None, shift=None, *, slope=1.0,
                      compute_dtype=jnp.float32, out_dtype=jnp.float32,
                      fuse_input=False, min_pallas_rows=256):
    """x: (M, K), w: (K, N). Returns (M, N) = leaky_relu((x@w)*scale+shift)."""
    M, K = x.shape
    Kw, N = w.shape
    assert K == Kw
    if scale is None:
        scale = jnp.ones((N,), jnp.float32)
    if shift is None:
        shift = jnp.zeros((N,), jnp.float32)
    scale = scale.reshape(1, N).astype(jnp.float32)
    shift = shift.reshape(1, N).astype(jnp.float32)

    # Tiny GEMMs (a handful of rows): a pallas_call is pure launch/pipeline
    # overhead -- run identical math through XLA instead.
    if M < min_pallas_rows:
        z = jnp.dot(x.astype(compute_dtype), w.astype(compute_dtype),
                    preferred_element_type=jnp.float32)
        z = z * scale + shift
        if slope != 1.0:
            z = jnp.maximum(z, slope * z)
        return z.astype(out_dtype)

    x = x.astype(compute_dtype)
    w = w.astype(compute_dtype)
    budget, vmem_limit = _vmem_budget()
    tm = _choose_tm(M, K, N, jnp.dtype(compute_dtype).itemsize,
                    jnp.dtype(out_dtype).itemsize, budget)
    Mp = _round_up(M, tm)
    if Mp != M:                                  # only small ragged remainders
        x = jnp.pad(x, ((0, Mp - M), (0, 0)))

    out = pl.pallas_call(
        functools.partial(_linear_affine_act_kernel, slope=float(slope)),
        out_shape=jax.ShapeDtypeStruct((Mp, N), out_dtype),
        grid_spec=pltpu.PrefetchScalarGridSpec(
            num_scalar_prefetch=0,
            grid=(Mp // tm,),
            in_specs=[
                pl.BlockSpec((tm, K), lambda i: (i, 0)),
                pl.BlockSpec((K, N), lambda i: (0, 0)),
                pl.BlockSpec((1, N), lambda i: (0, 0)),
                pl.BlockSpec((1, N), lambda i: (0, 0)),
            ],
            out_specs=pl.BlockSpec((tm, N), lambda i: (i, 0)),
        ),
        compiler_params=pltpu.CompilerParams(
            dimension_semantics=("parallel",),
            vmem_limit_bytes=vmem_limit,
            # let XLA fuse the patch reshape/transpose/cast into the input DMA
            allow_input_fusion=([True, False, False, False] if fuse_input
                                else None)),
    )(x, w, scale, shift)
    return out if Mp == M else out[:M]


# ---------------------------------------------------------------------------
# Conv2dBlock: 4x4 stride-4 conv (patch matmul, NHWC) + BN(eval) + LeakyReLU(0.1)
# ---------------------------------------------------------------------------
def conv4x4s4_bn_lrelu(x_nhwc, w, gamma, beta, mean, var, *, eps=1e-5, slope=0.1,
                       out_dtype=jnp.float32, fuse_input=False):
    N, H, W_, C = x_nhwc.shape
    OC = w.shape[0]
    H4, W4 = H // 4, W_ // 4
    M = N * H4 * W4
    K = 16 * C
    # Patch extraction straight from NHWC in bf16; inner order = (kh, kw, c).
    patches = (x_nhwc.astype(jnp.bfloat16)
               .reshape(N, H4, 4, W4, 4, C)
               .transpose(0, 1, 3, 2, 4, 5)
               .reshape(M, K))
    w2 = jnp.transpose(w, (2, 3, 1, 0)).reshape(K, OC).astype(jnp.float32)
    scale = gamma / jnp.sqrt(var + eps)
    shift = beta - mean * scale

    # Lane-dense output regrouping for every layer with OC < 128: G output rows
    # per kernel row so the stored tile is (tm, G*OC) with G*OC == 128.
    # Ragged M is padded with zero patch rows (result rows sliced off below).
    G = 128 // OC if (OC < 128 and 128 % OC == 0) else 1
    Mp = _round_up(M, G) if G > 1 else M
    if G > 1:
        if Mp != M:
            patches = jnp.pad(patches, ((0, Mp - M), (0, 0)))
        patches = patches.reshape(Mp // G, G * K)            # row-major -> free
        w2 = jnp.kron(jnp.eye(G, dtype=w2.dtype), w2)        # (G*K, G*OC) block diag
        scale = jnp.tile(scale, G)
        shift = jnp.tile(shift, G)

    out = linear_affine_act(patches, w2, scale, shift, slope=slope,
                            compute_dtype=jnp.bfloat16, out_dtype=out_dtype,
                            fuse_input=fuse_input)
    out = out.reshape(Mp, OC)[:M]                            # drop zero-pad rows
    return out.reshape(N, H4, W4, OC)                        # row-major -> free


# ---------------------------------------------------------------------------
# Pallas kernel 2: GATConv attention, flash-style online softmax.
#   grid = (dst tiles, src tiles); src axis is "arbitrary" with m/l/acc scratch.
#   el[u] = <feat[u], attn_l>, er[v] = <feat[v], attn_r> are PRE-computed (folded
#   into the fc) and streamed in; the kernel only does score + softmax + PV.
# ---------------------------------------------------------------------------
def _gat_attn_kernel(fsrc_ref, el_ref, er_ref, adj_ref, b_ref, o_ref,
                     m_sc, l_sc, acc_sc, *, heads, d, neg_slope, apply_elu):
    s = pl.program_id(1)
    ns = pl.num_programs(1)

    @pl.when(s == 0)
    def _():
        m_sc[...] = jnp.full(m_sc.shape, -1e30, jnp.float32)
        l_sc[...] = jnp.zeros(l_sc.shape, jnp.float32)
        acc_sc[...] = jnp.zeros(acc_sc.shape, jnp.float32)

    mask = adj_ref[...] > 0                                   # (Td, Ts), bf16 adjacency
    for h in range(heads):                                    # static, heads <= 2
        lo, hi = h * d, (h + 1) * d
        el = el_ref[h:h + 1, :]                               # (1, Ts)  precomputed
        er = er_ref[:, h:h + 1]                               # (Td, 1)  precomputed
        e = er + el                                           # (Td, Ts)
        e = jnp.maximum(e, neg_slope * e)                     # LeakyReLU
        e = jnp.where(mask, e, -1e30)                         # single mask fill
        m_prev = m_sc[:, h:h + 1]
        m_new = jnp.maximum(m_prev, jnp.max(e, axis=-1, keepdims=True))
        alpha = jnp.exp(m_prev - m_new)                       # rescale old stats
        p = jnp.exp(e - m_new)                                # masked lanes underflow to 0
        l_sc[:, h:h + 1] = alpha * l_sc[:, h:h + 1] + jnp.sum(p, axis=-1,
                                                              keepdims=True)
        acc_sc[:, lo:hi] = alpha * acc_sc[:, lo:hi] + jnp.dot(
            p.astype(jnp.bfloat16), fsrc_ref[:, lo:hi],
            preferred_element_type=jnp.float32)
        m_sc[:, h:h + 1] = m_new

    @pl.when(s == ns - 1)
    def _():
        parts = []
        for h in range(heads):
            inv = pl.reciprocal(jnp.maximum(l_sc[:, h:h + 1], 1e-20), approx=True)
            parts.append(acc_sc[:, h * d:(h + 1) * d] * inv)  # rescale AFTER matmul
        r = parts[0] if heads == 1 else jnp.concatenate(parts, axis=-1)
        r = r + b_ref[...]
        if apply_elu:
            r = jnp.where(r > 0.0, r, jnp.exp(r) - 1.0)
        o_ref[...] = r                                        # one lane-dense store


def gat_conv(h, p, adj_bf, *, neg_slope=0.2, apply_elu=True):
    """DGL-style GATConv on a dense graph. h: (N, in_dim) -> (N, heads*out_dim)."""
    N = h.shape[0]
    heads, D = p["attn_l"].shape
    F = heads * D
    W = p["w"].astype(jnp.float32)
    # Fold attn_l / attn_r into the fc: extra weight columns emit el/er lanes.
    wl = jnp.stack([W[:, hh * D:(hh + 1) * D] @ p["attn_l"][hh]
                    for hh in range(heads)], axis=1)          # (in, heads)
    wr = jnp.stack([W[:, hh * D:(hh + 1) * D] @ p["attn_r"][hh]
                    for hh in range(heads)], axis=1)
    w_ext = jnp.concatenate([W, wl, wr], axis=1)              # (in, F + 2*heads)
    feat_ext = linear_affine_act(h, w_ext)                    # f32 (N, F + 2*heads)
    feat = feat_ext[:, :F].astype(jnp.bfloat16)               # bf16 values for p@V
    el_t = feat_ext[:, F:F + heads].T                         # (heads, N) f32
    er = feat_ext[:, F + heads:F + 2 * heads]                 # (N, heads) f32
    bias = p["bias"].reshape(1, F).astype(jnp.float32)

    # Tiling: small graphs -> single tile; large graphs -> (Td, Ts) = (256, 512)
    # so VMEM stays O(Td*Ts) regardless of N (safe on v7x's 64 MiB VMEM).
    if N <= 1024:
        Td = Ts = _round_up(max(N, 8), 8)
        Np = Td
    else:
        Td, Ts = 256, 512
        Np = _round_up(N, 512)
    if Np != N:
        feat = jnp.pad(feat, ((0, Np - N), (0, 0)))
        el_t = jnp.pad(el_t, ((0, 0), (0, Np - N)))
        er = jnp.pad(er, ((0, Np - N), (0, 0)))
        adj_bf = jnp.pad(adj_bf, ((0, Np - N), (0, Np - N)))  # padded src/dst masked

    _, vmem_limit = _vmem_budget()
    out = pl.pallas_call(
        functools.partial(_gat_attn_kernel, heads=int(heads), d=int(D),
                          neg_slope=float(neg_slope), apply_elu=bool(apply_elu)),
        out_shape=jax.ShapeDtypeStruct((Np, F), jnp.float32),
        grid_spec=pltpu.PrefetchScalarGridSpec(
            num_scalar_prefetch=0,
            grid=(Np // Td, Np // Ts),
            in_specs=[
                pl.BlockSpec((Ts, F), lambda i, s: (s, 0)),      # src features (bf16)
                pl.BlockSpec((heads, Ts), lambda i, s: (0, s)),  # el (per-src scores)
                pl.BlockSpec((Td, heads), lambda i, s: (i, 0)),  # er (per-dst scores)
                pl.BlockSpec((Td, Ts), lambda i, s: (i, s)),     # adjacency (bf16)
                pl.BlockSpec((1, F), lambda i, s: (0, 0)),       # bias
            ],
            out_specs=pl.BlockSpec((Td, F), lambda i, s: (i, 0)),
            scratch_shapes=[pltpu.VMEM((Td, heads), jnp.float32),   # running max
                            pltpu.VMEM((Td, heads), jnp.float32),   # running sum
                            pltpu.VMEM((Td, F), jnp.float32)]),     # running acc
        compiler_params=pltpu.CompilerParams(
            dimension_semantics=("parallel", "arbitrary"),
            vmem_limit_bytes=vmem_limit),
    )(feat, el_t, er, adj_bf, bias)
    return out if Np == N else out[:N]


# ---------------------------------------------------------------------------
# Model configuration (matches GAT.__init__ arithmetic)
# ---------------------------------------------------------------------------
ENZYME_CONV_ARCHI = [(2, 4, 4, 0), (1, 4, 4, 0), (1, 4, 4, 0)]
NUM_HIDDEN = 64
NUM_LAYERS = 3
NUM_LABELS = 8
HEADS = [2, 2, 1]
M_FEA_DIM = 129          # 128 (e_dim) + 129 = 257 = fc_list in_dim
NEG_SLOPE = 0.2          # GATConv negative_slope


def init_params(key):
    def nrm(k, shape, s=0.1):
        return s * jax.random.normal(k, shape, dtype=jnp.float32)

    keys = iter(jax.random.split(key, 64))
    p = {}

    # Conv2dBlocks
    p["conv"] = []
    in_c = 2
    for (oc, k, s, pad) in ENZYME_CONV_ARCHI:
        p["conv"].append({
            "w": nrm(next(keys), (oc, in_c, k, k)),
            "gamma": 1.0 + nrm(next(keys), (oc,), 0.05),
            "beta": nrm(next(keys), (oc,), 0.05),
            "mean": nrm(next(keys), (oc,), 0.05),
            "var": 1.0 + jnp.abs(nrm(next(keys), (oc,), 0.05)),
        })
        in_c = oc

    # Flatten -> Linear(625, 64)    (stored as (in, out))
    p["flat_fc"] = {"w": nrm(next(keys), (625, 64)), "b": nrm(next(keys), (64,))}
    # single_linear: Linear(1600, 64)
    p["single"] = {"w": nrm(next(keys), (1600, 64)), "b": nrm(next(keys), (64,))}
    # fc_list: two Linear(257, num_hidden)
    p["fc_list"] = [{"w": nrm(next(keys), (257, NUM_HIDDEN)),
                     "b": nrm(next(keys), (NUM_HIDDEN,))} for _ in range(2)]

    # GAT layers
    p["gat"] = []
    in_dim = NUM_HIDDEN
    for l in range(NUM_LAYERS):
        out_dim = NUM_LABELS if l == NUM_LAYERS - 1 else NUM_HIDDEN
        heads = HEADS[l]
        p["gat"].append({
            "w": nrm(next(keys), (in_dim, heads * out_dim)),
            "attn_l": nrm(next(keys), (heads, out_dim)),
            "attn_r": nrm(next(keys), (heads, out_dim)),
            "bias": nrm(next(keys), (heads * out_dim,), 0.05),
        })
        in_dim = heads * out_dim
    return p


def gat_forward(params, e_logits_nhwc, e_single, m_feature, adj):
    # ---- conv tower on enzyme logit maps (NHWC throughout; dropout = identity);
    #      intermediate activations are kept in bf16 (next layer reads bf16) ----
    x = e_logits_nhwc
    n_conv = len(params["conv"])
    for li, cp in enumerate(params["conv"]):
        x = conv4x4s4_bn_lrelu(
            x, cp["w"], cp["gamma"], cp["beta"], cp["mean"], cp["var"],
            out_dtype=(jnp.bfloat16 if li < n_conv - 1 else jnp.float32),
            fuse_input=True)
    ne = x.shape[0]
    conv_flat = x.reshape(ne, -1)                       # (ne, 625); C==1 so == NCHW flatten

    # ---- flat_fc + single_linear fused into one lane-dense call (block-diag W);
    #      at tiny ne this routes through XLA automatically ----
    wf, bf = params["flat_fc"]["w"], params["flat_fc"]["b"]
    ws, bs = params["single"]["w"], params["single"]["b"]
    kf, nf = wf.shape
    ks, ns_ = ws.shape
    w_cat = jnp.zeros((kf + ks, nf + ns_), jnp.float32)
    w_cat = w_cat.at[:kf, :nf].set(wf).at[kf:, nf:].set(ws)
    b_cat = jnp.concatenate([bf, bs])
    x_cat = jnp.concatenate([conv_flat, e_single.astype(jnp.float32)], axis=1)
    e_feature = linear_affine_act(x_cat, w_cat, shift=b_cat)        # (ne, 128)

    # ---- type-specific projections; explicit zero-padding to 257 dims dropped
    #      (zero blocks contribute exactly 0 -> slicing the weights is exact) ----
    e_dim = e_feature.shape[1]                                       # 128
    h_e = linear_affine_act(e_feature, params["fc_list"][0]["w"][:e_dim],
                            shift=params["fc_list"][0]["b"])
    h_m = linear_affine_act(m_feature.astype(jnp.float32),
                            params["fc_list"][1]["w"][e_dim:],
                            shift=params["fc_list"][1]["b"])
    h = jnp.concatenate([h_e, h_m], axis=0)                          # (N, num_hidden)

    # ---- GAT layers (outputs already (N, heads*D) == PyTorch .flatten(1)) ----
    adj_bf = adj.astype(jnp.bfloat16)                                # 0/1 exact in bf16
    for l in range(NUM_LAYERS - 1):
        h = gat_conv(h, params["gat"][l], adj_bf,
                     neg_slope=NEG_SLOPE, apply_elu=True)            # activation = ELU
    out = gat_conv(h, params["gat"][-1], adj_bf,
                   neg_slope=NEG_SLOPE, apply_elu=False)             # last layer: none
    logits = out.reshape(out.shape[0], HEADS[-1], NUM_LABELS).mean(axis=1)
    return logits


if __name__ == "__main__":
    key = jax.random.PRNGKey(0)
    k_par, k_log, k_sgl, k_mft = jax.random.split(key, 4)

    params = init_params(k_par)

    NE, NM = 2, 2                                            # enzyme / metabolite nodes
    N = NE + NM
    # per-node logit maps (as loaded from .npy: [H, W, 2]); 1600 -> 400 -> 100 -> 25
    e_logits = jax.random.normal(k_log, (NE, 1600, 1600, 2), dtype=jnp.float32)
    e_single = jax.random.normal(k_sgl, (NE, 1600), dtype=jnp.float32)
    m_feature = jax.random.normal(k_mft, (NM, M_FEA_DIM), dtype=jnp.float32)

    # synthetic dense adjacency adj[dst, src] with guaranteed self-loops
    ii = jnp.arange(N)
    adj = (((ii[:, None] + ii[None, :]) % 2 == 0) | (ii[:, None] == ii[None, :])
           ).astype(jnp.float32)

    logits = jax.jit(gat_forward)(params, e_logits, e_single, m_feature, adj)
    logits = jax.block_until_ready(logits)
    assert logits.shape == (N, NUM_LABELS)
    assert bool(jnp.all(jnp.isfinite(logits)))
    print("KERNEL_OK")
</pallas_src>

<mosaic_0001>
module attributes {stable_mosaic.version = 11 : i64} {
  func.func @_linear_affine_act_kernel(%arg0: i32, %arg1: memref<1000x2048xbf16, #tpu.memory_space<vmem>>, %arg2: memref<2048x128xbf16, #tpu.memory_space<vmem>>, %arg3: memref<1x128xf32, #tpu.memory_space<vmem>>, %arg4: memref<1x128xf32, #tpu.memory_space<vmem>>, %arg5: memref<1000x128xbf16, #tpu.memory_space<vmem>>) attributes {dimension_semantics = [#tpu.dimension_semantics<parallel>], iteration_bounds = array<i64: 5>, scalar_prefetch = 0 : i64, scratch_operands = 0 : i64, tpu.core_type = #tpu.core_type<tc>, window_params = [{transform_indices = @transform_0, window_bounds = array<i64: 1000, 2048>}, {pipeline_mode = #tpu.pipeline_mode<synchronous>, transform_indices = @transform_1, window_bounds = array<i64: 2048, 128>}, {pipeline_mode = #tpu.pipeline_mode<synchronous>, transform_indices = @transform_2, window_bounds = array<i64: 1, 128>}, {pipeline_mode = #tpu.pipeline_mode<synchronous>, transform_indices = @transform_3, window_bounds = array<i64: 1, 128>}, {transform_indices = @transform_4, window_bounds = array<i64: 1000, 128>}]} {
    %c0 = arith.constant 0 : index
    %c0_0 = arith.constant 0 : index
    %0 = vector.load %arg1[%c0, %c0_0] : memref<1000x2048xbf16, #tpu.memory_space<vmem>>, vector<1000x2048xbf16>
    %c0_1 = arith.constant 0 : index
    %c0_2 = arith.constant 0 : index
    %1 = vector.load %arg2[%c0_1, %c0_2] : memref<2048x128xbf16, #tpu.memory_space<vmem>>, vector<2048x128xbf16>
    %cst = arith.constant dense<0.000000e+00> : vector<1000x128xf32>
    %2 = tpu.matmul %0, %1, %cst {dimension_numbers = #tpu.dot_dimension_numbers<[1], [0], [0], [1], [0, 0, 1, 1], [], []>} : vector<1000x2048xbf16>, vector<2048x128xbf16>, vector<1000x128xf32> -> vector<1000x128xf32>
    %c0_3 = arith.constant 0 : index
    %c0_4 = arith.constant 0 : index
    %3 = vector.load %arg3[%c0_3, %c0_4] : memref<1x128xf32, #tpu.memory_space<vmem>>, vector<1x128xf32>
    %4 = vector.broadcast %3 : vector<1x128xf32> to vector<1000x128xf32>
    %5 = arith.mulf %2, %4 : vector<1000x128xf32>
    %c0_5 = arith.constant 0 : index
    %c0_6 = arith.constant 0 : index
    %6 = vector.load %arg4[%c0_5, %c0_6] : memref<1x128xf32, #tpu.memory_space<vmem>>, vector<1x128xf32>
    %7 = vector.broadcast %6 : vector<1x128xf32> to vector<1000x128xf32>
    %8 = arith.addf %5, %7 : vector<1000x128xf32>
    %cst_7 = arith.constant 1.000000e-01 : f32
    %9 = vector.broadcast %cst_7 : f32 to vector<1000x128xf32>
    %10 = arith.mulf %9, %8 : vector<1000x128xf32>
    %11 = arith.maximumf %8, %10 : vector<1000x128xf32>
    %12 = arith.truncf %11 : vector<1000x128xf32> to vector<1000x128xbf16>
    %c0_8 = arith.constant 0 : index
    %c0_9 = arith.constant 0 : index
    %13 = vector.load %arg5[%c0_8, %c0_9] : memref<1000x128xbf16, #tpu.memory_space<vmem>>, vector<1000x128xbf16>
    tpu.vector_store %arg5[%c0_8, %c0_9], %12 {strides = array<i32>} : memref<1000x128xbf16, #tpu.memory_space<vmem>>, vector<1000x128xbf16>,
    return
  }
  func.func @transform_0(%arg0: i32) -> (i32, i32) {
    %c0_i32 = arith.constant 0 : i32
    %c0_i32_0 = arith.constant 0 : i32
    return %arg0, %c0_i32 : i32, i32
  }
  func.func @transform_1(%arg0: i32) -> (i32, i32) {
    %c0_i32 = arith.constant 0 : i32
    %c0_i32_0 = arith.constant 0 : i32
    %c0_i32_1 = arith.constant 0 : i32
    return %c0_i32, %c0_i32_0 : i32, i32
  }
  func.func @transform_2(%arg0: i32) -> (i32, i32) {
    %c0_i32 = arith.constant 0 : i32
    %c0_i32_0 = arith.constant 0 : i32
    %c0_i32_1 = arith.constant 0 : i32
    return %c0_i32, %c0_i32_0 : i32, i32
  }
  func.func @transform_3(%arg0: i32) -> (i32, i32) {
    %c0_i32 = arith.constant 0 : i32
    %c0_i32_0 = arith.constant 0 : i32
    %c0_i32_1 = arith.constant 0 : i32
    return %c0_i32, %c0_i32_0 : i32, i32
  }
  func.func @transform_4(%arg0: i32) -> (i32, i32) {
    %c0_i32 = arith.constant 0 : i32
    %c0_i32_0 = arith.constant 0 : i32
    return %arg0, %c0_i32 : i32, i32
  }
}

module attributes {stable_mosaic.version = 11 : i64} {
  func.func @_gat_attn_kernel(%arg0: i32, %arg1: i32, %arg2: memref<8x128xbf16, #tpu.memory_space<vmem>>, %arg3: memref<2x8xf32, #tpu.memory_space<vmem>>, %arg4: memref<8x2xf32, #tpu.memory_space<vmem>>, %arg5: memref<8x8xbf16, #tpu.memory_space<vmem>>, %arg6: memref<1x128xf32, #tpu.memory_space<vmem>>, %arg7: memref<8x128xf32, #tpu.memory_space<vmem>>, %arg8: memref<8x2xf32, #tpu.memory_space<vmem>>, %arg9: memref<8x2xf32, #tpu.memory_space<vmem>>, %arg10: memref<8x128xf32, #tpu.memory_space<vmem>>) attributes {dimension_semantics = [#tpu.dimension_semantics<parallel>, #tpu.dimension_semantics<arbitrary>], iteration_bounds = array<i64: 1, 1>, scalar_prefetch = 0 : i64, scratch_operands = 3 : i64, tpu.core_type = #tpu.core_type<tc>, window_params = [{transform_indices = @transform_0, window_bounds = array<i64: 8, 128>}, {transform_indices = @transform_1, window_bounds = array<i64: 2, 8>}, {transform_indices = @transform_2, window_bounds = array<i64: 8, 2>}, {transform_indices = @transform_3, window_bounds = array<i64: 8, 8>}, {pipeline_mode = #tpu.pipeline_mode<synchronous>, transform_indices = @transform_4, window_bounds = array<i64: 1, 128>}, {transform_indices = @transform_5, window_bounds = array<i64: 8, 128>}]} {
    %c0_i32 = arith.constant 0 : i32
    %0 = arith.cmpi eq, %arg1, %c0_i32 : i32
    %1 = arith.extui %0 : i1 to i32
    %c0_i32_0 = arith.constant 0 : i32
    %2 = arith.cmpi ne, %1, %c0_i32_0 : i32
    scf.if %2 {
      %cst_48 = arith.constant -1.000000e+30 : f32
      %77 = vector.broadcast %cst_48 : f32 to vector<8x2xf32>
      %c0_49 = arith.constant 0 : index
      %c0_50 = arith.constant 0 : index
      %78 = vector.load %arg8[%c0_49, %c0_50] : memref<8x2xf32, #tpu.memory_space<vmem>>, vector<8x2xf32>
      tpu.vector_store %arg8[%c0_49, %c0_50], %77 {strides = array<i32>} : memref<8x2xf32, #tpu.memory_space<vmem>>, vector<8x2xf32>,
      %cst_51 = arith.constant 0.000000e+00 : f32
      %79 = vector.broadcast %cst_51 : f32 to vector<8x2xf32>
      %c0_52 = arith.constant 0 : index
      %c0_53 = arith.constant 0 : index
      %80 = vector.load %arg9[%c0_52, %c0_53] : memref<8x2xf32, #tpu.memory_space<vmem>>, vector<8x2xf32>
      tpu.vector_store %arg9[%c0_52, %c0_53], %79 {strides = array<i32>} : memref<8x2xf32, #tpu.memory_space<vmem>>, vector<8x2xf32>,
      %cst_54 = arith.constant 0.000000e+00 : f32
      %81 = vector.broadcast %cst_54 : f32 to vector<8x128xf32>
      %c0_55 = arith.constant 0 : index
      %c0_56 = arith.constant 0 : index
      %82 = vector.load %arg10[%c0_55, %c0_56] : memref<8x128xf32, #tpu.memory_space<vmem>>, vector<8x128xf32>
      tpu.vector_store %arg10[%c0_55, %c0_56], %81 {strides = array<i32>} : memref<8x128xf32, #tpu.memory_space<vmem>>, vector<8x128xf32>,
    } else {
    }
    %c0 = arith.constant 0 : index
    %c0_1 = arith.constant 0 : index
    %3 = vector.load %arg5[%c0, %c0_1] : memref<8x8xbf16, #tpu.memory_space<vmem>>, vector<8x8xbf16>
    %cst = arith.constant 0.000000e+00 : bf16
    %4 = vector.broadcast %cst : bf16 to vector<8x8xbf16>
    %5 = arith.cmpf ogt, %3, %4 : vector<8x8xbf16>
    %c0_2 = arith.constant 0 : index
    %c0_3 = arith.constant 0 : index
    %6 = vector.load %arg3[%c0_2, %c0_3] : memref<2x8xf32, #tpu.memory_space<vmem>>, vector<1x8xf32>
    %c0_4 = arith.constant 0 : index
    %c0_5 = arith.constant 0 : index
    %7 = vector.load %arg4[%c0_4, %c0_5] : memref<8x2xf32, #tpu.memory_space<vmem>>, vector<8x1xf32>
    %8 = vector.broadcast %7 : vector<8x1xf32> to vector<8x8xf32>
    %9 = vector.broadcast %6 : vector<1x8xf32> to vector<8x8xf32>
    %10 = arith.addf %8, %9 : vector<8x8xf32>
    %cst_6 = arith.constant 2.000000e-01 : f32
    %11 = vector.broadcast %cst_6 : f32 to vector<8x8xf32>
    %12 = arith.mulf %11, %10 : vector<8x8xf32>
    %13 = arith.maximumf %10, %12 : vector<8x8xf32>
    %cst_7 = arith.constant -1.000000e+30 : f32
    %14 = vector.broadcast %cst_7 : f32 to vector<8x8xf32>
    %15 = arith.select %5, %13, %14 : vector<8x8xi1>, vector<8x8xf32>
    %c0_8 = arith.constant 0 : index
    %c0_9 = arith.constant 0 : index
    %16 = vector.load %arg8[%c0_8, %c0_9] : memref<8x2xf32, #tpu.memory_space<vmem>>, vector<8x1xf32>
    %cst_10 = arith.constant dense<0xFF800000> : vector<8xf32>
    %17 = vector.multi_reduction <maximumf>, %15, %cst_10 [1] : vector<8x8xf32> to vector<8xf32>
    %18 = vector.shape_cast %17 : vector<8xf32> to vector<8x1xf32>
    %19 = arith.maximumf %16, %18 : vector<8x1xf32>
    %20 = arith.subf %16, %19 : vector<8x1xf32>
    %21 = math.exp %20 : vector<8x1xf32>
    %22 = vector.broadcast %19 : vector<8x1xf32> to vector<8x8xf32>
    %23 = arith.subf %15, %22 : vector<8x8xf32>
    %24 = math.exp %23 : vector<8x8xf32>
    %c0_11 = arith.constant 0 : index
    %c0_12 = arith.constant 0 : index
    %25 = vector.load %arg9[%c0_11, %c0_12] : memref<8x2xf32, #tpu.memory_space<vmem>>, vector<8x1xf32>
    %26 = arith.mulf %21, %25 : vector<8x1xf32>
    %cst_13 = arith.constant dense<0.000000e+00> : vector<8xf32>
    %27 = vector.multi_reduction <add>, %24, %cst_13 [1] : vector<8x8xf32> to vector<8xf32>
    %28 = vector.shape_cast %27 : vector<8xf32> to vector<8x1xf32>
    %29 = arith.addf %26, %28 : vector<8x1xf32>
    %c0_14 = arith.constant 0 : index
    %c0_15 = arith.constant 0 : index
    %30 = vector.load %arg9[%c0_14, %c0_15] : memref<8x2xf32, #tpu.memory_space<vmem>>, vector<8x1xf32>
    tpu.vector_store %arg9[%c0_14, %c0_15], %29 {strides = array<i32>} : memref<8x2xf32, #tpu.memory_space<vmem>>, vector<8x1xf32>,
    %c0_16 = arith.constant 0 : index
    %c0_17 = arith.constant 0 : index
    %31 = vector.load %arg10[%c0_16, %c0_17] : memref<8x128xf32, #tpu.memory_space<vmem>>, vector<8x64xf32>
    %32 = vector.broadcast %21 : vector<8x1xf32> to vector<8x64xf32>
    %33 = arith.mulf %32, %31 : vector<8x64xf32>
    %34 = arith.truncf %24 : vector<8x8xf32> to vector<8x8xbf16>
    %c0_18 = arith.constant 0 : index
    %c0_19 = arith.constant 0 : index
    %35 = vector.load %arg2[%c0_18, %c0_19] : memref<8x128xbf16, #tpu.memory_space<vmem>>, vector<8x64xbf16>
    %cst_20 = arith.constant dense<0.000000e+00> : vector<8x64xf32>
    %36 = tpu.matmul %34, %35, %cst_20 {dimension_numbers = #tpu.dot_dimension_numbers<[1], [0], [0], [1], [0, 0, 1, 1], [], []>} : vector<8x8xbf16>, vector<8x64xbf16>, vector<8x64xf32> -> vector<8x64xf32>
    %37 = arith.addf %33, %36 : vector<8x64xf32>
    %c0_21 = arith.constant 0 : index
    %c0_22 = arith.constant 0 : index
    %38 = vector.load %arg10[%c0_21, %c0_22] : memref<8x128xf32, #tpu.memory_space<vmem>>, vector<8x64xf32>
    tpu.vector_store %arg10[%c0_21, %c0_22], %37 {strides = array<i32>} : memref<8x128xf32, #tpu.memory_space<vmem>>, vector<8x64xf32>,
    %c0_23 = arith.constant 0 : index
    %c0_24 = arith.constant 0 : index
    %39 = vector.load %arg8[%c0_23, %c0_24] : memref<8x2xf32, #tpu.memory_space<vmem>>, vector<8x1xf32>
    tpu.vector_store %arg8[%c0_23, %c0_24], %19 {strides = array<i32>} : memref<8x2xf32, #tpu.memory_space<vmem>>, vector<8x1xf32>,
    %c1 = arith.constant 1 : index
    %c0_25 = arith.constant 0 : index
    %40 = vector.load %arg3[%c1, %c0_25] : memref<2x8xf32, #tpu.memory_space<vmem>>, vector<1x8xf32>
    %c0_26 = arith.constant 0 : index
    %c1_27 = arith.constant 1 : index
    %41 = vector.load %arg4[%c0_26, %c1_27] : memref<8x2xf32, #tpu.memory_space<vmem>>, vector<8x1xf32>
    %42 = vector.broadcast %41 : vector<8x1xf32> to vector<8x8xf32>
    %43 = vector.broadcast %40 : vector<1x8xf32> to vector<8x8xf32>
    %44 = arith.addf %42, %43 : vector<8x8xf32>
    %cst_28 = arith.constant 2.000000e-01 : f32
    %45 = vector.broadcast %cst_28 : f32 to vector<8x8xf32>
    %46 = arith.mulf %45, %44 : vector<8x8xf32>
    %47 = arith.maximumf %44, %46 : vector<8x8xf32>
    %cst_29 = arith.constant -1.000000e+30 : f32
    %48 = vector.broadcast %cst_29 : f32 to vector<8x8xf32>
    %49 = arith.select %5, %47, %48 : vector<8x8xi1>, vector<8x8xf32>
    %c0_30 = arith.constant 0 : index
    %c1_31 = arith.constant 1 : index
    %50 = vector.load %arg8[%c0_30, %c1_31] : memref<8x2xf32, #tpu.memory_space<vmem>>, vector<8x1xf32>
    %cst_32 = arith.constant dense<0xFF800000> : vector<8xf32>
    %51 = vector.multi_reduction <maximumf>, %49, %cst_32 [1] : vector<8x8xf32> to vector<8xf32>
    %52 = vector.shape_cast %51 : vector<8xf32> to vector<8x1xf32>
    %53 = arith.maximumf %50, %52 : vector<8x1xf32>
    %54 = arith.subf %50, %53 : vector<8x1xf32>
    %55 = math.exp %54 : vector<8x1xf32>
    %56 = vector.broadcast %53 : vector<8x1xf32> to vector<8x8xf32>
    %57 = arith.subf %49, %56 : vector<8x8xf32>
    %58 = math.exp %57 : vector<8x8xf32>
    %c0_33 = arith.constant 0 : index
    %c1_34 = arith.constant 1 : index
    %59 = vector.load %arg9[%c0_33, %c1_34] : memref<8x2xf32, #tpu.memory_space<vmem>>, vector<8x1xf32>
    %60 = arith.mulf %55, %59 : vector<8x1xf32>
    %cst_35 = arith.constant dense<0.000000e+00> : vector<8xf32>
    %61 = vector.multi_reduction <add>, %58, %cst_35 [1] : vector<8x8xf32> to vector<8xf32>
    %62 = vector.shape_cast %61 : vector<8xf32> to vector<8x1xf32>
    %63 = arith.addf %60, %62 : vector<8x1xf32>
    %c0_36 = arith.constant 0 : index
    %c1_37 = arith.constant 1 : index
    %64 = vector.load %arg9[%c0_36, %c1_37] : memref<8x2xf32, #tpu.memory_space<vmem>>, vector<8x1xf32>
    tpu.vector_store %arg9[%c0_36, %c1_37], %63 {strides = array<i32>} : memref<8x2xf32, #tpu.memory_space<vmem>>, vector<8x1xf32>,
    %c0_38 = arith.constant 0 : index
    %c64 = arith.constant 64 : index
    %65 = vector.load %arg10[%c0_38, %c64] : memref<8x128xf32, #tpu.memory_space<vmem>>, vector<8x64xf32>
    %66 = vector.broadcast %55 : vector<8x1xf32> to vector<8x64xf32>
    %67 = arith.mulf %66, %65 : vector<8x64xf32>
    %68 = arith.truncf %58 : vector<8x8xf32> to vector<8x8xbf16>
    %c0_39 = arith.constant 0 : index
    %c64_40 = arith.constant 64 : index
    %69 = vector.load %arg2[%c0_39, %c64_40] : memref<8x128xbf16, #tpu.memory_space<vmem>>, vector<8x64xbf16>
    %cst_41 = arith.constant dense<0.000000e+00> : vector<8x64xf32>
    %70 = tpu.matmul %68, %69, %cst_41 {dimension_numbers = #tpu.dot_dimension_numbers<[1], [0], [0], [1], [0, 0, 1, 1], [], []>} : vector<8x8xbf16>, vector<8x64xbf16>, vector<8x64xf32> -> vector<8x64xf32>
    %71 = arith.addf %67, %70 : vector<8x64xf32>
    %c0_42 = arith.constant 0 : index
    %c64_43 = arith.constant 64 : index
    %72 = vector.load %arg10[%c0_42, %c64_43] : memref<8x128xf32, #tpu.memory_space<vmem>>, vector<8x64xf32>
    tpu.vector_store %arg10[%c0_42, %c64_43], %71 {strides = array<i32>} : memref<8x128xf32, #tpu.memory_space<vmem>>, vector<8x64xf32>,
    %c0_44 = arith.constant 0 : index
    %c1_45 = arith.constant 1 : index
    %73 = vector.load %arg8[%c0_44, %c1_45] : memref<8x2xf32, #tpu.memory_space<vmem>>, vector<8x1xf32>
    tpu.vector_store %arg8[%c0_44, %c1_45], %53 {strides = array<i32>} : memref<8x2xf32, #tpu.memory_space<vmem>>, vector<8x1xf32>,
    %c0_i32_46 = arith.constant 0 : i32
    %74 = arith.cmpi eq, %arg1, %c0_i32_46 : i32
    %75 = arith.extui %74 : i1 to i32
    %c0_i32_47 = arith.constant 0 : i32
    %76 = arith.cmpi ne, %75, %c0_i32_47 : i32
    scf.if %76 {
      %c0_48 = arith.constant 0 : index
      %c0_49 = arith.constant 0 : index
      %77 = vector.load %arg9[%c0_48, %c0_49] : memref<8x2xf32, #tpu.memory_space<vmem>>, vector<8x1xf32>
      %cst_50 = arith.constant 9.99999968E-21 : f32
      %78 = vector.broadcast %cst_50 : f32 to vector<8x1xf32>
      %79 = arith.maximumf %77, %78 : vector<8x1xf32>
      %80 = tpu.reciprocal %79 {approx = true} : vector<8x1xf32> -> vector<8x1xf32>
      %c0_51 = arith.constant 0 : index
      %c0_52 = arith.constant 0 : index
      %81 = vector.load %arg10[%c0_51, %c0_52] : memref<8x128xf32, #tpu.memory_space<vmem>>, vector<8x64xf32>
      %82 = vector.broadcast %80 : vector<8x1xf32> to vector<8x64xf32>
      %83 = arith.mulf %81, %82 : vector<8x64xf32>
      %c0_53 = arith.constant 0 : index
      %c1_54 = arith.constant 1 : index
      %84 = vector.load %arg9[%c0_53, %c1_54] : memref<8x2xf32, #tpu.memory_space<vmem>>, vector<8x1xf32>
      %cst_55 = arith.constant 9.99999968E-21 : f32
      %85 = vector.broadcast %cst_55 : f32 to vector<8x1xf32>
      %86 = arith.maximumf %84, %85 : vector<8x1xf32>
      %87 = tpu.reciprocal %86 {approx = true} : vector<8x1xf32> -> vector<8x1xf32>
      %c0_56 = arith.constant 0 : index
      %c64_57 = arith.constant 64 : index
      %88 = vector.load %arg10[%c0_56, %c64_57] : memref<8x128xf32, #tpu.memory_space<vmem>>, vector<8x64xf32>
      %89 = vector.broadcast %87 : vector<8x1xf32> to vector<8x64xf32>
      %90 = arith.mulf %88, %89 : vector<8x64xf32>
      %91 = tpu.concatenate %83, %90 in 1 : vector<8x64xf32>, vector<8x64xf32> -> vector<8x128xf32>
      %c0_58 = arith.constant 0 : index
      %c0_59 = arith.constant 0 : index
      %92 = vector.load %arg6[%c0_58, %c0_59] : memref<1x128xf32, #tpu.memory_space<vmem>>, vector<1x128xf32>
      %93 = vector.broadcast %92 : vector<1x128xf32> to vector<8x128xf32>
      %94 = arith.addf %91, %93 : vector<8x128xf32>
      %cst_60 = arith.constant 0.000000e+00 : f32
      %95 = vector.broadcast %cst_60 : f32 to vector<8x128xf32>
      %96 = arith.cmpf ogt, %94, %95 : vector<8x128xf32>
      %97 = math.exp %94 : vector<8x128xf32>
      %cst_61 = arith.constant 1.000000e+00 : f32
      %98 = vector.broadcast %cst_61 : f32 to vector<8x128xf32>
      %99 = arith.subf %97, %98 : vector<8x128xf32>
      %100 = arith.select %96, %94, %99 : vector<8x128xi1>, vector<8x128xf32>
      %c0_62 = arith.constant 0 : index
      %c0_63 = arith.constant 0 : index
      %101 = vector.load %arg7[%c0_62, %c0_63] : memref<8x128xf32, #tpu.memory_space<vmem>>, vector<8x128xf32>
      tpu.vector_store %arg7[%c0_62, %c0_63], %100 {strides = array<i32>} : memref<8x128xf32, #tpu.memory_space<vmem>>, vector<8x128xf32>,
    } else {
    }
    return
  }
  func.func @transform_0(%arg0: i32, %arg1: i32) -> (i32, i32) {
    %c0_i32 = arith.constant 0 : i32
    %c0_i32_0 = arith.constant 0 : i32
    return %arg1, %c0_i32 : i32, i32
  }
  func.func @transform_1(%arg0: i32, %arg1: i32) -> (i32, i32) {
    %c0_i32 = arith.constant 0 : i32
    %c0_i32_0 = arith.constant 0 : i32
    return %c0_i32, %arg1 : i32, i32
  }
  func.func @transform_2(%arg0: i32, %arg1: i32) -> (i32, i32) {
    %c0_i32 = arith.constant 0 : i32
    %c0_i32_0 = arith.constant 0 : i32
    return %arg0, %c0_i32 : i32, i32
  }
  func.func @transform_3(%arg0: i32, %arg1: i32) -> (i32, i32) {
    %c0_i32 = arith.constant 0 : i32
    return %arg0, %arg1 : i32, i32
  }
  func.func @transform_4(%arg0: i32, %arg1: i32) -> (i32, i32) {
    %c0_i32 = arith.constant 0 : i32
    %c0_i32_0 = arith.constant 0 : i32
    %c0_i32_1 = arith.constant 0 : i32
    return %c0_i32, %c0_i32_0 : i32, i32
  }
  func.func @transform_5(%arg0: i32, %arg1: i32) -> (i32, i32) {
    %c0_i32 = arith.constant 0 : i32
    %c0_i32_0 = arith.constant 0 : i32
    return %arg0, %c0_i32 : i32, i32
  }
}

module attributes {stable_mosaic.version = 11 : i64} {
  func.func @_gat_attn_kernel(%arg0: i32, %arg1: i32, %arg2: memref<8x8xbf16, #tpu.memory_space<vmem>>, %arg3: memref<1x8xf32, #tpu.memory_space<vmem>>, %arg4: memref<8x1xf32, #tpu.memory_space<vmem>>, %arg5: memref<8x8xbf16, #tpu.memory_space<vmem>>, %arg6: memref<1x8xf32, #tpu.memory_space<vmem>>, %arg7: memref<8x8xf32, #tpu.memory_space<vmem>>, %arg8: memref<8x1xf32, #tpu.memory_space<vmem>>, %arg9: memref<8x1xf32, #tpu.memory_space<vmem>>, %arg10: memref<8x8xf32, #tpu.memory_space<vmem>>) attributes {dimension_semantics = [#tpu.dimension_semantics<parallel>, #tpu.dimension_semantics<arbitrary>], iteration_bounds = array<i64: 1, 1>, scalar_prefetch = 0 : i64, scratch_operands = 3 : i64, tpu.core_type = #tpu.core_type<tc>, window_params = [{transform_indices = @transform_0, window_bounds = array<i64: 8, 8>}, {transform_indices = @transform_1, window_bounds = array<i64: 1, 8>}, {transform_indices = @transform_2, window_bounds = array<i64: 8, 1>}, {transform_indices = @transform_3, window_bounds = array<i64: 8, 8>}, {pipeline_mode = #tpu.pipeline_mode<synchronous>, transform_indices = @transform_4, window_bounds = array<i64: 1, 8>}, {transform_indices = @transform_5, window_bounds = array<i64: 8, 8>}]} {
    %c0_i32 = arith.constant 0 : i32
    %0 = arith.cmpi eq, %arg1, %c0_i32 : i32
    %1 = arith.extui %0 : i1 to i32
    %c0_i32_0 = arith.constant 0 : i32
    %2 = arith.cmpi ne, %1, %c0_i32_0 : i32
    scf.if %2 {
      %cst_27 = arith.constant -1.000000e+30 : f32
      %43 = vector.broadcast %cst_27 : f32 to vector<8x1xf32>
      %c0_28 = arith.constant 0 : index
      %c0_29 = arith.constant 0 : index
      %44 = vector.load %arg8[%c0_28, %c0_29] : memref<8x1xf32, #tpu.memory_space<vmem>>, vector<8x1xf32>
      tpu.vector_store %arg8[%c0_28, %c0_29], %43 {strides = array<i32>} : memref<8x1xf32, #tpu.memory_space<vmem>>, vector<8x1xf32>,
      %cst_30 = arith.constant 0.000000e+00 : f32
      %45 = vector.broadcast %cst_30 : f32 to vector<8x1xf32>
      %c0_31 = arith.constant 0 : index
      %c0_32 = arith.constant 0 : index
      %46 = vector.load %arg9[%c0_31, %c0_32] : memref<8x1xf32, #tpu.memory_space<vmem>>, vector<8x1xf32>
      tpu.vector_store %arg9[%c0_31, %c0_32], %45 {strides = array<i32>} : memref<8x1xf32, #tpu.memory_space<vmem>>, vector<8x1xf32>,
      %cst_33 = arith.constant 0.000000e+00 : f32
      %47 = vector.broadcast %cst_33 : f32 to vector<8x8xf32>
      %c0_34 = arith.constant 0 : index
      %c0_35 = arith.constant 0 : index
      %48 = vector.load %arg10[%c0_34, %c0_35] : memref<8x8xf32, #tpu.memory_space<vmem>>, vector<8x8xf32>
      tpu.vector_store %arg10[%c0_34, %c0_35], %47 {strides = array<i32>} : memref<8x8xf32, #tpu.memory_space<vmem>>, vector<8x8xf32>,
    } else {
    }
    %c0 = arith.constant 0 : index
    %c0_1 = arith.constant 0 : index
    %3 = vector.load %arg5[%c0, %c0_1] : memref<8x8xbf16, #tpu.memory_space<vmem>>, vector<8x8xbf16>
    %cst = arith.constant 0.000000e+00 : bf16
    %4 = vector.broadcast %cst : bf16 to vector<8x8xbf16>
    %5 = arith.cmpf ogt, %3, %4 : vector<8x8xbf16>
    %c0_2 = arith.constant 0 : index
    %c0_3 = arith.constant 0 : index
    %6 = vector.load %arg3[%c0_2, %c0_3] : memref<1x8xf32, #tpu.memory_space<vmem>>, vector<1x8xf32>
    %c0_4 = arith.constant 0 : index
    %c0_5 = arith.constant 0 : index
    %7 = vector.load %arg4[%c0_4, %c0_5] : memref<8x1xf32, #tpu.memory_space<vmem>>, vector<8x1xf32>
    %8 = vector.broadcast %7 : vector<8x1xf32> to vector<8x8xf32>
    %9 = vector.broadcast %6 : vector<1x8xf32> to vector<8x8xf32>
    %10 = arith.addf %8, %9 : vector<8x8xf32>
    %cst_6 = arith.constant 2.000000e-01 : f32
    %11 = vector.broadcast %cst_6 : f32 to vector<8x8xf32>
    %12 = arith.mulf %11, %10 : vector<8x8xf32>
    %13 = arith.maximumf %10, %12 : vector<8x8xf32>
    %cst_7 = arith.constant -1.000000e+30 : f32
    %14 = vector.broadcast %cst_7 : f32 to vector<8x8xf32>
    %15 = arith.select %5, %13, %14 : vector<8x8xi1>, vector<8x8xf32>
    %c0_8 = arith.constant 0 : index
    %c0_9 = arith.constant 0 : index
    %16 = vector.load %arg8[%c0_8, %c0_9] : memref<8x1xf32, #tpu.memory_space<vmem>>, vector<8x1xf32>
    %cst_10 = arith.constant dense<0xFF800000> : vector<8xf32>
    %17 = vector.multi_reduction <maximumf>, %15, %cst_10 [1] : vector<8x8xf32> to vector<8xf32>
    %18 = vector.shape_cast %17 : vector<8xf32> to vector<8x1xf32>
    %19 = arith.maximumf %16, %18 : vector<8x1xf32>
    %20 = arith.subf %16, %19 : vector<8x1xf32>
    %21 = math.exp %20 : vector<8x1xf32>
    %22 = vector.broadcast %19 : vector<8x1xf32> to vector<8x8xf32>
    %23 = arith.subf %15, %22 : vector<8x8xf32>
    %24 = math.exp %23 : vector<8x8xf32>
    %c0_11 = arith.constant 0 : index
    %c0_12 = arith.constant 0 : index
    %25 = vector.load %arg9[%c0_11, %c0_12] : memref<8x1xf32, #tpu.memory_space<vmem>>, vector<8x1xf32>
    %26 = arith.mulf %21, %25 : vector<8x1xf32>
    %cst_13 = arith.constant dense<0.000000e+00> : vector<8xf32>
    %27 = vector.multi_reduction <add>, %24, %cst_13 [1] : vector<8x8xf32> to vector<8xf32>
    %28 = vector.shape_cast %27 : vector<8xf32> to vector<8x1xf32>
    %29 = arith.addf %26, %28 : vector<8x1xf32>
    %c0_14 = arith.constant 0 : index
    %c0_15 = arith.constant 0 : index
    %30 = vector.load %arg9[%c0_14, %c0_15] : memref<8x1xf32, #tpu.memory_space<vmem>>, vector<8x1xf32>
    tpu.vector_store %arg9[%c0_14, %c0_15], %29 {strides = array<i32>} : memref<8x1xf32, #tpu.memory_space<vmem>>, vector<8x1xf32>,
    %c0_16 = arith.constant 0 : index
    %c0_17 = arith.constant 0 : index
    %31 = vector.load %arg10[%c0_16, %c0_17] : memref<8x8xf32, #tpu.memory_space<vmem>>, vector<8x8xf32>
    %32 = vector.broadcast %21 : vector<8x1xf32> to vector<8x8xf32>
    %33 = arith.mulf %32, %31 : vector<8x8xf32>
    %34 = arith.truncf %24 : vector<8x8xf32> to vector<8x8xbf16>
    %c0_18 = arith.constant 0 : index
    %c0_19 = arith.constant 0 : index
    %35 = vector.load %arg2[%c0_18, %c0_19] : memref<8x8xbf16, #tpu.memory_space<vmem>>, vector<8x8xbf16>
    %cst_20 = arith.constant dense<0.000000e+00> : vector<8x8xf32>
    %36 = tpu.matmul %34, %35, %cst_20 {dimension_numbers = #tpu.dot_dimension_numbers<[1], [0], [0], [1], [0, 0, 1, 1], [], []>} : vector<8x8xbf16>, vector<8x8xbf16>, vector<8x8xf32> -> vector<8x8xf32>
    %37 = arith.addf %33, %36 : vector<8x8xf32>
    %c0_21 = arith.constant 0 : index
    %c0_22 = arith.constant 0 : index
    %38 = vector.load %arg10[%c0_21, %c0_22] : memref<8x8xf32, #tpu.memory_space<vmem>>, vector<8x8xf32>
    tpu.vector_store %arg10[%c0_21, %c0_22], %37 {strides = array<i32>} : memref<8x8xf32, #tpu.memory_space<vmem>>, vector<8x8xf32>,
    %c0_23 = arith.constant 0 : index
    %c0_24 = arith.constant 0 : index
    %39 = vector.load %arg8[%c0_23, %c0_24] : memref<8x1xf32, #tpu.memory_space<vmem>>, vector<8x1xf32>
    tpu.vector_store %arg8[%c0_23, %c0_24], %19 {strides = array<i32>} : memref<8x1xf32, #tpu.memory_space<vmem>>, vector<8x1xf32>,
    %c0_i32_25 = arith.constant 0 : i32
    %40 = arith.cmpi eq, %arg1, %c0_i32_25 : i32
    %41 = arith.extui %40 : i1 to i32
    %c0_i32_26 = arith.constant 0 : i32
    %42 = arith.cmpi ne, %41, %c0_i32_26 : i32
    scf.if %42 {
      %c0_27 = arith.constant 0 : index
      %c0_28 = arith.constant 0 : index
      %43 = vector.load %arg9[%c0_27, %c0_28] : memref<8x1xf32, #tpu.memory_space<vmem>>, vector<8x1xf32>
      %cst_29 = arith.constant 9.99999968E-21 : f32
      %44 = vector.broadcast %cst_29 : f32 to vector<8x1xf32>
      %45 = arith.maximumf %43, %44 : vector<8x1xf32>
      %46 = tpu.reciprocal %45 {approx = true} : vector<8x1xf32> -> vector<8x1xf32>
      %c0_30 = arith.constant 0 : index
      %c0_31 = arith.constant 0 : index
      %47 = vector.load %arg10[%c0_30, %c0_31] : memref<8x8xf32, #tpu.memory_space<vmem>>, vector<8x8xf32>
      %48 = vector.broadcast %46 : vector<8x1xf32> to vector<8x8xf32>
      %49 = arith.mulf %47, %48 : vector<8x8xf32>
      %c0_32 = arith.constant 0 : index
      %c0_33 = arith.constant 0 : index
      %50 = vector.load %arg6[%c0_32, %c0_33] : memref<1x8xf32, #tpu.memory_space<vmem>>, vector<1x8xf32>
      %51 = vector.broadcast %50 : vector<1x8xf32> to vector<8x8xf32>
      %52 = arith.addf %49, %51 : vector<8x8xf32>
      %c0_34 = arith.constant 0 : index
      %c0_35 = arith.constant 0 : index
      %53 = vector.load %arg7[%c0_34, %c0_35] : memref<8x8xf32, #tpu.memory_space<vmem>>, vector<8x8xf32>
      tpu.vector_store %arg7[%c0_34, %c0_35], %52 {strides = array<i32>} : memref<8x8xf32, #tpu.memory_space<vmem>>, vector<8x8xf32>,
    } else {
    }
    return
  }
  func.func @transform_0(%arg0: i32, %arg1: i32) -> (i32, i32) {
    %c0_i32 = arith.constant 0 : i32
    %c0_i32_0 = arith.constant 0 : i32
    return %arg1, %c0_i32 : i32, i32
  }
  func.func @transform_1(%arg0: i32, %arg1: i32) -> (i32, i32) {
    %c0_i32 = arith.constant 0 : i32
    %c0_i32_0 = arith.constant 0 : i32
    return %c0_i32, %arg1 : i32, i32
  }
  func.func @transform_2(%arg0: i32, %arg1: i32) -> (i32, i32) {
    %c0_i32 = arith.constant 0 : i32
    %c0_i32_0 = arith.constant 0 : i32
    return %arg0, %c0_i32 : i32, i32
  }
  func.func @transform_3(%arg0: i32, %arg1: i32) -> (i32, i32) {
    %c0_i32 = arith.constant 0 : i32
    return %arg0, %arg1 : i32, i32
  }
  func.func @transform_4(%arg0: i32, %arg1: i32) -> (i32, i32) {
    %c0_i32 = arith.constant 0 : i32
    %c0_i32_0 = arith.constant 0 : i32
    %c0_i32_1 = arith.constant 0 : i32
    return %c0_i32, %c0_i32_0 : i32, i32
  }
  func.func @transform_5(%arg0: i32, %arg1: i32) -> (i32, i32) {
    %c0_i32 = arith.constant 0 : i32
    %c0_i32_0 = arith.constant 0 : i32
    return %arg0, %c0_i32 : i32, i32
  }
}

</mosaic_0001>

<bundles_post_ra>
// kernel: tile.33
= control target key start
LH: loop header
LB: loop body
LE: loop exit
PB: predicated region body
PF: predicated region fallthrough
CT: control target
= control target key end

     0   :  { %s64_s0 = inlined_call_operand.vmem [shape: f32[2], index: 0, kind: input, shape index: {}]   ;;  %s65_s1 = inlined_call_operand.vmem [shape: f32[64,2], index: 1, kind: output, shape index: {}]  }
   0x1   :  { %v4_v0 = vld [vmem:[%s64_s0] ss:$0 sm:$0xff] }
   0x2   :  { %5 = vst [vmem:[%s65_s1] sm:$0xff] %v4_v0  ;;  %20 = vst [vmem:[%s65_s1 + $0x8] sm:$0xff] %v4_v0 }
   0x3   :  { %21 = vst [vmem:[%s65_s1 + $0x10] sm:$0xff] %v4_v0  ;;  %22 = vst [vmem:[%s65_s1 + $0x18] sm:$0xff] %v4_v0 }
   0x4   :  { %23 = vst [vmem:[%s65_s1 + $0x20] sm:$0xff] %v4_v0  ;;  %24 = vst [vmem:[%s65_s1 + $0x28] sm:$0xff] %v4_v0 }
   0x5   :  { %25 = vst [vmem:[%s65_s1 + $0x30] sm:$0xff] %v4_v0  ;;  %26 = vst [vmem:[%s65_s1 + $0x38] sm:$0xff] %v4_v0 }

// kernel: tile.38
= control target key start
LH: loop header
LB: loop body
LE: loop exit
PB: predicated region body
PF: predicated region fallthrough
CT: control target
= control target key end

     0   :  { %s551_s10 = smov 126   ;;  %s552_s11 = smov 122   ;;  %vm4_vm0 = vcmask 15360   ;;  %s829_s0 = inlined_call_operand.vmem [shape: f32[64,2], index: 0, kind: input, shape index: {}]   ;;  %s830_s1 = inlined_call_operand.hbm [shape: f32[1,128], index: 1, kind: output, shape index: {}]  }
   0x1   :  { %v400_v0 = vld [vmem:[%s829_s0 + $0x3f] sm:$0x1]   ;;  %v402_v1 = vld [vmem:[%s829_s0 + $0x3d] sm:$0x1]   ;;  %v401_v2 = vld [vmem:[%s829_s0 + $0x3e] sm:$0x1]  }
   0x2   :  { %8 = vrot.lane.b32.xlu0 %v400_v0, %s551_s10  ;;  %20 = vrot.lane.b32.xlu1 %v402_v1, %s552_s11  ;;  %v403_v3 = vld [vmem:[%s829_s0 + $0x3c] sm:$0x1]   ;;  %s553_s16 = smov 124   ;;  %s554_s17 = smov 120   ;;  %v404_v4 = vld [vmem:[%s829_s0 + $0x3b] sm:$0x1]  }
   0x3   :  { %v405_v5 = vld [vmem:[%s829_s0 + $0x3a] sm:$0x1]   ;;  %s555_s22 = smov 118   ;;  %s556_s23 = smov 116   ;;  %v406_v6 = vld [vmem:[%s829_s0 + $0x39] sm:$0x1]  }
   0x4   :  { %v407_v7 = vld [vmem:[%s829_s0 + $0x38] sm:$0x1]   ;;  %s557_s28 = smov 114   ;;  %s558_s29 = smov 112   ;;  %v408_v8 = vld [vmem:[%s829_s0 + $0x37] sm:$0x1]  }
   0x5   :  { %v409_v9 = vld [vmem:[%s829_s0 + $0x36] sm:$0x1]   ;;  %s559_s5 = smov 110   ;;  %s560_s6 = smov 108   ;;  %v410_v10 = vld [vmem:[%s829_s0 + $0x35] sm:$0x1]  }
   0x6   :  { %14 = vrot.lane.b32.xlu0 %v401_v2, %s553_s16  ;;  %26 = vrot.lane.b32.xlu1 %v403_v3, %s554_s17  ;;  %v411_v11 = vld [vmem:[%s829_s0 + $0x34] sm:$0x1]   ;;  %s561_s11 = smov 106   ;;  %s562_s12 = smov 104   ;;  %v412_v12 = vld [vmem:[%s829_s0 + $0x33] sm:$0x1]  }
   0x7   :  { %v413_v13 = vld [vmem:[%s829_s0 + $0x32] sm:$0x1]   ;;  %s563_s17 = smov 102   ;;  %s564_s18 = smov 100   ;;  %v414_v14 = vld [vmem:[%s829_s0 + $0x31] sm:$0x1]  }
   0x8   :  { %v415_v15 = vld [vmem:[%s829_s0 + $0x30] sm:$0x1]   ;;  %v3_v16 = vld [vmem:[%s829_s0] sm:$0x1]   ;;  %s565_s25 = smov 98   ;;  %s566_s26 = smov 96  }
   0x9   :  { %v416_v17 = vld [vmem:[%s829_s0 + $0x2f] sm:$0x1]   ;;  %v417_v18 = vld [vmem:[%s829_s0 + $0x2e] sm:$0x1]   ;;  %5 = vst.msk [vmem:[#allocation2] sm:$0x1] %vm4_vm0, %v3_v16  }
   0xa   :  { %32 = vrot.lane.b32.xlu0 %v404_v4, %s555_s22  ;;  %38 = vrot.lane.b32.xlu1 %v405_v5, %s556_s23  ;;  %s567_s2 = smov 94   ;;  %s568_s3 = smov 92  }
   0xe   :  { %44 = vrot.lane.b32.xlu0 %v406_v6, %s557_s28  ;;  %50 = vrot.lane.b32.xlu1 %v407_v7, %s558_s29 }
  0x12   :  { %56 = vrot.lane.b32.xlu0 %v408_v8, %s559_s5  ;;  %62 = vrot.lane.b32.xlu1 %v409_v9, %s560_s6 }
  0x16   :  { %68 = vrot.lane.b32.xlu0 %v410_v10, %s561_s11  ;;  %74 = vrot.lane.b32.xlu1 %v411_v11, %s562_s12 }
  0x1a   :  { %80 = vrot.lane.b32.xlu0 %v412_v12, %s563_s17  ;;  %86 = vrot.lane.b32.xlu1 %v413_v13, %s564_s18 }
  0x1e   :  { %92 = vrot.lane.b32.xlu0 %v414_v14, %s565_s25  ;;  %98 = vrot.lane.b32.xlu1 %v415_v15, %s566_s26 }
  0x22   :  { %104 = vrot.lane.b32.xlu0 %v416_v17, %s567_s2  ;;  %110 = vrot.lane.b32.xlu1 %v417_v18, %s568_s3 }
  0x23   :  { %2 = vsyncpa [#allocation1], 0  ;;  %v418_v19 = vld [vmem:[%s829_s0 + $0x2d] sm:$0x1]   ;;  %v419_v20 = vld [vmem:[%s829_s0 + $0x2c] sm:$0x1]  }
  0x24   :  { %s569_s8 = smov 90   ;;  %s570_s9 = smov 88   ;;  %v420_v21 = vld [vmem:[%s829_s0 + $0x2b] sm:$0x1]   ;;  %v421_v22 = vld [vmem:[%s829_s0 + $0x2a] sm:$0x1]  }
  0x25   :  { %s571_s14 = smov 86   ;;  %s572_s15 = smov 84   ;;  %v422_v23 = vld [vmem:[%s829_s0 + $0x29] sm:$0x1]   ;;  %v423_v24 = vld [vmem:[%s829_s0 + $0x28] sm:$0x1]  }
  0x26   :  { %116 = vrot.lane.b32.xlu0 %v418_v19, %s569_s8  ;;  %122 = vrot.lane.b32.xlu1 %v419_v20, %s570_s9  ;;  %s573_s20 = smov 82   ;;  %s574_s21 = smov 80   ;;  %v424_v25 = vld [vmem:[%s829_s0 + $0x27] sm:$0x1]   ;;  %v425_v26 = vld [vmem:[%s829_s0 + $0x26] sm:$0x1]  }
  0x27   :  { %s575_s26 = smov 78   ;;  %s576_s27 = smov 76   ;;  %v426_v27 = vld [vmem:[%s829_s0 + $0x25] sm:$0x1]   ;;  %v427_v28 = vld [vmem:[%s829_s0 + $0x24] sm:$0x1]  }
  0x28   :  { %s577_s3 = smov 74   ;;  %s578_s4 = smov 72   ;;  %v428_v29 = vld [vmem:[%s829_s0 + $0x23] sm:$0x1]   ;;  %v429_v30 = vld [vmem:[%s829_s0 + $0x22] sm:$0x1]  }
  0x29   :  { %s579_s9 = smov 70   ;;  %s580_s10 = smov 68   ;;  %v430_v31 = vld [vmem:[%s829_s0 + $0x21] sm:$0x1]   ;;  %v431_v32 = vld [vmem:[%s829_s0 + $0x20] sm:$0x1]  }
  0x2a   :  { %128 = vrot.lane.b32.xlu0 %v420_v21, %s571_s14  ;;  %134 = vrot.lane.b32.xlu1 %v421_v22, %s572_s15  ;;  %s581_s15 = smov 66   ;;  %s582_s16 = smov 64   ;;  %v432_v33 = vld [vmem:[%s829_s0 + $0x1f] sm:$0x1]   ;;  %v433_v34 = vld [vmem:[%s829_s0 + $0x1e] sm:$0x1]  }
  0x2b   :  { %s584_s22 = smov 60   ;;  %v434_v35 = vld [vmem:[%s829_s0 + $0x1d] sm:$0x1]   ;;  %v435_v36 = vld [vmem:[%s829_s0 + $0x1c] sm:$0x1]   ;;  %s586_s28 = smov 56  }
  0x2c   :  { %v436_v37 = vld [vmem:[%s829_s0 + $0x1b] sm:$0x1]   ;;  %v437_v38 = vld [vmem:[%s829_s0 + $0x1a] sm:$0x1]   ;;  %s588_s5 = smov 52   ;;  %s590_s11 = smov 48  }
  0x2d   :  { %v438_v39 = vld [vmem:[%s829_s0 + $0x19] sm:$0x1]   ;;  %v439_v40 = vld [vmem:[%s829_s0 + $0x18] sm:$0x1]   ;;  %v440_v41 = vld [vmem:[%s829_s0 + $0x17] sm:$0x1]  }
  0x2e   :  { %140 = vrot.lane.b32.xlu0 %v422_v23, %s573_s20  ;;  %146 = vrot.lane.b32.xlu1 %v423_v24, %s574_s21  ;;  %s583_s21 = smov 62   ;;  %v441_v42 = vld [vmem:[%s829_s0 + $0x16] sm:$0x1]   ;;  %s592_s17 = smov 44   ;;  %v442_v43 = vld [vmem:[%s829_s0 + $0x15] sm:$0x1]  }
  0x2f   :  { %v443_v44 = vld [vmem:[%s829_s0 + $0x14] sm:$0x1]   ;;  %s594_s23 = smov 40   ;;  %v444_v45 = vld [vmem:[%s829_s0 + $0x13] sm:$0x1]   ;;  %s596_s29 = smov 36  }
  0x30   :  { %v445_v46 = vld [vmem:[%s829_s0 + $0x12] sm:$0x1]   ;;  %v446_v47 = vld [vmem:[%s829_s0 + $0x11] sm:$0x1]   ;;  %v447_v48 = vld [vmem:[%s829_s0 + $0x10] sm:$0x1]  }
  0x31   :  { %s598_s6 = smov 32   ;;  %v448_v49 = vld [vmem:[%s829_s0 + $0xf] sm:$0x1]   ;;  %v449_v50 = vld [vmem:[%s829_s0 + $0xe] sm:$0x1]   ;;  %s600_s12 = smov 28  }
  0x32   :  { %152 = vrot.lane.b32.xlu0 %v424_v25, %s575_s26  ;;  %158 = vrot.lane.b32.xlu1 %v425_v26, %s576_s27  ;;  %s585_s27 = smov 58   ;;  %v450_v51 = vld [vmem:[%s829_s0 + $0xd] sm:$0x1]   ;;  %v451_v52 = vld [vmem:[%s829_s0 + $0xc] sm:$0x1]   ;;  %s602_s18 = smov 24  }
  0x33   :  { %v452_v53 = vld [vmem:[%s829_s0 + $0xb] sm:$0x1]   ;;  %v453_v54 = vld [vmem:[%s829_s0 + $0xa] sm:$0x1]   ;;  %s604_s24 = smov 20   ;;  %s606_s30 = smov 16  }
  0x34   :  { %v454_v55 = vld [vmem:[%s829_s0 + $0x9] sm:$0x1]   ;;  %v455_v56 = vld [vmem:[%s829_s0 + $0x8] sm:$0x1]   ;;  %v456_v57 = vld [vmem:[%s829_s0 + $0x7] sm:$0x1]  }
  0x35   :  { %v457_v58 = vld [vmem:[%s829_s0 + $0x6] sm:$0x1]   ;;  %vm10_vm1 = vcmask 1048560   ;;  %s608_s7 = smov 12   ;;  %v458_v59 = vld [vmem:[%s829_s0 + $0x5] sm:$0x1]  }
  0x36   :  { %164 = vrot.lane.b32.xlu0 %v426_v27, %s577_s3  ;;  %170 = vrot.lane.b32.xlu1 %v427_v28, %s578_s4  ;;  %s587_s4 = smov 54   ;;  %v459_v60 = vld [vmem:[%s829_s0 + $0x4] sm:$0x1]   ;;  %vm22_vm2 = vcmask 1015760   ;;  %vm16_vm3 = vcmask 1032160   ;;  %s610_s13 = smov 8  }
  0x37   :  { %v460_v63 = vld [vmem:[%s829_s0 + $0x3] sm:$0x1]   ;;  %v461_v0 = vld [vmem:[%s829_s0 + $0x2] sm:$0x1]   ;;  %vm28_vm4 = vcmask 999360   ;;  %vm34_vm5 = vcmask 982960  }
  0x38   :  { %s612_s19 = smov 4   ;;  %v462_v3 = vld [vmem:[%s829_s0 + $0x1] sm:$0x1]   ;;  %vm40_vm6 = vcmask 966560   ;;  %s613_s0 = smov 2   ;;  %vm46_vm7 = vcmask 950160  }
  0x39   :  { %vm52_vm8 = vcmask 933760   ;;  %vm58_vm9 = vcmask 917360   ;;  %vm64_vm10 = vcmask 900960   ;;  %vm70_vm11 = vcmask 884560  }
  0x3a   :  { %176 = vrot.lane.b32.xlu0 %v428_v29, %s579_s9  ;;  %182 = vrot.lane.b32.xlu1 %v429_v30, %s580_s10  ;;  %s589_s10 = smov 50   ;;  %vm76_vm12 = vcmask 868160   ;;  %vm82_vm13 = vcmask 851760   ;;  %vm88_vm14 = vcmask 835360   ;;  %vm94_vm15 = vcmask 818960  }
  0x3b   :  { %vm100_vm0 = vcmask 802560  }
  0x3e   :  { %188 = vrot.lane.b32.xlu0 %v430_v31, %s581_s15  ;;  %194 = vrot.lane.b32.xlu1 %v431_v32, %s582_s16  ;;  %s591_s16 = smov 46  }
  0x42   :  { %200 = vrot.lane.b32.xlu0 %v432_v33, %s583_s21  ;;  %206 = vrot.lane.b32.xlu1 %v433_v34, %s584_s22  ;;  %s593_s22 = smov 42  }
  0x46   :  { %212 = vrot.lane.b32.xlu0 %v434_v35, %s585_s27  ;;  %218 = vrot.lane.b32.xlu1 %v435_v36, %s586_s28  ;;  %s595_s28 = smov 38  }
  0x4a   :  { %224 = vrot.lane.b32.xlu0 %v436_v37, %s587_s4  ;;  %230 = vrot.lane.b32.xlu1 %v437_v38, %s588_s5  ;;  %s597_s5 = smov 34  }
  0x4e   :  { %236 = vrot.lane.b32.xlu0 %v438_v39, %s589_s10  ;;  %242 = vrot.lane.b32.xlu1 %v439_v40, %s590_s11  ;;  %s599_s11 = smov 30  }
  0x52   :  { %248 = vrot.lane.b32.xlu0 %v440_v41, %s591_s16  ;;  %254 = vrot.lane.b32.xlu1 %v441_v42, %s592_s17  ;;  %s601_s17 = smov 26  }
  0x56   :  { %260 = vrot.lane.b32.xlu0 %v442_v43, %s593_s22  ;;  %266 = vrot.lane.b32.xlu1 %v443_v44, %s594_s23  ;;  %s603_s23 = smov 22   ;;  %s614_s22 = smov [#allocation0]  }
  0x5a   :  { %272 = vrot.lane.b32.xlu0 %v444_v45, %s595_s28  ;;  %278 = vrot.lane.b32.xlu1 %v445_v46, %s596_s29  ;;  %s605_s29 = smov 18  }
  0x5e   :  { %284 = vrot.lane.b32.xlu0 %v446_v47, %s597_s5  ;;  %290 = vrot.lane.b32.xlu1 %v447_v48, %s598_s6  ;;  %s607_s6 = smov 14  }
  0x62   :  { %296 = vrot.lane.b32.xlu0 %v448_v49, %s599_s11  ;;  %302 = vrot.lane.b32.xlu1 %v449_v50, %s600_s12  ;;  %s609_s12 = smov 10  }
  0x66   :  { %308 = vrot.lane.b32.xlu0 %v450_v51, %s601_s17  ;;  %314 = vrot.lane.b32.xlu1 %v451_v52, %s602_s18  ;;  %s611_s18 = smov 6  }
  0x6a   :  { %320 = vrot.lane.b32.xlu0 %v452_v53, %s603_s23  ;;  %326 = vrot.lane.b32.xlu1 %v453_v54, %s604_s24  ;;  %s394_s23 = sshll.u32 %s614_s22, 4  ;;  %s395_s23 = int_to_ptr.vmem [resolvable:$true] %s394_s23 }
  0x6b   :  { %s527_s24 = scalar_lea.vmem %s395_s23, 16  ;;  %s531_s25 = scalar_lea.vmem %s395_s23, 32 }
  0x6c   :  { %p528_p0 = scmp.ne.s32.totalorder %s395_s23, %s527_s24  ;;  %p532_p1 = scmp.lt.s32.totalorder %s395_s23, %s395_s23 }
  0x6d   :  { %p533_p2 = scmp.lt.s32.totalorder %s531_s25, %s527_s24 }
  0x6e   :  { %332 = vrot.lane.b32.xlu0 %v454_v55, %s605_s29  ;;  %338 = vrot.lane.b32.xlu1 %v455_v56, %s606_s30 }
  0x6f   :  { %p534_p3 = por %p533_p2, %p532_p1 }
  0x71   :  { %p535_p4 = pnand %p534_p3, %p528_p0 }
  0x72   :  { %344 = vrot.lane.b32.xlu0 %v456_v57, %s607_s6  ;;  %350 = vrot.lane.b32.xlu1 %v457_v58, %s608_s7 }
  0x74   :  { %v9_v61 = vpop.permute.xlu0 %8   ;;  %v21_v62 = vpop.permute.xlu1 %20  }
  0x75   :  { %11 = vst.msk [vmem:[#allocation2] sm:$0x1] %vm10_vm1, %v9_v61   ;;  %vm106_vm1 = vcmask 786160  }
  0x76   :  { %356 = vrot.lane.b32.xlu0 %v458_v59, %s609_s12  ;;  %362 = vrot.lane.b32.xlu1 %v459_v60, %s610_s13 }
  0x78   :  { %v15_v1 = vpop.permute.xlu0 %14   ;;  %v27_v2 = vpop.permute.xlu1 %26  }
  0x79   :  { %17 = vst.msk [vmem:[#allocation2] sm:$0x1] %vm16_vm3, %v15_v1   ;;  %vm118_vm3 = vcmask 753360  }
  0x7a   :  { %23 = vst.msk [vmem:[#allocation2] sm:$0x1] %vm22_vm2, %v21_v62   ;;  %368 = vrot.lane.b32.xlu0 %v460_v63, %s611_s18  ;;  %374 = vrot.lane.b32.xlu1 %v461_v0, %s612_s19  ;;  %vm112_vm2 = vcmask 769760  }
  0x7b   :  { %29 = vst.msk [vmem:[#allocation2] sm:$0x1] %vm28_vm4, %v27_v2   ;;  %vm124_vm4 = vcmask 736960  }
  0x7c   :  { %v33_v4 = vpop.permute.xlu0 %32   ;;  %v39_v5 = vpop.permute.xlu1 %38  }
  0x7d   :  { %35 = vst.msk [vmem:[#allocation2] sm:$0x1] %vm34_vm5, %v33_v4   ;;  %vm130_vm5 = vcmask 720560  }
  0x7e   :  { %380 = vrot.lane.b32.xlu0 %v462_v3, %s613_s0  ;;  %41 = vst.msk [vmem:[#allocation2] sm:$0x1] %vm40_vm6, %v39_v5   ;;  %vm136_vm6 = vcmask 704160  }
  0x80   :  { %v45_v6 = vpop.permute.xlu0 %44   ;;  %v51_v7 = vpop.permute.xlu1 %50  }
  0x81   :  { %47 = vst.msk [vmem:[#allocation2] sm:$0x1] %vm46_vm7, %v45_v6   ;;  %vm142_vm7 = vcmask 687760  }
  0x82   :  { %53 = vst.msk [vmem:[#allocation2] sm:$0x1] %vm52_vm8, %v51_v7   ;;  %vm148_vm8 = vcmask 671360  }
  0x84   :  { %v57_v8 = vpop.permute.xlu0 %56   ;;  %v63_v9 = vpop.permute.xlu1 %62  }
  0x85   :  { %59 = vst.msk [vmem:[#allocation2] sm:$0x1] %vm58_vm9, %v57_v8   ;;  %vm154_vm9 = vcmask 654960  }
  0x86   :  { %65 = vst.msk [vmem:[#allocation2] sm:$0x1] %vm64_vm10, %v63_v9   ;;  %vm160_vm10 = vcmask 638560  }
  0x88   :  { %v69_v10 = vpop.permute.xlu0 %68   ;;  %v75_v11 = vpop.permute.xlu1 %74  }
  0x89   :  { %71 = vst.msk [vmem:[#allocation2] sm:$0x1] %vm70_vm11, %v69_v10   ;;  %vm166_vm11 = vcmask 622160  }
  0x8a   :  { %77 = vst.msk [vmem:[#allocation2] sm:$0x1] %vm76_vm12, %v75_v11   ;;  %vm172_vm12 = vcmask 605760  }
  0x8c   :  { %v81_v12 = vpop.permute.xlu0 %80   ;;  %v87_v13 = vpop.permute.xlu1 %86  }
  0x8d   :  { %83 = vst.msk [vmem:[#allocation2] sm:$0x1] %vm82_vm13, %v81_v12   ;;  %vm178_vm13 = vcmask 589360  }
  0x8e   :  { %89 = vst.msk [vmem:[#allocation2] sm:$0x1] %vm88_vm14, %v87_v13   ;;  %vm184_vm14 = vcmask 572960  }
  0x90   :  { %v93_v14 = vpop.permute.xlu0 %92   ;;  %v99_v15 = vpop.permute.xlu1 %98  }
  0x91   :  { %95 = vst.msk [vmem:[#allocation2] sm:$0x1] %vm94_vm15, %v93_v14   ;;  %vm190_vm15 = vcmask 556560  }
  0x92   :  { %101 = vst.msk [vmem:[#allocation2] sm:$0x1] %vm100_vm0, %v99_v15   ;;  %vm196_vm0 = vcmask 540160  }
  0x94   :  { %v105_v16 = vpop.permute.xlu0 %104   ;;  %v111_v17 = vpop.permute.xlu1 %110  }
  0x95   :  { %107 = vst.msk [vmem:[#allocation2] sm:$0x1] %vm106_vm1, %v105_v16   ;;  %vm202_vm1 = vcmask 523760  }
  0x96   :  { %113 = vst.msk [vmem:[#allocation2] sm:$0x1] %vm112_vm2, %v111_v17   ;;  %vm208_vm2 = vcmask 507360  }
  0x98   :  { %v117_v18 = vpop.permute.xlu0 %116   ;;  %v123_v19 = vpop.permute.xlu1 %122  }
  0x99   :  { %119 = vst.msk [vmem:[#allocation2] sm:$0x1] %vm118_vm3, %v117_v18   ;;  %vm214_vm3 = vcmask 490960  }
  0x9a   :  { %125 = vst.msk [vmem:[#allocation2] sm:$0x1] %vm124_vm4, %v123_v19   ;;  %vm220_vm4 = vcmask 474560  }
  0x9c   :  { %v129_v20 = vpop.permute.xlu0 %128   ;;  %v135_v21 = vpop.permute.xlu1 %134  }
  0x9d   :  { %131 = vst.msk [vmem:[#allocation2] sm:$0x1] %vm130_vm5, %v129_v20   ;;  %vm226_vm5 = vcmask 458160  }
  0x9e   :  { %137 = vst.msk [vmem:[#allocation2] sm:$0x1] %vm136_vm6, %v135_v21   ;;  %vm232_vm6 = vcmask 441760  }
  0xa0   :  { %v141_v22 = vpop.permute.xlu0 %140   ;;  %v147_v23 = vpop.permute.xlu1 %146  }
  0xa1   :  { %143 = vst.msk [vmem:[#allocation2] sm:$0x1] %vm142_vm7, %v141_v22   ;;  %vm238_vm7 = vcmask 425360  }
  0xa2   :  { %149 = vst.msk [vmem:[#allocation2] sm:$0x1] %vm148_vm8, %v147_v23   ;;  %vm244_vm8 = vcmask 408960  }
  0xa4   :  { %v153_v24 = vpop.permute.xlu0 %152   ;;  %v159_v25 = vpop.permute.xlu1 %158  }
  0xa5   :  { %155 = vst.msk [vmem:[#allocation2] sm:$0x1] %vm154_vm9, %v153_v24   ;;  %vm250_vm9 = vcmask 392560  }
  0xa6   :  { %161 = vst.msk [vmem:[#allocation2] sm:$0x1] %vm160_vm10, %v159_v25   ;;  %vm256_vm10 = vcmask 376160  }
  0xa8   :  { %v165_v26 = vpop.permute.xlu0 %164   ;;  %v171_v27 = vpop.permute.xlu1 %170  }
  0xa9   :  { %167 = vst.msk [vmem:[#allocation2] sm:$0x1] %vm166_vm11, %v165_v26   ;;  %vm262_vm11 = vcmask 359760  }
  0xaa   :  { %173 = vst.msk [vmem:[#allocation2] sm:$0x1] %vm172_vm12, %v171_v27   ;;  %vm268_vm12 = vcmask 343360  }
  0xac   :  { %v177_v28 = vpop.permute.xlu0 %176   ;;  %v183_v29 = vpop.permute.xlu1 %182  }
  0xad   :  { %179 = vst.msk [vmem:[#allocation2] sm:$0x1] %vm178_vm13, %v177_v28   ;;  %vm274_vm13 = vcmask 326960  }
  0xae   :  { %185 = vst.msk [vmem:[#allocation2] sm:$0x1] %vm184_vm14, %v183_v29   ;;  %vm280_vm14 = vcmask 310560  }
  0xb0   :  { %v189_v30 = vpop.permute.xlu0 %188   ;;  %v195_v31 = vpop.permute.xlu1 %194  }
  0xb1   :  { %191 = vst.msk [vmem:[#allocation2] sm:$0x1] %vm190_vm15, %v189_v30   ;;  %vm286_vm15 = vcmask 294160  }
  0xb2   :  { %197 = vst.msk [vmem:[#allocation2] sm:$0x1] %vm196_vm0, %v195_v31   ;;  %vm292_vm0 = vcmask 277760  }
  0xb4   :  { %v201_v32 = vpop.permute.xlu0 %200   ;;  %v207_v33 = vpop.permute.xlu1 %206  }
  0xb5   :  { %203 = vst.msk [vmem:[#allocation2] sm:$0x1] %vm202_vm1, %v201_v32   ;;  %vm298_vm1 = vcmask 261360  }
  0xb6   :  { %209 = vst.msk [vmem:[#allocation2] sm:$0x1] %vm208_vm2, %v207_v33   ;;  %vm304_vm2 = vcmask 244960  }
  0xb8   :  { %v213_v34 = vpop.permute.xlu0 %212   ;;  %v219_v35 = vpop.permute.xlu1 %218  }
  0xb9   :  { %215 = vst.msk [vmem:[#allocation2] sm:$0x1] %vm214_vm3, %v213_v34   ;;  %vm310_vm3 = vcmask 228560  }
  0xba   :  { %221 = vst.msk [vmem:[#allocation2] sm:$0x1] %vm220_vm4, %v219_v35   ;;  %vm316_vm4 = vcmask 212160  }
  0xbc   :  { %v225_v36 = vpop.permute.xlu0 %224   ;;  %v231_v37 = vpop.permute.xlu1 %230  }
  0xbd   :  { %227 = vst.msk [vmem:[#allocation2] sm:$0x1] %vm226_vm5, %v225_v36   ;;  %vm322_vm5 = vcmask 195760  }
  0xbe   :  { %233 = vst.msk [vmem:[#allocation2] sm:$0x1] %vm232_vm6, %v231_v37   ;;  %vm328_vm6 = vcmask 179360  }
  0xc0   :  { %v237_v38 = vpop.permute.xlu0 %236   ;;  %v243_v39 = vpop.permute.xlu1 %242  }
  0xc1   :  { %239 = vst.msk [vmem:[#allocation2] sm:$0x1] %vm238_vm7, %v237_v38   ;;  %vm334_vm7 = vcmask 162960  }
  0xc2   :  { %245 = vst.msk [vmem:[#allocation2] sm:$0x1] %vm244_vm8, %v243_v39   ;;  %vm340_vm8 = vcmask 146560  }
  0xc4   :  { %v249_v40 = vpop.permute.xlu0 %248   ;;  %v255_v41 = vpop.permute.xlu1 %254  }
  0xc5   :  { %251 = vst.msk [vmem:[#allocation2] sm:$0x1] %vm250_vm9, %v249_v40   ;;  %vm346_vm9 = vcmask 130160  }
  0xc6   :  { %257 = vst.msk [vmem:[#allocation2] sm:$0x1] %vm256_vm10, %v255_v41   ;;  %vm352_vm10 = vcmask 113760  }
  0xc8   :  { %v261_v42 = vpop.permute.xlu0 %260   ;;  %v267_v43 = vpop.permute.xlu1 %266  }
  0xc9   :  { %263 = vst.msk [vmem:[#allocation2] sm:$0x1] %vm262_vm11, %v261_v42   ;;  %vm358_vm11 = vcmask 97360  }
  0xca   :  { %269 = vst.msk [vmem:[#allocation2] sm:$0x1] %vm268_vm12, %v267_v43   ;;  %vm364_vm12 = vcmask 80960  }
  0xcc   :  { %v273_v44 = vpop.permute.xlu0 %272   ;;  %v279_v45 = vpop.permute.xlu1 %278  }
  0xcd   :  { %275 = vst.msk [vmem:[#allocation2] sm:$0x1] %vm274_vm13, %v273_v44   ;;  %vm370_vm13 = vcmask 64560  }
  0xce   :  { %281 = vst.msk [vmem:[#allocation2] sm:$0x1] %vm280_vm14, %v279_v45   ;;  %vm376_vm14 = vcmask 48160  }
  0xd0   :  { %v285_v46 = vpop.permute.xlu0 %284   ;;  %v291_v47 = vpop.permute.xlu1 %290  }
  0xd1   :  { %287 = vst.msk [vmem:[#allocation2] sm:$0x1] %vm286_vm15, %v285_v46   ;;  %vm382_vm15 = vcmask 31760  }
  0xd2   :  { %293 = vst.msk [vmem:[#allocation2] sm:$0x1] %vm292_vm0, %v291_v47  }
  0xd4   :  { %v297_v48 = vpop.permute.xlu0 %296   ;;  %v303_v49 = vpop.permute.xlu1 %302  }
  0xd5   :  { %299 = vst.msk [vmem:[#allocation2] sm:$0x1] %vm298_vm1, %v297_v48  }
  0xd6   :  { %305 = vst.msk [vmem:[#allocation2] sm:$0x1] %vm304_vm2, %v303_v49  }
  0xd8   :  { %v309_v50 = vpop.permute.xlu0 %308   ;;  %v315_v51 = vpop.permute.xlu1 %314  }
  0xd9   :  { %311 = vst.msk [vmem:[#allocation2] sm:$0x1] %vm310_vm3, %v309_v50  }
  0xda   :  { %317 = vst.msk [vmem:[#allocation2] sm:$0x1] %vm316_vm4, %v315_v51  }
  0xdc   :  { %v321_v52 = vpop.permute.xlu0 %320   ;;  %v327_v53 = vpop.permute.xlu1 %326  }
  0xdd   :  { %323 = vst.msk [vmem:[#allocation2] sm:$0x1] %vm322_vm5, %v321_v52  }
  0xde   :  { %329 = vst.msk [vmem:[#allocation2] sm:$0x1] %vm328_vm6, %v327_v53  }
  0xe0   :  { %v333_v54 = vpop.permute.xlu0 %332   ;;  %v339_v55 = vpop.permute.xlu1 %338  }
  0xe1   :  { %335 = vst.msk [vmem:[#allocation2] sm:$0x1] %vm334_vm7, %v333_v54  }
  0xe2   :  { %341 = vst.msk [vmem:[#allocation2] sm:$0x1] %vm340_vm8, %v339_v55  }
  0xe4   :  { %v345_v56 = vpop.permute.xlu0 %344   ;;  %v351_v57 = vpop.permute.xlu1 %350  }
  0xe5   :  { %347 = vst.msk [vmem:[#allocation2] sm:$0x1] %vm346_vm9, %v345_v56  }
  0xe6   :  { %353 = vst.msk [vmem:[#allocation2] sm:$0x1] %vm352_vm10, %v351_v57  }
  0xe8   :  { %v357_v58 = vpop.permute.xlu0 %356   ;;  %v363_v59 = vpop.permute.xlu1 %362  }
  0xe9   :  { %359 = vst.msk [vmem:[#allocation2] sm:$0x1] %vm358_vm11, %v357_v58  }
  0xea   :  { %365 = vst.msk [vmem:[#allocation2] sm:$0x1] %vm364_vm12, %v363_v59  }
  0xec   :  { %v369_v60 = vpop.permute.xlu0 %368   ;;  %v375_v61 = vpop.permute.xlu1 %374  }
  0xed   :  { %371 = vst.msk [vmem:[#allocation2] sm:$0x1] %vm370_vm13, %v369_v60  }
  0xee   :  { %377 = vst.msk [vmem:[#allocation2] sm:$0x1] %vm376_vm14, %v375_v61  }
  0xf0   :  { %v381_v62 = vpop.permute.xlu0 %380  }
  0xf1   :  { %383 = vst.msk [vmem:[#allocation2] sm:$0x1] %vm382_vm15, %v381_v62  }
  0xf8   :  { %v387_v63 = vld [vmem:[#allocation2] sm:$0x1] }
  0xf9   :  { %389 = vst [vmem:[#allocation0] sm:$0x1] %v387_v63 }
  0xfa   :  { %538 = shalt.err (!%p535_p4)
}
  0xfb   :  { %s539_s28 = scalar_lea.hbm %s830_s1, 16 }
  0xfc   :  { %p540_p5 = scmp.ne.s32.totalorder %s830_s1, %s539_s28  ;;  %p543_p6 = scmp.lt.u32.totalorder %s539_s28, %s830_s1 }
  0xfe   :  { %p545_p7 = pnand %p543_p6, %p540_p5 }
 0x100   :  { %548 = shalt.err (!%p545_p7)
}
 0x101   :  { %397 = dma.vmem_to_hbm [thread:$0]  %s395_s23, 16, %s830_s1, [#allocation1]  }
 0x102   :  { %549 = dma.done.wait [#allocation1], 16  }
 0x103   :  { %550 = vsyncadd [#allocation1], 4294967280 }
 0x104   :  { %399 = vsyncpa [#allocation1], 1 }

// kernel: mul.4
= control target key start
LH: loop header
LB: loop body
LE: loop exit
PB: predicated region body
PF: predicated region fallthrough
CT: control target
= control target key end

     0   :  { %vm43_vm0 = vcmask 1041409   ;;  %s232_s22 = smov 26   ;;  %s233_s23 = smov 28   ;;  %vm45_vm1 = vcmask 15360   ;;  %vm55_vm2 = vcmask 261360   ;;  %vm65_vm3 = vcmask 244960   ;;  %s299_s0 = inlined_call_operand.vmem [shape: f32[4,4,2,2], index: 0, kind: input, shape index: {}]   ;;  %s300_s1 = inlined_call_operand.vmem [shape: f32[32,2], index: 1, kind: output, shape index: {}]  }
   0x1   :  { %v209_v0 = vld [vmem:[%s299_s0 + $0x1c] sm:$0xf]  ;;  %v213_v1 = vld [vmem:[%s299_s0 + $0xc] sm:$0xf]  ;;  %v210_v2 = vld [vmem:[%s299_s0 + $0x18] sm:$0xf] }
   0x2   :  { %8 = vst [vmem:[#allocation1 + $0x38] sm:$0xf] %v209_v0  ;;  %28 = vst [vmem:[#allocation1 + $0x18] sm:$0xf] %v213_v1  ;;  %v214_v3 = vld [vmem:[%s299_s0 + $0x8] sm:$0xf] }
   0x3   :  { %13 = vst [vmem:[#allocation1 + $0x30] sm:$0xf] %v210_v2  ;;  %33 = vst [vmem:[#allocation1 + $0x10] sm:$0xf] %v214_v3  ;;  %v211_v4 = vld [vmem:[%s299_s0 + $0x14] sm:$0xf] }
   0x4   :  { %v215_v5 = vld [vmem:[%s299_s0 + $0x4] sm:$0xf]  ;;  %18 = vst [vmem:[#allocation1 + $0x28] sm:$0xf] %v211_v4  ;;  %v212_v6 = vld [vmem:[%s299_s0 + $0x10] sm:$0xf] }
   0x5   :  { %37 = vst [vmem:[#allocation1 + $0x8] sm:$0xf] %v215_v5  ;;  %v38_v7 = vld [vmem:[%s299_s0] sm:$0xf]  ;;  %23 = vst [vmem:[#allocation1 + $0x20] sm:$0xf] %v212_v6 }
   0x6   :  { %39 = vst [vmem:[#allocation1] sm:$0xf] %v38_v7  ;;  %s231_s0 = smov 30   ;;  %s234_s24 = smov 24   ;;  %vm75_vm4 = vcmask 228560   ;;  %vm85_vm5 = vcmask 212160  }
   0x7   :  { %s235_s25 = smov 22   ;;  %s236_s26 = smov 20   ;;  %vm95_vm6 = vcmask 195760   ;;  %vm105_vm7 = vcmask 179360   ;;  %vm115_vm8 = vcmask 162960   ;;  %vm125_vm9 = vcmask 146560  }
   0x8   :  { %s237_s27 = smov 18   ;;  %s238_s28 = smov 16   ;;  %vm135_vm10 = vcmask 130160   ;;  %vm145_vm11 = vcmask 113760   ;;  %vm155_vm12 = vcmask 97360   ;;  %vm165_vm13 = vcmask 80960  }
   0x9   :  { %v48_v8 = vld [vmem:[#allocation1 + $0x1b] sm:$0x1]   ;;  %v68_v10 = vld [vmem:[#allocation1 + $0x19] sm:$0x1]   ;;  %v58_v13 = vld [vmem:[#allocation1 + $0x1a] sm:$0x1]  }
   0xa   :  { %v50_v9 = vld [vmem:[#allocation1 + $0x3a] sm:$0x2]   ;;  %v70_v12 = vld [vmem:[#allocation1 + $0x38] sm:$0x2]   ;;  %v60_v14 = vld [vmem:[#allocation1 + $0x39] sm:$0x2]  }
   0xb   :  { %v52_v11 = vsel %vm43_vm0, %v50_v9, %v48_v8  ;;  %v72_v15 = vsel %vm43_vm0, %v70_v12, %v68_v10  ;;  %v78_v16 = vld [vmem:[#allocation1 + $0x18] sm:$0x1]   ;;  %v62_v18 = vsel %vm43_vm0, %v60_v14, %v58_v13  ;;  %v88_v20 = vld [vmem:[#allocation1 + $0x13] sm:$0x1]   ;;  %v98_v22 = vld [vmem:[#allocation1 + $0x12] sm:$0x1]  }
   0xc   :  { %53 = vrot.lane.b32.xlu0 %v52_v11, %s231_s0  ;;  %v80_v17 = vld [vmem:[#allocation1 + $0x37] sm:$0x2]   ;;  %73 = vrot.lane.b32.xlu1 %v72_v15, %s232_s22  ;;  %v90_v21 = vld [vmem:[#allocation1 + $0x32] sm:$0x2]   ;;  %v100_v23 = vld [vmem:[#allocation1 + $0x31] sm:$0x2]  }
   0xd   :  { %v82_v19 = vsel %vm43_vm0, %v80_v17, %v78_v16  ;;  %v92_v24 = vsel %vm43_vm0, %v90_v21, %v88_v20  ;;  %v102_v25 = vsel %vm43_vm0, %v100_v23, %v98_v22  ;;  %v108_v26 = vld [vmem:[#allocation1 + $0x11] sm:$0x1]   ;;  %v118_v28 = vld [vmem:[#allocation1 + $0x10] sm:$0x1]   ;;  %v40_v30 = vld [vmem:[#allocation1] sm:$0x1]  }
   0xe   :  { %v110_v27 = vld [vmem:[#allocation1 + $0x30] sm:$0x2]   ;;  %v120_v29 = vld [vmem:[#allocation1 + $0x2f] sm:$0x2]   ;;  %v42_v31 = vld [vmem:[#allocation1 + $0x1f] sm:$0x2]  }
   0xf   :  { %v112_v32 = vsel %vm43_vm0, %v110_v27, %v108_v26  ;;  %v44_v33 = vsel %vm43_vm0, %v42_v31, %v40_v30  ;;  %v122_v34 = vsel %vm43_vm0, %v120_v29, %v118_v28  ;;  %v128_v35 = vld [vmem:[#allocation1 + $0xb] sm:$0x1]   ;;  %v138_v37 = vld [vmem:[#allocation1 + $0xa] sm:$0x1]   ;;  %v148_v41 = vld [vmem:[#allocation1 + $0x9] sm:$0x1]  }
  0x10   :  { %63 = vrot.lane.b32.xlu0 %v62_v18, %s233_s23  ;;  %83 = vrot.lane.b32.xlu1 %v82_v19, %s234_s24  ;;  %v130_v36 = vld [vmem:[#allocation1 + $0x2a] sm:$0x2]   ;;  %46 = vst.msk [vmem:[#allocation0] sm:$0x3] %vm45_vm1, %v44_v33   ;;  %v140_v38 = vld [vmem:[#allocation1 + $0x29] sm:$0x2]  }
  0x11   :  { %v132_v39 = vsel %vm43_vm0, %v130_v36, %v128_v35  ;;  %v142_v40 = vsel %vm43_vm0, %v140_v38, %v138_v37  ;;  %v150_v42 = vld [vmem:[#allocation1 + $0x28] sm:$0x2]   ;;  %v158_v43 = vld [vmem:[#allocation1 + $0x8] sm:$0x1]   ;;  %s239_s29 = smov 14   ;;  %s240_s30 = smov 12  }
  0x12   :  { %v160_v44 = vld [vmem:[#allocation1 + $0x27] sm:$0x2]   ;;  %v152_v45 = vsel %vm43_vm0, %v150_v42, %v148_v41  ;;  %v168_v47 = vld [vmem:[#allocation1 + $0x3] sm:$0x1]   ;;  %v178_v49 = vld [vmem:[#allocation1 + $0x2] sm:$0x1]  }
  0x13   :  { %v162_v46 = vsel %vm43_vm0, %v160_v44, %v158_v43  ;;  %v170_v48 = vld [vmem:[#allocation1 + $0x22] sm:$0x2]   ;;  %v180_v50 = vld [vmem:[#allocation1 + $0x21] sm:$0x2]   ;;  %s241_s2 = smov 10   ;;  %s242_s3 = smov 8  }
  0x14   :  { %93 = vrot.lane.b32.xlu0 %v92_v24, %s235_s25  ;;  %103 = vrot.lane.b32.xlu1 %v102_v25, %s236_s26  ;;  %v172_v51 = vsel %vm43_vm0, %v170_v48, %v168_v47  ;;  %v182_v52 = vsel %vm43_vm0, %v180_v50, %v178_v49  ;;  %v188_v53 = vld [vmem:[#allocation1 + $0x1] sm:$0x1]   ;;  %s243_s4 = smov 6   ;;  %s244_s5 = smov 4   ;;  %vm175_vm14 = vcmask 64560   ;;  %vm185_vm15 = vcmask 48160  }
  0x15   :  { %v190_v54 = vld [vmem:[#allocation1 + $0x20] sm:$0x2]   ;;  %s245_s6 = smov 2  }
  0x16   :  { %v192_v55 = vsel %vm43_vm0, %v190_v54, %v188_v53  ;;  %vm195_vm0 = vcmask 31760  }
  0x18   :  { %113 = vrot.lane.b32.xlu0 %v112_v32, %s237_s27  ;;  %123 = vrot.lane.b32.xlu1 %v122_v34, %s238_s28 }
  0x1c   :  { %133 = vrot.lane.b32.xlu0 %v132_v39, %s239_s29  ;;  %143 = vrot.lane.b32.xlu1 %v142_v40, %s240_s30 }
  0x20   :  { %153 = vrot.lane.b32.xlu0 %v152_v45, %s241_s2  ;;  %163 = vrot.lane.b32.xlu1 %v162_v46, %s242_s3 }
  0x24   :  { %173 = vrot.lane.b32.xlu0 %v172_v51, %s243_s4  ;;  %183 = vrot.lane.b32.xlu1 %v182_v52, %s244_s5 }
  0x28   :  { %193 = vrot.lane.b32.xlu0 %v192_v55, %s245_s6 }
  0x7e   :  { %v54_v56 = vpop.permute.xlu0 %53   ;;  %v74_v57 = vpop.permute.xlu1 %73  }
  0x7f   :  { %56 = vst.msk [vmem:[#allocation0] sm:$0x3] %vm55_vm2, %v54_v56  }
  0x82   :  { %v64_v58 = vpop.permute.xlu0 %63   ;;  %v84_v59 = vpop.permute.xlu1 %83  }
  0x83   :  { %66 = vst.msk [vmem:[#allocation0] sm:$0x3] %vm65_vm3, %v64_v58  }
  0x84   :  { %76 = vst.msk [vmem:[#allocation0] sm:$0x3] %vm75_vm4, %v74_v57  }
  0x85   :  { %86 = vst.msk [vmem:[#allocation0] sm:$0x3] %vm85_vm5, %v84_v59  }
  0x86   :  { %v94_v60 = vpop.permute.xlu0 %93   ;;  %v104_v61 = vpop.permute.xlu1 %103  }
  0x87   :  { %96 = vst.msk [vmem:[#allocation0] sm:$0x3] %vm95_vm6, %v94_v60  }
  0x88   :  { %106 = vst.msk [vmem:[#allocation0] sm:$0x3] %vm105_vm7, %v104_v61  }
  0x8a   :  { %v114_v62 = vpop.permute.xlu0 %113   ;;  %v124_v63 = vpop.permute.xlu1 %123  }
  0x8b   :  { %116 = vst.msk [vmem:[#allocation0] sm:$0x3] %vm115_vm8, %v114_v62  }
  0x8c   :  { %126 = vst.msk [vmem:[#allocation0] sm:$0x3] %vm125_vm9, %v124_v63  }
  0x8e   :  { %v134_v0 = vpop.permute.xlu0 %133   ;;  %v144_v1 = vpop.permute.xlu1 %143  }
  0x8f   :  { %136 = vst.msk [vmem:[#allocation0] sm:$0x3] %vm135_vm10, %v134_v0  }
  0x90   :  { %146 = vst.msk [vmem:[#allocation0] sm:$0x3] %vm145_vm11, %v144_v1  }
  0x92   :  { %v154_v2 = vpop.permute.xlu0 %153   ;;  %v164_v3 = vpop.permute.xlu1 %163  }
  0x93   :  { %156 = vst.msk [vmem:[#allocation0] sm:$0x3] %vm155_vm12, %v154_v2  }
  0x94   :  { %166 = vst.msk [vmem:[#allocation0] sm:$0x3] %vm165_vm13, %v164_v3  }
  0x96   :  { %v174_v4 = vpop.permute.xlu0 %173   ;;  %v184_v5 = vpop.permute.xlu1 %183  }
  0x97   :  { %176 = vst.msk [vmem:[#allocation0] sm:$0x3] %vm175_vm14, %v174_v4  }
  0x98   :  { %186 = vst.msk [vmem:[#allocation0] sm:$0x3] %vm185_vm15, %v184_v5  }
  0x9a   :  { %v194_v6 = vpop.permute.xlu0 %193  }
  0x9b   :  { %196 = vst.msk [vmem:[#allocation0] sm:$0x3] %vm195_vm0, %v194_v6  }
  0xa2   :  { %v200_v7 = vld [vmem:[#allocation0] sm:$0x3] }
  0xa3   :  { %202 = vst [vmem:[%s300_s1] sm:$0x3] %v200_v7 }

// kernel: gat_forward.4
= control target key start
LH: loop header
LB: loop body
LE: loop exit
PB: predicated region body
PF: predicated region fallthrough
CT: control target
= control target key end

     0   :  { %s16329_s15 = smov 0   ;;  %s18237_s0 = inlined_call_operand.vmem [shape: bf16[5000,2048], index: 0, kind: input, shape index: {}]   ;;  %s18238_s1 = inlined_call_operand.vmem [shape: bf16[2048,128], index: 1, kind: input, shape index: {}]   ;;  %s18239_s2 = inlined_call_operand.vmem [shape: f32[1,128], index: 2, kind: input, shape index: {}]   ;;  %s18240_s3 = inlined_call_operand.vmem [shape: f32[1,128], index: 3, kind: input, shape index: {}]   ;;  %s18241_s4 = inlined_call_operand.vmem [shape: bf16[5000,128], index: 4, kind: output, shape index: {}]  }
   0x1 LB: > { %s12729_s16 = sadd.s32 4294967295, %s16301_s15   ;;  %p12733_p0 = scmp.ge.s32.totalorder %s16301_s15, 1  ;;  %s16301_s15 = sphi %s16329_s15, %s14_s15  }
   0x2   : > { %p164_p1 = scmp.lt.s32.totalorder %s16301_s15, 6 }
   0x4   : > { %p165_p2 = pnand %p12733_p0, %p164_p1 }
   0x5   : > { %v16145_v0 = vld [vmem:[%s18238_s1] sm:$0xff] (!%p165_p2)   ;;  %v16303_v1 = vmov (!%p165_p2), 0   ;;  %v16147_v3 = vld [vmem:[%s18238_s1 + $0x8] sm:$0xff] (!%p165_p2)   ;;  %v16149_v5 = vld [vmem:[%s18238_s1 + $0x10] sm:$0xff] (!%p165_p2)   ;;  %s191_s9 = smul.u32 (!%p165_p2), 125, %s12729_s16 }
   0x6   : > { %168 = sbr.rel (%p165_p2) target bundleno = 2303 (0x8ff), region = 36  ;;  %7245 = vmatprep.subr.bf16.mxu1 (!%p165_p2), %v16303_v1  ;;  %9389 = vmatprep.subr.bf16.mxu0 (!%p165_p2), %v16303_v1  ;;  %v16146_v2 = vld [vmem:[%s18238_s1 + $0x200] sm:$0xff] (!%p165_p2)   ;;  %v16148_v4 = vld [vmem:[%s18238_s1 + $0x208] sm:$0xff] (!%p165_p2)   ;;  %v16150_v6 = vld [vmem:[%s18238_s1 + $0x210] sm:$0xff] (!%p165_p2)  }
   0x7   : > { %7246 = vmatpush1.bf16.msra.mxu1 (!%p165_p2), %v16145_v0  ;;  %9390 = vmatpush1.bf16.msra.mxu0 (!%p165_p2), %v16146_v2  ;;  %v16151_v7 = vld [vmem:[%s18238_s1 + $0x18] sm:$0xff] (!%p165_p2)   ;;  %v16153_v9 = vld [vmem:[%s18238_s1 + $0x20] sm:$0xff] (!%p165_p2)   ;;  %v16155_v11 = vld [vmem:[%s18238_s1 + $0x28] sm:$0xff] (!%p165_p2)   ;;  %p192_p3 = scmp.lt.s32.totalorder (!%p165_p2), %s191_s9, 624 }
   0x8   : > { %7247 = vmatprep.subr.bf16.mxu1 (!%p165_p2), %v16303_v1  ;;  %9391 = vmatprep.subr.bf16.mxu0 (!%p165_p2), %v16303_v1  ;;  %v16152_v8 = vld [vmem:[%s18238_s1 + $0x218] sm:$0xff] (!%p165_p2)   ;;  %v16154_v10 = vld [vmem:[%s18238_s1 + $0x220] sm:$0xff] (!%p165_p2)   ;;  %v16156_v12 = vld [vmem:[%s18238_s1 + $0x228] sm:$0xff] (!%p165_p2)  }
   0x9   : > { %v16157_v13 = vld [vmem:[%s18238_s1 + $0x30] sm:$0xff] (!%p165_p2)   ;;  %v16159_v15 = vld [vmem:[%s18238_s1 + $0x38] sm:$0xff] (!%p165_p2)   ;;  %v16161_v17 = vld [vmem:[%s18238_s1 + $0x40] sm:$0xff] (!%p165_p2)  }
   0xa   : > { %v16158_v14 = vld [vmem:[%s18238_s1 + $0x230] sm:$0xff] (!%p165_p2)   ;;  %v16160_v16 = vld [vmem:[%s18238_s1 + $0x238] sm:$0xff] (!%p165_p2)   ;;  %v16162_v18 = vld [vmem:[%s18238_s1 + $0x240] sm:$0xff] (!%p165_p2)  }
   0xb   : > { %7248 = vmatpush1.bf16.msra.mxu1 (!%p165_p2), %v16147_v3  ;;  %9392 = vmatpush1.bf16.msra.mxu0 (!%p165_p2), %v16148_v4  ;;  %v16163_v24 = vld [vmem:[%s18238_s1 + $0x48] sm:$0xff] (!%p165_p2)   ;;  %v16165_v27 = vld [vmem:[%s18238_s1 + $0x50] sm:$0xff] (!%p165_p2)   ;;  %v16167_v29 = vld [vmem:[%s18238_s1 + $0x58] sm:$0xff] (!%p165_p2)  }
   0xc   : > { %7249 = vmatprep.subr.bf16.mxu1 (!%p165_p2), %v16303_v1  ;;  %9393 = vmatprep.subr.bf16.mxu0 (!%p165_p2), %v16303_v1  ;;  %v16164_v26 = vld [vmem:[%s18238_s1 + $0x248] sm:$0xff] (!%p165_p2)   ;;  %v16166_v28 = vld [vmem:[%s18238_s1 + $0x250] sm:$0xff] (!%p165_p2)   ;;  %v16168_v30 = vld [vmem:[%s18238_s1 + $0x258] sm:$0xff] (!%p165_p2)  }
   0xd   : > { %s18243_s9 = smov (!%p192_p3, %s191_s9), 624  ;;  %v16169_v31 = vld [vmem:[%s18238_s1 + $0x60] sm:$0xff]   ;;  %v16171_v33 = vld [vmem:[%s18238_s1 + $0x68] sm:$0xff]   ;;  %v16173_v35 = vld [vmem:[%s18238_s1 + $0x70] sm:$0xff]  }
   0xe   : > { %s14002_s23 = sshll.u32 %s18243_s9, 6  ;;  %v16170_v32 = vld [vmem:[%s18238_s1 + $0x260] sm:$0xff]   ;;  %v16172_v34 = vld [vmem:[%s18238_s1 + $0x268] sm:$0xff]   ;;  %v16174_v36 = vld [vmem:[%s18238_s1 + $0x270] sm:$0xff]   ;;  %s12736_s26 = sshll.u32 %s18243_s9, 2 }
   0xf   : > { %7250 = vmatpush1.bf16.msra.mxu1 %v16149_v5  ;;  %9394 = vmatpush1.bf16.msra.mxu0 %v16150_v6  ;;  %s16409_s28 = scalar_lea.vmem %s18237_s0, %s14002_s23  ;;  %v16175_v37 = vld [vmem:[%s18238_s1 + $0x78] sm:$0xff]   ;;  %v16177_v45 = vld [vmem:[%s18238_s1 + $0x80] sm:$0xff]   ;;  %v16179_v53 = vld [vmem:[%s18238_s1 + $0x88] sm:$0xff]   ;;  %s17764_s29 = scalar_lea.vmem %s18241_s4, %s12736_s26 }
  0x10   : > { %7251 = vmatprep.subr.bf16.mxu1 %v16303_v1  ;;  %9395 = vmatprep.subr.bf16.mxu0 %v16303_v1  ;;  %v16420_v19 = vld [vmem:[%s16409_s28] sm:$0xff]  ;;  %v16176_v38 = vld [vmem:[%s18238_s1 + $0x278] sm:$0xff]   ;;  %v16180_v54 = vld [vmem:[%s18238_s1 + $0x288] sm:$0xff]  }
  0x11   : > { %v16423_v20 = vld [vmem:[%s16409_s28 + $0x40] sm:$0xff]  ;;  %v16181_v56 = vld [vmem:[%s18238_s1 + $0x90] sm:$0xff]   ;;  %v16183_v2 = vld [vmem:[%s18238_s1 + $0x98] sm:$0xff]  }
  0x12   : > { %v16426_v21 = vld [vmem:[%s16409_s28 + $0x20] sm:$0xff]  ;;  %v12738_v22 = vcombine.high %v16420_v19, %v16423_v20  ;;  %v12737_v41 = vcombine.low %v16420_v19, %v16423_v20  ;;  %v16182_v59 = vld [vmem:[%s18238_s1 + $0x290] sm:$0xff]   ;;  %v16184_v3 = vld [vmem:[%s18238_s1 + $0x298] sm:$0xff]  }
  0x13   : > { %7252 = vmatpush1.bf16.msra.mxu1 %v16151_v7  ;;  %9396 = vmatpush1.bf16.msra.mxu0 %v16152_v8  ;;  %v16431_v23 = vld [vmem:[%s16409_s28 + $0x60] sm:$0xff]  ;;  %v16187_v20 = vld [vmem:[%s18238_s1 + $0xa8] sm:$0xff]  }
  0x14   : > { %7253 = vmatprep.subr.bf16.mxu1 %v16303_v1  ;;  %9397 = vmatprep.subr.bf16.mxu0 %v16303_v1  ;;  %v12746_v25 = vcombine.high %v16426_v21, %v16431_v23  ;;  %v221_v39 = vld [vmem:[%s16409_s28 + $0x80] sm:$0xff]  ;;  %v12745_v44 = vcombine.low %v16426_v21, %v16431_v23  ;;  %v16188_v23 = vld [vmem:[%s18238_s1 + $0x2a8] sm:$0xff]  }
  0x15   : > { %7277 = vmatprep.mubr.bf16.mxu1 %v12738_v22  ;;  %v229_v40 = vld [vmem:[%s16409_s28 + $0xc0] sm:$0xff] }
  0x16   : > { %9421 = vmatprep.mubr.bf16.mxu0 %v12746_v25  ;;  %v225_v42 = vld [vmem:[%s16409_s28 + $0xa0] sm:$0xff]  ;;  %v12754_v47 = vcombine.high %v221_v39, %v229_v40  ;;  %v12753_v55 = vcombine.low %v221_v39, %v229_v40 }
  0x17   : > { %7254 = vmatpush1.bf16.msra.mxu1 %v16153_v9  ;;  %9398 = vmatpush1.bf16.msra.mxu0 %v16154_v10  ;;  %v233_v43 = vld [vmem:[%s16409_s28 + $0xe0] sm:$0xff] }
  0x18   : > { %7255 = vmatprep.subr.bf16.mxu1 %v16303_v1  ;;  %9399 = vmatprep.subr.bf16.mxu0 %v16303_v1  ;;  %v16178_v46 = vld [vmem:[%s18238_s1 + $0x280] sm:$0xff]   ;;  %v12762_v48 = vcombine.high %v225_v42, %v233_v43  ;;  %v12761_v57 = vcombine.low %v225_v42, %v233_v43 }
  0x19   : > { %v237_v49 = vld [vmem:[%s16409_s28 + $0x100] sm:$0xff] }
  0x1a   : > { %v245_v50 = vld [vmem:[%s16409_s28 + $0x140] sm:$0xff] }
  0x1b   : > { %7256 = vmatpush1.bf16.msra.mxu1 %v16155_v11  ;;  %9400 = vmatpush1.bf16.msra.mxu0 %v16156_v12  ;;  %v241_v51 = vld [vmem:[%s16409_s28 + $0x120] sm:$0xff]  ;;  %v12770_v58 = vcombine.high %v237_v49, %v245_v50  ;;  %v12769_v4 = vcombine.low %v237_v49, %v245_v50 }
  0x1c   : > { %7257 = vmatprep.subr.bf16.mxu1 %v16303_v1  ;;  %9401 = vmatprep.subr.bf16.mxu0 %v16303_v1  ;;  %v249_v52 = vld [vmem:[%s16409_s28 + $0x160] sm:$0xff] }
  0x1d   : > { %v12778_v60 = vcombine.high %v241_v51, %v249_v52  ;;  %v253_v61 = vld [vmem:[%s16409_s28 + $0x180] sm:$0xff]  ;;  %v12777_v6 = vcombine.low %v241_v51, %v249_v52 }
  0x1e   : > { %v261_v62 = vld [vmem:[%s16409_s28 + $0x1c0] sm:$0xff] }
  0x1f   : > { %7258 = vmatpush1.bf16.msra.mxu1 %v16157_v13  ;;  %9402 = vmatpush1.bf16.msra.mxu0 %v16158_v14  ;;  %v257_v63 = vld [vmem:[%s16409_s28 + $0x1a0] sm:$0xff]  ;;  %v12786_v7 = vcombine.high %v253_v61, %v261_v62  ;;  %v12785_v14 = vcombine.low %v253_v61, %v261_v62 }
  0x20   : > { %7259 = vmatprep.subr.bf16.mxu1 %v16303_v1  ;;  %9403 = vmatprep.subr.bf16.mxu0 %v16303_v1  ;;  %v265_v0 = vld [vmem:[%s16409_s28 + $0x1e0] sm:$0xff] }
  0x21   : > { %v16185_v5 = vld [vmem:[%s18238_s1 + $0xa0] sm:$0xff]   ;;  %v12794_v9 = vcombine.high %v257_v63, %v265_v0 }
  0x22   : > { %v16186_v8 = vld [vmem:[%s18238_s1 + $0x2a0] sm:$0xff]  }
  0x23   : > { %7260 = vmatpush1.bf16.msra.mxu1 %v16159_v15  ;;  %9404 = vmatpush1.bf16.msra.mxu0 %v16160_v16  ;;  %v269_v10 = vld [vmem:[%s16409_s28 + $0x200] sm:$0xff]  ;;  %v12793_v15 = vcombine.low %v257_v63, %v265_v0 }
  0x24   : > { %7261 = vmatprep.subr.bf16.mxu1 %v16303_v1  ;;  %9405 = vmatprep.subr.bf16.mxu0 %v16303_v1  ;;  %v277_v11 = vld [vmem:[%s16409_s28 + $0x240] sm:$0xff] }
  0x25   : > { %v273_v12 = vld [vmem:[%s16409_s28 + $0x220] sm:$0xff]  ;;  %v12802_v16 = vcombine.high %v269_v10, %v277_v11 }
  0x26   : > { %v281_v13 = vld [vmem:[%s16409_s28 + $0x260] sm:$0xff] }
  0x27   : > { %7262 = vmatpush1.bf16.msra.mxu1 %v16161_v17  ;;  %9406 = vmatpush1.bf16.msra.mxu0 %v16162_v18  ;;  %v12810_v17 = vcombine.high %v273_v12, %v281_v13  ;;  %v285_v18 = vld [vmem:[%s16409_s28 + $0x280] sm:$0xff]  ;;  %v12809_v25 = vcombine.low %v273_v12, %v281_v13 }
  0x28   : > { %7263 = vmatprep.subr.bf16.mxu1 %v16303_v1  ;;  %9407 = vmatprep.subr.bf16.mxu0 %v16303_v1  ;;  %v293_v19 = vld [vmem:[%s16409_s28 + $0x2c0] sm:$0xff] }
  0x29   : > { %v289_v21 = vld [vmem:[%s16409_s28 + $0x2a0] sm:$0xff] }
  0x2a   : > { %v297_v22 = vld [vmem:[%s16409_s28 + $0x2e0] sm:$0xff] }
  0x2b   : > { %7264 = vmatpush1.bf16.msra.mxu1 %v16163_v24  ;;  %9408 = vmatpush1.bf16.msra.mxu0 %v16164_v26  ;;  %v12801_v24 = vcombine.low %v269_v10, %v277_v11  ;;  %v12818_v26 = vcombine.high %v285_v18, %v293_v19  ;;  %v329_v39 = vld [vmem:[%s16409_s28 + $0x3e0] sm:$0xff] }
  0x2c   : > { %7265 = vmatprep.subr.bf16.mxu1 %v16303_v1  ;;  %9409 = vmatprep.subr.bf16.mxu0 %v16303_v1  ;;  %v349_v52 = vld [vmem:[%s16409_s28 + $0x480] sm:$0xff] }
  0x2d   : > { %v365_v62 = vld [vmem:[%s16409_s28 + $0x500] sm:$0xff] }
  0x2e   : > { %v373_v63 = vld [vmem:[%s16409_s28 + $0x540] sm:$0xff] }
  0x2f   : > { %7266 = vmatpush1.bf16.msra.mxu1 %v16165_v27  ;;  %9410 = vmatpush1.bf16.msra.mxu0 %v16166_v28  ;;  %v12826_v27 = vcombine.high %v289_v21, %v297_v22  ;;  %v301_v28 = vld [vmem:[%s16409_s28 + $0x300] sm:$0xff]  ;;  %v12897_v11 = vcombine.low %v365_v62, %v373_v63 }
  0x30   : > { %7267 = vmatprep.subr.bf16.mxu1 %v16303_v1  ;;  %9411 = vmatprep.subr.bf16.mxu0 %v16303_v1  ;;  %v369_v0 = vld [vmem:[%s16409_s28 + $0x520] sm:$0xff] }
  0x31   : > { %v393_v10 = vld [vmem:[%s16409_s28 + $0x5e0] sm:$0xff] }
  0x33   : > { %7268 = vmatpush1.bf16.msra.mxu1 %v16167_v29  ;;  %9412 = vmatpush1.bf16.msra.mxu0 %v16168_v30  ;;  %v309_v29 = vld [vmem:[%s16409_s28 + $0x340] sm:$0xff] }
  0x34   : > { %7269 = vmatprep.subr.bf16.mxu1 %v16303_v1  ;;  %9413 = vmatprep.subr.bf16.mxu0 %v16303_v1  ;;  %v305_v30 = vld [vmem:[%s16409_s28 + $0x320] sm:$0xff]  ;;  %v12833_v40 = vcombine.low %v301_v28, %v309_v29 }
  0x37   : > { %7270 = vmatpush1.bf16.msra.mxu1 %v16169_v31  ;;  %9414 = vmatpush1.bf16.msra.mxu0 %v16170_v32  ;;  %v313_v31 = vld [vmem:[%s16409_s28 + $0x360] sm:$0xff]  ;;  %v12817_v32 = vcombine.low %v285_v18, %v293_v19 }
  0x38   : > { %7271 = vmatprep.subr.bf16.mxu1 %v16303_v1  ;;  %9415 = vmatprep.subr.bf16.mxu0 %v16303_v1  ;;  %v409_v18 = vld [vmem:[%s16409_s28 + $0x660] sm:$0xff] }
  0x3b   : > { %7272 = vmatpush1.bf16.msra.mxu1 %v16171_v33  ;;  %9416 = vmatpush1.bf16.msra.mxu0 %v16172_v34  ;;  %v12825_v33 = vcombine.low %v289_v21, %v297_v22  ;;  %v12834_v34 = vcombine.high %v301_v28, %v309_v29  ;;  %v425_v28 = vld [vmem:[%s16409_s28 + $0x6e0] sm:$0xff] }
  0x3c   : > { %7273 = vmatprep.subr.bf16.mxu1 %v16303_v1  ;;  %9417 = vmatprep.subr.bf16.mxu0 %v16303_v1 }
  0x3f   : > { %7274 = vmatpush1.bf16.msra.mxu1 %v16173_v35  ;;  %9418 = vmatpush1.bf16.msra.mxu0 %v16174_v36  ;;  %v12842_v35 = vcombine.high %v305_v30, %v313_v31  ;;  %v317_v36 = vld [vmem:[%s16409_s28 + $0x380] sm:$0xff] }
  0x40   : > { %7275 = vmatprep.subr.bf16.mxu1 %v16303_v1  ;;  %9419 = vmatprep.subr.bf16.mxu0 %v16303_v1 }
  0x43   : > { %7276 = vmatpush1.bf16.msra.mxu1 %v16175_v37  ;;  %9420 = vmatpush1.bf16.msra.mxu0 %v16176_v38  ;;  %v325_v37 = vld [vmem:[%s16409_s28 + $0x3c0] sm:$0xff] }
  0x44   : > { %7781 = vmatprep.subr.bf16.mxu1 %v16303_v1  ;;  %9925 = vmatprep.subr.bf16.mxu0 %v16303_v1  ;;  %v321_v38 = vld [vmem:[%s16409_s28 + $0x3a0] sm:$0xff]  ;;  %v12850_v42 = vcombine.high %v317_v36, %v325_v37 }
  0x45   : > { %v12858_v43 = vcombine.high %v321_v38, %v329_v39  ;;  %v12857_v49 = vcombine.low %v321_v38, %v329_v39 }
  0x46   : > { %7278 = vmatmul.mubr.bf16.vlgmr.msra.gmra.mrb[0].mxu1 %v12737_v41  ;;  %9422 = vmatmul.mubr.bf16.vlgmr.msra.gmra.mrb[0].mxu0 %v12745_v44  ;;  %v12841_v41 = vcombine.low %v305_v30, %v313_v31  ;;  %v333_v44 = vld [vmem:[%s16409_s28 + $0x400] sm:$0xff] }
  0x47   : > { %7782 = vmatpush1.bf16.msra.mxu1 %v16177_v45  ;;  %9926 = vmatpush1.bf16.msra.mxu0 %v16178_v46  ;;  %v341_v45 = vld [vmem:[%s16409_s28 + $0x440] sm:$0xff] }
  0x48   : > { %7285 = vmatprep.mubr.bf16.mxu1 %v12754_v47  ;;  %9429 = vmatprep.mubr.bf16.mxu0 %v12762_v48  ;;  %v337_v46 = vld [vmem:[%s16409_s28 + $0x420] sm:$0xff]  ;;  %v12849_v48 = vcombine.low %v317_v36, %v325_v37  ;;  %v12866_v50 = vcombine.high %v333_v44, %v341_v45 }
  0x49   : > { %7783 = vmatprep.subr.bf16.mxu1 %v16303_v1  ;;  %9927 = vmatprep.subr.bf16.mxu0 %v16303_v1  ;;  %v345_v47 = vld [vmem:[%s16409_s28 + $0x460] sm:$0xff] }
  0x4a   : > { %v12874_v51 = vcombine.high %v337_v46, %v345_v47  ;;  %v441_v36 = vld [vmem:[%s16409_s28 + $0x760] sm:$0xff] }
  0x4b   : > { %7784 = vmatpush1.bf16.msra.mxu1 %v16179_v53  ;;  %9928 = vmatpush1.bf16.msra.mxu0 %v16180_v54  ;;  %v16189_v53 = vld [vmem:[%s18238_s1 + $0xb0] sm:$0xff]  }
  0x4c   : > { %7785 = vmatprep.subr.bf16.mxu1 %v16303_v1  ;;  %9929 = vmatprep.subr.bf16.mxu0 %v16303_v1  ;;  %v16190_v54 = vld [vmem:[%s18238_s1 + $0x2b0] sm:$0xff]  }
  0x4e   : > { %7286 = vmatmul.mubr.bf16.gmra.mrb[4].mxu1 %v12753_v55  ;;  %9430 = vmatmul.mubr.bf16.gmra.mrb[4].mxu0 %v12761_v57  ;;  %v357_v55 = vld [vmem:[%s16409_s28 + $0x4c0] sm:$0xff] }
  0x4f   : > { %7293 = vmatprep.mubr.bf16.mxu1 %v12770_v58  ;;  %9437 = vmatprep.mubr.bf16.mxu0 %v12778_v60  ;;  %v361_v57 = vld [vmem:[%s16409_s28 + $0x4e0] sm:$0xff]  ;;  %v12865_v58 = vcombine.low %v333_v44, %v341_v45  ;;  %v12882_v60 = vcombine.high %v349_v52, %v357_v55 }
  0x50   : > { %7786 = vmatpush1.bf16.msra.mxu1 %v16181_v56  ;;  %9930 = vmatpush1.bf16.msra.mxu0 %v16182_v59  ;;  %v353_v56 = vld [vmem:[%s16409_s28 + $0x4a0] sm:$0xff]  ;;  %v12873_v59 = vcombine.low %v337_v46, %v345_v47 }
  0x51   : > { %7787 = vmatprep.subr.bf16.mxu1 %v16303_v1  ;;  %9931 = vmatprep.subr.bf16.mxu0 %v16303_v1  ;;  %v12890_v61 = vcombine.high %v353_v56, %v361_v57  ;;  %v457_v44 = vld [vmem:[%s16409_s28 + $0x7e0] sm:$0xff] }
  0x54   : > { %7788 = vmatpush1.bf16.msra.mxu1 %v16183_v2  ;;  %9932 = vmatpush1.bf16.msra.mxu0 %v16184_v3  ;;  %v377_v2 = vld [vmem:[%s16409_s28 + $0x560] sm:$0xff]  ;;  %v12881_v3 = vcombine.low %v349_v52, %v357_v55 }
  0x55   : > { %7789 = vmatprep.subr.bf16.mxu1 %v16303_v1  ;;  %9933 = vmatprep.subr.bf16.mxu0 %v16303_v1  ;;  %v12905_v12 = vcombine.low %v369_v0, %v377_v2  ;;  %v473_v52 = vld [vmem:[%s16409_s28 + $0x860] sm:$0xff] }
  0x56   : > { %7294 = vmatmul.mubr.bf16.gmra.mrb[8].mxu1 %v12769_v4  ;;  %9438 = vmatmul.mubr.bf16.gmra.mrb[8].mxu0 %v12777_v6  ;;  %v12889_v4 = vcombine.low %v353_v56, %v361_v57  ;;  %v12906_v6 = vcombine.high %v369_v0, %v377_v2  ;;  %v16193_v57 = vld [vmem:[%s18238_s1 + $0xc0] sm:$0xff]  }
  0x57   : > { %7301 = vmatprep.mubr.bf16.mxu1 %v12786_v7  ;;  %9445 = vmatprep.mubr.bf16.mxu0 %v12794_v9  ;;  %v381_v7 = vld [vmem:[%s16409_s28 + $0x580] sm:$0xff] }
  0x58   : > { %7790 = vmatpush1.bf16.msra.mxu1 %v16185_v5  ;;  %9934 = vmatpush1.bf16.msra.mxu0 %v16186_v8  ;;  %v12898_v5 = vcombine.high %v365_v62, %v373_v63  ;;  %v389_v8 = vld [vmem:[%s16409_s28 + $0x5c0] sm:$0xff] }
  0x59   : > { %7791 = vmatprep.subr.bf16.mxu1 %v16303_v1  ;;  %9935 = vmatprep.subr.bf16.mxu0 %v16303_v1  ;;  %v385_v9 = vld [vmem:[%s16409_s28 + $0x5a0] sm:$0xff]  ;;  %v12914_v13 = vcombine.high %v381_v7, %v389_v8  ;;  %v12913_v19 = vcombine.low %v381_v7, %v389_v8 }
  0x5a   : > { %v489_v62 = vld [vmem:[%s16409_s28 + $0x8e0] sm:$0xff] }
  0x5b   : > { %v505_v7 = vld [vmem:[%s16409_s28 + $0x960] sm:$0xff] }
  0x5c   : > { %7792 = vmatpush1.bf16.msra.mxu1 %v16187_v20  ;;  %9936 = vmatpush1.bf16.msra.mxu0 %v16188_v23  ;;  %v12921_v20 = vcombine.low %v385_v9, %v393_v10  ;;  %v16191_v23 = vld [vmem:[%s18238_s1 + $0xb8] sm:$0xff]  }
  0x5d   : > { %7793 = vmatprep.subr.bf16.mxu1 %v16303_v1  ;;  %9937 = vmatprep.subr.bf16.mxu0 %v16303_v1 }
  0x5e   : > { %7302 = vmatmul.mubr.bf16.gmra.mrb[12].mxu1 %v12785_v14  ;;  %9446 = vmatmul.mubr.bf16.gmra.mrb[12].mxu0 %v12793_v15  ;;  %v12922_v14 = vcombine.high %v385_v9, %v393_v10  ;;  %v397_v15 = vld [vmem:[%s16409_s28 + $0x600] sm:$0xff] }
  0x5f   : > { %7309 = vmatprep.mubr.bf16.mxu1 %v12802_v16  ;;  %9453 = vmatprep.mubr.bf16.mxu0 %v12810_v17  ;;  %v405_v16 = vld [vmem:[%s16409_s28 + $0x640] sm:$0xff] }
  0x60   : > { %7794 = vmatpush1.bf16.msra.mxu1 %v16189_v53  ;;  %9938 = vmatpush1.bf16.msra.mxu0 %v16190_v54  ;;  %v401_v17 = vld [vmem:[%s16409_s28 + $0x620] sm:$0xff]  ;;  %v12930_v21 = vcombine.high %v397_v15, %v405_v16  ;;  %v12929_v29 = vcombine.low %v397_v15, %v405_v16 }
  0x61   : > { %7795 = vmatprep.subr.bf16.mxu1 %v16303_v1  ;;  %9939 = vmatprep.subr.bf16.mxu0 %v16303_v1  ;;  %v12938_v22 = vcombine.high %v401_v17, %v409_v18  ;;  %v12937_v30 = vcombine.low %v401_v17, %v409_v18  ;;  %v521_v15 = vld [vmem:[%s16409_s28 + $0x9e0] sm:$0xff] }
  0x64   : > { %7796 = vmatpush1.bf16.msra.mxu1 %v16191_v23  ;;  %v537_v23 = vld [vmem:[%s16409_s28 + $0xa60] sm:$0xff] }
  0x65   : > { %7797 = vmatprep.subr.bf16.mxu1 %v16303_v1 }
  0x66   : > { %7310 = vmatmul.mubr.bf16.gmra.mrb[16].mxu1 %v12801_v24  ;;  %9454 = vmatmul.mubr.bf16.gmra.mrb[16].mxu0 %v12809_v25  ;;  %v16192_v24 = vld [vmem:[%s18238_s1 + $0x2b8] sm:$0xff]   ;;  %v413_v25 = vld [vmem:[%s16409_s28 + $0x680] sm:$0xff] }
  0x67   : > { %7317 = vmatprep.mubr.bf16.mxu1 %v12818_v26  ;;  %9461 = vmatprep.mubr.bf16.mxu0 %v12826_v27  ;;  %v421_v26 = vld [vmem:[%s16409_s28 + $0x6c0] sm:$0xff] }
  0x68   : > { %v417_v27 = vld [vmem:[%s16409_s28 + $0x6a0] sm:$0xff]  ;;  %9940 = vmatpush1.bf16.msra.mxu0 %v16192_v24  ;;  %v12946_v31 = vcombine.high %v413_v25, %v421_v26  ;;  %v12945_v37 = vcombine.low %v413_v25, %v421_v26  ;;  %7798 = vmatpush1.bf16.msra.mxu1 %v16193_v57 }
  0x69   : > { %9941 = vmatprep.subr.bf16.mxu0 %v16303_v1  ;;  %v12953_v38 = vcombine.low %v417_v27, %v425_v28  ;;  %7799 = vmatprep.subr.bf16.mxu1 %v16303_v1  ;;  %v601_v57 = vld [vmem:[%s16409_s28 + $0xc60] sm:$0xff] }
  0x6e   : > { %7318 = vmatmul.mubr.bf16.gmra.mrb[20].mxu1 %v12817_v32  ;;  %9462 = vmatmul.mubr.bf16.gmra.mrb[20].mxu0 %v12825_v33  ;;  %v12954_v32 = vcombine.high %v417_v27, %v425_v28  ;;  %v429_v33 = vld [vmem:[%s16409_s28 + $0x700] sm:$0xff]  ;;  %v16195_v28 = vld [vmem:[%s18238_s1 + $0xc8] sm:$0xff]  }
  0x6f   : > { %7325 = vmatprep.mubr.bf16.mxu1 %v12834_v34  ;;  %9469 = vmatprep.mubr.bf16.mxu0 %v12842_v35  ;;  %v437_v34 = vld [vmem:[%s16409_s28 + $0x740] sm:$0xff] }
  0x70   : > { %v433_v35 = vld [vmem:[%s16409_s28 + $0x720] sm:$0xff]  ;;  %v12962_v39 = vcombine.high %v429_v33, %v437_v34  ;;  %v12961_v45 = vcombine.low %v429_v33, %v437_v34  ;;  %7800 = vmatpush1.bf16.msra.mxu1 %v16195_v28 }
  0x71   : > { %v12969_v46 = vcombine.low %v433_v35, %v441_v36  ;;  %v553_v33 = vld [vmem:[%s16409_s28 + $0xae0] sm:$0xff]  ;;  %7801 = vmatprep.subr.bf16.mxu1 %v16303_v1 }
  0x72   : > { %v665_v28 = vld [vmem:[%s16409_s28 + $0xe60] sm:$0xff] }
  0x76   : > { %7326 = vmatmul.mubr.bf16.gmra.mrb[24].mxu1 %v12833_v40  ;;  %9470 = vmatmul.mubr.bf16.gmra.mrb[24].mxu0 %v12841_v41  ;;  %v12970_v40 = vcombine.high %v433_v35, %v441_v36  ;;  %v445_v41 = vld [vmem:[%s16409_s28 + $0x780] sm:$0xff] }
  0x77   : > { %7333 = vmatprep.mubr.bf16.mxu1 %v12850_v42  ;;  %9477 = vmatprep.mubr.bf16.mxu0 %v12858_v43  ;;  %v453_v42 = vld [vmem:[%s16409_s28 + $0x7c0] sm:$0xff] }
  0x78   : > { %v449_v43 = vld [vmem:[%s16409_s28 + $0x7a0] sm:$0xff]  ;;  %v12978_v47 = vcombine.high %v445_v41, %v453_v42  ;;  %v12977_v53 = vcombine.low %v445_v41, %v453_v42 }
  0x79   : > { %v12985_v54 = vcombine.low %v449_v43, %v457_v44  ;;  %v569_v41 = vld [vmem:[%s16409_s28 + $0xb60] sm:$0xff] }
  0x7e   : > { %7334 = vmatmul.mubr.bf16.gmra.mrb[28].mxu1 %v12849_v48  ;;  %9478 = vmatmul.mubr.bf16.gmra.mrb[28].mxu0 %v12857_v49  ;;  %v12986_v48 = vcombine.high %v449_v43, %v457_v44  ;;  %v461_v49 = vld [vmem:[%s16409_s28 + $0x800] sm:$0xff] }
  0x7f   : > { %7341 = vmatprep.mubr.bf16.mxu1 %v12866_v50  ;;  %9485 = vmatprep.mubr.bf16.mxu0 %v12874_v51  ;;  %v469_v50 = vld [vmem:[%s16409_s28 + $0x840] sm:$0xff] }
  0x80   : > { %v465_v51 = vld [vmem:[%s16409_s28 + $0x820] sm:$0xff]  ;;  %v12994_v55 = vcombine.high %v461_v49, %v469_v50  ;;  %v12993_v63 = vcombine.low %v461_v49, %v469_v50 }
  0x81   : > { %v13002_v56 = vcombine.high %v465_v51, %v473_v52  ;;  %v13001_v0 = vcombine.low %v465_v51, %v473_v52  ;;  %v585_v49 = vld [vmem:[%s16409_s28 + $0xbe0] sm:$0xff] }
  0x86   : > { %7342 = vmatmul.mubr.bf16.gmra.mrb[32].mxu1 %v12865_v58  ;;  %9486 = vmatmul.mubr.bf16.gmra.mrb[32].mxu0 %v12873_v59  ;;  %v16194_v58 = vld [vmem:[%s18238_s1 + $0x2c0] sm:$0xff]  }
  0x87   : > { %7349 = vmatprep.mubr.bf16.mxu1 %v12882_v60  ;;  %9493 = vmatprep.mubr.bf16.mxu0 %v12890_v61  ;;  %v477_v59 = vld [vmem:[%s16409_s28 + $0x880] sm:$0xff] }
  0x88   : > { %v485_v60 = vld [vmem:[%s16409_s28 + $0x8c0] sm:$0xff]  ;;  %9942 = vmatpush1.bf16.msra.mxu0 %v16194_v58 }
  0x89   : > { %v481_v61 = vld [vmem:[%s16409_s28 + $0x8a0] sm:$0xff]  ;;  %9943 = vmatprep.subr.bf16.mxu0 %v16303_v1  ;;  %v13010_v2 = vcombine.high %v477_v59, %v485_v60  ;;  %v13009_v8 = vcombine.low %v477_v59, %v485_v60 }
  0x8a   : > { %v13017_v9 = vcombine.low %v481_v61, %v489_v62 }
  0x8e   : > { %7350 = vmatmul.mubr.bf16.gmra.mrb[36].mxu1 %v12881_v3  ;;  %9494 = vmatmul.mubr.bf16.gmra.mrb[36].mxu0 %v12889_v4  ;;  %v13018_v3 = vcombine.high %v481_v61, %v489_v62  ;;  %v493_v4 = vld [vmem:[%s16409_s28 + $0x900] sm:$0xff]  ;;  %v16197_v62 = vld [vmem:[%s18238_s1 + $0xd0] sm:$0xff]  }
  0x8f   : > { %7357 = vmatprep.mubr.bf16.mxu1 %v12898_v5  ;;  %9501 = vmatprep.mubr.bf16.mxu0 %v12906_v6  ;;  %v501_v5 = vld [vmem:[%s16409_s28 + $0x940] sm:$0xff] }
  0x90   : > { %v497_v6 = vld [vmem:[%s16409_s28 + $0x920] sm:$0xff]  ;;  %v13026_v10 = vcombine.high %v493_v4, %v501_v5  ;;  %v13025_v16 = vcombine.low %v493_v4, %v501_v5  ;;  %7802 = vmatpush1.bf16.msra.mxu1 %v16197_v62 }
  0x91   : > { %v13033_v17 = vcombine.low %v497_v6, %v505_v7  ;;  %v617_v4 = vld [vmem:[%s16409_s28 + $0xce0] sm:$0xff]  ;;  %7803 = vmatprep.subr.bf16.mxu1 %v16303_v1 }
  0x92   : > { %v729_v62 = vld [vmem:[%s16409_s28 + $0x1060] sm:$0xff] }
  0x96   : > { %7358 = vmatmul.mubr.bf16.gmra.mrb[40].mxu1 %v12897_v11  ;;  %9502 = vmatmul.mubr.bf16.gmra.mrb[40].mxu0 %v12905_v12  ;;  %v13034_v11 = vcombine.high %v497_v6, %v505_v7  ;;  %v509_v12 = vld [vmem:[%s16409_s28 + $0x980] sm:$0xff] }
  0x97   : > { %7365 = vmatprep.mubr.bf16.mxu1 %v12914_v13  ;;  %9509 = vmatprep.mubr.bf16.mxu0 %v12922_v14  ;;  %v517_v13 = vld [vmem:[%s16409_s28 + $0x9c0] sm:$0xff] }
  0x98   : > { %v513_v14 = vld [vmem:[%s16409_s28 + $0x9a0] sm:$0xff]  ;;  %v13042_v18 = vcombine.high %v509_v12, %v517_v13  ;;  %v13041_v24 = vcombine.low %v509_v12, %v517_v13 }
  0x99   : > { %v13049_v25 = vcombine.low %v513_v14, %v521_v15  ;;  %v633_v12 = vld [vmem:[%s16409_s28 + $0xd60] sm:$0xff] }
  0x9e   : > { %7366 = vmatmul.mubr.bf16.gmra.mrb[44].mxu1 %v12913_v19  ;;  %9510 = vmatmul.mubr.bf16.gmra.mrb[44].mxu0 %v12921_v20  ;;  %v13050_v19 = vcombine.high %v513_v14, %v521_v15  ;;  %v525_v20 = vld [vmem:[%s16409_s28 + $0xa00] sm:$0xff] }
  0x9f   : > { %7373 = vmatprep.mubr.bf16.mxu1 %v12930_v21  ;;  %9517 = vmatprep.mubr.bf16.mxu0 %v12938_v22  ;;  %v533_v21 = vld [vmem:[%s16409_s28 + $0xa40] sm:$0xff] }
  0xa0   : > { %v529_v22 = vld [vmem:[%s16409_s28 + $0xa20] sm:$0xff]  ;;  %v13058_v26 = vcombine.high %v525_v20, %v533_v21  ;;  %v13057_v34 = vcombine.low %v525_v20, %v533_v21 }
  0xa1   : > { %v13066_v27 = vcombine.high %v529_v22, %v537_v23  ;;  %v13065_v35 = vcombine.low %v529_v22, %v537_v23  ;;  %v649_v20 = vld [vmem:[%s16409_s28 + $0xde0] sm:$0xff] }
  0xa6   : > { %7374 = vmatmul.mubr.bf16.gmra.mrb[48].mxu1 %v12929_v29  ;;  %9518 = vmatmul.mubr.bf16.gmra.mrb[48].mxu0 %v12937_v30  ;;  %v16196_v29 = vld [vmem:[%s18238_s1 + $0x2c8] sm:$0xff]   ;;  %v541_v30 = vld [vmem:[%s16409_s28 + $0xa80] sm:$0xff] }
  0xa7   : > { %7381 = vmatprep.mubr.bf16.mxu1 %v12946_v31  ;;  %9525 = vmatprep.mubr.bf16.mxu0 %v12954_v32  ;;  %v549_v31 = vld [vmem:[%s16409_s28 + $0xac0] sm:$0xff] }
  0xa8   : > { %v545_v32 = vld [vmem:[%s16409_s28 + $0xaa0] sm:$0xff]  ;;  %9944 = vmatpush1.bf16.msra.mxu0 %v16196_v29  ;;  %v13074_v36 = vcombine.high %v541_v30, %v549_v31  ;;  %v13073_v42 = vcombine.low %v541_v30, %v549_v31 }
  0xa9   : > { %9945 = vmatprep.subr.bf16.mxu0 %v16303_v1  ;;  %v13081_v43 = vcombine.low %v545_v32, %v553_v33 }
  0xae   : > { %7382 = vmatmul.mubr.bf16.gmra.mrb[52].mxu1 %v12945_v37  ;;  %9526 = vmatmul.mubr.bf16.gmra.mrb[52].mxu0 %v12953_v38  ;;  %v13082_v37 = vcombine.high %v545_v32, %v553_v33  ;;  %v557_v38 = vld [vmem:[%s16409_s28 + $0xb00] sm:$0xff]  ;;  %v16199_v33 = vld [vmem:[%s18238_s1 + $0xd8] sm:$0xff]  }
  0xaf   : > { %7389 = vmatprep.mubr.bf16.mxu1 %v12962_v39  ;;  %9533 = vmatprep.mubr.bf16.mxu0 %v12970_v40  ;;  %v565_v39 = vld [vmem:[%s16409_s28 + $0xb40] sm:$0xff] }
  0xb0   : > { %v561_v40 = vld [vmem:[%s16409_s28 + $0xb20] sm:$0xff]  ;;  %v13090_v44 = vcombine.high %v557_v38, %v565_v39  ;;  %v13089_v50 = vcombine.low %v557_v38, %v565_v39  ;;  %7804 = vmatpush1.bf16.msra.mxu1 %v16199_v33 }
  0xb1   : > { %v13097_v51 = vcombine.low %v561_v40, %v569_v41  ;;  %v681_v38 = vld [vmem:[%s16409_s28 + $0xee0] sm:$0xff]  ;;  %7805 = vmatprep.subr.bf16.mxu1 %v16303_v1 }
  0xb2   : > { %v793_v33 = vld [vmem:[%s16409_s28 + $0x1260] sm:$0xff] }
  0xb6   : > { %7390 = vmatmul.mubr.bf16.gmra.mrb[56].mxu1 %v12961_v45  ;;  %9534 = vmatmul.mubr.bf16.gmra.mrb[56].mxu0 %v12969_v46  ;;  %v13098_v45 = vcombine.high %v561_v40, %v569_v41  ;;  %v573_v46 = vld [vmem:[%s16409_s28 + $0xb80] sm:$0xff] }
  0xb7   : > { %7397 = vmatprep.mubr.bf16.mxu1 %v12978_v47  ;;  %9541 = vmatprep.mubr.bf16.mxu0 %v12986_v48  ;;  %v581_v47 = vld [vmem:[%s16409_s28 + $0xbc0] sm:$0xff] }
  0xb8   : > { %v577_v48 = vld [vmem:[%s16409_s28 + $0xba0] sm:$0xff]  ;;  %v13106_v52 = vcombine.high %v573_v46, %v581_v47  ;;  %v13105_v58 = vcombine.low %v573_v46, %v581_v47 }
  0xb9   : > { %v13113_v59 = vcombine.low %v577_v48, %v585_v49  ;;  %v697_v46 = vld [vmem:[%s16409_s28 + $0xf60] sm:$0xff] }
  0xbe   : > { %7398 = vmatmul.mubr.bf16.gmra.mrb[60].mxu1 %v12977_v53  ;;  %9542 = vmatmul.mubr.bf16.gmra.mrb[60].mxu0 %v12985_v54  ;;  %v13114_v53 = vcombine.high %v577_v48, %v585_v49  ;;  %v589_v54 = vld [vmem:[%s16409_s28 + $0xc00] sm:$0xff] }
  0xbf   : > { %7405 = vmatprep.mubr.bf16.mxu1 %v12994_v55  ;;  %9549 = vmatprep.mubr.bf16.mxu0 %v13002_v56  ;;  %v597_v55 = vld [vmem:[%s16409_s28 + $0xc40] sm:$0xff] }
  0xc0   : > { %v593_v56 = vld [vmem:[%s16409_s28 + $0xc20] sm:$0xff]  ;;  %v13122_v60 = vcombine.high %v589_v54, %v597_v55  ;;  %v13121_v5 = vcombine.low %v589_v54, %v597_v55 }
  0xc1   : > { %v13130_v61 = vcombine.high %v593_v56, %v601_v57  ;;  %v13129_v6 = vcombine.low %v593_v56, %v601_v57  ;;  %v713_v54 = vld [vmem:[%s16409_s28 + $0xfe0] sm:$0xff] }
  0xc6   : > { %7406 = vmatmul.mubr.bf16.gmra.mrb[64].mxu1 %v12993_v63  ;;  %9550 = vmatmul.mubr.bf16.gmra.mrb[64].mxu0 %v13001_v0  ;;  %v16198_v63 = vld [vmem:[%s18238_s1 + $0x2d0] sm:$0xff]   ;;  %v605_v0 = vld [vmem:[%s16409_s28 + $0xc80] sm:$0xff] }
  0xc7   : > { %7413 = vmatprep.mubr.bf16.mxu1 %v13010_v2  ;;  %9557 = vmatprep.mubr.bf16.mxu0 %v13018_v3  ;;  %v613_v2 = vld [vmem:[%s16409_s28 + $0xcc0] sm:$0xff] }
  0xc8   : > { %v609_v3 = vld [vmem:[%s16409_s28 + $0xca0] sm:$0xff]  ;;  %9946 = vmatpush1.bf16.msra.mxu0 %v16198_v63  ;;  %v13138_v7 = vcombine.high %v605_v0, %v613_v2  ;;  %v13137_v13 = vcombine.low %v605_v0, %v613_v2 }
  0xc9   : > { %9947 = vmatprep.subr.bf16.mxu0 %v16303_v1  ;;  %v13145_v14 = vcombine.low %v609_v3, %v617_v4 }
  0xce   : > { %7414 = vmatmul.mubr.bf16.gmra.mrb[68].mxu1 %v13009_v8  ;;  %9558 = vmatmul.mubr.bf16.gmra.mrb[68].mxu0 %v13017_v9  ;;  %v13146_v8 = vcombine.high %v609_v3, %v617_v4  ;;  %v621_v9 = vld [vmem:[%s16409_s28 + $0xd00] sm:$0xff] }
  0xcf   : > { %7421 = vmatprep.mubr.bf16.mxu1 %v13026_v10  ;;  %9565 = vmatprep.mubr.bf16.mxu0 %v13034_v11  ;;  %v629_v10 = vld [vmem:[%s16409_s28 + $0xd40] sm:$0xff] }
  0xd0   : > { %v625_v11 = vld [vmem:[%s16409_s28 + $0xd20] sm:$0xff]  ;;  %v13154_v15 = vcombine.high %v621_v9, %v629_v10  ;;  %v13153_v21 = vcombine.low %v621_v9, %v629_v10 }
  0xd1   : > { %v13161_v22 = vcombine.low %v625_v11, %v633_v12  ;;  %v16201_v4 = vld [vmem:[%s18238_s1 + $0xe0] sm:$0xff]  }
  0xd2   : > { %v745_v9 = vld [vmem:[%s16409_s28 + $0x10e0] sm:$0xff]  ;;  %7806 = vmatpush1.bf16.msra.mxu1 %v16201_v4 }
  0xd3   : > { %7807 = vmatprep.subr.bf16.mxu1 %v16303_v1  ;;  %v857_v4 = vld [vmem:[%s16409_s28 + $0x1460] sm:$0xff] }
  0xd6   : > { %7422 = vmatmul.mubr.bf16.gmra.mrb[72].mxu1 %v13025_v16  ;;  %9566 = vmatmul.mubr.bf16.gmra.mrb[72].mxu0 %v13033_v17  ;;  %v13162_v16 = vcombine.high %v625_v11, %v633_v12  ;;  %v637_v17 = vld [vmem:[%s16409_s28 + $0xd80] sm:$0xff] }
  0xd7   : > { %7429 = vmatprep.mubr.bf16.mxu1 %v13042_v18  ;;  %9573 = vmatprep.mubr.bf16.mxu0 %v13050_v19  ;;  %v645_v18 = vld [vmem:[%s16409_s28 + $0xdc0] sm:$0xff] }
  0xd8   : > { %v641_v19 = vld [vmem:[%s16409_s28 + $0xda0] sm:$0xff]  ;;  %v13170_v23 = vcombine.high %v637_v17, %v645_v18  ;;  %v13169_v29 = vcombine.low %v637_v17, %v645_v18 }
  0xd9   : > { %v13177_v30 = vcombine.low %v641_v19, %v649_v20  ;;  %v761_v17 = vld [vmem:[%s16409_s28 + $0x1160] sm:$0xff] }
  0xde   : > { %7430 = vmatmul.mubr.bf16.gmra.mrb[76].mxu1 %v13041_v24  ;;  %9574 = vmatmul.mubr.bf16.gmra.mrb[76].mxu0 %v13049_v25  ;;  %v13178_v24 = vcombine.high %v641_v19, %v649_v20  ;;  %v653_v25 = vld [vmem:[%s16409_s28 + $0xe00] sm:$0xff] }
  0xdf   : > { %7437 = vmatprep.mubr.bf16.mxu1 %v13058_v26  ;;  %9581 = vmatprep.mubr.bf16.mxu0 %v13066_v27  ;;  %v661_v26 = vld [vmem:[%s16409_s28 + $0xe40] sm:$0xff] }
  0xe0   : > { %v657_v27 = vld [vmem:[%s16409_s28 + $0xe20] sm:$0xff]  ;;  %v13186_v31 = vcombine.high %v653_v25, %v661_v26  ;;  %v13185_v39 = vcombine.low %v653_v25, %v661_v26 }
  0xe1   : > { %v13194_v32 = vcombine.high %v657_v27, %v665_v28  ;;  %v13193_v40 = vcombine.low %v657_v27, %v665_v28  ;;  %v777_v25 = vld [vmem:[%s16409_s28 + $0x11e0] sm:$0xff] }
  0xe6   : > { %7438 = vmatmul.mubr.bf16.gmra.mrb[80].mxu1 %v13057_v34  ;;  %9582 = vmatmul.mubr.bf16.gmra.mrb[80].mxu0 %v13065_v35  ;;  %v16200_v34 = vld [vmem:[%s18238_s1 + $0x2d8] sm:$0xff]   ;;  %v669_v35 = vld [vmem:[%s16409_s28 + $0xe80] sm:$0xff] }
  0xe7   : > { %7445 = vmatprep.mubr.bf16.mxu1 %v13074_v36  ;;  %9589 = vmatprep.mubr.bf16.mxu0 %v13082_v37  ;;  %v677_v36 = vld [vmem:[%s16409_s28 + $0xec0] sm:$0xff] }
  0xe8   : > { %v673_v37 = vld [vmem:[%s16409_s28 + $0xea0] sm:$0xff]  ;;  %9948 = vmatpush1.bf16.msra.mxu0 %v16200_v34  ;;  %v13202_v41 = vcombine.high %v669_v35, %v677_v36  ;;  %v13201_v47 = vcombine.low %v669_v35, %v677_v36 }
  0xe9   : > { %9949 = vmatprep.subr.bf16.mxu0 %v16303_v1  ;;  %v13209_v48 = vcombine.low %v673_v37, %v681_v38 }
  0xee   : > { %7446 = vmatmul.mubr.bf16.gmra.mrb[84].mxu1 %v13073_v42  ;;  %9590 = vmatmul.mubr.bf16.gmra.mrb[84].mxu0 %v13081_v43  ;;  %v13210_v42 = vcombine.high %v673_v37, %v681_v38  ;;  %v685_v43 = vld [vmem:[%s16409_s28 + $0xf00] sm:$0xff]  ;;  %v16203_v38 = vld [vmem:[%s18238_s1 + $0xe8] sm:$0xff]  }
  0xef   : > { %7453 = vmatprep.mubr.bf16.mxu1 %v13090_v44  ;;  %9597 = vmatprep.mubr.bf16.mxu0 %v13098_v45  ;;  %v693_v44 = vld [vmem:[%s16409_s28 + $0xf40] sm:$0xff] }
  0xf0   : > { %v689_v45 = vld [vmem:[%s16409_s28 + $0xf20] sm:$0xff]  ;;  %v13218_v49 = vcombine.high %v685_v43, %v693_v44  ;;  %v13217_v55 = vcombine.low %v685_v43, %v693_v44  ;;  %7808 = vmatpush1.bf16.msra.mxu1 %v16203_v38 }
  0xf1   : > { %v13225_v56 = vcombine.low %v689_v45, %v697_v46  ;;  %v809_v43 = vld [vmem:[%s16409_s28 + $0x12e0] sm:$0xff]  ;;  %7809 = vmatprep.subr.bf16.mxu1 %v16303_v1 }
  0xf2   : > { %v921_v38 = vld [vmem:[%s16409_s28 + $0x1660] sm:$0xff] }
  0xf6   : > { %7454 = vmatmul.mubr.bf16.gmra.mrb[88].mxu1 %v13089_v50  ;;  %9598 = vmatmul.mubr.bf16.gmra.mrb[88].mxu0 %v13097_v51  ;;  %v13226_v50 = vcombine.high %v689_v45, %v697_v46  ;;  %v701_v51 = vld [vmem:[%s16409_s28 + $0xf80] sm:$0xff] }
  0xf7   : > { %7461 = vmatprep.mubr.bf16.mxu1 %v13106_v52  ;;  %9605 = vmatprep.mubr.bf16.mxu0 %v13114_v53  ;;  %v709_v52 = vld [vmem:[%s16409_s28 + $0xfc0] sm:$0xff] }
  0xf8   : > { %v705_v53 = vld [vmem:[%s16409_s28 + $0xfa0] sm:$0xff]  ;;  %v13234_v57 = vcombine.high %v701_v51, %v709_v52  ;;  %v13233_v63 = vcombine.low %v701_v51, %v709_v52 }
  0xf9   : > { %v13241_v0 = vcombine.low %v705_v53, %v713_v54  ;;  %v825_v51 = vld [vmem:[%s16409_s28 + $0x1360] sm:$0xff] }
  0xfe   : > { %7462 = vmatmul.mubr.bf16.gmra.mrb[92].mxu1 %v13105_v58  ;;  %9606 = vmatmul.mubr.bf16.gmra.mrb[92].mxu0 %v13113_v59  ;;  %v13242_v58 = vcombine.high %v705_v53, %v713_v54  ;;  %v717_v59 = vld [vmem:[%s16409_s28 + $0x1000] sm:$0xff] }
  0xff   : > { %7469 = vmatprep.mubr.bf16.mxu1 %v13122_v60  ;;  %9613 = vmatprep.mubr.bf16.mxu0 %v13130_v61  ;;  %v725_v60 = vld [vmem:[%s16409_s28 + $0x1040] sm:$0xff] }
 0x100   : > { %v721_v61 = vld [vmem:[%s16409_s28 + $0x1020] sm:$0xff]  ;;  %v13250_v2 = vcombine.high %v717_v59, %v725_v60  ;;  %v13249_v10 = vcombine.low %v717_v59, %v725_v60 }
 0x101   : > { %v13258_v3 = vcombine.high %v721_v61, %v729_v62  ;;  %v13257_v11 = vcombine.low %v721_v61, %v729_v62  ;;  %v841_v59 = vld [vmem:[%s16409_s28 + $0x13e0] sm:$0xff] }
 0x106   : > { %7470 = vmatmul.mubr.bf16.gmra.mrb[96].mxu1 %v13121_v5  ;;  %9614 = vmatmul.mubr.bf16.gmra.mrb[96].mxu0 %v13129_v6  ;;  %v16202_v5 = vld [vmem:[%s18238_s1 + $0x2e0] sm:$0xff]  }
 0x107   : > { %7477 = vmatprep.mubr.bf16.mxu1 %v13138_v7  ;;  %9621 = vmatprep.mubr.bf16.mxu0 %v13146_v8  ;;  %v733_v6 = vld [vmem:[%s16409_s28 + $0x1080] sm:$0xff] }
 0x108   : > { %v741_v7 = vld [vmem:[%s16409_s28 + $0x10c0] sm:$0xff]  ;;  %9950 = vmatpush1.bf16.msra.mxu0 %v16202_v5 }
 0x109   : > { %v737_v8 = vld [vmem:[%s16409_s28 + $0x10a0] sm:$0xff]  ;;  %9951 = vmatprep.subr.bf16.mxu0 %v16303_v1  ;;  %v13266_v12 = vcombine.high %v733_v6, %v741_v7  ;;  %v13265_v18 = vcombine.low %v733_v6, %v741_v7 }
 0x10a   : > { %v13273_v19 = vcombine.low %v737_v8, %v745_v9 }
 0x10e   : > { %7478 = vmatmul.mubr.bf16.gmra.mrb[100].mxu1 %v13137_v13  ;;  %9622 = vmatmul.mubr.bf16.gmra.mrb[100].mxu0 %v13145_v14  ;;  %v13274_v13 = vcombine.high %v737_v8, %v745_v9  ;;  %v749_v14 = vld [vmem:[%s16409_s28 + $0x1100] sm:$0xff]  ;;  %v16205_v9 = vld [vmem:[%s18238_s1 + $0xf0] sm:$0xff]  }
 0x10f   : > { %7485 = vmatprep.mubr.bf16.mxu1 %v13154_v15  ;;  %9629 = vmatprep.mubr.bf16.mxu0 %v13162_v16  ;;  %v757_v15 = vld [vmem:[%s16409_s28 + $0x1140] sm:$0xff] }
 0x110   : > { %v753_v16 = vld [vmem:[%s16409_s28 + $0x1120] sm:$0xff]  ;;  %v13282_v20 = vcombine.high %v749_v14, %v757_v15  ;;  %v13281_v26 = vcombine.low %v749_v14, %v757_v15  ;;  %7810 = vmatpush1.bf16.msra.mxu1 %v16205_v9 }
 0x111   : > { %v13289_v27 = vcombine.low %v753_v16, %v761_v17  ;;  %v873_v14 = vld [vmem:[%s16409_s28 + $0x14e0] sm:$0xff]  ;;  %7811 = vmatprep.subr.bf16.mxu1 %v16303_v1 }
 0x112   : > { %v985_v9 = vld [vmem:[%s16409_s28 + $0x1860] sm:$0xff] }
 0x116   : > { %7486 = vmatmul.mubr.bf16.gmra.mrb[104].mxu1 %v13153_v21  ;;  %9630 = vmatmul.mubr.bf16.gmra.mrb[104].mxu0 %v13161_v22  ;;  %v13290_v21 = vcombine.high %v753_v16, %v761_v17  ;;  %v765_v22 = vld [vmem:[%s16409_s28 + $0x1180] sm:$0xff] }
 0x117   : > { %7493 = vmatprep.mubr.bf16.mxu1 %v13170_v23  ;;  %9637 = vmatprep.mubr.bf16.mxu0 %v13178_v24  ;;  %v773_v23 = vld [vmem:[%s16409_s28 + $0x11c0] sm:$0xff] }
 0x118   : > { %v769_v24 = vld [vmem:[%s16409_s28 + $0x11a0] sm:$0xff]  ;;  %v13298_v28 = vcombine.high %v765_v22, %v773_v23  ;;  %v13297_v34 = vcombine.low %v765_v22, %v773_v23 }
 0x119   : > { %v13305_v35 = vcombine.low %v769_v24, %v777_v25  ;;  %v889_v22 = vld [vmem:[%s16409_s28 + $0x1560] sm:$0xff] }
 0x11e   : > { %7494 = vmatmul.mubr.bf16.gmra.mrb[108].mxu1 %v13169_v29  ;;  %9638 = vmatmul.mubr.bf16.gmra.mrb[108].mxu0 %v13177_v30  ;;  %v13306_v29 = vcombine.high %v769_v24, %v777_v25  ;;  %v781_v30 = vld [vmem:[%s16409_s28 + $0x1200] sm:$0xff] }
 0x11f   : > { %7501 = vmatprep.mubr.bf16.mxu1 %v13186_v31  ;;  %9645 = vmatprep.mubr.bf16.mxu0 %v13194_v32  ;;  %v789_v31 = vld [vmem:[%s16409_s28 + $0x1240] sm:$0xff] }
 0x120   : > { %v785_v32 = vld [vmem:[%s16409_s28 + $0x1220] sm:$0xff]  ;;  %v13314_v36 = vcombine.high %v781_v30, %v789_v31  ;;  %v13313_v44 = vcombine.low %v781_v30, %v789_v31 }
 0x121   : > { %v13322_v37 = vcombine.high %v785_v32, %v793_v33  ;;  %v13321_v45 = vcombine.low %v785_v32, %v793_v33  ;;  %v905_v30 = vld [vmem:[%s16409_s28 + $0x15e0] sm:$0xff] }
 0x126   : > { %7502 = vmatmul.mubr.bf16.gmra.mrb[112].mxu1 %v13185_v39  ;;  %9646 = vmatmul.mubr.bf16.gmra.mrb[112].mxu0 %v13193_v40  ;;  %v16204_v39 = vld [vmem:[%s18238_s1 + $0x2e8] sm:$0xff]   ;;  %v797_v40 = vld [vmem:[%s16409_s28 + $0x1280] sm:$0xff] }
 0x127   : > { %7509 = vmatprep.mubr.bf16.mxu1 %v13202_v41  ;;  %9653 = vmatprep.mubr.bf16.mxu0 %v13210_v42  ;;  %v805_v41 = vld [vmem:[%s16409_s28 + $0x12c0] sm:$0xff] }
 0x128   : > { %v801_v42 = vld [vmem:[%s16409_s28 + $0x12a0] sm:$0xff]  ;;  %9952 = vmatpush1.bf16.msra.mxu0 %v16204_v39  ;;  %v13330_v46 = vcombine.high %v797_v40, %v805_v41  ;;  %v13329_v52 = vcombine.low %v797_v40, %v805_v41 }
 0x129   : > { %9953 = vmatprep.subr.bf16.mxu0 %v16303_v1  ;;  %v13337_v53 = vcombine.low %v801_v42, %v809_v43 }
 0x12e   : > { %7510 = vmatmul.mubr.bf16.gmra.mrb[116].mxu1 %v13201_v47  ;;  %9654 = vmatmul.mubr.bf16.gmra.mrb[116].mxu0 %v13209_v48  ;;  %v13338_v47 = vcombine.high %v801_v42, %v809_v43  ;;  %v813_v48 = vld [vmem:[%s16409_s28 + $0x1300] sm:$0xff]  ;;  %v16207_v43 = vld [vmem:[%s18238_s1 + $0xf8] sm:$0xff]  }
 0x12f   : > { %7517 = vmatprep.mubr.bf16.mxu1 %v13218_v49  ;;  %9661 = vmatprep.mubr.bf16.mxu0 %v13226_v50  ;;  %v821_v49 = vld [vmem:[%s16409_s28 + $0x1340] sm:$0xff] }
 0x130   : > { %v817_v50 = vld [vmem:[%s16409_s28 + $0x1320] sm:$0xff]  ;;  %v13346_v54 = vcombine.high %v813_v48, %v821_v49  ;;  %v13345_v60 = vcombine.low %v813_v48, %v821_v49  ;;  %7812 = vmatpush1.bf16.msra.mxu1 %v16207_v43 }
 0x131   : > { %v13353_v61 = vcombine.low %v817_v50, %v825_v51  ;;  %v937_v48 = vld [vmem:[%s16409_s28 + $0x16e0] sm:$0xff]  ;;  %8317 = vmatprep.subr.bf16.mxu1 %v16303_v1 }
 0x136   : > { %7518 = vmatmul.mubr.bf16.gmra.mrb[120].mxu1 %v13217_v55  ;;  %9662 = vmatmul.mubr.bf16.gmra.mrb[120].mxu0 %v13225_v56  ;;  %v13354_v55 = vcombine.high %v817_v50, %v825_v51  ;;  %v829_v56 = vld [vmem:[%s16409_s28 + $0x1380] sm:$0xff] }
 0x137   : > { %7525 = vmatprep.mubr.bf16.mxu1 %v13234_v57  ;;  %9669 = vmatprep.mubr.bf16.mxu0 %v13242_v58  ;;  %v837_v57 = vld [vmem:[%s16409_s28 + $0x13c0] sm:$0xff] }
 0x138   : > { %v833_v58 = vld [vmem:[%s16409_s28 + $0x13a0] sm:$0xff]  ;;  %v13362_v62 = vcombine.high %v829_v56, %v837_v57  ;;  %v13361_v5 = vcombine.low %v829_v56, %v837_v57 }
 0x139   : > { %v13369_v6 = vcombine.low %v833_v58, %v841_v59  ;;  %v953_v56 = vld [vmem:[%s16409_s28 + $0x1760] sm:$0xff] }
 0x13e   : > { %7526 = vmatmul.mubr.bf16.gmra.mrb[124].mxu1 %v13233_v63  ;;  %9670 = vmatmul.mubr.bf16.gmra.mrb[124].mxu0 %v13241_v0  ;;  %v13370_v63 = vcombine.high %v833_v58, %v841_v59  ;;  %v845_v0 = vld [vmem:[%s16409_s28 + $0x1400] sm:$0xff] }
 0x13f   : > { %7533 = vmatprep.mubr.bf16.mxu1 %v13250_v2  ;;  %9677 = vmatprep.mubr.bf16.mxu0 %v13258_v3  ;;  %v853_v2 = vld [vmem:[%s16409_s28 + $0x1440] sm:$0xff] }
 0x140   : > { %v849_v3 = vld [vmem:[%s16409_s28 + $0x1420] sm:$0xff]  ;;  %v13378_v7 = vcombine.high %v845_v0, %v853_v2  ;;  %v13377_v15 = vcombine.low %v845_v0, %v853_v2 }
 0x141   : > { %v13386_v8 = vcombine.high %v849_v3, %v857_v4  ;;  %v13385_v16 = vcombine.low %v849_v3, %v857_v4  ;;  %v969_v0 = vld [vmem:[%s16409_s28 + $0x17e0] sm:$0xff] }
 0x146   : > { %7534 = vmatmul.mubr.bf16.gmra.mrb[128].mxu1 %v13249_v10  ;;  %9678 = vmatmul.mubr.bf16.gmra.mrb[128].mxu0 %v13257_v11  ;;  %v16206_v10 = vld [vmem:[%s18238_s1 + $0x2f0] sm:$0xff]   ;;  %v861_v11 = vld [vmem:[%s16409_s28 + $0x1480] sm:$0xff] }
 0x147   : > { %7541 = vmatprep.mubr.bf16.mxu1 %v13266_v12  ;;  %9685 = vmatprep.mubr.bf16.mxu0 %v13274_v13  ;;  %v869_v12 = vld [vmem:[%s16409_s28 + $0x14c0] sm:$0xff] }
 0x148   : > { %v865_v13 = vld [vmem:[%s16409_s28 + $0x14a0] sm:$0xff]  ;;  %9954 = vmatpush1.bf16.msra.mxu0 %v16206_v10  ;;  %v13394_v17 = vcombine.high %v861_v11, %v869_v12  ;;  %v13393_v23 = vcombine.low %v861_v11, %v869_v12 }
 0x149   : > { %9955 = vmatprep.subr.bf16.mxu0 %v16303_v1  ;;  %v13401_v24 = vcombine.low %v865_v13, %v873_v14 }
 0x14e   : > { %7542 = vmatmul.mubr.bf16.gmra.mrb[132].mxu1 %v13265_v18  ;;  %9686 = vmatmul.mubr.bf16.gmra.mrb[132].mxu0 %v13273_v19  ;;  %v13402_v18 = vcombine.high %v865_v13, %v873_v14  ;;  %v877_v19 = vld [vmem:[%s16409_s28 + $0x1500] sm:$0xff] }
 0x14f   : > { %7549 = vmatprep.mubr.bf16.mxu1 %v13282_v20  ;;  %9693 = vmatprep.mubr.bf16.mxu0 %v13290_v21  ;;  %v885_v20 = vld [vmem:[%s16409_s28 + $0x1540] sm:$0xff] }
 0x150   : > { %v881_v21 = vld [vmem:[%s16409_s28 + $0x1520] sm:$0xff]  ;;  %v13410_v25 = vcombine.high %v877_v19, %v885_v20  ;;  %v13409_v31 = vcombine.low %v877_v19, %v885_v20 }
 0x151   : > { %v13417_v32 = vcombine.low %v881_v21, %v889_v22  ;;  %v989_v14 = vld [vmem:[%s16409_s28 + $0x1880] sm:$0xff] }
 0x156   : > { %7550 = vmatmul.mubr.bf16.gmra.mrb[136].mxu1 %v13281_v26  ;;  %9694 = vmatmul.mubr.bf16.gmra.mrb[136].mxu0 %v13289_v27  ;;  %v13418_v26 = vcombine.high %v881_v21, %v889_v22  ;;  %v893_v27 = vld [vmem:[%s16409_s28 + $0x1580] sm:$0xff] }
 0x157   : > { %7557 = vmatprep.mubr.bf16.mxu1 %v13298_v28  ;;  %9701 = vmatprep.mubr.bf16.mxu0 %v13306_v29  ;;  %v901_v28 = vld [vmem:[%s16409_s28 + $0x15c0] sm:$0xff] }
 0x158   : > { %v897_v29 = vld [vmem:[%s16409_s28 + $0x15a0] sm:$0xff]  ;;  %v13426_v33 = vcombine.high %v893_v27, %v901_v28  ;;  %v13425_v39 = vcombine.low %v893_v27, %v901_v28 }
 0x159   : > { %v13433_v40 = vcombine.low %v897_v29, %v905_v30  ;;  %v1005_v22 = vld [vmem:[%s16409_s28 + $0x1900] sm:$0xff] }
 0x15e   : > { %7558 = vmatmul.mubr.bf16.gmra.mrb[140].mxu1 %v13297_v34  ;;  %9702 = vmatmul.mubr.bf16.gmra.mrb[140].mxu0 %v13305_v35  ;;  %v13434_v34 = vcombine.high %v897_v29, %v905_v30  ;;  %v909_v35 = vld [vmem:[%s16409_s28 + $0x1600] sm:$0xff] }
 0x15f   : > { %7565 = vmatprep.mubr.bf16.mxu1 %v13314_v36  ;;  %9709 = vmatprep.mubr.bf16.mxu0 %v13322_v37  ;;  %v917_v36 = vld [vmem:[%s16409_s28 + $0x1640] sm:$0xff] }
 0x160   : > { %v913_v37 = vld [vmem:[%s16409_s28 + $0x1620] sm:$0xff]  ;;  %v13442_v41 = vcombine.high %v909_v35, %v917_v36  ;;  %v13441_v49 = vcombine.low %v909_v35, %v917_v36 }
 0x161   : > { %v13450_v42 = vcombine.high %v913_v37, %v921_v38  ;;  %v13449_v50 = vcombine.low %v913_v37, %v921_v38  ;;  %v1021_v30 = vld [vmem:[%s16409_s28 + $0x1980] sm:$0xff] }
 0x162   : > { %v1037_v38 = vld [vmem:[%s16409_s28 + $0x1a00] sm:$0xff] }
 0x166   : > { %7566 = vmatmul.mubr.bf16.gmra.mrb[144].mxu1 %v13313_v44  ;;  %9710 = vmatmul.mubr.bf16.gmra.mrb[144].mxu0 %v13321_v45  ;;  %v16208_v44 = vld [vmem:[%s18238_s1 + $0x2f8] sm:$0xff]   ;;  %v925_v45 = vld [vmem:[%s16409_s28 + $0x1680] sm:$0xff] }
 0x167   : > { %7573 = vmatprep.mubr.bf16.mxu1 %v13330_v46  ;;  %9717 = vmatprep.mubr.bf16.mxu0 %v13338_v47  ;;  %v933_v46 = vld [vmem:[%s16409_s28 + $0x16c0] sm:$0xff] }
 0x168   : > { %v929_v47 = vld [vmem:[%s16409_s28 + $0x16a0] sm:$0xff]  ;;  %9956 = vmatpush1.bf16.msra.mxu0 %v16208_v44  ;;  %v13458_v51 = vcombine.high %v925_v45, %v933_v46  ;;  %v13457_v57 = vcombine.low %v925_v45, %v933_v46 }
 0x169   : > { %10461 = vmatprep.subr.bf16.mxu0 %v16303_v1  ;;  %v13465_v58 = vcombine.low %v929_v47, %v937_v48  ;;  %v1053_v46 = vld [vmem:[%s16409_s28 + $0x1a80] sm:$0xff] }
 0x16e   : > { %7574 = vmatmul.mubr.bf16.gmra.mrb[148].mxu1 %v13329_v52  ;;  %9718 = vmatmul.mubr.bf16.gmra.mrb[148].mxu0 %v13337_v53  ;;  %v13466_v52 = vcombine.high %v929_v47, %v937_v48  ;;  %v941_v53 = vld [vmem:[%s16409_s28 + $0x1700] sm:$0xff] }
 0x16f   : > { %7581 = vmatprep.mubr.bf16.mxu1 %v13346_v54  ;;  %9725 = vmatprep.mubr.bf16.mxu0 %v13354_v55  ;;  %v949_v54 = vld [vmem:[%s16409_s28 + $0x1740] sm:$0xff] }
 0x170   : > { %v945_v55 = vld [vmem:[%s16409_s28 + $0x1720] sm:$0xff]  ;;  %v13474_v59 = vcombine.high %v941_v53, %v949_v54  ;;  %v13473_v2 = vcombine.low %v941_v53, %v949_v54 }
 0x171   : > { %v13481_v3 = vcombine.low %v945_v55, %v953_v56  ;;  %v1061_v47 = vld [vmem:[%s16409_s28 + $0x1ac0] sm:$0xff] }
 0x172   : > { %v1057_v48 = vld [vmem:[%s16409_s28 + $0x1aa0] sm:$0xff] }
 0x173   : > { %v1069_v54 = vld [vmem:[%s16409_s28 + $0x1b00] sm:$0xff] }
 0x176   : > { %7582 = vmatmul.mubr.bf16.gmra.mrb[152].mxu1 %v13345_v60  ;;  %9726 = vmatmul.mubr.bf16.gmra.mrb[152].mxu0 %v13353_v61  ;;  %v13482_v60 = vcombine.high %v945_v55, %v953_v56  ;;  %v957_v61 = vld [vmem:[%s16409_s28 + $0x1780] sm:$0xff] }
 0x177   : > { %7589 = vmatprep.mubr.bf16.mxu1 %v13362_v62  ;;  %9733 = vmatprep.mubr.bf16.mxu0 %v13370_v63  ;;  %v965_v62 = vld [vmem:[%s16409_s28 + $0x17c0] sm:$0xff] }
 0x178   : > { %v961_v63 = vld [vmem:[%s16409_s28 + $0x17a0] sm:$0xff]  ;;  %v13490_v4 = vcombine.high %v957_v61, %v965_v62  ;;  %v13489_v10 = vcombine.low %v957_v61, %v965_v62 }
 0x179   : > { %v13497_v11 = vcombine.low %v961_v63, %v969_v0  ;;  %v1077_v55 = vld [vmem:[%s16409_s28 + $0x1b40] sm:$0xff] }
 0x17a   : > { %v1073_v56 = vld [vmem:[%s16409_s28 + $0x1b20] sm:$0xff] }
 0x17b   : > { %v1085_v62 = vld [vmem:[%s16409_s28 + $0x1b80] sm:$0xff] }
 0x17e   : > { %7590 = vmatmul.mubr.bf16.gmra.mrb[156].mxu1 %v13361_v5  ;;  %9734 = vmatmul.mubr.bf16.gmra.mrb[156].mxu0 %v13369_v6  ;;  %v13498_v5 = vcombine.high %v961_v63, %v969_v0  ;;  %v973_v6 = vld [vmem:[%s16409_s28 + $0x1800] sm:$0xff] }
 0x17f   : > { %7597 = vmatprep.mubr.bf16.mxu1 %v13378_v7  ;;  %9741 = vmatprep.mubr.bf16.mxu0 %v13386_v8  ;;  %v981_v7 = vld [vmem:[%s16409_s28 + $0x1840] sm:$0xff] }
 0x180   : > { %v977_v8 = vld [vmem:[%s16409_s28 + $0x1820] sm:$0xff]  ;;  %v13506_v12 = vcombine.high %v973_v6, %v981_v7 }
 0x181   : > { %v13514_v13 = vcombine.high %v977_v8, %v985_v9  ;;  %v13513_v19 = vcombine.low %v977_v8, %v985_v9  ;;  %v1093_v63 = vld [vmem:[%s16409_s28 + $0x1bc0] sm:$0xff] }
 0x182   : > { %v1089_v0 = vld [vmem:[%s16409_s28 + $0x1ba0] sm:$0xff] }
 0x183   : > { %v1109_v8 = vld [vmem:[%s16409_s28 + $0x1c40] sm:$0xff] }
 0x184   : > { %v1105_v9 = vld [vmem:[%s16409_s28 + $0x1c20] sm:$0xff] }
 0x186   : > { %7598 = vmatmul.mubr.bf16.gmra.mrb[160].mxu1 %v13377_v15  ;;  %9742 = vmatmul.mubr.bf16.gmra.mrb[160].mxu0 %v13385_v16  ;;  %v997_v15 = vld [vmem:[%s16409_s28 + $0x18c0] sm:$0xff] }
 0x187   : > { %7605 = vmatprep.mubr.bf16.mxu1 %v13394_v17  ;;  %9749 = vmatprep.mubr.bf16.mxu0 %v13402_v18  ;;  %v993_v16 = vld [vmem:[%s16409_s28 + $0x18a0] sm:$0xff]  ;;  %v13505_v18 = vcombine.low %v973_v6, %v981_v7  ;;  %v13522_v20 = vcombine.high %v989_v14, %v997_v15 }
 0x188   : > { %v1001_v17 = vld [vmem:[%s16409_s28 + $0x18e0] sm:$0xff] }
 0x189   : > { %v13530_v21 = vcombine.high %v993_v16, %v1001_v17  ;;  %v13529_v27 = vcombine.low %v993_v16, %v1001_v17  ;;  %v1101_v7 = vld [vmem:[%s16409_s28 + $0x1c00] sm:$0xff] }
 0x18a   : > { %v1125_v16 = vld [vmem:[%s16409_s28 + $0x1cc0] sm:$0xff] }
 0x18b   : > { %v1121_v17 = vld [vmem:[%s16409_s28 + $0x1ca0] sm:$0xff] }
 0x18e   : > { %7606 = vmatmul.mubr.bf16.gmra.mrb[164].mxu1 %v13393_v23  ;;  %9750 = vmatmul.mubr.bf16.gmra.mrb[164].mxu0 %v13401_v24  ;;  %v1013_v23 = vld [vmem:[%s16409_s28 + $0x1940] sm:$0xff] }
 0x18f   : > { %7613 = vmatprep.mubr.bf16.mxu1 %v13410_v25  ;;  %9757 = vmatprep.mubr.bf16.mxu0 %v13418_v26  ;;  %v1009_v24 = vld [vmem:[%s16409_s28 + $0x1920] sm:$0xff]  ;;  %v13521_v26 = vcombine.low %v989_v14, %v997_v15  ;;  %v13538_v28 = vcombine.high %v1005_v22, %v1013_v23 }
 0x190   : > { %v1017_v25 = vld [vmem:[%s16409_s28 + $0x1960] sm:$0xff] }
 0x191   : > { %v13546_v29 = vcombine.high %v1009_v24, %v1017_v25  ;;  %v13545_v35 = vcombine.low %v1009_v24, %v1017_v25  ;;  %v1117_v15 = vld [vmem:[%s16409_s28 + $0x1c80] sm:$0xff] }
 0x192   : > { %v1141_v24 = vld [vmem:[%s16409_s28 + $0x1d40] sm:$0xff] }
 0x193   : > { %v1137_v25 = vld [vmem:[%s16409_s28 + $0x1d20] sm:$0xff] }
 0x196   : > { %7614 = vmatmul.mubr.bf16.gmra.mrb[168].mxu1 %v13409_v31  ;;  %9758 = vmatmul.mubr.bf16.gmra.mrb[168].mxu0 %v13417_v32  ;;  %v1029_v31 = vld [vmem:[%s16409_s28 + $0x19c0] sm:$0xff] }
 0x197   : > { %7621 = vmatprep.mubr.bf16.mxu1 %v13426_v33  ;;  %9765 = vmatprep.mubr.bf16.mxu0 %v13434_v34  ;;  %v1025_v32 = vld [vmem:[%s16409_s28 + $0x19a0] sm:$0xff]  ;;  %v13537_v34 = vcombine.low %v1005_v22, %v1013_v23  ;;  %v13554_v36 = vcombine.high %v1021_v30, %v1029_v31 }
 0x198   : > { %v1033_v33 = vld [vmem:[%s16409_s28 + $0x19e0] sm:$0xff] }
 0x199   : > { %v13562_v37 = vcombine.high %v1025_v32, %v1033_v33  ;;  %v13561_v43 = vcombine.low %v1025_v32, %v1033_v33  ;;  %v1133_v23 = vld [vmem:[%s16409_s28 + $0x1d00] sm:$0xff] }
 0x19a   : > { %v1157_v32 = vld [vmem:[%s16409_s28 + $0x1dc0] sm:$0xff] }
 0x19b   : > { %v1153_v33 = vld [vmem:[%s16409_s28 + $0x1da0] sm:$0xff] }
 0x19e   : > { %7622 = vmatmul.mubr.bf16.gmra.mrb[172].mxu1 %v13425_v39  ;;  %9766 = vmatmul.mubr.bf16.gmra.mrb[172].mxu0 %v13433_v40  ;;  %v1045_v39 = vld [vmem:[%s16409_s28 + $0x1a40] sm:$0xff] }
 0x19f   : > { %7629 = vmatprep.mubr.bf16.mxu1 %v13442_v41  ;;  %9773 = vmatprep.mubr.bf16.mxu0 %v13450_v42  ;;  %v1041_v40 = vld [vmem:[%s16409_s28 + $0x1a20] sm:$0xff]  ;;  %v13553_v42 = vcombine.low %v1021_v30, %v1029_v31  ;;  %v13570_v44 = vcombine.high %v1037_v38, %v1045_v39 }
 0x1a0   : > { %v1049_v41 = vld [vmem:[%s16409_s28 + $0x1a60] sm:$0xff] }
 0x1a1   : > { %v13578_v45 = vcombine.high %v1041_v40, %v1049_v41  ;;  %v1149_v31 = vld [vmem:[%s16409_s28 + $0x1d80] sm:$0xff] }
 0x1a6   : > { %7630 = vmatmul.mubr.bf16.gmra.mrb[176].mxu1 %v13441_v49  ;;  %9774 = vmatmul.mubr.bf16.gmra.mrb[176].mxu0 %v13449_v50  ;;  %v1065_v49 = vld [vmem:[%s16409_s28 + $0x1ae0] sm:$0xff]  ;;  %v13569_v50 = vcombine.low %v1037_v38, %v1045_v39 }
 0x1a7   : > { %7637 = vmatprep.mubr.bf16.mxu1 %v13458_v51  ;;  %9781 = vmatprep.mubr.bf16.mxu0 %v13466_v52  ;;  %v13577_v51 = vcombine.low %v1041_v40, %v1049_v41  ;;  %v13586_v52 = vcombine.high %v1053_v46, %v1061_v47  ;;  %v13594_v53 = vcombine.high %v1057_v48, %v1065_v49  ;;  %v1165_v39 = vld [vmem:[%s16409_s28 + $0x1e00] sm:$0xff] }
 0x1a8   : > { %v1173_v40 = vld [vmem:[%s16409_s28 + $0x1e40] sm:$0xff] }
 0x1a9   : > { %v1169_v41 = vld [vmem:[%s16409_s28 + $0x1e20] sm:$0xff] }
 0x1ae   : > { %7638 = vmatmul.mubr.bf16.gmra.mrb[180].mxu1 %v13457_v57  ;;  %9782 = vmatmul.mubr.bf16.gmra.mrb[180].mxu0 %v13465_v58  ;;  %v1081_v57 = vld [vmem:[%s16409_s28 + $0x1b60] sm:$0xff]  ;;  %v13585_v58 = vcombine.low %v1053_v46, %v1061_v47 }
 0x1af   : > { %7645 = vmatprep.mubr.bf16.mxu1 %v13474_v59  ;;  %9789 = vmatprep.mubr.bf16.mxu0 %v13482_v60  ;;  %v13593_v59 = vcombine.low %v1057_v48, %v1065_v49  ;;  %v13602_v60 = vcombine.high %v1069_v54, %v1077_v55  ;;  %v13610_v61 = vcombine.high %v1073_v56, %v1081_v57  ;;  %v1181_v47 = vld [vmem:[%s16409_s28 + $0x1e80] sm:$0xff] }
 0x1b0   : > { %v1189_v48 = vld [vmem:[%s16409_s28 + $0x1ec0] sm:$0xff] }
 0x1b1   : > { %v1185_v49 = vld [vmem:[%s16409_s28 + $0x1ea0] sm:$0xff] }
 0x1b6   : > { %7646 = vmatmul.mubr.bf16.gmra.mrb[184].mxu1 %v13473_v2  ;;  %9790 = vmatmul.mubr.bf16.gmra.mrb[184].mxu0 %v13481_v3  ;;  %v1097_v2 = vld [vmem:[%s16409_s28 + $0x1be0] sm:$0xff]  ;;  %v13601_v3 = vcombine.low %v1069_v54, %v1077_v55 }
 0x1b7   : > { %7653 = vmatprep.mubr.bf16.mxu1 %v13490_v4  ;;  %9797 = vmatprep.mubr.bf16.mxu0 %v13498_v5  ;;  %v13609_v4 = vcombine.low %v1073_v56, %v1081_v57  ;;  %v13618_v5 = vcombine.high %v1085_v62, %v1093_v63  ;;  %v13626_v6 = vcombine.high %v1089_v0, %v1097_v2  ;;  %v1197_v55 = vld [vmem:[%s16409_s28 + $0x1f00] sm:$0xff] }
 0x1b8   : > { %v1201_v56 = vld [vmem:[%s16409_s28 + $0x1f20] sm:$0xff]  ;;  %v13713_v57 = vcombine.low %v1181_v47, %v1189_v48 }
 0x1be   : > { %7654 = vmatmul.mubr.bf16.gmra.mrb[188].mxu1 %v13489_v10  ;;  %9798 = vmatmul.mubr.bf16.gmra.mrb[188].mxu0 %v13497_v11  ;;  %v1113_v10 = vld [vmem:[%s16409_s28 + $0x1c60] sm:$0xff]  ;;  %v13617_v11 = vcombine.low %v1085_v62, %v1093_v63  ;;  %v214_v62 = vld [vmem:[%s16409_s28 + $0x48] sm:$0xff] }
 0x1bf   : > { %7661 = vmatprep.mubr.bf16.mxu1 %v13506_v12  ;;  %9805 = vmatprep.mubr.bf16.mxu0 %v13514_v13  ;;  %v13625_v12 = vcombine.low %v1089_v0, %v1097_v2  ;;  %v13634_v13 = vcombine.high %v1101_v7, %v1109_v8  ;;  %v13642_v14 = vcombine.high %v1105_v9, %v1113_v10  ;;  %v210_v63 = vld [vmem:[%s16409_s28 + $0x28] sm:$0xff] }
 0x1c0   : > { %v218_v0 = vld [vmem:[%s16409_s28 + $0x68] sm:$0xff]  ;;  %v13729_v2 = vcombine.low %v1197_v55, %v1197_v55 }
 0x1c6   : > { %7662 = vmatmul.mubr.bf16.gmra.mrb[192].mxu1 %v13505_v18  ;;  %9806 = vmatmul.mubr.bf16.gmra.mrb[192].mxu0 %v13513_v19  ;;  %v1129_v18 = vld [vmem:[%s16409_s28 + $0x1ce0] sm:$0xff]  ;;  %v13633_v19 = vcombine.low %v1101_v7, %v1109_v8  ;;  %v230_v7 = vld [vmem:[%s16409_s28 + $0xc8] sm:$0xff] }
 0x1c7   : > { %7669 = vmatprep.mubr.bf16.mxu1 %v13522_v20  ;;  %9813 = vmatprep.mubr.bf16.mxu0 %v13530_v21  ;;  %v13641_v20 = vcombine.low %v1105_v9, %v1113_v10  ;;  %v13650_v21 = vcombine.high %v1117_v15, %v1125_v16  ;;  %v13658_v22 = vcombine.high %v1121_v17, %v1129_v18  ;;  %v226_v9 = vld [vmem:[%s16409_s28 + $0xa8] sm:$0xff] }
 0x1c8   : > { %v234_v10 = vld [vmem:[%s16409_s28 + $0xe8] sm:$0xff] }
 0x1ce   : > { %7670 = vmatmul.mubr.bf16.gmra.mrb[196].mxu1 %v13521_v26  ;;  %9814 = vmatmul.mubr.bf16.gmra.mrb[196].mxu0 %v13529_v27  ;;  %v1145_v26 = vld [vmem:[%s16409_s28 + $0x1d60] sm:$0xff]  ;;  %v13649_v27 = vcombine.low %v1117_v15, %v1125_v16  ;;  %v12764_v15 = vcombine.high %v226_v9, %v234_v10  ;;  %v16215_v16 = vld [vmem:[%s18238_s1 + $0x108] sm:$0xff]  }
 0x1cf   : > { %7677 = vmatprep.mubr.bf16.mxu1 %v13538_v28  ;;  %9821 = vmatprep.mubr.bf16.mxu0 %v13546_v29  ;;  %v13657_v28 = vcombine.low %v1121_v17, %v1129_v18  ;;  %v13666_v29 = vcombine.high %v1133_v23, %v1141_v24  ;;  %v13674_v30 = vcombine.high %v1137_v25, %v1145_v26  ;;  %v238_v17 = vld [vmem:[%s16409_s28 + $0x108] sm:$0xff] }
 0x1d0   : > { %v246_v18 = vld [vmem:[%s16409_s28 + $0x148] sm:$0xff] }
 0x1d6   : > { %7678 = vmatmul.mubr.bf16.gmra.mrb[200].mxu1 %v13537_v34  ;;  %9822 = vmatmul.mubr.bf16.gmra.mrb[200].mxu0 %v13545_v35  ;;  %v1161_v34 = vld [vmem:[%s16409_s28 + $0x1de0] sm:$0xff]  ;;  %v13665_v35 = vcombine.low %v1133_v23, %v1141_v24  ;;  %v12763_v23 = vcombine.low %v226_v9, %v234_v10  ;;  %v12772_v24 = vcombine.high %v238_v17, %v246_v18 }
 0x1d7   : > { %7685 = vmatprep.mubr.bf16.mxu1 %v13554_v36  ;;  %9829 = vmatprep.mubr.bf16.mxu0 %v13562_v37  ;;  %v13673_v36 = vcombine.low %v1137_v25, %v1145_v26  ;;  %v13682_v37 = vcombine.high %v1149_v31, %v1157_v32  ;;  %v13690_v38 = vcombine.high %v1153_v33, %v1161_v34  ;;  %v16217_v26 = vld [vmem:[%s18238_s1 + $0x110] sm:$0xff]  }
 0x1de   : > { %7686 = vmatmul.mubr.bf16.gmra.mrb[204].mxu1 %v13553_v42  ;;  %9830 = vmatmul.mubr.bf16.gmra.mrb[204].mxu0 %v13561_v43  ;;  %v1177_v42 = vld [vmem:[%s16409_s28 + $0x1e60] sm:$0xff]  ;;  %v13681_v43 = vcombine.low %v1149_v31, %v1157_v32  ;;  %v258_v31 = vld [vmem:[%s16409_s28 + $0x1a8] sm:$0xff] }
 0x1df   : > { %7693 = vmatprep.mubr.bf16.mxu1 %v13570_v44  ;;  %9837 = vmatprep.mubr.bf16.mxu0 %v13578_v45  ;;  %v13689_v44 = vcombine.low %v1153_v33, %v1161_v34  ;;  %v13698_v45 = vcombine.high %v1165_v39, %v1173_v40  ;;  %v13706_v46 = vcombine.high %v1169_v41, %v1177_v42  ;;  %v266_v32 = vld [vmem:[%s16409_s28 + $0x1e8] sm:$0xff]  ;;  %v16220_v33 = vld [vmem:[%s18238_s1 + $0x318] sm:$0xff]  }
 0x1e0   : > { %v12771_v34 = vcombine.low %v238_v17, %v246_v18 }
 0x1e6   : > { %7694 = vmatmul.mubr.bf16.gmra.mrb[208].mxu1 %v13569_v50  ;;  %9838 = vmatmul.mubr.bf16.gmra.mrb[208].mxu0 %v13577_v51  ;;  %v1193_v50 = vld [vmem:[%s16409_s28 + $0x1ee0] sm:$0xff]  ;;  %v13697_v51 = vcombine.low %v1165_v39, %v1173_v40  ;;  %v270_v40 = vld [vmem:[%s16409_s28 + $0x208] sm:$0xff] }
 0x1e7   : > { %7701 = vmatprep.mubr.bf16.mxu1 %v13586_v52  ;;  %9845 = vmatprep.mubr.bf16.mxu0 %v13594_v53  ;;  %v13705_v52 = vcombine.low %v1169_v41, %v1177_v42  ;;  %v13714_v53 = vcombine.high %v1181_v47, %v1189_v48  ;;  %v13722_v54 = vcombine.high %v1185_v49, %v1193_v50  ;;  %v16222_v39 = vld [vmem:[%s18238_s1 + $0x320] sm:$0xff]   ;;  %v278_v41 = vld [vmem:[%s16409_s28 + $0x248] sm:$0xff] }
 0x1e8   : > { %v274_v42 = vld [vmem:[%s16409_s28 + $0x228] sm:$0xff] }
 0x1e9   : > { %v16223_v48 = vld [vmem:[%s18238_s1 + $0x128] sm:$0xff]  }
 0x1ee   : > { %7702 = vmatmul.mubr.bf16.gmra.mrb[212].mxu1 %v13585_v58  ;;  %9846 = vmatmul.mubr.bf16.gmra.mrb[212].mxu0 %v13593_v59  ;;  %v13721_v58 = vcombine.low %v1185_v49, %v1193_v50  ;;  %v13730_v59 = vcombine.high %v1197_v55, %v1197_v55  ;;  %v286_v49 = vld [vmem:[%s16409_s28 + $0x288] sm:$0xff] }
 0x1ef   : > { %7709 = vmatprep.mubr.bf16.mxu1 %v13602_v60  ;;  %9853 = vmatprep.mubr.bf16.mxu0 %v13610_v61  ;;  %v13738_v60 = vcombine.high %v1201_v56, %v1201_v56  ;;  %v206_v61 = vld [vmem:[%s16409_s28 + $0x8] sm:$0xff] }
 0x1f0   : > { %v12739_v8 = vcombine.low %v206_v61, %v214_v62  ;;  %v294_v50 = vld [vmem:[%s16409_s28 + $0x2c8] sm:$0xff] }
 0x1f6   : > { %7710 = vmatmul.mubr.bf16.gmra.mrb[216].mxu1 %v13601_v3  ;;  %9854 = vmatmul.mubr.bf16.gmra.mrb[216].mxu0 %v13609_v4  ;;  %v13737_v3 = vcombine.low %v1201_v56, %v1201_v56  ;;  %v12740_v4 = vcombine.high %v206_v61, %v214_v62  ;;  %v12820_v56 = vcombine.high %v286_v49, %v294_v50  ;;  %v314_v61 = vld [vmem:[%s16409_s28 + $0x368] sm:$0xff] }
 0x1f7   : > { %7717 = vmatprep.mubr.bf16.mxu1 %v13618_v5  ;;  %9861 = vmatprep.mubr.bf16.mxu0 %v13626_v6  ;;  %v12748_v5 = vcombine.high %v210_v63, %v218_v0  ;;  %v222_v6 = vld [vmem:[%s16409_s28 + $0x88] sm:$0xff]  ;;  %v12819_v62 = vcombine.low %v286_v49, %v294_v50 }
 0x1fe   : > { %7718 = vmatmul.mubr.bf16.gmra.mrb[220].mxu1 %v13617_v11  ;;  %9862 = vmatmul.mubr.bf16.gmra.mrb[220].mxu0 %v13625_v12  ;;  %v12747_v11 = vcombine.low %v210_v63, %v218_v0  ;;  %v16213_v12 = vld [vmem:[%s18238_s1 + $0x100] sm:$0xff]  }
 0x1ff   : > { %7725 = vmatprep.mubr.bf16.mxu1 %v13634_v13  ;;  %9869 = vmatprep.mubr.bf16.mxu0 %v13642_v14  ;;  %v16214_v13 = vld [vmem:[%s18238_s1 + $0x300] sm:$0xff]   ;;  %v12756_v14 = vcombine.high %v222_v6, %v230_v7 }
 0x206   : > { %7726 = vmatmul.mubr.bf16.gmra.mrb[224].mxu1 %v13633_v19  ;;  %9870 = vmatmul.mubr.bf16.gmra.mrb[224].mxu0 %v13641_v20  ;;  %v16216_v19 = vld [vmem:[%s18238_s1 + $0x308] sm:$0xff]  }
 0x207   : > { %7733 = vmatprep.mubr.bf16.mxu1 %v13650_v21  ;;  %9877 = vmatprep.mubr.bf16.mxu0 %v13658_v22  ;;  %v242_v20 = vld [vmem:[%s16409_s28 + $0x128] sm:$0xff]  ;;  %v12755_v22 = vcombine.low %v222_v6, %v230_v7 }
 0x208   : > { %v250_v21 = vld [vmem:[%s16409_s28 + $0x168] sm:$0xff] }
 0x209   : > { %v12780_v25 = vcombine.high %v242_v20, %v250_v21  ;;  %v330_v6 = vld [vmem:[%s16409_s28 + $0x3e8] sm:$0xff] }
 0x20e   : > { %7734 = vmatmul.mubr.bf16.gmra.mrb[228].mxu1 %v13649_v27  ;;  %9878 = vmatmul.mubr.bf16.gmra.mrb[228].mxu0 %v13657_v28  ;;  %v16218_v27 = vld [vmem:[%s18238_s1 + $0x310] sm:$0xff]   ;;  %v254_v28 = vld [vmem:[%s16409_s28 + $0x188] sm:$0xff] }
 0x20f   : > { %7741 = vmatprep.mubr.bf16.mxu1 %v13666_v29  ;;  %9885 = vmatprep.mubr.bf16.mxu0 %v13674_v30  ;;  %v262_v29 = vld [vmem:[%s16409_s28 + $0x1c8] sm:$0xff]  ;;  %v16219_v30 = vld [vmem:[%s18238_s1 + $0x118] sm:$0xff]  }
 0x216   : > { %7742 = vmatmul.mubr.bf16.gmra.mrb[232].mxu1 %v13665_v35  ;;  %9886 = vmatmul.mubr.bf16.gmra.mrb[232].mxu0 %v13673_v36  ;;  %v12779_v35 = vcombine.low %v242_v20, %v250_v21  ;;  %v12788_v36 = vcombine.high %v254_v28, %v262_v29  ;;  %v16226_v20 = vld [vmem:[%s18238_s1 + $0x330] sm:$0xff]   ;;  %v350_v21 = vld [vmem:[%s16409_s28 + $0x488] sm:$0xff] }
 0x217   : > { %7749 = vmatprep.mubr.bf16.mxu1 %v13682_v37  ;;  %9893 = vmatprep.mubr.bf16.mxu0 %v13690_v38  ;;  %v12796_v37 = vcombine.high %v258_v31, %v266_v32  ;;  %v16221_v38 = vld [vmem:[%s18238_s1 + $0x120] sm:$0xff]  }
 0x21e   : > { %7750 = vmatmul.mubr.bf16.gmra.mrb[236].mxu1 %v13681_v43  ;;  %9894 = vmatmul.mubr.bf16.gmra.mrb[236].mxu0 %v13689_v44  ;;  %v282_v43 = vld [vmem:[%s16409_s28 + $0x268] sm:$0xff]  ;;  %v12787_v44 = vcombine.low %v254_v28, %v262_v29 }
 0x21f   : > { %7757 = vmatprep.mubr.bf16.mxu1 %v13698_v45  ;;  %9901 = vmatprep.mubr.bf16.mxu0 %v13706_v46  ;;  %v12795_v45 = vcombine.low %v258_v31, %v266_v32  ;;  %v12804_v46 = vcombine.high %v270_v40, %v278_v41  ;;  %v12812_v47 = vcombine.high %v274_v42, %v282_v43  ;;  %v366_v29 = vld [vmem:[%s16409_s28 + $0x508] sm:$0xff] }
 0x220   : > { %v12811_v55 = vcombine.low %v274_v42, %v282_v43  ;;  %v370_v31 = vld [vmem:[%s16409_s28 + $0x528] sm:$0xff] }
 0x221   : > { %v378_v32 = vld [vmem:[%s16409_s28 + $0x568] sm:$0xff] }
 0x222   : > { %v12907_v42 = vcombine.low %v370_v31, %v378_v32 }
 0x226   : > { %7758 = vmatmul.mubr.bf16.gmra.mrb[240].mxu1 %v13697_v51  ;;  %9902 = vmatmul.mubr.bf16.gmra.mrb[240].mxu0 %v13705_v52  ;;  %v16224_v51 = vld [vmem:[%s18238_s1 + $0x328] sm:$0xff]  }
 0x227   : > { %7765 = vmatprep.mubr.bf16.mxu1 %v13714_v53  ;;  %9909 = vmatprep.mubr.bf16.mxu0 %v13722_v54  ;;  %v290_v52 = vld [vmem:[%s16409_s28 + $0x2a8] sm:$0xff]  ;;  %v12803_v54 = vcombine.low %v270_v40, %v278_v41 }
 0x228   : > { %v298_v53 = vld [vmem:[%s16409_s28 + $0x2e8] sm:$0xff] }
 0x229   : > { %v12827_v63 = vcombine.low %v290_v52, %v298_v53  ;;  %v394_v40 = vld [vmem:[%s16409_s28 + $0x5e8] sm:$0xff] }
 0x22e   : > { %7766 = vmatmul.mubr.bf16.gmra.mrb[244].mxu1 %v13713_v57  ;;  %9910 = vmatmul.mubr.bf16.gmra.mrb[244].mxu0 %v13721_v58  ;;  %v12828_v57 = vcombine.high %v290_v52, %v298_v53  ;;  %v302_v58 = vld [vmem:[%s16409_s28 + $0x308] sm:$0xff]  ;;  %v16227_v53 = vld [vmem:[%s18238_s1 + $0x138] sm:$0xff]  }
 0x22f   : > { %7773 = vmatprep.mubr.bf16.mxu1 %v13730_v59  ;;  %9917 = vmatprep.mubr.bf16.mxu0 %v13738_v60  ;;  %v310_v59 = vld [vmem:[%s16409_s28 + $0x348] sm:$0xff] }
 0x230   : > { %v306_v60 = vld [vmem:[%s16409_s28 + $0x328] sm:$0xff]  ;;  %v12836_v0 = vcombine.high %v302_v58, %v310_v59  ;;  %v12835_v7 = vcombine.low %v302_v58, %v310_v59 }
 0x231   : > { %v426_v58 = vld [vmem:[%s16409_s28 + $0x6e8] sm:$0xff] }
 0x236   : > { %7774 = vmatmul.mubr.bf16.gmra.mrb[248].mxu1 %v13729_v2  ;;  %9918 = vmatmul.mubr.bf16.gmra.mrb[248].mxu0 %v13737_v3  ;;  %v12844_v2 = vcombine.high %v306_v60, %v314_v61  ;;  %v318_v3 = vld [vmem:[%s16409_s28 + $0x388] sm:$0xff] }
 0x237   : > { %7813 = vmatprep.mubr.bf16.mxu1 %v12740_v4  ;;  %9957 = vmatprep.mubr.bf16.mxu0 %v12748_v5  ;;  %v326_v4 = vld [vmem:[%s16409_s28 + $0x3c8] sm:$0xff] }
 0x238   : > { %v322_v5 = vld [vmem:[%s16409_s28 + $0x3a8] sm:$0xff]  ;;  %v12852_v9 = vcombine.high %v318_v3, %v326_v4 }
 0x239   : > { %v12860_v10 = vcombine.high %v322_v5, %v330_v6 }
 0x23e   : > { %7814 = vmatmul.mubr.bf16.vlgmr.msra.gmra.mrb[0].mxu1 %v12739_v8  ;;  %9958 = vmatmul.mubr.bf16.vlgmr.msra.gmra.mrb[0].mxu0 %v12747_v11  ;;  %v12843_v8 = vcombine.low %v306_v60, %v314_v61  ;;  %v334_v11 = vld [vmem:[%s16409_s28 + $0x408] sm:$0xff] }
 0x23f   : > { %8318 = vmatpush1.bf16.msra.mxu1 %v16213_v12  ;;  %10462 = vmatpush1.bf16.msra.mxu0 %v16214_v13  ;;  %v342_v12 = vld [vmem:[%s16409_s28 + $0x448] sm:$0xff] }
 0x240   : > { %7821 = vmatprep.mubr.bf16.mxu1 %v12756_v14  ;;  %9965 = vmatprep.mubr.bf16.mxu0 %v12764_v15  ;;  %v338_v13 = vld [vmem:[%s16409_s28 + $0x428] sm:$0xff]  ;;  %v12851_v15 = vcombine.low %v318_v3, %v326_v4  ;;  %v12868_v17 = vcombine.high %v334_v11, %v342_v12 }
 0x241   : > { %8319 = vmatprep.subr.bf16.mxu1 %v16303_v1  ;;  %10463 = vmatprep.subr.bf16.mxu0 %v16303_v1  ;;  %v346_v14 = vld [vmem:[%s16409_s28 + $0x468] sm:$0xff] }
 0x242   : > { %v12876_v18 = vcombine.high %v338_v13, %v346_v14  ;;  %v442_v3 = vld [vmem:[%s16409_s28 + $0x768] sm:$0xff] }
 0x243   : > { %8320 = vmatpush1.bf16.msra.mxu1 %v16215_v16  ;;  %10464 = vmatpush1.bf16.msra.mxu0 %v16216_v19  ;;  %v12859_v16 = vcombine.low %v322_v5, %v330_v6  ;;  %v16225_v19 = vld [vmem:[%s18238_s1 + $0x130] sm:$0xff]  }
 0x244   : > { %8321 = vmatprep.subr.bf16.mxu1 %v16303_v1  ;;  %10465 = vmatprep.subr.bf16.mxu0 %v16303_v1 }
 0x246   : > { %7822 = vmatmul.mubr.bf16.gmra.mrb[4].mxu1 %v12755_v22  ;;  %9966 = vmatmul.mubr.bf16.gmra.mrb[4].mxu0 %v12763_v23  ;;  %v358_v22 = vld [vmem:[%s16409_s28 + $0x4c8] sm:$0xff] }
 0x247   : > { %7829 = vmatprep.mubr.bf16.mxu1 %v12772_v24  ;;  %9973 = vmatprep.mubr.bf16.mxu0 %v12780_v25  ;;  %v354_v23 = vld [vmem:[%s16409_s28 + $0x4a8] sm:$0xff]  ;;  %v12867_v25 = vcombine.low %v334_v11, %v342_v12 }
 0x248   : > { %8322 = vmatpush1.bf16.msra.mxu1 %v16217_v26  ;;  %10466 = vmatpush1.bf16.msra.mxu0 %v16218_v27  ;;  %v362_v24 = vld [vmem:[%s16409_s28 + $0x4e8] sm:$0xff]  ;;  %v12875_v26 = vcombine.low %v338_v13, %v346_v14  ;;  %v12884_v27 = vcombine.high %v350_v21, %v358_v22 }
 0x249   : > { %8323 = vmatprep.subr.bf16.mxu1 %v16303_v1  ;;  %10467 = vmatprep.subr.bf16.mxu0 %v16303_v1  ;;  %v12892_v28 = vcombine.high %v354_v23, %v362_v24  ;;  %v458_v11 = vld [vmem:[%s16409_s28 + $0x7e8] sm:$0xff] }
 0x24c   : > { %8324 = vmatpush1.bf16.msra.mxu1 %v16219_v30  ;;  %10468 = vmatpush1.bf16.msra.mxu0 %v16220_v33  ;;  %v374_v30 = vld [vmem:[%s16409_s28 + $0x548] sm:$0xff]  ;;  %v12883_v33 = vcombine.low %v350_v21, %v358_v22 }
 0x24d   : > { %8325 = vmatprep.subr.bf16.mxu1 %v16303_v1  ;;  %10469 = vmatprep.subr.bf16.mxu0 %v16303_v1  ;;  %v12899_v41 = vcombine.low %v366_v29, %v374_v30 }
 0x24e   : > { %7830 = vmatmul.mubr.bf16.gmra.mrb[8].mxu1 %v12771_v34  ;;  %9974 = vmatmul.mubr.bf16.gmra.mrb[8].mxu0 %v12779_v35  ;;  %v12891_v34 = vcombine.low %v354_v23, %v362_v24  ;;  %v12900_v35 = vcombine.high %v366_v29, %v374_v30  ;;  %v16229_v24 = vld [vmem:[%s18238_s1 + $0x140] sm:$0xff]   ;;  %v490_v29 = vld [vmem:[%s16409_s28 + $0x8e8] sm:$0xff] }
 0x24f   : > { %7837 = vmatprep.mubr.bf16.mxu1 %v12788_v36  ;;  %9981 = vmatprep.mubr.bf16.mxu0 %v12796_v37  ;;  %v12908_v36 = vcombine.high %v370_v31, %v378_v32  ;;  %v382_v37 = vld [vmem:[%s16409_s28 + $0x588] sm:$0xff] }
 0x250   : > { %8326 = vmatpush1.bf16.msra.mxu1 %v16221_v38  ;;  %10470 = vmatpush1.bf16.msra.mxu0 %v16222_v39  ;;  %v390_v38 = vld [vmem:[%s16409_s28 + $0x5c8] sm:$0xff] }
 0x251   : > { %8327 = vmatprep.subr.bf16.mxu1 %v16303_v1  ;;  %10471 = vmatprep.subr.bf16.mxu0 %v16303_v1  ;;  %v386_v39 = vld [vmem:[%s16409_s28 + $0x5a8] sm:$0xff]  ;;  %v12916_v43 = vcombine.high %v382_v37, %v390_v38  ;;  %v12915_v49 = vcombine.low %v382_v37, %v390_v38 }
 0x252   : > { %v12923_v50 = vcombine.low %v386_v39, %v394_v40  ;;  %v506_v37 = vld [vmem:[%s16409_s28 + $0x968] sm:$0xff] }
 0x254   : > { %8328 = vmatpush1.bf16.msra.mxu1 %v16223_v48  ;;  %10472 = vmatpush1.bf16.msra.mxu0 %v16224_v51  ;;  %v410_v48 = vld [vmem:[%s16409_s28 + $0x668] sm:$0xff] }
 0x255   : > { %8329 = vmatprep.subr.bf16.mxu1 %v16303_v1  ;;  %10473 = vmatprep.subr.bf16.mxu0 %v16303_v1 }
 0x256   : > { %7838 = vmatmul.mubr.bf16.gmra.mrb[12].mxu1 %v12787_v44  ;;  %9982 = vmatmul.mubr.bf16.gmra.mrb[12].mxu0 %v12795_v45  ;;  %v12924_v44 = vcombine.high %v386_v39, %v394_v40  ;;  %v398_v45 = vld [vmem:[%s16409_s28 + $0x608] sm:$0xff] }
 0x257   : > { %7845 = vmatprep.mubr.bf16.mxu1 %v12804_v46  ;;  %9989 = vmatprep.mubr.bf16.mxu0 %v12812_v47  ;;  %v406_v46 = vld [vmem:[%s16409_s28 + $0x648] sm:$0xff] }
 0x258   : > { %8330 = vmatpush1.bf16.msra.mxu1 %v16225_v19  ;;  %10474 = vmatpush1.bf16.msra.mxu0 %v16226_v20  ;;  %v402_v47 = vld [vmem:[%s16409_s28 + $0x628] sm:$0xff]  ;;  %v12932_v51 = vcombine.high %v398_v45, %v406_v46  ;;  %v12931_v59 = vcombine.low %v398_v45, %v406_v46 }
 0x259   : > { %8331 = vmatprep.subr.bf16.mxu1 %v16303_v1  ;;  %10475 = vmatprep.subr.bf16.mxu0 %v16303_v1  ;;  %v12940_v52 = vcombine.high %v402_v47, %v410_v48  ;;  %v12939_v60 = vcombine.low %v402_v47, %v410_v48  ;;  %v474_v19 = vld [vmem:[%s16409_s28 + $0x868] sm:$0xff] }
 0x25a   : > { %v522_v45 = vld [vmem:[%s16409_s28 + $0x9e8] sm:$0xff] }
 0x25c   : > { %8332 = vmatpush1.bf16.msra.mxu1 %v16227_v53  ;;  %v538_v53 = vld [vmem:[%s16409_s28 + $0xa68] sm:$0xff] }
 0x25d   : > { %8333 = vmatprep.subr.bf16.mxu1 %v16303_v1 }
 0x25e   : > { %7846 = vmatmul.mubr.bf16.gmra.mrb[16].mxu1 %v12803_v54  ;;  %9990 = vmatmul.mubr.bf16.gmra.mrb[16].mxu0 %v12811_v55  ;;  %v16228_v54 = vld [vmem:[%s18238_s1 + $0x338] sm:$0xff]   ;;  %v414_v55 = vld [vmem:[%s16409_s28 + $0x688] sm:$0xff] }
 0x25f   : > { %7853 = vmatprep.mubr.bf16.mxu1 %v12820_v56  ;;  %9997 = vmatprep.mubr.bf16.mxu0 %v12828_v57  ;;  %v422_v56 = vld [vmem:[%s16409_s28 + $0x6c8] sm:$0xff] }
 0x260   : > { %v418_v57 = vld [vmem:[%s16409_s28 + $0x6a8] sm:$0xff]  ;;  %10476 = vmatpush1.bf16.msra.mxu0 %v16228_v54  ;;  %v12948_v61 = vcombine.high %v414_v55, %v422_v56  ;;  %v12947_v4 = vcombine.low %v414_v55, %v422_v56  ;;  %8334 = vmatpush1.bf16.msra.mxu1 %v16229_v24 }
 0x261   : > { %10477 = vmatprep.subr.bf16.mxu0 %v16303_v1  ;;  %v12955_v5 = vcombine.low %v418_v57, %v426_v58  ;;  %8335 = vmatprep.subr.bf16.mxu1 %v16303_v1  ;;  %v602_v24 = vld [vmem:[%s16409_s28 + $0xc68] sm:$0xff] }
 0x266   : > { %7854 = vmatmul.mubr.bf16.gmra.mrb[20].mxu1 %v12819_v62  ;;  %9998 = vmatmul.mubr.bf16.gmra.mrb[20].mxu0 %v12827_v63  ;;  %v12956_v62 = vcombine.high %v418_v57, %v426_v58  ;;  %v430_v63 = vld [vmem:[%s16409_s28 + $0x708] sm:$0xff] }
 0x267   : > { %7861 = vmatprep.mubr.bf16.mxu1 %v12836_v0  ;;  %10005 = vmatprep.mubr.bf16.mxu0 %v12844_v2  ;;  %v438_v0 = vld [vmem:[%s16409_s28 + $0x748] sm:$0xff] }
 0x268   : > { %v434_v2 = vld [vmem:[%s16409_s28 + $0x728] sm:$0xff]  ;;  %v12964_v6 = vcombine.high %v430_v63, %v438_v0  ;;  %v12963_v12 = vcombine.low %v430_v63, %v438_v0 }
 0x269   : > { %v12971_v13 = vcombine.low %v434_v2, %v442_v3  ;;  %v16231_v58 = vld [vmem:[%s18238_s1 + $0x148] sm:$0xff]  }
 0x26a   : > { %v554_v63 = vld [vmem:[%s16409_s28 + $0xae8] sm:$0xff]  ;;  %8336 = vmatpush1.bf16.msra.mxu1 %v16231_v58 }
 0x26b   : > { %8337 = vmatprep.subr.bf16.mxu1 %v16303_v1  ;;  %v666_v58 = vld [vmem:[%s16409_s28 + $0xe68] sm:$0xff] }
 0x26e   : > { %7862 = vmatmul.mubr.bf16.gmra.mrb[24].mxu1 %v12835_v7  ;;  %10006 = vmatmul.mubr.bf16.gmra.mrb[24].mxu0 %v12843_v8  ;;  %v12972_v7 = vcombine.high %v434_v2, %v442_v3  ;;  %v446_v8 = vld [vmem:[%s16409_s28 + $0x788] sm:$0xff] }
 0x26f   : > { %7869 = vmatprep.mubr.bf16.mxu1 %v12852_v9  ;;  %10013 = vmatprep.mubr.bf16.mxu0 %v12860_v10  ;;  %v454_v9 = vld [vmem:[%s16409_s28 + $0x7c8] sm:$0xff] }
 0x270   : > { %v450_v10 = vld [vmem:[%s16409_s28 + $0x7a8] sm:$0xff]  ;;  %v12980_v14 = vcombine.high %v446_v8, %v454_v9  ;;  %v12979_v20 = vcombine.low %v446_v8, %v454_v9 }
 0x271   : > { %v12987_v21 = vcombine.low %v450_v10, %v458_v11  ;;  %v570_v8 = vld [vmem:[%s16409_s28 + $0xb68] sm:$0xff] }
 0x276   : > { %7870 = vmatmul.mubr.bf16.gmra.mrb[28].mxu1 %v12851_v15  ;;  %10014 = vmatmul.mubr.bf16.gmra.mrb[28].mxu0 %v12859_v16  ;;  %v12988_v15 = vcombine.high %v450_v10, %v458_v11  ;;  %v462_v16 = vld [vmem:[%s16409_s28 + $0x808] sm:$0xff] }
 0x277   : > { %7877 = vmatprep.mubr.bf16.mxu1 %v12868_v17  ;;  %10021 = vmatprep.mubr.bf16.mxu0 %v12876_v18  ;;  %v470_v17 = vld [vmem:[%s16409_s28 + $0x848] sm:$0xff] }
 0x278   : > { %v466_v18 = vld [vmem:[%s16409_s28 + $0x828] sm:$0xff]  ;;  %v12996_v22 = vcombine.high %v462_v16, %v470_v17  ;;  %v12995_v30 = vcombine.low %v462_v16, %v470_v17 }
 0x279   : > { %v13004_v23 = vcombine.high %v466_v18, %v474_v19  ;;  %v13003_v31 = vcombine.low %v466_v18, %v474_v19  ;;  %v586_v16 = vld [vmem:[%s16409_s28 + $0xbe8] sm:$0xff] }
 0x27e   : > { %7878 = vmatmul.mubr.bf16.gmra.mrb[32].mxu1 %v12867_v25  ;;  %10022 = vmatmul.mubr.bf16.gmra.mrb[32].mxu0 %v12875_v26  ;;  %v16230_v25 = vld [vmem:[%s18238_s1 + $0x340] sm:$0xff]   ;;  %v478_v26 = vld [vmem:[%s16409_s28 + $0x888] sm:$0xff] }
 0x27f   : > { %7885 = vmatprep.mubr.bf16.mxu1 %v12884_v27  ;;  %10029 = vmatprep.mubr.bf16.mxu0 %v12892_v28  ;;  %v486_v27 = vld [vmem:[%s16409_s28 + $0x8c8] sm:$0xff] }
 0x280   : > { %v482_v28 = vld [vmem:[%s16409_s28 + $0x8a8] sm:$0xff]  ;;  %10478 = vmatpush1.bf16.msra.mxu0 %v16230_v25  ;;  %v13012_v32 = vcombine.high %v478_v26, %v486_v27  ;;  %v13011_v38 = vcombine.low %v478_v26, %v486_v27 }
 0x281   : > { %10479 = vmatprep.subr.bf16.mxu0 %v16303_v1  ;;  %v13019_v39 = vcombine.low %v482_v28, %v490_v29 }
 0x286   : > { %7886 = vmatmul.mubr.bf16.gmra.mrb[36].mxu1 %v12883_v33  ;;  %10030 = vmatmul.mubr.bf16.gmra.mrb[36].mxu0 %v12891_v34  ;;  %v13020_v33 = vcombine.high %v482_v28, %v490_v29  ;;  %v494_v34 = vld [vmem:[%s16409_s28 + $0x908] sm:$0xff]  ;;  %v16233_v29 = vld [vmem:[%s18238_s1 + $0x150] sm:$0xff]  }
 0x287   : > { %7893 = vmatprep.mubr.bf16.mxu1 %v12900_v35  ;;  %10037 = vmatprep.mubr.bf16.mxu0 %v12908_v36  ;;  %v502_v35 = vld [vmem:[%s16409_s28 + $0x948] sm:$0xff] }
 0x288   : > { %v498_v36 = vld [vmem:[%s16409_s28 + $0x928] sm:$0xff]  ;;  %v13028_v40 = vcombine.high %v494_v34, %v502_v35  ;;  %v13027_v46 = vcombine.low %v494_v34, %v502_v35  ;;  %8338 = vmatpush1.bf16.msra.mxu1 %v16233_v29 }
 0x289   : > { %v13035_v47 = vcombine.low %v498_v36, %v506_v37  ;;  %v618_v34 = vld [vmem:[%s16409_s28 + $0xce8] sm:$0xff]  ;;  %8339 = vmatprep.subr.bf16.mxu1 %v16303_v1 }
 0x28a   : > { %v730_v29 = vld [vmem:[%s16409_s28 + $0x1068] sm:$0xff] }
 0x28e   : > { %7894 = vmatmul.mubr.bf16.gmra.mrb[40].mxu1 %v12899_v41  ;;  %10038 = vmatmul.mubr.bf16.gmra.mrb[40].mxu0 %v12907_v42  ;;  %v13036_v41 = vcombine.high %v498_v36, %v506_v37  ;;  %v510_v42 = vld [vmem:[%s16409_s28 + $0x988] sm:$0xff] }
 0x28f   : > { %7901 = vmatprep.mubr.bf16.mxu1 %v12916_v43  ;;  %10045 = vmatprep.mubr.bf16.mxu0 %v12924_v44  ;;  %v518_v43 = vld [vmem:[%s16409_s28 + $0x9c8] sm:$0xff] }
 0x290   : > { %v514_v44 = vld [vmem:[%s16409_s28 + $0x9a8] sm:$0xff]  ;;  %v13044_v48 = vcombine.high %v510_v42, %v518_v43  ;;  %v13043_v54 = vcombine.low %v510_v42, %v518_v43 }
 0x291   : > { %v13051_v55 = vcombine.low %v514_v44, %v522_v45  ;;  %v634_v42 = vld [vmem:[%s16409_s28 + $0xd68] sm:$0xff] }
 0x296   : > { %7902 = vmatmul.mubr.bf16.gmra.mrb[44].mxu1 %v12915_v49  ;;  %10046 = vmatmul.mubr.bf16.gmra.mrb[44].mxu0 %v12923_v50  ;;  %v13052_v49 = vcombine.high %v514_v44, %v522_v45  ;;  %v526_v50 = vld [vmem:[%s16409_s28 + $0xa08] sm:$0xff] }
 0x297   : > { %7909 = vmatprep.mubr.bf16.mxu1 %v12932_v51  ;;  %10053 = vmatprep.mubr.bf16.mxu0 %v12940_v52  ;;  %v534_v51 = vld [vmem:[%s16409_s28 + $0xa48] sm:$0xff] }
 0x298   : > { %v530_v52 = vld [vmem:[%s16409_s28 + $0xa28] sm:$0xff]  ;;  %v13060_v56 = vcombine.high %v526_v50, %v534_v51  ;;  %v13059_v0 = vcombine.low %v526_v50, %v534_v51 }
 0x299   : > { %v13068_v57 = vcombine.high %v530_v52, %v538_v53  ;;  %v13067_v2 = vcombine.low %v530_v52, %v538_v53  ;;  %v650_v50 = vld [vmem:[%s16409_s28 + $0xde8] sm:$0xff] }
 0x29e   : > { %7910 = vmatmul.mubr.bf16.gmra.mrb[48].mxu1 %v12931_v59  ;;  %10054 = vmatmul.mubr.bf16.gmra.mrb[48].mxu0 %v12939_v60  ;;  %v16232_v59 = vld [vmem:[%s18238_s1 + $0x348] sm:$0xff]  }
 0x29f   : > { %7917 = vmatprep.mubr.bf16.mxu1 %v12948_v61  ;;  %10061 = vmatprep.mubr.bf16.mxu0 %v12956_v62  ;;  %v542_v60 = vld [vmem:[%s16409_s28 + $0xa88] sm:$0xff] }
 0x2a0   : > { %v550_v61 = vld [vmem:[%s16409_s28 + $0xac8] sm:$0xff]  ;;  %10480 = vmatpush1.bf16.msra.mxu0 %v16232_v59 }
 0x2a1   : > { %v546_v62 = vld [vmem:[%s16409_s28 + $0xaa8] sm:$0xff]  ;;  %10481 = vmatprep.subr.bf16.mxu0 %v16303_v1  ;;  %v13076_v3 = vcombine.high %v542_v60, %v550_v61  ;;  %v13075_v9 = vcombine.low %v542_v60, %v550_v61 }
 0x2a2   : > { %v13083_v10 = vcombine.low %v546_v62, %v554_v63 }
 0x2a6   : > { %7918 = vmatmul.mubr.bf16.gmra.mrb[52].mxu1 %v12947_v4  ;;  %10062 = vmatmul.mubr.bf16.gmra.mrb[52].mxu0 %v12955_v5  ;;  %v13084_v4 = vcombine.high %v546_v62, %v554_v63  ;;  %v558_v5 = vld [vmem:[%s16409_s28 + $0xb08] sm:$0xff]  ;;  %v16235_v63 = vld [vmem:[%s18238_s1 + $0x158] sm:$0xff]  }
 0x2a7   : > { %7925 = vmatprep.mubr.bf16.mxu1 %v12964_v6  ;;  %10069 = vmatprep.mubr.bf16.mxu0 %v12972_v7  ;;  %v566_v6 = vld [vmem:[%s16409_s28 + $0xb48] sm:$0xff] }
 0x2a8   : > { %v562_v7 = vld [vmem:[%s16409_s28 + $0xb28] sm:$0xff]  ;;  %v13092_v11 = vcombine.high %v558_v5, %v566_v6  ;;  %v13091_v17 = vcombine.low %v558_v5, %v566_v6  ;;  %8340 = vmatpush1.bf16.msra.mxu1 %v16235_v63 }
 0x2a9   : > { %v13099_v18 = vcombine.low %v562_v7, %v570_v8  ;;  %v682_v5 = vld [vmem:[%s16409_s28 + $0xee8] sm:$0xff]  ;;  %8341 = vmatprep.subr.bf16.mxu1 %v16303_v1 }
 0x2aa   : > { %v794_v63 = vld [vmem:[%s16409_s28 + $0x1268] sm:$0xff] }
 0x2ae   : > { %7926 = vmatmul.mubr.bf16.gmra.mrb[56].mxu1 %v12963_v12  ;;  %10070 = vmatmul.mubr.bf16.gmra.mrb[56].mxu0 %v12971_v13  ;;  %v13100_v12 = vcombine.high %v562_v7, %v570_v8  ;;  %v574_v13 = vld [vmem:[%s16409_s28 + $0xb88] sm:$0xff] }
 0x2af   : > { %7933 = vmatprep.mubr.bf16.mxu1 %v12980_v14  ;;  %10077 = vmatprep.mubr.bf16.mxu0 %v12988_v15  ;;  %v582_v14 = vld [vmem:[%s16409_s28 + $0xbc8] sm:$0xff] }
 0x2b0   : > { %v578_v15 = vld [vmem:[%s16409_s28 + $0xba8] sm:$0xff]  ;;  %v13108_v19 = vcombine.high %v574_v13, %v582_v14  ;;  %v13107_v25 = vcombine.low %v574_v13, %v582_v14 }
 0x2b1   : > { %v13115_v26 = vcombine.low %v578_v15, %v586_v16  ;;  %v698_v13 = vld [vmem:[%s16409_s28 + $0xf68] sm:$0xff] }
 0x2b6   : > { %7934 = vmatmul.mubr.bf16.gmra.mrb[60].mxu1 %v12979_v20  ;;  %10078 = vmatmul.mubr.bf16.gmra.mrb[60].mxu0 %v12987_v21  ;;  %v13116_v20 = vcombine.high %v578_v15, %v586_v16  ;;  %v590_v21 = vld [vmem:[%s16409_s28 + $0xc08] sm:$0xff] }
 0x2b7   : > { %7941 = vmatprep.mubr.bf16.mxu1 %v12996_v22  ;;  %10085 = vmatprep.mubr.bf16.mxu0 %v13004_v23  ;;  %v598_v22 = vld [vmem:[%s16409_s28 + $0xc48] sm:$0xff] }
 0x2b8   : > { %v594_v23 = vld [vmem:[%s16409_s28 + $0xc28] sm:$0xff]  ;;  %v13124_v27 = vcombine.high %v590_v21, %v598_v22  ;;  %v13123_v35 = vcombine.low %v590_v21, %v598_v22 }
 0x2b9   : > { %v13132_v28 = vcombine.high %v594_v23, %v602_v24  ;;  %v13131_v36 = vcombine.low %v594_v23, %v602_v24  ;;  %v714_v21 = vld [vmem:[%s16409_s28 + $0xfe8] sm:$0xff] }
 0x2be   : > { %7942 = vmatmul.mubr.bf16.gmra.mrb[64].mxu1 %v12995_v30  ;;  %10086 = vmatmul.mubr.bf16.gmra.mrb[64].mxu0 %v13003_v31  ;;  %v16234_v30 = vld [vmem:[%s18238_s1 + $0x350] sm:$0xff]   ;;  %v606_v31 = vld [vmem:[%s16409_s28 + $0xc88] sm:$0xff] }
 0x2bf   : > { %7949 = vmatprep.mubr.bf16.mxu1 %v13012_v32  ;;  %10093 = vmatprep.mubr.bf16.mxu0 %v13020_v33  ;;  %v614_v32 = vld [vmem:[%s16409_s28 + $0xcc8] sm:$0xff] }
 0x2c0   : > { %v610_v33 = vld [vmem:[%s16409_s28 + $0xca8] sm:$0xff]  ;;  %10482 = vmatpush1.bf16.msra.mxu0 %v16234_v30  ;;  %v13140_v37 = vcombine.high %v606_v31, %v614_v32  ;;  %v13139_v43 = vcombine.low %v606_v31, %v614_v32 }
 0x2c1   : > { %10483 = vmatprep.subr.bf16.mxu0 %v16303_v1  ;;  %v13147_v44 = vcombine.low %v610_v33, %v618_v34 }
 0x2c6   : > { %7950 = vmatmul.mubr.bf16.gmra.mrb[68].mxu1 %v13011_v38  ;;  %10094 = vmatmul.mubr.bf16.gmra.mrb[68].mxu0 %v13019_v39  ;;  %v13148_v38 = vcombine.high %v610_v33, %v618_v34  ;;  %v622_v39 = vld [vmem:[%s16409_s28 + $0xd08] sm:$0xff]  ;;  %v16237_v34 = vld [vmem:[%s18238_s1 + $0x160] sm:$0xff]  }
 0x2c7   : > { %7957 = vmatprep.mubr.bf16.mxu1 %v13028_v40  ;;  %10101 = vmatprep.mubr.bf16.mxu0 %v13036_v41  ;;  %v630_v40 = vld [vmem:[%s16409_s28 + $0xd48] sm:$0xff] }
 0x2c8   : > { %v626_v41 = vld [vmem:[%s16409_s28 + $0xd28] sm:$0xff]  ;;  %v13156_v45 = vcombine.high %v622_v39, %v630_v40  ;;  %v13155_v51 = vcombine.low %v622_v39, %v630_v40  ;;  %8342 = vmatpush1.bf16.msra.mxu1 %v16237_v34 }
 0x2c9   : > { %v13163_v52 = vcombine.low %v626_v41, %v634_v42  ;;  %v746_v39 = vld [vmem:[%s16409_s28 + $0x10e8] sm:$0xff]  ;;  %8343 = vmatprep.subr.bf16.mxu1 %v16303_v1 }
 0x2ca   : > { %v858_v34 = vld [vmem:[%s16409_s28 + $0x1468] sm:$0xff] }
 0x2ce   : > { %7958 = vmatmul.mubr.bf16.gmra.mrb[72].mxu1 %v13027_v46  ;;  %10102 = vmatmul.mubr.bf16.gmra.mrb[72].mxu0 %v13035_v47  ;;  %v13164_v46 = vcombine.high %v626_v41, %v634_v42  ;;  %v638_v47 = vld [vmem:[%s16409_s28 + $0xd88] sm:$0xff] }
 0x2cf   : > { %7965 = vmatprep.mubr.bf16.mxu1 %v13044_v48  ;;  %10109 = vmatprep.mubr.bf16.mxu0 %v13052_v49  ;;  %v646_v48 = vld [vmem:[%s16409_s28 + $0xdc8] sm:$0xff] }
 0x2d0   : > { %v642_v49 = vld [vmem:[%s16409_s28 + $0xda8] sm:$0xff]  ;;  %v13172_v53 = vcombine.high %v638_v47, %v646_v48  ;;  %v13171_v59 = vcombine.low %v638_v47, %v646_v48 }
 0x2d1   : > { %v13179_v60 = vcombine.low %v642_v49, %v650_v50  ;;  %v762_v47 = vld [vmem:[%s16409_s28 + $0x1168] sm:$0xff] }
 0x2d6   : > { %7966 = vmatmul.mubr.bf16.gmra.mrb[76].mxu1 %v13043_v54  ;;  %10110 = vmatmul.mubr.bf16.gmra.mrb[76].mxu0 %v13051_v55  ;;  %v13180_v54 = vcombine.high %v642_v49, %v650_v50  ;;  %v654_v55 = vld [vmem:[%s16409_s28 + $0xe08] sm:$0xff] }
 0x2d7   : > { %7973 = vmatprep.mubr.bf16.mxu1 %v13060_v56  ;;  %10117 = vmatprep.mubr.bf16.mxu0 %v13068_v57  ;;  %v662_v56 = vld [vmem:[%s16409_s28 + $0xe48] sm:$0xff] }
 0x2d8   : > { %v658_v57 = vld [vmem:[%s16409_s28 + $0xe28] sm:$0xff]  ;;  %v13188_v61 = vcombine.high %v654_v55, %v662_v56  ;;  %v13187_v6 = vcombine.low %v654_v55, %v662_v56 }
 0x2d9   : > { %v13196_v62 = vcombine.high %v658_v57, %v666_v58  ;;  %v13195_v7 = vcombine.low %v658_v57, %v666_v58  ;;  %v778_v55 = vld [vmem:[%s16409_s28 + $0x11e8] sm:$0xff] }
 0x2de   : > { %7974 = vmatmul.mubr.bf16.gmra.mrb[80].mxu1 %v13059_v0  ;;  %10118 = vmatmul.mubr.bf16.gmra.mrb[80].mxu0 %v13067_v2  ;;  %v16236_v0 = vld [vmem:[%s18238_s1 + $0x358] sm:$0xff]   ;;  %v670_v2 = vld [vmem:[%s16409_s28 + $0xe88] sm:$0xff] }
 0x2df   : > { %7981 = vmatprep.mubr.bf16.mxu1 %v13076_v3  ;;  %10125 = vmatprep.mubr.bf16.mxu0 %v13084_v4  ;;  %v678_v3 = vld [vmem:[%s16409_s28 + $0xec8] sm:$0xff] }
 0x2e0   : > { %v674_v4 = vld [vmem:[%s16409_s28 + $0xea8] sm:$0xff]  ;;  %10484 = vmatpush1.bf16.msra.mxu0 %v16236_v0  ;;  %v13204_v8 = vcombine.high %v670_v2, %v678_v3  ;;  %v13203_v14 = vcombine.low %v670_v2, %v678_v3 }
 0x2e1   : > { %10485 = vmatprep.subr.bf16.mxu0 %v16303_v1  ;;  %v13211_v15 = vcombine.low %v674_v4, %v682_v5 }
 0x2e6   : > { %7982 = vmatmul.mubr.bf16.gmra.mrb[84].mxu1 %v13075_v9  ;;  %10126 = vmatmul.mubr.bf16.gmra.mrb[84].mxu0 %v13083_v10  ;;  %v13212_v9 = vcombine.high %v674_v4, %v682_v5  ;;  %v686_v10 = vld [vmem:[%s16409_s28 + $0xf08] sm:$0xff] }
 0x2e7   : > { %7989 = vmatprep.mubr.bf16.mxu1 %v13092_v11  ;;  %10133 = vmatprep.mubr.bf16.mxu0 %v13100_v12  ;;  %v694_v11 = vld [vmem:[%s16409_s28 + $0xf48] sm:$0xff] }
 0x2e8   : > { %v690_v12 = vld [vmem:[%s16409_s28 + $0xf28] sm:$0xff]  ;;  %v13220_v16 = vcombine.high %v686_v10, %v694_v11  ;;  %v13219_v22 = vcombine.low %v686_v10, %v694_v11 }
 0x2e9   : > { %v13227_v23 = vcombine.low %v690_v12, %v698_v13  ;;  %v16239_v5 = vld [vmem:[%s18238_s1 + $0x168] sm:$0xff]  }
 0x2ea   : > { %v810_v10 = vld [vmem:[%s16409_s28 + $0x12e8] sm:$0xff]  ;;  %8344 = vmatpush1.bf16.msra.mxu1 %v16239_v5 }
 0x2eb   : > { %8345 = vmatprep.subr.bf16.mxu1 %v16303_v1  ;;  %v922_v5 = vld [vmem:[%s16409_s28 + $0x1668] sm:$0xff] }
 0x2ee   : > { %7990 = vmatmul.mubr.bf16.gmra.mrb[88].mxu1 %v13091_v17  ;;  %10134 = vmatmul.mubr.bf16.gmra.mrb[88].mxu0 %v13099_v18  ;;  %v13228_v17 = vcombine.high %v690_v12, %v698_v13  ;;  %v702_v18 = vld [vmem:[%s16409_s28 + $0xf88] sm:$0xff] }
 0x2ef   : > { %7997 = vmatprep.mubr.bf16.mxu1 %v13108_v19  ;;  %10141 = vmatprep.mubr.bf16.mxu0 %v13116_v20  ;;  %v710_v19 = vld [vmem:[%s16409_s28 + $0xfc8] sm:$0xff] }
 0x2f0   : > { %v706_v20 = vld [vmem:[%s16409_s28 + $0xfa8] sm:$0xff]  ;;  %v13236_v24 = vcombine.high %v702_v18, %v710_v19  ;;  %v13235_v30 = vcombine.low %v702_v18, %v710_v19 }
 0x2f1   : > { %v13243_v31 = vcombine.low %v706_v20, %v714_v21  ;;  %v826_v18 = vld [vmem:[%s16409_s28 + $0x1368] sm:$0xff] }
 0x2f6   : > { %7998 = vmatmul.mubr.bf16.gmra.mrb[92].mxu1 %v13107_v25  ;;  %10142 = vmatmul.mubr.bf16.gmra.mrb[92].mxu0 %v13115_v26  ;;  %v13244_v25 = vcombine.high %v706_v20, %v714_v21  ;;  %v718_v26 = vld [vmem:[%s16409_s28 + $0x1008] sm:$0xff] }
 0x2f7   : > { %8005 = vmatprep.mubr.bf16.mxu1 %v13124_v27  ;;  %10149 = vmatprep.mubr.bf16.mxu0 %v13132_v28  ;;  %v726_v27 = vld [vmem:[%s16409_s28 + $0x1048] sm:$0xff] }
 0x2f8   : > { %v722_v28 = vld [vmem:[%s16409_s28 + $0x1028] sm:$0xff]  ;;  %v13252_v32 = vcombine.high %v718_v26, %v726_v27  ;;  %v13251_v40 = vcombine.low %v718_v26, %v726_v27 }
 0x2f9   : > { %v13260_v33 = vcombine.high %v722_v28, %v730_v29  ;;  %v13259_v41 = vcombine.low %v722_v28, %v730_v29  ;;  %v842_v26 = vld [vmem:[%s16409_s28 + $0x13e8] sm:$0xff] }
 0x2fe   : > { %8006 = vmatmul.mubr.bf16.gmra.mrb[96].mxu1 %v13123_v35  ;;  %10150 = vmatmul.mubr.bf16.gmra.mrb[96].mxu0 %v13131_v36  ;;  %v16238_v35 = vld [vmem:[%s18238_s1 + $0x360] sm:$0xff]   ;;  %v734_v36 = vld [vmem:[%s16409_s28 + $0x1088] sm:$0xff] }
 0x2ff   : > { %8013 = vmatprep.mubr.bf16.mxu1 %v13140_v37  ;;  %10157 = vmatprep.mubr.bf16.mxu0 %v13148_v38  ;;  %v742_v37 = vld [vmem:[%s16409_s28 + $0x10c8] sm:$0xff] }
 0x300   : > { %v738_v38 = vld [vmem:[%s16409_s28 + $0x10a8] sm:$0xff]  ;;  %10486 = vmatpush1.bf16.msra.mxu0 %v16238_v35  ;;  %v13268_v42 = vcombine.high %v734_v36, %v742_v37  ;;  %v13267_v48 = vcombine.low %v734_v36, %v742_v37 }
 0x301   : > { %10487 = vmatprep.subr.bf16.mxu0 %v16303_v1  ;;  %v13275_v49 = vcombine.low %v738_v38, %v746_v39 }
 0x306   : > { %8014 = vmatmul.mubr.bf16.gmra.mrb[100].mxu1 %v13139_v43  ;;  %10158 = vmatmul.mubr.bf16.gmra.mrb[100].mxu0 %v13147_v44  ;;  %v13276_v43 = vcombine.high %v738_v38, %v746_v39  ;;  %v750_v44 = vld [vmem:[%s16409_s28 + $0x1108] sm:$0xff]  ;;  %v16241_v39 = vld [vmem:[%s18238_s1 + $0x170] sm:$0xff]  }
 0x307   : > { %8021 = vmatprep.mubr.bf16.mxu1 %v13156_v45  ;;  %10165 = vmatprep.mubr.bf16.mxu0 %v13164_v46  ;;  %v758_v45 = vld [vmem:[%s16409_s28 + $0x1148] sm:$0xff] }
 0x308   : > { %v754_v46 = vld [vmem:[%s16409_s28 + $0x1128] sm:$0xff]  ;;  %v13284_v50 = vcombine.high %v750_v44, %v758_v45  ;;  %v13283_v56 = vcombine.low %v750_v44, %v758_v45  ;;  %8346 = vmatpush1.bf16.msra.mxu1 %v16241_v39 }
 0x309   : > { %v13291_v57 = vcombine.low %v754_v46, %v762_v47  ;;  %v874_v44 = vld [vmem:[%s16409_s28 + $0x14e8] sm:$0xff]  ;;  %8347 = vmatprep.subr.bf16.mxu1 %v16303_v1 }
 0x30a   : > { %v986_v39 = vld [vmem:[%s16409_s28 + $0x1868] sm:$0xff] }
 0x30e   : > { %8022 = vmatmul.mubr.bf16.gmra.mrb[104].mxu1 %v13155_v51  ;;  %10166 = vmatmul.mubr.bf16.gmra.mrb[104].mxu0 %v13163_v52  ;;  %v13292_v51 = vcombine.high %v754_v46, %v762_v47  ;;  %v766_v52 = vld [vmem:[%s16409_s28 + $0x1188] sm:$0xff] }
 0x30f   : > { %8029 = vmatprep.mubr.bf16.mxu1 %v13172_v53  ;;  %10173 = vmatprep.mubr.bf16.mxu0 %v13180_v54  ;;  %v774_v53 = vld [vmem:[%s16409_s28 + $0x11c8] sm:$0xff] }
 0x310   : > { %v770_v54 = vld [vmem:[%s16409_s28 + $0x11a8] sm:$0xff]  ;;  %v13300_v58 = vcombine.high %v766_v52, %v774_v53  ;;  %v13299_v0 = vcombine.low %v766_v52, %v774_v53 }
 0x311   : > { %v13307_v2 = vcombine.low %v770_v54, %v778_v55  ;;  %v890_v52 = vld [vmem:[%s16409_s28 + $0x1568] sm:$0xff] }
 0x316   : > { %8030 = vmatmul.mubr.bf16.gmra.mrb[108].mxu1 %v13171_v59  ;;  %10174 = vmatmul.mubr.bf16.gmra.mrb[108].mxu0 %v13179_v60  ;;  %v13308_v59 = vcombine.high %v770_v54, %v778_v55  ;;  %v782_v60 = vld [vmem:[%s16409_s28 + $0x1208] sm:$0xff] }
 0x317   : > { %8037 = vmatprep.mubr.bf16.mxu1 %v13188_v61  ;;  %10181 = vmatprep.mubr.bf16.mxu0 %v13196_v62  ;;  %v790_v61 = vld [vmem:[%s16409_s28 + $0x1248] sm:$0xff] }
 0x318   : > { %v786_v62 = vld [vmem:[%s16409_s28 + $0x1228] sm:$0xff]  ;;  %v13316_v3 = vcombine.high %v782_v60, %v790_v61  ;;  %v13315_v11 = vcombine.low %v782_v60, %v790_v61 }
 0x319   : > { %v13324_v4 = vcombine.high %v786_v62, %v794_v63  ;;  %v13323_v12 = vcombine.low %v786_v62, %v794_v63  ;;  %v906_v60 = vld [vmem:[%s16409_s28 + $0x15e8] sm:$0xff] }
 0x31e   : > { %8038 = vmatmul.mubr.bf16.gmra.mrb[112].mxu1 %v13187_v6  ;;  %10182 = vmatmul.mubr.bf16.gmra.mrb[112].mxu0 %v13195_v7  ;;  %v16240_v6 = vld [vmem:[%s18238_s1 + $0x368] sm:$0xff]  }
 0x31f   : > { %8045 = vmatprep.mubr.bf16.mxu1 %v13204_v8  ;;  %10189 = vmatprep.mubr.bf16.mxu0 %v13212_v9  ;;  %v798_v7 = vld [vmem:[%s16409_s28 + $0x1288] sm:$0xff] }
 0x320   : > { %v806_v8 = vld [vmem:[%s16409_s28 + $0x12c8] sm:$0xff]  ;;  %10488 = vmatpush1.bf16.msra.mxu0 %v16240_v6 }
 0x321   : > { %v802_v9 = vld [vmem:[%s16409_s28 + $0x12a8] sm:$0xff]  ;;  %10489 = vmatprep.subr.bf16.mxu0 %v16303_v1  ;;  %v13332_v13 = vcombine.high %v798_v7, %v806_v8  ;;  %v13331_v19 = vcombine.low %v798_v7, %v806_v8 }
 0x322   : > { %v13339_v20 = vcombine.low %v802_v9, %v810_v10 }
 0x326   : > { %8046 = vmatmul.mubr.bf16.gmra.mrb[116].mxu1 %v13203_v14  ;;  %10190 = vmatmul.mubr.bf16.gmra.mrb[116].mxu0 %v13211_v15  ;;  %v13340_v14 = vcombine.high %v802_v9, %v810_v10  ;;  %v814_v15 = vld [vmem:[%s16409_s28 + $0x1308] sm:$0xff]  ;;  %v16243_v10 = vld [vmem:[%s18238_s1 + $0x178] sm:$0xff]  }
 0x327   : > { %8053 = vmatprep.mubr.bf16.mxu1 %v13220_v16  ;;  %10197 = vmatprep.mubr.bf16.mxu0 %v13228_v17  ;;  %v822_v16 = vld [vmem:[%s16409_s28 + $0x1348] sm:$0xff] }
 0x328   : > { %v818_v17 = vld [vmem:[%s16409_s28 + $0x1328] sm:$0xff]  ;;  %v13348_v21 = vcombine.high %v814_v15, %v822_v16  ;;  %v13347_v27 = vcombine.low %v814_v15, %v822_v16  ;;  %8348 = vmatpush1.bf16.msra.mxu1 %v16243_v10 }
 0x329   : > { %v13355_v28 = vcombine.low %v818_v17, %v826_v18  ;;  %v938_v15 = vld [vmem:[%s16409_s28 + $0x16e8] sm:$0xff]  ;;  %8853 = vmatprep.subr.bf16.mxu1 %v16303_v1 }
 0x32e   : > { %8054 = vmatmul.mubr.bf16.gmra.mrb[120].mxu1 %v13219_v22  ;;  %10198 = vmatmul.mubr.bf16.gmra.mrb[120].mxu0 %v13227_v23  ;;  %v13356_v22 = vcombine.high %v818_v17, %v826_v18  ;;  %v830_v23 = vld [vmem:[%s16409_s28 + $0x1388] sm:$0xff] }
 0x32f   : > { %8061 = vmatprep.mubr.bf16.mxu1 %v13236_v24  ;;  %10205 = vmatprep.mubr.bf16.mxu0 %v13244_v25  ;;  %v838_v24 = vld [vmem:[%s16409_s28 + $0x13c8] sm:$0xff] }
 0x330   : > { %v834_v25 = vld [vmem:[%s16409_s28 + $0x13a8] sm:$0xff]  ;;  %v13364_v29 = vcombine.high %v830_v23, %v838_v24  ;;  %v13363_v35 = vcombine.low %v830_v23, %v838_v24 }
 0x331   : > { %v13371_v36 = vcombine.low %v834_v25, %v842_v26  ;;  %v954_v23 = vld [vmem:[%s16409_s28 + $0x1768] sm:$0xff] }
 0x336   : > { %8062 = vmatmul.mubr.bf16.gmra.mrb[124].mxu1 %v13235_v30  ;;  %10206 = vmatmul.mubr.bf16.gmra.mrb[124].mxu0 %v13243_v31  ;;  %v13372_v30 = vcombine.high %v834_v25, %v842_v26  ;;  %v846_v31 = vld [vmem:[%s16409_s28 + $0x1408] sm:$0xff] }
 0x337   : > { %8069 = vmatprep.mubr.bf16.mxu1 %v13252_v32  ;;  %10213 = vmatprep.mubr.bf16.mxu0 %v13260_v33  ;;  %v854_v32 = vld [vmem:[%s16409_s28 + $0x1448] sm:$0xff] }
 0x338   : > { %v850_v33 = vld [vmem:[%s16409_s28 + $0x1428] sm:$0xff]  ;;  %v13380_v37 = vcombine.high %v846_v31, %v854_v32  ;;  %v13379_v45 = vcombine.low %v846_v31, %v854_v32 }
 0x339   : > { %v13388_v38 = vcombine.high %v850_v33, %v858_v34  ;;  %v13387_v46 = vcombine.low %v850_v33, %v858_v34  ;;  %v970_v31 = vld [vmem:[%s16409_s28 + $0x17e8] sm:$0xff] }
 0x33e   : > { %8070 = vmatmul.mubr.bf16.gmra.mrb[128].mxu1 %v13251_v40  ;;  %10214 = vmatmul.mubr.bf16.gmra.mrb[128].mxu0 %v13259_v41  ;;  %v16242_v40 = vld [vmem:[%s18238_s1 + $0x370] sm:$0xff]   ;;  %v862_v41 = vld [vmem:[%s16409_s28 + $0x1488] sm:$0xff] }
 0x33f   : > { %8077 = vmatprep.mubr.bf16.mxu1 %v13268_v42  ;;  %10221 = vmatprep.mubr.bf16.mxu0 %v13276_v43  ;;  %v870_v42 = vld [vmem:[%s16409_s28 + $0x14c8] sm:$0xff] }
 0x340   : > { %v866_v43 = vld [vmem:[%s16409_s28 + $0x14a8] sm:$0xff]  ;;  %10490 = vmatpush1.bf16.msra.mxu0 %v16242_v40  ;;  %v13396_v47 = vcombine.high %v862_v41, %v870_v42  ;;  %v13395_v53 = vcombine.low %v862_v41, %v870_v42 }
 0x341   : > { %10491 = vmatprep.subr.bf16.mxu0 %v16303_v1  ;;  %v13403_v54 = vcombine.low %v866_v43, %v874_v44 }
 0x346   : > { %8078 = vmatmul.mubr.bf16.gmra.mrb[132].mxu1 %v13267_v48  ;;  %10222 = vmatmul.mubr.bf16.gmra.mrb[132].mxu0 %v13275_v49  ;;  %v13404_v48 = vcombine.high %v866_v43, %v874_v44  ;;  %v878_v49 = vld [vmem:[%s16409_s28 + $0x1508] sm:$0xff] }
 0x347   : > { %8085 = vmatprep.mubr.bf16.mxu1 %v13284_v50  ;;  %10229 = vmatprep.mubr.bf16.mxu0 %v13292_v51  ;;  %v886_v50 = vld [vmem:[%s16409_s28 + $0x1548] sm:$0xff] }
 0x348   : > { %v882_v51 = vld [vmem:[%s16409_s28 + $0x1528] sm:$0xff]  ;;  %v13412_v55 = vcombine.high %v878_v49, %v886_v50  ;;  %v13411_v61 = vcombine.low %v878_v49, %v886_v50 }
 0x349   : > { %v13419_v62 = vcombine.low %v882_v51, %v890_v52  ;;  %v990_v44 = vld [vmem:[%s16409_s28 + $0x1888] sm:$0xff] }
 0x34e   : > { %8086 = vmatmul.mubr.bf16.gmra.mrb[136].mxu1 %v13283_v56  ;;  %10230 = vmatmul.mubr.bf16.gmra.mrb[136].mxu0 %v13291_v57  ;;  %v13420_v56 = vcombine.high %v882_v51, %v890_v52  ;;  %v894_v57 = vld [vmem:[%s16409_s28 + $0x1588] sm:$0xff] }
 0x34f   : > { %8093 = vmatprep.mubr.bf16.mxu1 %v13300_v58  ;;  %10237 = vmatprep.mubr.bf16.mxu0 %v13308_v59  ;;  %v902_v58 = vld [vmem:[%s16409_s28 + $0x15c8] sm:$0xff] }
 0x350   : > { %v898_v59 = vld [vmem:[%s16409_s28 + $0x15a8] sm:$0xff]  ;;  %v13428_v63 = vcombine.high %v894_v57, %v902_v58  ;;  %v13427_v6 = vcombine.low %v894_v57, %v902_v58 }
 0x351   : > { %v13435_v7 = vcombine.low %v898_v59, %v906_v60  ;;  %v1006_v52 = vld [vmem:[%s16409_s28 + $0x1908] sm:$0xff] }
 0x356   : > { %8094 = vmatmul.mubr.bf16.gmra.mrb[140].mxu1 %v13299_v0  ;;  %10238 = vmatmul.mubr.bf16.gmra.mrb[140].mxu0 %v13307_v2  ;;  %v13436_v0 = vcombine.high %v898_v59, %v906_v60  ;;  %v910_v2 = vld [vmem:[%s16409_s28 + $0x1608] sm:$0xff] }
 0x357   : > { %8101 = vmatprep.mubr.bf16.mxu1 %v13316_v3  ;;  %10245 = vmatprep.mubr.bf16.mxu0 %v13324_v4  ;;  %v918_v3 = vld [vmem:[%s16409_s28 + $0x1648] sm:$0xff] }
 0x358   : > { %v914_v4 = vld [vmem:[%s16409_s28 + $0x1628] sm:$0xff]  ;;  %v13444_v8 = vcombine.high %v910_v2, %v918_v3  ;;  %v13443_v16 = vcombine.low %v910_v2, %v918_v3 }
 0x359   : > { %v13452_v9 = vcombine.high %v914_v4, %v922_v5  ;;  %v13451_v17 = vcombine.low %v914_v4, %v922_v5  ;;  %v1022_v60 = vld [vmem:[%s16409_s28 + $0x1988] sm:$0xff] }
 0x35a   : > { %v1038_v5 = vld [vmem:[%s16409_s28 + $0x1a08] sm:$0xff] }
 0x35e   : > { %8102 = vmatmul.mubr.bf16.gmra.mrb[144].mxu1 %v13315_v11  ;;  %10246 = vmatmul.mubr.bf16.gmra.mrb[144].mxu0 %v13323_v12  ;;  %v16244_v11 = vld [vmem:[%s18238_s1 + $0x378] sm:$0xff]   ;;  %v926_v12 = vld [vmem:[%s16409_s28 + $0x1688] sm:$0xff] }
 0x35f   : > { %8109 = vmatprep.mubr.bf16.mxu1 %v13332_v13  ;;  %10253 = vmatprep.mubr.bf16.mxu0 %v13340_v14  ;;  %v934_v13 = vld [vmem:[%s16409_s28 + $0x16c8] sm:$0xff] }
 0x360   : > { %v930_v14 = vld [vmem:[%s16409_s28 + $0x16a8] sm:$0xff]  ;;  %10492 = vmatpush1.bf16.msra.mxu0 %v16244_v11  ;;  %v13460_v18 = vcombine.high %v926_v12, %v934_v13  ;;  %v13459_v24 = vcombine.low %v926_v12, %v934_v13 }
 0x361   : > { %10997 = vmatprep.subr.bf16.mxu0 %v16303_v1  ;;  %v13467_v25 = vcombine.low %v930_v14, %v938_v15  ;;  %v1054_v13 = vld [vmem:[%s16409_s28 + $0x1a88] sm:$0xff] }
 0x366   : > { %8110 = vmatmul.mubr.bf16.gmra.mrb[148].mxu1 %v13331_v19  ;;  %10254 = vmatmul.mubr.bf16.gmra.mrb[148].mxu0 %v13339_v20  ;;  %v13468_v19 = vcombine.high %v930_v14, %v938_v15  ;;  %v942_v20 = vld [vmem:[%s16409_s28 + $0x1708] sm:$0xff] }
 0x367   : > { %8117 = vmatprep.mubr.bf16.mxu1 %v13348_v21  ;;  %10261 = vmatprep.mubr.bf16.mxu0 %v13356_v22  ;;  %v950_v21 = vld [vmem:[%s16409_s28 + $0x1748] sm:$0xff] }
 0x368   : > { %v946_v22 = vld [vmem:[%s16409_s28 + $0x1728] sm:$0xff]  ;;  %v13476_v26 = vcombine.high %v942_v20, %v950_v21  ;;  %v13475_v32 = vcombine.low %v942_v20, %v950_v21 }
 0x369   : > { %v13483_v33 = vcombine.low %v946_v22, %v954_v23  ;;  %v1062_v14 = vld [vmem:[%s16409_s28 + $0x1ac8] sm:$0xff] }
 0x36a   : > { %v1058_v15 = vld [vmem:[%s16409_s28 + $0x1aa8] sm:$0xff] }
 0x36b   : > { %v1070_v21 = vld [vmem:[%s16409_s28 + $0x1b08] sm:$0xff] }
 0x36e   : > { %8118 = vmatmul.mubr.bf16.gmra.mrb[152].mxu1 %v13347_v27  ;;  %10262 = vmatmul.mubr.bf16.gmra.mrb[152].mxu0 %v13355_v28  ;;  %v13484_v27 = vcombine.high %v946_v22, %v954_v23  ;;  %v958_v28 = vld [vmem:[%s16409_s28 + $0x1788] sm:$0xff] }
 0x36f   : > { %8125 = vmatprep.mubr.bf16.mxu1 %v13364_v29  ;;  %10269 = vmatprep.mubr.bf16.mxu0 %v13372_v30  ;;  %v966_v29 = vld [vmem:[%s16409_s28 + $0x17c8] sm:$0xff] }
 0x370   : > { %v962_v30 = vld [vmem:[%s16409_s28 + $0x17a8] sm:$0xff]  ;;  %v13492_v34 = vcombine.high %v958_v28, %v966_v29  ;;  %v13491_v40 = vcombine.low %v958_v28, %v966_v29 }
 0x371   : > { %v13499_v41 = vcombine.low %v962_v30, %v970_v31  ;;  %v1078_v22 = vld [vmem:[%s16409_s28 + $0x1b48] sm:$0xff] }
 0x372   : > { %v1074_v23 = vld [vmem:[%s16409_s28 + $0x1b28] sm:$0xff] }
 0x373   : > { %v1086_v29 = vld [vmem:[%s16409_s28 + $0x1b88] sm:$0xff] }
 0x376   : > { %8126 = vmatmul.mubr.bf16.gmra.mrb[156].mxu1 %v13363_v35  ;;  %10270 = vmatmul.mubr.bf16.gmra.mrb[156].mxu0 %v13371_v36  ;;  %v13500_v35 = vcombine.high %v962_v30, %v970_v31  ;;  %v974_v36 = vld [vmem:[%s16409_s28 + $0x1808] sm:$0xff] }
 0x377   : > { %8133 = vmatprep.mubr.bf16.mxu1 %v13380_v37  ;;  %10277 = vmatprep.mubr.bf16.mxu0 %v13388_v38  ;;  %v982_v37 = vld [vmem:[%s16409_s28 + $0x1848] sm:$0xff] }
 0x378   : > { %v978_v38 = vld [vmem:[%s16409_s28 + $0x1828] sm:$0xff]  ;;  %v13508_v42 = vcombine.high %v974_v36, %v982_v37 }
 0x379   : > { %v13516_v43 = vcombine.high %v978_v38, %v986_v39  ;;  %v13515_v49 = vcombine.low %v978_v38, %v986_v39  ;;  %v1094_v30 = vld [vmem:[%s16409_s28 + $0x1bc8] sm:$0xff] }
 0x37a   : > { %v1090_v31 = vld [vmem:[%s16409_s28 + $0x1ba8] sm:$0xff] }
 0x37b   : > { %v1110_v38 = vld [vmem:[%s16409_s28 + $0x1c48] sm:$0xff] }
 0x37c   : > { %v1106_v39 = vld [vmem:[%s16409_s28 + $0x1c28] sm:$0xff] }
 0x37e   : > { %8134 = vmatmul.mubr.bf16.gmra.mrb[160].mxu1 %v13379_v45  ;;  %10278 = vmatmul.mubr.bf16.gmra.mrb[160].mxu0 %v13387_v46  ;;  %v998_v45 = vld [vmem:[%s16409_s28 + $0x18c8] sm:$0xff] }
 0x37f   : > { %8141 = vmatprep.mubr.bf16.mxu1 %v13396_v47  ;;  %10285 = vmatprep.mubr.bf16.mxu0 %v13404_v48  ;;  %v994_v46 = vld [vmem:[%s16409_s28 + $0x18a8] sm:$0xff]  ;;  %v13507_v48 = vcombine.low %v974_v36, %v982_v37  ;;  %v13524_v50 = vcombine.high %v990_v44, %v998_v45 }
 0x380   : > { %v1002_v47 = vld [vmem:[%s16409_s28 + $0x18e8] sm:$0xff] }
 0x381   : > { %v13532_v51 = vcombine.high %v994_v46, %v1002_v47  ;;  %v13531_v57 = vcombine.low %v994_v46, %v1002_v47  ;;  %v1102_v37 = vld [vmem:[%s16409_s28 + $0x1c08] sm:$0xff] }
 0x382   : > { %v1126_v46 = vld [vmem:[%s16409_s28 + $0x1cc8] sm:$0xff] }
 0x383   : > { %v1122_v47 = vld [vmem:[%s16409_s28 + $0x1ca8] sm:$0xff] }
 0x386   : > { %8142 = vmatmul.mubr.bf16.gmra.mrb[164].mxu1 %v13395_v53  ;;  %10286 = vmatmul.mubr.bf16.gmra.mrb[164].mxu0 %v13403_v54  ;;  %v1014_v53 = vld [vmem:[%s16409_s28 + $0x1948] sm:$0xff] }
 0x387   : > { %8149 = vmatprep.mubr.bf16.mxu1 %v13412_v55  ;;  %10293 = vmatprep.mubr.bf16.mxu0 %v13420_v56  ;;  %v1010_v54 = vld [vmem:[%s16409_s28 + $0x1928] sm:$0xff]  ;;  %v13523_v56 = vcombine.low %v990_v44, %v998_v45  ;;  %v13540_v58 = vcombine.high %v1006_v52, %v1014_v53 }
 0x388   : > { %v1018_v55 = vld [vmem:[%s16409_s28 + $0x1968] sm:$0xff] }
 0x389   : > { %v13548_v59 = vcombine.high %v1010_v54, %v1018_v55  ;;  %v13547_v2 = vcombine.low %v1010_v54, %v1018_v55  ;;  %v1118_v45 = vld [vmem:[%s16409_s28 + $0x1c88] sm:$0xff] }
 0x38a   : > { %v1142_v54 = vld [vmem:[%s16409_s28 + $0x1d48] sm:$0xff] }
 0x38b   : > { %v1138_v55 = vld [vmem:[%s16409_s28 + $0x1d28] sm:$0xff] }
 0x38e   : > { %8150 = vmatmul.mubr.bf16.gmra.mrb[168].mxu1 %v13411_v61  ;;  %10294 = vmatmul.mubr.bf16.gmra.mrb[168].mxu0 %v13419_v62  ;;  %v1030_v61 = vld [vmem:[%s16409_s28 + $0x19c8] sm:$0xff] }
 0x38f   : > { %8157 = vmatprep.mubr.bf16.mxu1 %v13428_v63  ;;  %10301 = vmatprep.mubr.bf16.mxu0 %v13436_v0  ;;  %v1026_v62 = vld [vmem:[%s16409_s28 + $0x19a8] sm:$0xff]  ;;  %v13539_v0 = vcombine.low %v1006_v52, %v1014_v53  ;;  %v13556_v3 = vcombine.high %v1022_v60, %v1030_v61 }
 0x390   : > { %v1034_v63 = vld [vmem:[%s16409_s28 + $0x19e8] sm:$0xff] }
 0x391   : > { %v13564_v4 = vcombine.high %v1026_v62, %v1034_v63  ;;  %v13563_v10 = vcombine.low %v1026_v62, %v1034_v63  ;;  %v1134_v53 = vld [vmem:[%s16409_s28 + $0x1d08] sm:$0xff] }
 0x392   : > { %v1158_v62 = vld [vmem:[%s16409_s28 + $0x1dc8] sm:$0xff] }
 0x393   : > { %v1154_v63 = vld [vmem:[%s16409_s28 + $0x1da8] sm:$0xff] }
 0x396   : > { %8158 = vmatmul.mubr.bf16.gmra.mrb[172].mxu1 %v13427_v6  ;;  %10302 = vmatmul.mubr.bf16.gmra.mrb[172].mxu0 %v13435_v7  ;;  %v1046_v6 = vld [vmem:[%s16409_s28 + $0x1a48] sm:$0xff] }
 0x397   : > { %8165 = vmatprep.mubr.bf16.mxu1 %v13444_v8  ;;  %10309 = vmatprep.mubr.bf16.mxu0 %v13452_v9  ;;  %v1042_v7 = vld [vmem:[%s16409_s28 + $0x1a28] sm:$0xff]  ;;  %v13555_v9 = vcombine.low %v1022_v60, %v1030_v61  ;;  %v13572_v11 = vcombine.high %v1038_v5, %v1046_v6 }
 0x398   : > { %v1050_v8 = vld [vmem:[%s16409_s28 + $0x1a68] sm:$0xff] }
 0x399   : > { %v13580_v12 = vcombine.high %v1042_v7, %v1050_v8  ;;  %v1150_v61 = vld [vmem:[%s16409_s28 + $0x1d88] sm:$0xff] }
 0x39e   : > { %8166 = vmatmul.mubr.bf16.gmra.mrb[176].mxu1 %v13443_v16  ;;  %10310 = vmatmul.mubr.bf16.gmra.mrb[176].mxu0 %v13451_v17  ;;  %v1066_v16 = vld [vmem:[%s16409_s28 + $0x1ae8] sm:$0xff]  ;;  %v13571_v17 = vcombine.low %v1038_v5, %v1046_v6 }
 0x39f   : > { %8173 = vmatprep.mubr.bf16.mxu1 %v13460_v18  ;;  %10317 = vmatprep.mubr.bf16.mxu0 %v13468_v19  ;;  %v13579_v18 = vcombine.low %v1042_v7, %v1050_v8  ;;  %v13588_v19 = vcombine.high %v1054_v13, %v1062_v14  ;;  %v13596_v20 = vcombine.high %v1058_v15, %v1066_v16  ;;  %v1166_v6 = vld [vmem:[%s16409_s28 + $0x1e08] sm:$0xff] }
 0x3a0   : > { %v1174_v7 = vld [vmem:[%s16409_s28 + $0x1e48] sm:$0xff] }
 0x3a1   : > { %v1170_v8 = vld [vmem:[%s16409_s28 + $0x1e28] sm:$0xff] }
 0x3a6   : > { %8174 = vmatmul.mubr.bf16.gmra.mrb[180].mxu1 %v13459_v24  ;;  %10318 = vmatmul.mubr.bf16.gmra.mrb[180].mxu0 %v13467_v25  ;;  %v1082_v24 = vld [vmem:[%s16409_s28 + $0x1b68] sm:$0xff]  ;;  %v13587_v25 = vcombine.low %v1054_v13, %v1062_v14 }
 0x3a7   : > { %8181 = vmatprep.mubr.bf16.mxu1 %v13476_v26  ;;  %10325 = vmatprep.mubr.bf16.mxu0 %v13484_v27  ;;  %v13595_v26 = vcombine.low %v1058_v15, %v1066_v16  ;;  %v13604_v27 = vcombine.high %v1070_v21, %v1078_v22  ;;  %v13612_v28 = vcombine.high %v1074_v23, %v1082_v24  ;;  %v1182_v14 = vld [vmem:[%s16409_s28 + $0x1e88] sm:$0xff] }
 0x3a8   : > { %v1190_v15 = vld [vmem:[%s16409_s28 + $0x1ec8] sm:$0xff] }
 0x3a9   : > { %v1186_v16 = vld [vmem:[%s16409_s28 + $0x1ea8] sm:$0xff] }
 0x3ae   : > { %8182 = vmatmul.mubr.bf16.gmra.mrb[184].mxu1 %v13475_v32  ;;  %10326 = vmatmul.mubr.bf16.gmra.mrb[184].mxu0 %v13483_v33  ;;  %v1098_v32 = vld [vmem:[%s16409_s28 + $0x1be8] sm:$0xff]  ;;  %v13603_v33 = vcombine.low %v1070_v21, %v1078_v22 }
 0x3af   : > { %8189 = vmatprep.mubr.bf16.mxu1 %v13492_v34  ;;  %10333 = vmatprep.mubr.bf16.mxu0 %v13500_v35  ;;  %v13611_v34 = vcombine.low %v1074_v23, %v1082_v24  ;;  %v13620_v35 = vcombine.high %v1086_v29, %v1094_v30  ;;  %v13628_v36 = vcombine.high %v1090_v31, %v1098_v32  ;;  %v1198_v22 = vld [vmem:[%s16409_s28 + $0x1f08] sm:$0xff] }
 0x3b0   : > { %v1202_v23 = vld [vmem:[%s16409_s28 + $0x1f28] sm:$0xff]  ;;  %v13715_v24 = vcombine.low %v1182_v14, %v1190_v15 }
 0x3b6   : > { %8190 = vmatmul.mubr.bf16.gmra.mrb[188].mxu1 %v13491_v40  ;;  %10334 = vmatmul.mubr.bf16.gmra.mrb[188].mxu0 %v13499_v41  ;;  %v1114_v40 = vld [vmem:[%s16409_s28 + $0x1c68] sm:$0xff]  ;;  %v13619_v41 = vcombine.low %v1086_v29, %v1094_v30  ;;  %v215_v29 = vld [vmem:[%s16409_s28 + $0x50] sm:$0xff] }
 0x3b7   : > { %8197 = vmatprep.mubr.bf16.mxu1 %v13508_v42  ;;  %10341 = vmatprep.mubr.bf16.mxu0 %v13516_v43  ;;  %v13627_v42 = vcombine.low %v1090_v31, %v1098_v32  ;;  %v13636_v43 = vcombine.high %v1102_v37, %v1110_v38  ;;  %v13644_v44 = vcombine.high %v1106_v39, %v1114_v40  ;;  %v211_v30 = vld [vmem:[%s16409_s28 + $0x30] sm:$0xff] }
 0x3b8   : > { %v219_v31 = vld [vmem:[%s16409_s28 + $0x70] sm:$0xff]  ;;  %v13731_v32 = vcombine.low %v1198_v22, %v1198_v22 }
 0x3be   : > { %8198 = vmatmul.mubr.bf16.gmra.mrb[192].mxu1 %v13507_v48  ;;  %10342 = vmatmul.mubr.bf16.gmra.mrb[192].mxu0 %v13515_v49  ;;  %v1130_v48 = vld [vmem:[%s16409_s28 + $0x1ce8] sm:$0xff]  ;;  %v13635_v49 = vcombine.low %v1102_v37, %v1110_v38  ;;  %v231_v37 = vld [vmem:[%s16409_s28 + $0xd0] sm:$0xff] }
 0x3bf   : > { %8205 = vmatprep.mubr.bf16.mxu1 %v13524_v50  ;;  %10349 = vmatprep.mubr.bf16.mxu0 %v13532_v51  ;;  %v13643_v50 = vcombine.low %v1106_v39, %v1114_v40  ;;  %v13652_v51 = vcombine.high %v1118_v45, %v1126_v46  ;;  %v13660_v52 = vcombine.high %v1122_v47, %v1130_v48  ;;  %v227_v39 = vld [vmem:[%s16409_s28 + $0xb0] sm:$0xff] }
 0x3c0   : > { %v235_v40 = vld [vmem:[%s16409_s28 + $0xf0] sm:$0xff] }
 0x3c6   : > { %8206 = vmatmul.mubr.bf16.gmra.mrb[196].mxu1 %v13523_v56  ;;  %10350 = vmatmul.mubr.bf16.gmra.mrb[196].mxu0 %v13531_v57  ;;  %v1146_v56 = vld [vmem:[%s16409_s28 + $0x1d68] sm:$0xff]  ;;  %v13651_v57 = vcombine.low %v1118_v45, %v1126_v46  ;;  %v12766_v45 = vcombine.high %v227_v39, %v235_v40 }
 0x3c7   : > { %8213 = vmatprep.mubr.bf16.mxu1 %v13540_v58  ;;  %10357 = vmatprep.mubr.bf16.mxu0 %v13548_v59  ;;  %v13659_v58 = vcombine.low %v1122_v47, %v1130_v48  ;;  %v13668_v59 = vcombine.high %v1134_v53, %v1142_v54  ;;  %v13676_v60 = vcombine.high %v1138_v55, %v1146_v56  ;;  %v16251_v46 = vld [vmem:[%s18238_s1 + $0x188] sm:$0xff]   ;;  %v239_v47 = vld [vmem:[%s16409_s28 + $0x110] sm:$0xff] }
 0x3c8   : > { %v247_v48 = vld [vmem:[%s16409_s28 + $0x150] sm:$0xff] }
 0x3ce   : > { %8214 = vmatmul.mubr.bf16.gmra.mrb[200].mxu1 %v13539_v0  ;;  %10358 = vmatmul.mubr.bf16.gmra.mrb[200].mxu0 %v13547_v2  ;;  %v1162_v0 = vld [vmem:[%s16409_s28 + $0x1de8] sm:$0xff]  ;;  %v13667_v2 = vcombine.low %v1134_v53, %v1142_v54  ;;  %v12765_v53 = vcombine.low %v227_v39, %v235_v40  ;;  %v12774_v54 = vcombine.high %v239_v47, %v247_v48 }
 0x3cf   : > { %8221 = vmatprep.mubr.bf16.mxu1 %v13556_v3  ;;  %10365 = vmatprep.mubr.bf16.mxu0 %v13564_v4  ;;  %v13675_v3 = vcombine.low %v1138_v55, %v1146_v56  ;;  %v13684_v4 = vcombine.high %v1150_v61, %v1158_v62  ;;  %v13692_v5 = vcombine.high %v1154_v63, %v1162_v0  ;;  %v16253_v56 = vld [vmem:[%s18238_s1 + $0x190] sm:$0xff]  }
 0x3d6   : > { %8222 = vmatmul.mubr.bf16.gmra.mrb[204].mxu1 %v13555_v9  ;;  %10366 = vmatmul.mubr.bf16.gmra.mrb[204].mxu0 %v13563_v10  ;;  %v1178_v9 = vld [vmem:[%s16409_s28 + $0x1e68] sm:$0xff]  ;;  %v13683_v10 = vcombine.low %v1150_v61, %v1158_v62  ;;  %v259_v61 = vld [vmem:[%s16409_s28 + $0x1b0] sm:$0xff] }
 0x3d7   : > { %8229 = vmatprep.mubr.bf16.mxu1 %v13572_v11  ;;  %10373 = vmatprep.mubr.bf16.mxu0 %v13580_v12  ;;  %v13691_v11 = vcombine.low %v1154_v63, %v1162_v0  ;;  %v13700_v12 = vcombine.high %v1166_v6, %v1174_v7  ;;  %v13708_v13 = vcombine.high %v1170_v8, %v1178_v9  ;;  %v267_v62 = vld [vmem:[%s16409_s28 + $0x1f0] sm:$0xff]  ;;  %v16256_v63 = vld [vmem:[%s18238_s1 + $0x398] sm:$0xff]  }
 0x3d8   : > { %v12773_v0 = vcombine.low %v239_v47, %v247_v48 }
 0x3de   : > { %8230 = vmatmul.mubr.bf16.gmra.mrb[208].mxu1 %v13571_v17  ;;  %10374 = vmatmul.mubr.bf16.gmra.mrb[208].mxu0 %v13579_v18  ;;  %v1194_v17 = vld [vmem:[%s16409_s28 + $0x1ee8] sm:$0xff]  ;;  %v13699_v18 = vcombine.low %v1166_v6, %v1174_v7  ;;  %v16258_v6 = vld [vmem:[%s18238_s1 + $0x3a0] sm:$0xff]   ;;  %v271_v7 = vld [vmem:[%s16409_s28 + $0x210] sm:$0xff] }
 0x3df   : > { %8237 = vmatprep.mubr.bf16.mxu1 %v13588_v19  ;;  %10381 = vmatprep.mubr.bf16.mxu0 %v13596_v20  ;;  %v13707_v19 = vcombine.low %v1170_v8, %v1178_v9  ;;  %v13716_v20 = vcombine.high %v1182_v14, %v1190_v15  ;;  %v13724_v21 = vcombine.high %v1186_v16, %v1194_v17  ;;  %v279_v8 = vld [vmem:[%s16409_s28 + $0x250] sm:$0xff]  ;;  %v16259_v15 = vld [vmem:[%s18238_s1 + $0x1a8] sm:$0xff]  }
 0x3e0   : > { %v275_v9 = vld [vmem:[%s16409_s28 + $0x230] sm:$0xff] }
 0x3e6   : > { %8238 = vmatmul.mubr.bf16.gmra.mrb[212].mxu1 %v13587_v25  ;;  %10382 = vmatmul.mubr.bf16.gmra.mrb[212].mxu0 %v13595_v26  ;;  %v13723_v25 = vcombine.low %v1186_v16, %v1194_v17  ;;  %v13732_v26 = vcombine.high %v1198_v22, %v1198_v22  ;;  %v287_v16 = vld [vmem:[%s16409_s28 + $0x290] sm:$0xff] }
 0x3e7   : > { %8245 = vmatprep.mubr.bf16.mxu1 %v13604_v27  ;;  %10389 = vmatprep.mubr.bf16.mxu0 %v13612_v28  ;;  %v13740_v27 = vcombine.high %v1202_v23, %v1202_v23  ;;  %v207_v28 = vld [vmem:[%s16409_s28 + $0x10] sm:$0xff] }
 0x3e8   : > { %v12741_v38 = vcombine.low %v207_v28, %v215_v29  ;;  %v295_v17 = vld [vmem:[%s16409_s28 + $0x2d0] sm:$0xff] }
 0x3ee   : > { %8246 = vmatmul.mubr.bf16.gmra.mrb[216].mxu1 %v13603_v33  ;;  %10390 = vmatmul.mubr.bf16.gmra.mrb[216].mxu0 %v13611_v34  ;;  %v13739_v33 = vcombine.low %v1202_v23, %v1202_v23  ;;  %v12742_v34 = vcombine.high %v207_v28, %v215_v29  ;;  %v12822_v23 = vcombine.high %v287_v16, %v295_v17  ;;  %v315_v28 = vld [vmem:[%s16409_s28 + $0x370] sm:$0xff] }
 0x3ef   : > { %8253 = vmatprep.mubr.bf16.mxu1 %v13620_v35  ;;  %10397 = vmatprep.mubr.bf16.mxu0 %v13628_v36  ;;  %v12750_v35 = vcombine.high %v211_v30, %v219_v31  ;;  %v223_v36 = vld [vmem:[%s16409_s28 + $0x90] sm:$0xff]  ;;  %v12821_v29 = vcombine.low %v287_v16, %v295_v17 }
 0x3f6   : > { %8254 = vmatmul.mubr.bf16.gmra.mrb[220].mxu1 %v13619_v41  ;;  %10398 = vmatmul.mubr.bf16.gmra.mrb[220].mxu0 %v13627_v42  ;;  %v12749_v41 = vcombine.low %v211_v30, %v219_v31  ;;  %v16249_v42 = vld [vmem:[%s18238_s1 + $0x180] sm:$0xff]  }
 0x3f7   : > { %8261 = vmatprep.mubr.bf16.mxu1 %v13636_v43  ;;  %10405 = vmatprep.mubr.bf16.mxu0 %v13644_v44  ;;  %v16250_v43 = vld [vmem:[%s18238_s1 + $0x380] sm:$0xff]   ;;  %v12758_v44 = vcombine.high %v223_v36, %v231_v37 }
 0x3fe   : > { %8262 = vmatmul.mubr.bf16.gmra.mrb[224].mxu1 %v13635_v49  ;;  %10406 = vmatmul.mubr.bf16.gmra.mrb[224].mxu0 %v13643_v50  ;;  %v16252_v49 = vld [vmem:[%s18238_s1 + $0x388] sm:$0xff]   ;;  %v243_v50 = vld [vmem:[%s16409_s28 + $0x130] sm:$0xff] }
 0x3ff   : > { %8269 = vmatprep.mubr.bf16.mxu1 %v13652_v51  ;;  %10413 = vmatprep.mubr.bf16.mxu0 %v13660_v52  ;;  %v251_v51 = vld [vmem:[%s16409_s28 + $0x170] sm:$0xff]  ;;  %v12757_v52 = vcombine.low %v223_v36, %v231_v37 }
 0x400   : > { %v12782_v55 = vcombine.high %v243_v50, %v251_v51  ;;  %v331_v36 = vld [vmem:[%s16409_s28 + $0x3f0] sm:$0xff] }
 0x406   : > { %8270 = vmatmul.mubr.bf16.gmra.mrb[228].mxu1 %v13651_v57  ;;  %10414 = vmatmul.mubr.bf16.gmra.mrb[228].mxu0 %v13659_v58  ;;  %v16254_v57 = vld [vmem:[%s18238_s1 + $0x390] sm:$0xff]  }
 0x407   : > { %8277 = vmatprep.mubr.bf16.mxu1 %v13668_v59  ;;  %10421 = vmatprep.mubr.bf16.mxu0 %v13676_v60  ;;  %v255_v58 = vld [vmem:[%s16409_s28 + $0x190] sm:$0xff]  ;;  %v16255_v60 = vld [vmem:[%s18238_s1 + $0x198] sm:$0xff]  }
 0x408   : > { %v263_v59 = vld [vmem:[%s16409_s28 + $0x1d0] sm:$0xff] }
 0x40e   : > { %8278 = vmatmul.mubr.bf16.gmra.mrb[232].mxu1 %v13667_v2  ;;  %10422 = vmatmul.mubr.bf16.gmra.mrb[232].mxu0 %v13675_v3  ;;  %v12781_v2 = vcombine.low %v243_v50, %v251_v51  ;;  %v12790_v3 = vcombine.high %v255_v58, %v263_v59  ;;  %v16262_v50 = vld [vmem:[%s18238_s1 + $0x3b0] sm:$0xff]  }
 0x40f   : > { %8285 = vmatprep.mubr.bf16.mxu1 %v13684_v4  ;;  %10429 = vmatprep.mubr.bf16.mxu0 %v13692_v5  ;;  %v12798_v4 = vcombine.high %v259_v61, %v267_v62  ;;  %v16257_v5 = vld [vmem:[%s18238_s1 + $0x1a0] sm:$0xff]   ;;  %v351_v51 = vld [vmem:[%s16409_s28 + $0x490] sm:$0xff] }
 0x416   : > { %8286 = vmatmul.mubr.bf16.gmra.mrb[236].mxu1 %v13683_v10  ;;  %10430 = vmatmul.mubr.bf16.gmra.mrb[236].mxu0 %v13691_v11  ;;  %v283_v10 = vld [vmem:[%s16409_s28 + $0x270] sm:$0xff]  ;;  %v12789_v11 = vcombine.low %v255_v58, %v263_v59 }
 0x417   : > { %8293 = vmatprep.mubr.bf16.mxu1 %v13700_v12  ;;  %10437 = vmatprep.mubr.bf16.mxu0 %v13708_v13  ;;  %v12797_v12 = vcombine.low %v259_v61, %v267_v62  ;;  %v12806_v13 = vcombine.high %v271_v7, %v279_v8  ;;  %v12814_v14 = vcombine.high %v275_v9, %v283_v10  ;;  %v367_v59 = vld [vmem:[%s16409_s28 + $0x510] sm:$0xff] }
 0x418   : > { %v12813_v22 = vcombine.low %v275_v9, %v283_v10  ;;  %v371_v61 = vld [vmem:[%s16409_s28 + $0x530] sm:$0xff] }
 0x419   : > { %v379_v62 = vld [vmem:[%s16409_s28 + $0x570] sm:$0xff] }
 0x41a   : > { %v12909_v9 = vcombine.low %v371_v61, %v379_v62 }
 0x41e   : > { %8294 = vmatmul.mubr.bf16.gmra.mrb[240].mxu1 %v13699_v18  ;;  %10438 = vmatmul.mubr.bf16.gmra.mrb[240].mxu0 %v13707_v19  ;;  %v16260_v18 = vld [vmem:[%s18238_s1 + $0x3a8] sm:$0xff]   ;;  %v291_v19 = vld [vmem:[%s16409_s28 + $0x2b0] sm:$0xff] }
 0x41f   : > { %8301 = vmatprep.mubr.bf16.mxu1 %v13716_v20  ;;  %10445 = vmatprep.mubr.bf16.mxu0 %v13724_v21  ;;  %v299_v20 = vld [vmem:[%s16409_s28 + $0x2f0] sm:$0xff]  ;;  %v12805_v21 = vcombine.low %v271_v7, %v279_v8 }
 0x420   : > { %v12829_v30 = vcombine.low %v291_v19, %v299_v20  ;;  %v395_v7 = vld [vmem:[%s16409_s28 + $0x5f0] sm:$0xff] }
 0x426   : > { %8302 = vmatmul.mubr.bf16.gmra.mrb[244].mxu1 %v13715_v24  ;;  %10446 = vmatmul.mubr.bf16.gmra.mrb[244].mxu0 %v13723_v25  ;;  %v12830_v24 = vcombine.high %v291_v19, %v299_v20  ;;  %v303_v25 = vld [vmem:[%s16409_s28 + $0x310] sm:$0xff]  ;;  %v16263_v20 = vld [vmem:[%s18238_s1 + $0x1b8] sm:$0xff]  }
 0x427   : > { %8309 = vmatprep.mubr.bf16.mxu1 %v13732_v26  ;;  %10453 = vmatprep.mubr.bf16.mxu0 %v13740_v27  ;;  %v311_v26 = vld [vmem:[%s16409_s28 + $0x350] sm:$0xff] }
 0x428   : > { %v307_v27 = vld [vmem:[%s16409_s28 + $0x330] sm:$0xff]  ;;  %v12838_v31 = vcombine.high %v303_v25, %v311_v26  ;;  %v12837_v37 = vcombine.low %v303_v25, %v311_v26 }
 0x429   : > { %v427_v25 = vld [vmem:[%s16409_s28 + $0x6f0] sm:$0xff] }
 0x42e   : > { %8310 = vmatmul.mubr.bf16.gmra.mrb[248].mxu1 %v13731_v32  ;;  %10454 = vmatmul.mubr.bf16.gmra.mrb[248].mxu0 %v13739_v33  ;;  %v12846_v32 = vcombine.high %v307_v27, %v315_v28  ;;  %v319_v33 = vld [vmem:[%s16409_s28 + $0x390] sm:$0xff] }
 0x42f   : > { %8349 = vmatprep.mubr.bf16.mxu1 %v12742_v34  ;;  %10493 = vmatprep.mubr.bf16.mxu0 %v12750_v35  ;;  %v327_v34 = vld [vmem:[%s16409_s28 + $0x3d0] sm:$0xff] }
 0x430   : > { %v323_v35 = vld [vmem:[%s16409_s28 + $0x3b0] sm:$0xff]  ;;  %v12854_v39 = vcombine.high %v319_v33, %v327_v34 }
 0x431   : > { %v12862_v40 = vcombine.high %v323_v35, %v331_v36 }
 0x436   : > { %8350 = vmatmul.mubr.bf16.vlgmr.msra.gmra.mrb[0].mxu1 %v12741_v38  ;;  %10494 = vmatmul.mubr.bf16.vlgmr.msra.gmra.mrb[0].mxu0 %v12749_v41  ;;  %v12845_v38 = vcombine.low %v307_v27, %v315_v28  ;;  %v335_v41 = vld [vmem:[%s16409_s28 + $0x410] sm:$0xff] }
 0x437   : > { %8854 = vmatpush1.bf16.msra.mxu1 %v16249_v42  ;;  %10998 = vmatpush1.bf16.msra.mxu0 %v16250_v43  ;;  %v343_v42 = vld [vmem:[%s16409_s28 + $0x450] sm:$0xff] }
 0x438   : > { %8357 = vmatprep.mubr.bf16.mxu1 %v12758_v44  ;;  %10501 = vmatprep.mubr.bf16.mxu0 %v12766_v45  ;;  %v339_v43 = vld [vmem:[%s16409_s28 + $0x430] sm:$0xff]  ;;  %v12853_v45 = vcombine.low %v319_v33, %v327_v34  ;;  %v12870_v47 = vcombine.high %v335_v41, %v343_v42 }
 0x439   : > { %8855 = vmatprep.subr.bf16.mxu1 %v16303_v1  ;;  %10999 = vmatprep.subr.bf16.mxu0 %v16303_v1  ;;  %v347_v44 = vld [vmem:[%s16409_s28 + $0x470] sm:$0xff] }
 0x43a   : > { %v12878_v48 = vcombine.high %v339_v43, %v347_v44  ;;  %v443_v33 = vld [vmem:[%s16409_s28 + $0x770] sm:$0xff] }
 0x43b   : > { %8856 = vmatpush1.bf16.msra.mxu1 %v16251_v46  ;;  %11000 = vmatpush1.bf16.msra.mxu0 %v16252_v49  ;;  %v12861_v46 = vcombine.low %v323_v35, %v331_v36  ;;  %v16261_v49 = vld [vmem:[%s18238_s1 + $0x1b0] sm:$0xff]  }
 0x43c   : > { %8857 = vmatprep.subr.bf16.mxu1 %v16303_v1  ;;  %11001 = vmatprep.subr.bf16.mxu0 %v16303_v1 }
 0x43e   : > { %8358 = vmatmul.mubr.bf16.gmra.mrb[4].mxu1 %v12757_v52  ;;  %10502 = vmatmul.mubr.bf16.gmra.mrb[4].mxu0 %v12765_v53  ;;  %v359_v52 = vld [vmem:[%s16409_s28 + $0x4d0] sm:$0xff] }
 0x43f   : > { %8365 = vmatprep.mubr.bf16.mxu1 %v12774_v54  ;;  %10509 = vmatprep.mubr.bf16.mxu0 %v12782_v55  ;;  %v355_v53 = vld [vmem:[%s16409_s28 + $0x4b0] sm:$0xff]  ;;  %v12869_v55 = vcombine.low %v335_v41, %v343_v42 }
 0x440   : > { %8858 = vmatpush1.bf16.msra.mxu1 %v16253_v56  ;;  %11002 = vmatpush1.bf16.msra.mxu0 %v16254_v57  ;;  %v363_v54 = vld [vmem:[%s16409_s28 + $0x4f0] sm:$0xff]  ;;  %v12877_v56 = vcombine.low %v339_v43, %v347_v44  ;;  %v12886_v57 = vcombine.high %v351_v51, %v359_v52 }
 0x441   : > { %8859 = vmatprep.subr.bf16.mxu1 %v16303_v1  ;;  %11003 = vmatprep.subr.bf16.mxu0 %v16303_v1  ;;  %v12894_v58 = vcombine.high %v355_v53, %v363_v54  ;;  %v459_v41 = vld [vmem:[%s16409_s28 + $0x7f0] sm:$0xff] }
 0x444   : > { %8860 = vmatpush1.bf16.msra.mxu1 %v16255_v60  ;;  %11004 = vmatpush1.bf16.msra.mxu0 %v16256_v63  ;;  %v375_v60 = vld [vmem:[%s16409_s28 + $0x550] sm:$0xff]  ;;  %v12885_v63 = vcombine.low %v351_v51, %v359_v52 }
 0x445   : > { %8861 = vmatprep.subr.bf16.mxu1 %v16303_v1  ;;  %11005 = vmatprep.subr.bf16.mxu0 %v16303_v1  ;;  %v12901_v8 = vcombine.low %v367_v59, %v375_v60 }
 0x446   : > { %8366 = vmatmul.mubr.bf16.gmra.mrb[8].mxu1 %v12773_v0  ;;  %10510 = vmatmul.mubr.bf16.gmra.mrb[8].mxu0 %v12781_v2  ;;  %v12893_v0 = vcombine.low %v355_v53, %v363_v54  ;;  %v12902_v2 = vcombine.high %v367_v59, %v375_v60  ;;  %v16265_v54 = vld [vmem:[%s18238_s1 + $0x1c0] sm:$0xff]   ;;  %v491_v59 = vld [vmem:[%s16409_s28 + $0x8f0] sm:$0xff] }
 0x447   : > { %8373 = vmatprep.mubr.bf16.mxu1 %v12790_v3  ;;  %10517 = vmatprep.mubr.bf16.mxu0 %v12798_v4  ;;  %v12910_v3 = vcombine.high %v371_v61, %v379_v62  ;;  %v383_v4 = vld [vmem:[%s16409_s28 + $0x590] sm:$0xff] }
 0x448   : > { %8862 = vmatpush1.bf16.msra.mxu1 %v16257_v5  ;;  %11006 = vmatpush1.bf16.msra.mxu0 %v16258_v6  ;;  %v391_v5 = vld [vmem:[%s16409_s28 + $0x5d0] sm:$0xff] }
 0x449   : > { %8863 = vmatprep.subr.bf16.mxu1 %v16303_v1  ;;  %11007 = vmatprep.subr.bf16.mxu0 %v16303_v1  ;;  %v387_v6 = vld [vmem:[%s16409_s28 + $0x5b0] sm:$0xff]  ;;  %v12918_v10 = vcombine.high %v383_v4, %v391_v5  ;;  %v12917_v16 = vcombine.low %v383_v4, %v391_v5 }
 0x44a   : > { %v12925_v17 = vcombine.low %v387_v6, %v395_v7  ;;  %v507_v4 = vld [vmem:[%s16409_s28 + $0x970] sm:$0xff] }
 0x44c   : > { %8864 = vmatpush1.bf16.msra.mxu1 %v16259_v15  ;;  %11008 = vmatpush1.bf16.msra.mxu0 %v16260_v18  ;;  %v411_v15 = vld [vmem:[%s16409_s28 + $0x670] sm:$0xff] }
 0x44d   : > { %8865 = vmatprep.subr.bf16.mxu1 %v16303_v1  ;;  %11009 = vmatprep.subr.bf16.mxu0 %v16303_v1 }
 0x44e   : > { %8374 = vmatmul.mubr.bf16.gmra.mrb[12].mxu1 %v12789_v11  ;;  %10518 = vmatmul.mubr.bf16.gmra.mrb[12].mxu0 %v12797_v12  ;;  %v12926_v11 = vcombine.high %v387_v6, %v395_v7  ;;  %v399_v12 = vld [vmem:[%s16409_s28 + $0x610] sm:$0xff] }
 0x44f   : > { %8381 = vmatprep.mubr.bf16.mxu1 %v12806_v13  ;;  %10525 = vmatprep.mubr.bf16.mxu0 %v12814_v14  ;;  %v407_v13 = vld [vmem:[%s16409_s28 + $0x650] sm:$0xff] }
 0x450   : > { %8866 = vmatpush1.bf16.msra.mxu1 %v16261_v49  ;;  %11010 = vmatpush1.bf16.msra.mxu0 %v16262_v50  ;;  %v403_v14 = vld [vmem:[%s16409_s28 + $0x630] sm:$0xff]  ;;  %v12934_v18 = vcombine.high %v399_v12, %v407_v13  ;;  %v12933_v26 = vcombine.low %v399_v12, %v407_v13 }
 0x451   : > { %8867 = vmatprep.subr.bf16.mxu1 %v16303_v1  ;;  %11011 = vmatprep.subr.bf16.mxu0 %v16303_v1  ;;  %v12942_v19 = vcombine.high %v403_v14, %v411_v15  ;;  %v12941_v27 = vcombine.low %v403_v14, %v411_v15  ;;  %v475_v49 = vld [vmem:[%s16409_s28 + $0x870] sm:$0xff] }
 0x452   : > { %v523_v12 = vld [vmem:[%s16409_s28 + $0x9f0] sm:$0xff] }
 0x454   : > { %8868 = vmatpush1.bf16.msra.mxu1 %v16263_v20  ;;  %v539_v20 = vld [vmem:[%s16409_s28 + $0xa70] sm:$0xff] }
 0x455   : > { %8869 = vmatprep.subr.bf16.mxu1 %v16303_v1 }
 0x456   : > { %8382 = vmatmul.mubr.bf16.gmra.mrb[16].mxu1 %v12805_v21  ;;  %10526 = vmatmul.mubr.bf16.gmra.mrb[16].mxu0 %v12813_v22  ;;  %v16264_v21 = vld [vmem:[%s18238_s1 + $0x3b8] sm:$0xff]   ;;  %v415_v22 = vld [vmem:[%s16409_s28 + $0x690] sm:$0xff] }
 0x457   : > { %8389 = vmatprep.mubr.bf16.mxu1 %v12822_v23  ;;  %10533 = vmatprep.mubr.bf16.mxu0 %v12830_v24  ;;  %v423_v23 = vld [vmem:[%s16409_s28 + $0x6d0] sm:$0xff] }
 0x458   : > { %v419_v24 = vld [vmem:[%s16409_s28 + $0x6b0] sm:$0xff]  ;;  %11012 = vmatpush1.bf16.msra.mxu0 %v16264_v21  ;;  %v12950_v28 = vcombine.high %v415_v22, %v423_v23  ;;  %v12949_v34 = vcombine.low %v415_v22, %v423_v23  ;;  %8870 = vmatpush1.bf16.msra.mxu1 %v16265_v54 }
 0x459   : > { %11013 = vmatprep.subr.bf16.mxu0 %v16303_v1  ;;  %v12957_v35 = vcombine.low %v419_v24, %v427_v25  ;;  %8871 = vmatprep.subr.bf16.mxu1 %v16303_v1  ;;  %v603_v54 = vld [vmem:[%s16409_s28 + $0xc70] sm:$0xff] }
 0x45e   : > { %8390 = vmatmul.mubr.bf16.gmra.mrb[20].mxu1 %v12821_v29  ;;  %10534 = vmatmul.mubr.bf16.gmra.mrb[20].mxu0 %v12829_v30  ;;  %v12958_v29 = vcombine.high %v419_v24, %v427_v25  ;;  %v431_v30 = vld [vmem:[%s16409_s28 + $0x710] sm:$0xff]  ;;  %v16267_v25 = vld [vmem:[%s18238_s1 + $0x1c8] sm:$0xff]  }
 0x45f   : > { %8397 = vmatprep.mubr.bf16.mxu1 %v12838_v31  ;;  %10541 = vmatprep.mubr.bf16.mxu0 %v12846_v32  ;;  %v439_v31 = vld [vmem:[%s16409_s28 + $0x750] sm:$0xff] }
 0x460   : > { %v435_v32 = vld [vmem:[%s16409_s28 + $0x730] sm:$0xff]  ;;  %v12966_v36 = vcombine.high %v431_v30, %v439_v31  ;;  %v12965_v42 = vcombine.low %v431_v30, %v439_v31  ;;  %8872 = vmatpush1.bf16.msra.mxu1 %v16267_v25 }
 0x461   : > { %v12973_v43 = vcombine.low %v435_v32, %v443_v33  ;;  %v555_v30 = vld [vmem:[%s16409_s28 + $0xaf0] sm:$0xff]  ;;  %8873 = vmatprep.subr.bf16.mxu1 %v16303_v1 }
 0x462   : > { %v667_v25 = vld [vmem:[%s16409_s28 + $0xe70] sm:$0xff] }
 0x466   : > { %8398 = vmatmul.mubr.bf16.gmra.mrb[24].mxu1 %v12837_v37  ;;  %10542 = vmatmul.mubr.bf16.gmra.mrb[24].mxu0 %v12845_v38  ;;  %v12974_v37 = vcombine.high %v435_v32, %v443_v33  ;;  %v447_v38 = vld [vmem:[%s16409_s28 + $0x790] sm:$0xff] }
 0x467   : > { %8405 = vmatprep.mubr.bf16.mxu1 %v12854_v39  ;;  %10549 = vmatprep.mubr.bf16.mxu0 %v12862_v40  ;;  %v455_v39 = vld [vmem:[%s16409_s28 + $0x7d0] sm:$0xff] }
 0x468   : > { %v451_v40 = vld [vmem:[%s16409_s28 + $0x7b0] sm:$0xff]  ;;  %v12982_v44 = vcombine.high %v447_v38, %v455_v39  ;;  %v12981_v50 = vcombine.low %v447_v38, %v455_v39 }
 0x469   : > { %v12989_v51 = vcombine.low %v451_v40, %v459_v41  ;;  %v571_v38 = vld [vmem:[%s16409_s28 + $0xb70] sm:$0xff] }
 0x46e   : > { %8406 = vmatmul.mubr.bf16.gmra.mrb[28].mxu1 %v12853_v45  ;;  %10550 = vmatmul.mubr.bf16.gmra.mrb[28].mxu0 %v12861_v46  ;;  %v12990_v45 = vcombine.high %v451_v40, %v459_v41  ;;  %v463_v46 = vld [vmem:[%s16409_s28 + $0x810] sm:$0xff] }
 0x46f   : > { %8413 = vmatprep.mubr.bf16.mxu1 %v12870_v47  ;;  %10557 = vmatprep.mubr.bf16.mxu0 %v12878_v48  ;;  %v471_v47 = vld [vmem:[%s16409_s28 + $0x850] sm:$0xff] }
 0x470   : > { %v467_v48 = vld [vmem:[%s16409_s28 + $0x830] sm:$0xff]  ;;  %v12998_v52 = vcombine.high %v463_v46, %v471_v47  ;;  %v12997_v60 = vcombine.low %v463_v46, %v471_v47 }
 0x471   : > { %v13006_v53 = vcombine.high %v467_v48, %v475_v49  ;;  %v13005_v61 = vcombine.low %v467_v48, %v475_v49  ;;  %v587_v46 = vld [vmem:[%s16409_s28 + $0xbf0] sm:$0xff] }
 0x476   : > { %8414 = vmatmul.mubr.bf16.gmra.mrb[32].mxu1 %v12869_v55  ;;  %10558 = vmatmul.mubr.bf16.gmra.mrb[32].mxu0 %v12877_v56  ;;  %v16266_v55 = vld [vmem:[%s18238_s1 + $0x3c0] sm:$0xff]   ;;  %v479_v56 = vld [vmem:[%s16409_s28 + $0x890] sm:$0xff] }
 0x477   : > { %8421 = vmatprep.mubr.bf16.mxu1 %v12886_v57  ;;  %10565 = vmatprep.mubr.bf16.mxu0 %v12894_v58  ;;  %v487_v57 = vld [vmem:[%s16409_s28 + $0x8d0] sm:$0xff] }
 0x478   : > { %v483_v58 = vld [vmem:[%s16409_s28 + $0x8b0] sm:$0xff]  ;;  %11014 = vmatpush1.bf16.msra.mxu0 %v16266_v55  ;;  %v13014_v62 = vcombine.high %v479_v56, %v487_v57  ;;  %v13013_v5 = vcombine.low %v479_v56, %v487_v57 }
 0x479   : > { %11015 = vmatprep.subr.bf16.mxu0 %v16303_v1  ;;  %v13021_v6 = vcombine.low %v483_v58, %v491_v59 }
 0x47e   : > { %8422 = vmatmul.mubr.bf16.gmra.mrb[36].mxu1 %v12885_v63  ;;  %10566 = vmatmul.mubr.bf16.gmra.mrb[36].mxu0 %v12893_v0  ;;  %v13022_v63 = vcombine.high %v483_v58, %v491_v59  ;;  %v495_v0 = vld [vmem:[%s16409_s28 + $0x910] sm:$0xff] }
 0x47f   : > { %8429 = vmatprep.mubr.bf16.mxu1 %v12902_v2  ;;  %10573 = vmatprep.mubr.bf16.mxu0 %v12910_v3  ;;  %v503_v2 = vld [vmem:[%s16409_s28 + $0x950] sm:$0xff] }
 0x480   : > { %v499_v3 = vld [vmem:[%s16409_s28 + $0x930] sm:$0xff]  ;;  %v13030_v7 = vcombine.high %v495_v0, %v503_v2  ;;  %v13029_v13 = vcombine.low %v495_v0, %v503_v2 }
 0x481   : > { %v13037_v14 = vcombine.low %v499_v3, %v507_v4  ;;  %v16269_v59 = vld [vmem:[%s18238_s1 + $0x1d0] sm:$0xff]  }
 0x482   : > { %v619_v0 = vld [vmem:[%s16409_s28 + $0xcf0] sm:$0xff]  ;;  %8874 = vmatpush1.bf16.msra.mxu1 %v16269_v59 }
 0x483   : > { %8875 = vmatprep.subr.bf16.mxu1 %v16303_v1  ;;  %v731_v59 = vld [vmem:[%s16409_s28 + $0x1070] sm:$0xff] }
 0x486   : > { %8430 = vmatmul.mubr.bf16.gmra.mrb[40].mxu1 %v12901_v8  ;;  %10574 = vmatmul.mubr.bf16.gmra.mrb[40].mxu0 %v12909_v9  ;;  %v13038_v8 = vcombine.high %v499_v3, %v507_v4  ;;  %v511_v9 = vld [vmem:[%s16409_s28 + $0x990] sm:$0xff] }
 0x487   : > { %8437 = vmatprep.mubr.bf16.mxu1 %v12918_v10  ;;  %10581 = vmatprep.mubr.bf16.mxu0 %v12926_v11  ;;  %v519_v10 = vld [vmem:[%s16409_s28 + $0x9d0] sm:$0xff] }
 0x488   : > { %v515_v11 = vld [vmem:[%s16409_s28 + $0x9b0] sm:$0xff]  ;;  %v13046_v15 = vcombine.high %v511_v9, %v519_v10  ;;  %v13045_v21 = vcombine.low %v511_v9, %v519_v10 }
 0x489   : > { %v13053_v22 = vcombine.low %v515_v11, %v523_v12  ;;  %v635_v9 = vld [vmem:[%s16409_s28 + $0xd70] sm:$0xff] }
 0x48e   : > { %8438 = vmatmul.mubr.bf16.gmra.mrb[44].mxu1 %v12917_v16  ;;  %10582 = vmatmul.mubr.bf16.gmra.mrb[44].mxu0 %v12925_v17  ;;  %v13054_v16 = vcombine.high %v515_v11, %v523_v12  ;;  %v527_v17 = vld [vmem:[%s16409_s28 + $0xa10] sm:$0xff] }
 0x48f   : > { %8445 = vmatprep.mubr.bf16.mxu1 %v12934_v18  ;;  %10589 = vmatprep.mubr.bf16.mxu0 %v12942_v19  ;;  %v535_v18 = vld [vmem:[%s16409_s28 + $0xa50] sm:$0xff] }
 0x490   : > { %v531_v19 = vld [vmem:[%s16409_s28 + $0xa30] sm:$0xff]  ;;  %v13062_v23 = vcombine.high %v527_v17, %v535_v18  ;;  %v13061_v31 = vcombine.low %v527_v17, %v535_v18 }
 0x491   : > { %v13070_v24 = vcombine.high %v531_v19, %v539_v20  ;;  %v13069_v32 = vcombine.low %v531_v19, %v539_v20  ;;  %v651_v17 = vld [vmem:[%s16409_s28 + $0xdf0] sm:$0xff] }
 0x496   : > { %8446 = vmatmul.mubr.bf16.gmra.mrb[48].mxu1 %v12933_v26  ;;  %10590 = vmatmul.mubr.bf16.gmra.mrb[48].mxu0 %v12941_v27  ;;  %v16268_v26 = vld [vmem:[%s18238_s1 + $0x3c8] sm:$0xff]   ;;  %v543_v27 = vld [vmem:[%s16409_s28 + $0xa90] sm:$0xff] }
 0x497   : > { %8453 = vmatprep.mubr.bf16.mxu1 %v12950_v28  ;;  %10597 = vmatprep.mubr.bf16.mxu0 %v12958_v29  ;;  %v551_v28 = vld [vmem:[%s16409_s28 + $0xad0] sm:$0xff] }
 0x498   : > { %v547_v29 = vld [vmem:[%s16409_s28 + $0xab0] sm:$0xff]  ;;  %11016 = vmatpush1.bf16.msra.mxu0 %v16268_v26  ;;  %v13078_v33 = vcombine.high %v543_v27, %v551_v28  ;;  %v13077_v39 = vcombine.low %v543_v27, %v551_v28 }
 0x499   : > { %11017 = vmatprep.subr.bf16.mxu0 %v16303_v1  ;;  %v13085_v40 = vcombine.low %v547_v29, %v555_v30 }
 0x49e   : > { %8454 = vmatmul.mubr.bf16.gmra.mrb[52].mxu1 %v12949_v34  ;;  %10598 = vmatmul.mubr.bf16.gmra.mrb[52].mxu0 %v12957_v35  ;;  %v13086_v34 = vcombine.high %v547_v29, %v555_v30  ;;  %v559_v35 = vld [vmem:[%s16409_s28 + $0xb10] sm:$0xff]  ;;  %v16271_v30 = vld [vmem:[%s18238_s1 + $0x1d8] sm:$0xff]  }
 0x49f   : > { %8461 = vmatprep.mubr.bf16.mxu1 %v12966_v36  ;;  %10605 = vmatprep.mubr.bf16.mxu0 %v12974_v37  ;;  %v567_v36 = vld [vmem:[%s16409_s28 + $0xb50] sm:$0xff] }
 0x4a0   : > { %v563_v37 = vld [vmem:[%s16409_s28 + $0xb30] sm:$0xff]  ;;  %v13094_v41 = vcombine.high %v559_v35, %v567_v36  ;;  %v13093_v47 = vcombine.low %v559_v35, %v567_v36  ;;  %8876 = vmatpush1.bf16.msra.mxu1 %v16271_v30 }
 0x4a1   : > { %v13101_v48 = vcombine.low %v563_v37, %v571_v38  ;;  %v683_v35 = vld [vmem:[%s16409_s28 + $0xef0] sm:$0xff]  ;;  %8877 = vmatprep.subr.bf16.mxu1 %v16303_v1 }
 0x4a2   : > { %v795_v30 = vld [vmem:[%s16409_s28 + $0x1270] sm:$0xff] }
 0x4a6   : > { %8462 = vmatmul.mubr.bf16.gmra.mrb[56].mxu1 %v12965_v42  ;;  %10606 = vmatmul.mubr.bf16.gmra.mrb[56].mxu0 %v12973_v43  ;;  %v13102_v42 = vcombine.high %v563_v37, %v571_v38  ;;  %v575_v43 = vld [vmem:[%s16409_s28 + $0xb90] sm:$0xff] }
 0x4a7   : > { %8469 = vmatprep.mubr.bf16.mxu1 %v12982_v44  ;;  %10613 = vmatprep.mubr.bf16.mxu0 %v12990_v45  ;;  %v583_v44 = vld [vmem:[%s16409_s28 + $0xbd0] sm:$0xff] }
 0x4a8   : > { %v579_v45 = vld [vmem:[%s16409_s28 + $0xbb0] sm:$0xff]  ;;  %v13110_v49 = vcombine.high %v575_v43, %v583_v44  ;;  %v13109_v55 = vcombine.low %v575_v43, %v583_v44 }
 0x4a9   : > { %v13117_v56 = vcombine.low %v579_v45, %v587_v46  ;;  %v699_v43 = vld [vmem:[%s16409_s28 + $0xf70] sm:$0xff] }
 0x4ae   : > { %8470 = vmatmul.mubr.bf16.gmra.mrb[60].mxu1 %v12981_v50  ;;  %10614 = vmatmul.mubr.bf16.gmra.mrb[60].mxu0 %v12989_v51  ;;  %v13118_v50 = vcombine.high %v579_v45, %v587_v46  ;;  %v591_v51 = vld [vmem:[%s16409_s28 + $0xc10] sm:$0xff] }
 0x4af   : > { %8477 = vmatprep.mubr.bf16.mxu1 %v12998_v52  ;;  %10621 = vmatprep.mubr.bf16.mxu0 %v13006_v53  ;;  %v599_v52 = vld [vmem:[%s16409_s28 + $0xc50] sm:$0xff] }
 0x4b0   : > { %v595_v53 = vld [vmem:[%s16409_s28 + $0xc30] sm:$0xff]  ;;  %v13126_v57 = vcombine.high %v591_v51, %v599_v52  ;;  %v13125_v2 = vcombine.low %v591_v51, %v599_v52 }
 0x4b1   : > { %v13134_v58 = vcombine.high %v595_v53, %v603_v54  ;;  %v13133_v3 = vcombine.low %v595_v53, %v603_v54  ;;  %v715_v51 = vld [vmem:[%s16409_s28 + $0xff0] sm:$0xff] }
 0x4b6   : > { %8478 = vmatmul.mubr.bf16.gmra.mrb[64].mxu1 %v12997_v60  ;;  %10622 = vmatmul.mubr.bf16.gmra.mrb[64].mxu0 %v13005_v61  ;;  %v16270_v60 = vld [vmem:[%s18238_s1 + $0x3d0] sm:$0xff]  }
 0x4b7   : > { %8485 = vmatprep.mubr.bf16.mxu1 %v13014_v62  ;;  %10629 = vmatprep.mubr.bf16.mxu0 %v13022_v63  ;;  %v607_v61 = vld [vmem:[%s16409_s28 + $0xc90] sm:$0xff] }
 0x4b8   : > { %v615_v62 = vld [vmem:[%s16409_s28 + $0xcd0] sm:$0xff]  ;;  %11018 = vmatpush1.bf16.msra.mxu0 %v16270_v60 }
 0x4b9   : > { %v611_v63 = vld [vmem:[%s16409_s28 + $0xcb0] sm:$0xff]  ;;  %11019 = vmatprep.subr.bf16.mxu0 %v16303_v1  ;;  %v13142_v4 = vcombine.high %v607_v61, %v615_v62  ;;  %v13141_v10 = vcombine.low %v607_v61, %v615_v62 }
 0x4ba   : > { %v13149_v11 = vcombine.low %v611_v63, %v619_v0 }
 0x4be   : > { %8486 = vmatmul.mubr.bf16.gmra.mrb[68].mxu1 %v13013_v5  ;;  %10630 = vmatmul.mubr.bf16.gmra.mrb[68].mxu0 %v13021_v6  ;;  %v13150_v5 = vcombine.high %v611_v63, %v619_v0  ;;  %v623_v6 = vld [vmem:[%s16409_s28 + $0xd10] sm:$0xff]  ;;  %v16273_v0 = vld [vmem:[%s18238_s1 + $0x1e0] sm:$0xff]  }
 0x4bf   : > { %8493 = vmatprep.mubr.bf16.mxu1 %v13030_v7  ;;  %10637 = vmatprep.mubr.bf16.mxu0 %v13038_v8  ;;  %v631_v7 = vld [vmem:[%s16409_s28 + $0xd50] sm:$0xff] }
 0x4c0   : > { %v627_v8 = vld [vmem:[%s16409_s28 + $0xd30] sm:$0xff]  ;;  %v13158_v12 = vcombine.high %v623_v6, %v631_v7  ;;  %v13157_v18 = vcombine.low %v623_v6, %v631_v7  ;;  %8878 = vmatpush1.bf16.msra.mxu1 %v16273_v0 }
 0x4c1   : > { %v13165_v19 = vcombine.low %v627_v8, %v635_v9  ;;  %v747_v6 = vld [vmem:[%s16409_s28 + $0x10f0] sm:$0xff]  ;;  %8879 = vmatprep.subr.bf16.mxu1 %v16303_v1 }
 0x4c2   : > { %v859_v0 = vld [vmem:[%s16409_s28 + $0x1470] sm:$0xff] }
 0x4c6   : > { %8494 = vmatmul.mubr.bf16.gmra.mrb[72].mxu1 %v13029_v13  ;;  %10638 = vmatmul.mubr.bf16.gmra.mrb[72].mxu0 %v13037_v14  ;;  %v13166_v13 = vcombine.high %v627_v8, %v635_v9  ;;  %v639_v14 = vld [vmem:[%s16409_s28 + $0xd90] sm:$0xff] }
 0x4c7   : > { %8501 = vmatprep.mubr.bf16.mxu1 %v13046_v15  ;;  %10645 = vmatprep.mubr.bf16.mxu0 %v13054_v16  ;;  %v647_v15 = vld [vmem:[%s16409_s28 + $0xdd0] sm:$0xff] }
 0x4c8   : > { %v643_v16 = vld [vmem:[%s16409_s28 + $0xdb0] sm:$0xff]  ;;  %v13174_v20 = vcombine.high %v639_v14, %v647_v15  ;;  %v13173_v26 = vcombine.low %v639_v14, %v647_v15 }
 0x4c9   : > { %v13181_v27 = vcombine.low %v643_v16, %v651_v17  ;;  %v763_v14 = vld [vmem:[%s16409_s28 + $0x1170] sm:$0xff] }
 0x4ce   : > { %8502 = vmatmul.mubr.bf16.gmra.mrb[76].mxu1 %v13045_v21  ;;  %10646 = vmatmul.mubr.bf16.gmra.mrb[76].mxu0 %v13053_v22  ;;  %v13182_v21 = vcombine.high %v643_v16, %v651_v17  ;;  %v655_v22 = vld [vmem:[%s16409_s28 + $0xe10] sm:$0xff] }
 0x4cf   : > { %8509 = vmatprep.mubr.bf16.mxu1 %v13062_v23  ;;  %10653 = vmatprep.mubr.bf16.mxu0 %v13070_v24  ;;  %v663_v23 = vld [vmem:[%s16409_s28 + $0xe50] sm:$0xff] }
 0x4d0   : > { %v659_v24 = vld [vmem:[%s16409_s28 + $0xe30] sm:$0xff]  ;;  %v13190_v28 = vcombine.high %v655_v22, %v663_v23  ;;  %v13189_v36 = vcombine.low %v655_v22, %v663_v23 }
 0x4d1   : > { %v13198_v29 = vcombine.high %v659_v24, %v667_v25  ;;  %v13197_v37 = vcombine.low %v659_v24, %v667_v25  ;;  %v779_v22 = vld [vmem:[%s16409_s28 + $0x11f0] sm:$0xff] }
 0x4d6   : > { %8510 = vmatmul.mubr.bf16.gmra.mrb[80].mxu1 %v13061_v31  ;;  %10654 = vmatmul.mubr.bf16.gmra.mrb[80].mxu0 %v13069_v32  ;;  %v16272_v31 = vld [vmem:[%s18238_s1 + $0x3d8] sm:$0xff]   ;;  %v671_v32 = vld [vmem:[%s16409_s28 + $0xe90] sm:$0xff] }
 0x4d7   : > { %8517 = vmatprep.mubr.bf16.mxu1 %v13078_v33  ;;  %10661 = vmatprep.mubr.bf16.mxu0 %v13086_v34  ;;  %v679_v33 = vld [vmem:[%s16409_s28 + $0xed0] sm:$0xff] }
 0x4d8   : > { %v675_v34 = vld [vmem:[%s16409_s28 + $0xeb0] sm:$0xff]  ;;  %11020 = vmatpush1.bf16.msra.mxu0 %v16272_v31  ;;  %v13206_v38 = vcombine.high %v671_v32, %v679_v33  ;;  %v13205_v44 = vcombine.low %v671_v32, %v679_v33 }
 0x4d9   : > { %11021 = vmatprep.subr.bf16.mxu0 %v16303_v1  ;;  %v13213_v45 = vcombine.low %v675_v34, %v683_v35 }
 0x4de   : > { %8518 = vmatmul.mubr.bf16.gmra.mrb[84].mxu1 %v13077_v39  ;;  %10662 = vmatmul.mubr.bf16.gmra.mrb[84].mxu0 %v13085_v40  ;;  %v13214_v39 = vcombine.high %v675_v34, %v683_v35  ;;  %v687_v40 = vld [vmem:[%s16409_s28 + $0xf10] sm:$0xff]  ;;  %v16275_v35 = vld [vmem:[%s18238_s1 + $0x1e8] sm:$0xff]  }
 0x4df   : > { %8525 = vmatprep.mubr.bf16.mxu1 %v13094_v41  ;;  %10669 = vmatprep.mubr.bf16.mxu0 %v13102_v42  ;;  %v695_v41 = vld [vmem:[%s16409_s28 + $0xf50] sm:$0xff] }
 0x4e0   : > { %v691_v42 = vld [vmem:[%s16409_s28 + $0xf30] sm:$0xff]  ;;  %v13222_v46 = vcombine.high %v687_v40, %v695_v41  ;;  %v13221_v52 = vcombine.low %v687_v40, %v695_v41  ;;  %8880 = vmatpush1.bf16.msra.mxu1 %v16275_v35 }
 0x4e1   : > { %v13229_v53 = vcombine.low %v691_v42, %v699_v43  ;;  %v811_v40 = vld [vmem:[%s16409_s28 + $0x12f0] sm:$0xff]  ;;  %8881 = vmatprep.subr.bf16.mxu1 %v16303_v1 }
 0x4e6   : > { %8526 = vmatmul.mubr.bf16.gmra.mrb[88].mxu1 %v13093_v47  ;;  %10670 = vmatmul.mubr.bf16.gmra.mrb[88].mxu0 %v13101_v48  ;;  %v13230_v47 = vcombine.high %v691_v42, %v699_v43  ;;  %v703_v48 = vld [vmem:[%s16409_s28 + $0xf90] sm:$0xff] }
 0x4e7   : > { %8533 = vmatprep.mubr.bf16.mxu1 %v13110_v49  ;;  %10677 = vmatprep.mubr.bf16.mxu0 %v13118_v50  ;;  %v711_v49 = vld [vmem:[%s16409_s28 + $0xfd0] sm:$0xff] }
 0x4e8   : > { %v707_v50 = vld [vmem:[%s16409_s28 + $0xfb0] sm:$0xff]  ;;  %v13238_v54 = vcombine.high %v703_v48, %v711_v49  ;;  %v13237_v60 = vcombine.low %v703_v48, %v711_v49 }
 0x4e9   : > { %v13245_v61 = vcombine.low %v707_v50, %v715_v51  ;;  %v827_v48 = vld [vmem:[%s16409_s28 + $0x1370] sm:$0xff] }
 0x4ee   : > { %8534 = vmatmul.mubr.bf16.gmra.mrb[92].mxu1 %v13109_v55  ;;  %10678 = vmatmul.mubr.bf16.gmra.mrb[92].mxu0 %v13117_v56  ;;  %v13246_v55 = vcombine.high %v707_v50, %v715_v51  ;;  %v719_v56 = vld [vmem:[%s16409_s28 + $0x1010] sm:$0xff] }
 0x4ef   : > { %8541 = vmatprep.mubr.bf16.mxu1 %v13126_v57  ;;  %10685 = vmatprep.mubr.bf16.mxu0 %v13134_v58  ;;  %v727_v57 = vld [vmem:[%s16409_s28 + $0x1050] sm:$0xff] }
 0x4f0   : > { %v723_v58 = vld [vmem:[%s16409_s28 + $0x1030] sm:$0xff]  ;;  %v13254_v62 = vcombine.high %v719_v56, %v727_v57  ;;  %v13253_v7 = vcombine.low %v719_v56, %v727_v57 }
 0x4f1   : > { %v13262_v63 = vcombine.high %v723_v58, %v731_v59  ;;  %v13261_v8 = vcombine.low %v723_v58, %v731_v59  ;;  %v843_v56 = vld [vmem:[%s16409_s28 + $0x13f0] sm:$0xff] }
 0x4f6   : > { %8542 = vmatmul.mubr.bf16.gmra.mrb[96].mxu1 %v13125_v2  ;;  %10686 = vmatmul.mubr.bf16.gmra.mrb[96].mxu0 %v13133_v3  ;;  %v16274_v2 = vld [vmem:[%s18238_s1 + $0x3e0] sm:$0xff]   ;;  %v735_v3 = vld [vmem:[%s16409_s28 + $0x1090] sm:$0xff] }
 0x4f7   : > { %8549 = vmatprep.mubr.bf16.mxu1 %v13142_v4  ;;  %10693 = vmatprep.mubr.bf16.mxu0 %v13150_v5  ;;  %v743_v4 = vld [vmem:[%s16409_s28 + $0x10d0] sm:$0xff] }
 0x4f8   : > { %v739_v5 = vld [vmem:[%s16409_s28 + $0x10b0] sm:$0xff]  ;;  %11022 = vmatpush1.bf16.msra.mxu0 %v16274_v2  ;;  %v13270_v9 = vcombine.high %v735_v3, %v743_v4  ;;  %v13269_v15 = vcombine.low %v735_v3, %v743_v4 }
 0x4f9   : > { %11023 = vmatprep.subr.bf16.mxu0 %v16303_v1  ;;  %v13277_v16 = vcombine.low %v739_v5, %v747_v6 }
 0x4fe   : > { %8550 = vmatmul.mubr.bf16.gmra.mrb[100].mxu1 %v13141_v10  ;;  %10694 = vmatmul.mubr.bf16.gmra.mrb[100].mxu0 %v13149_v11  ;;  %v13278_v10 = vcombine.high %v739_v5, %v747_v6  ;;  %v751_v11 = vld [vmem:[%s16409_s28 + $0x1110] sm:$0xff] }
 0x4ff   : > { %8557 = vmatprep.mubr.bf16.mxu1 %v13158_v12  ;;  %10701 = vmatprep.mubr.bf16.mxu0 %v13166_v13  ;;  %v759_v12 = vld [vmem:[%s16409_s28 + $0x1150] sm:$0xff] }
 0x500   : > { %v755_v13 = vld [vmem:[%s16409_s28 + $0x1130] sm:$0xff]  ;;  %v13286_v17 = vcombine.high %v751_v11, %v759_v12  ;;  %v13285_v23 = vcombine.low %v751_v11, %v759_v12 }
 0x501   : > { %v13293_v24 = vcombine.low %v755_v13, %v763_v14  ;;  %v16277_v6 = vld [vmem:[%s18238_s1 + $0x1f0] sm:$0xff]  }
 0x502   : > { %v875_v11 = vld [vmem:[%s16409_s28 + $0x14f0] sm:$0xff]  ;;  %8882 = vmatpush1.bf16.msra.mxu1 %v16277_v6 }
 0x503   : > { %8883 = vmatprep.subr.bf16.mxu1 %v16303_v1 }
 0x506   : > { %8558 = vmatmul.mubr.bf16.gmra.mrb[104].mxu1 %v13157_v18  ;;  %10702 = vmatmul.mubr.bf16.gmra.mrb[104].mxu0 %v13165_v19  ;;  %v13294_v18 = vcombine.high %v755_v13, %v763_v14  ;;  %v767_v19 = vld [vmem:[%s16409_s28 + $0x1190] sm:$0xff] }
 0x507   : > { %8565 = vmatprep.mubr.bf16.mxu1 %v13174_v20  ;;  %10709 = vmatprep.mubr.bf16.mxu0 %v13182_v21  ;;  %v775_v20 = vld [vmem:[%s16409_s28 + $0x11d0] sm:$0xff] }
 0x508   : > { %v771_v21 = vld [vmem:[%s16409_s28 + $0x11b0] sm:$0xff]  ;;  %v13302_v25 = vcombine.high %v767_v19, %v775_v20  ;;  %v13301_v31 = vcombine.low %v767_v19, %v775_v20 }
 0x509   : > { %v13309_v32 = vcombine.low %v771_v21, %v779_v22  ;;  %v891_v19 = vld [vmem:[%s16409_s28 + $0x1570] sm:$0xff] }
 0x50e   : > { %8566 = vmatmul.mubr.bf16.gmra.mrb[108].mxu1 %v13173_v26  ;;  %10710 = vmatmul.mubr.bf16.gmra.mrb[108].mxu0 %v13181_v27  ;;  %v13310_v26 = vcombine.high %v771_v21, %v779_v22  ;;  %v783_v27 = vld [vmem:[%s16409_s28 + $0x1210] sm:$0xff] }
 0x50f   : > { %8573 = vmatprep.mubr.bf16.mxu1 %v13190_v28  ;;  %10717 = vmatprep.mubr.bf16.mxu0 %v13198_v29  ;;  %v791_v28 = vld [vmem:[%s16409_s28 + $0x1250] sm:$0xff] }
 0x510   : > { %v787_v29 = vld [vmem:[%s16409_s28 + $0x1230] sm:$0xff]  ;;  %v13318_v33 = vcombine.high %v783_v27, %v791_v28  ;;  %v13317_v41 = vcombine.low %v783_v27, %v791_v28 }
 0x511   : > { %v13326_v34 = vcombine.high %v787_v29, %v795_v30  ;;  %v13325_v42 = vcombine.low %v787_v29, %v795_v30 }
 0x516   : > { %8574 = vmatmul.mubr.bf16.gmra.mrb[112].mxu1 %v13189_v36  ;;  %10718 = vmatmul.mubr.bf16.gmra.mrb[112].mxu0 %v13197_v37  ;;  %v16276_v36 = vld [vmem:[%s18238_s1 + $0x3e8] sm:$0xff]   ;;  %v799_v37 = vld [vmem:[%s16409_s28 + $0x1290] sm:$0xff] }
 0x517   : > { %8581 = vmatprep.mubr.bf16.mxu1 %v13206_v38  ;;  %10725 = vmatprep.mubr.bf16.mxu0 %v13214_v39  ;;  %v807_v38 = vld [vmem:[%s16409_s28 + $0x12d0] sm:$0xff] }
 0x518   : > { %v803_v39 = vld [vmem:[%s16409_s28 + $0x12b0] sm:$0xff]  ;;  %11024 = vmatpush1.bf16.msra.mxu0 %v16276_v36  ;;  %v13334_v43 = vcombine.high %v799_v37, %v807_v38  ;;  %v13333_v49 = vcombine.low %v799_v37, %v807_v38 }
 0x519   : > { %11025 = vmatprep.subr.bf16.mxu0 %v16303_v1  ;;  %v13341_v50 = vcombine.low %v803_v39, %v811_v40 }
 0x51e   : > { %8582 = vmatmul.mubr.bf16.gmra.mrb[116].mxu1 %v13205_v44  ;;  %10726 = vmatmul.mubr.bf16.gmra.mrb[116].mxu0 %v13213_v45  ;;  %v13342_v44 = vcombine.high %v803_v39, %v811_v40  ;;  %v815_v45 = vld [vmem:[%s16409_s28 + $0x1310] sm:$0xff]  ;;  %v16279_v39 = vld [vmem:[%s18238_s1 + $0x1f8] sm:$0xff]  }
 0x51f   : > { %8589 = vmatprep.mubr.bf16.mxu1 %v13222_v46  ;;  %10733 = vmatprep.mubr.bf16.mxu0 %v13230_v47  ;;  %v823_v46 = vld [vmem:[%s16409_s28 + $0x1350] sm:$0xff]  ;;  %v16280_v40 = vld [vmem:[%s18238_s1 + $0x3f8] sm:$0xff]  }
 0x520   : > { %v819_v47 = vld [vmem:[%s16409_s28 + $0x1330] sm:$0xff]  ;;  %v13350_v51 = vcombine.high %v815_v45, %v823_v46  ;;  %v13349_v57 = vcombine.low %v815_v45, %v823_v46  ;;  %8884 = vmatpush1.bf16.msra.mxu1 %v16279_v39 }
 0x521   : > { %v13357_v58 = vcombine.low %v819_v47, %v827_v48 }
 0x526   : > { %8590 = vmatmul.mubr.bf16.gmra.mrb[120].mxu1 %v13221_v52  ;;  %10734 = vmatmul.mubr.bf16.gmra.mrb[120].mxu0 %v13229_v53  ;;  %v13358_v52 = vcombine.high %v819_v47, %v827_v48  ;;  %v831_v53 = vld [vmem:[%s16409_s28 + $0x1390] sm:$0xff] }
 0x527   : > { %8597 = vmatprep.mubr.bf16.mxu1 %v13238_v54  ;;  %10741 = vmatprep.mubr.bf16.mxu0 %v13246_v55  ;;  %v839_v54 = vld [vmem:[%s16409_s28 + $0x13d0] sm:$0xff] }
 0x528   : > { %v835_v55 = vld [vmem:[%s16409_s28 + $0x13b0] sm:$0xff]  ;;  %v13366_v59 = vcombine.high %v831_v53, %v839_v54  ;;  %v13365_v2 = vcombine.low %v831_v53, %v839_v54 }
 0x529   : > { %v13373_v3 = vcombine.low %v835_v55, %v843_v56 }
 0x52e   : > { %8598 = vmatmul.mubr.bf16.gmra.mrb[124].mxu1 %v13237_v60  ;;  %10742 = vmatmul.mubr.bf16.gmra.mrb[124].mxu0 %v13245_v61  ;;  %v13374_v60 = vcombine.high %v835_v55, %v843_v56  ;;  %v847_v61 = vld [vmem:[%s16409_s28 + $0x1410] sm:$0xff] }
 0x52f   : > { %8605 = vmatprep.mubr.bf16.mxu1 %v13254_v62  ;;  %10749 = vmatprep.mubr.bf16.mxu0 %v13262_v63  ;;  %v855_v62 = vld [vmem:[%s16409_s28 + $0x1450] sm:$0xff] }
 0x530   : > { %v851_v63 = vld [vmem:[%s16409_s28 + $0x1430] sm:$0xff]  ;;  %v13382_v4 = vcombine.high %v847_v61, %v855_v62  ;;  %v13381_v12 = vcombine.low %v847_v61, %v855_v62 }
 0x531   : > { %v13390_v5 = vcombine.high %v851_v63, %v859_v0  ;;  %v13389_v13 = vcombine.low %v851_v63, %v859_v0 }
 0x536   : > { %8606 = vmatmul.mubr.bf16.gmra.mrb[128].mxu1 %v13253_v7  ;;  %10750 = vmatmul.mubr.bf16.gmra.mrb[128].mxu0 %v13261_v8  ;;  %v16278_v7 = vld [vmem:[%s18238_s1 + $0x3f0] sm:$0xff]  }
 0x537   : > { %8613 = vmatprep.mubr.bf16.mxu1 %v13270_v9  ;;  %10757 = vmatprep.mubr.bf16.mxu0 %v13278_v10  ;;  %v863_v8 = vld [vmem:[%s16409_s28 + $0x1490] sm:$0xff] }
 0x538   : > { %v871_v9 = vld [vmem:[%s16409_s28 + $0x14d0] sm:$0xff]  ;;  %11026 = vmatpush1.bf16.msra.mxu0 %v16278_v7 }
 0x539   : > { %v867_v10 = vld [vmem:[%s16409_s28 + $0x14b0] sm:$0xff]  ;;  %11027 = vmatprep.subr.bf16.mxu0 %v16303_v1  ;;  %v13398_v14 = vcombine.high %v863_v8, %v871_v9  ;;  %v13397_v20 = vcombine.low %v863_v8, %v871_v9 }
 0x53a   : > { %v13405_v21 = vcombine.low %v867_v10, %v875_v11  ;;  %v895_v1 = vld [vmem:[%s16409_s28 + $0x1590] sm:$0xff] }
 0x53c   : > { %11028 = vmatpush1.bf16.msra.mxu0 %v16280_v40 }
 0x53e   : > { %8614 = vmatmul.mubr.bf16.gmra.mrb[132].mxu1 %v13269_v15  ;;  %10758 = vmatmul.mubr.bf16.gmra.mrb[132].mxu0 %v13277_v16  ;;  %v13406_v15 = vcombine.high %v867_v10, %v875_v11  ;;  %v879_v16 = vld [vmem:[%s16409_s28 + $0x1510] sm:$0xff] }
 0x53f   : > { %8621 = vmatprep.mubr.bf16.mxu1 %v13286_v17  ;;  %10765 = vmatprep.mubr.bf16.mxu0 %v13294_v18  ;;  %v887_v17 = vld [vmem:[%s16409_s28 + $0x1550] sm:$0xff] }
 0x540   : > { %v883_v18 = vld [vmem:[%s16409_s28 + $0x1530] sm:$0xff]  ;;  %v13414_v22 = vcombine.high %v879_v16, %v887_v17  ;;  %v13413_v27 = vcombine.low %v879_v16, %v887_v17 }
 0x541   : > { %v13421_v28 = vcombine.low %v883_v18, %v891_v19  ;;  %v991_v10 = vld [vmem:[%s16409_s28 + $0x1890] sm:$0xff] }
 0x542   : > { %v999_v11 = vld [vmem:[%s16409_s28 + $0x18d0] sm:$0xff] }
 0x543   : > { %v13526_v16 = vcombine.high %v991_v10, %v999_v11 }
 0x546   : > { %8622 = vmatmul.mubr.bf16.gmra.mrb[136].mxu1 %v13285_v23  ;;  %10766 = vmatmul.mubr.bf16.gmra.mrb[136].mxu0 %v13293_v24  ;;  %v13422_v23 = vcombine.high %v883_v18, %v891_v19  ;;  %v903_v24 = vld [vmem:[%s16409_s28 + $0x15d0] sm:$0xff] }
 0x547   : > { %8629 = vmatprep.mubr.bf16.mxu1 %v13302_v25  ;;  %10773 = vmatprep.mubr.bf16.mxu0 %v13310_v26  ;;  %v899_v25 = vld [vmem:[%s16409_s28 + $0x15b0] sm:$0xff]  ;;  %v13430_v29 = vcombine.high %v895_v1, %v903_v24  ;;  %v13429_v35 = vcombine.low %v895_v1, %v903_v24 }
 0x548   : > { %v907_v26 = vld [vmem:[%s16409_s28 + $0x15f0] sm:$0xff] }
 0x549   : > { %v13438_v30 = vcombine.high %v899_v25, %v907_v26  ;;  %v13437_v36 = vcombine.low %v899_v25, %v907_v26  ;;  %v1007_v18 = vld [vmem:[%s16409_s28 + $0x1910] sm:$0xff] }
 0x54a   : > { %v1015_v19 = vld [vmem:[%s16409_s28 + $0x1950] sm:$0xff] }
 0x54b   : > { %v13542_v1 = vcombine.high %v1007_v18, %v1015_v19  ;;  %v1023_v25 = vld [vmem:[%s16409_s28 + $0x1990] sm:$0xff] }
 0x54c   : > { %v1031_v26 = vld [vmem:[%s16409_s28 + $0x19d0] sm:$0xff] }
 0x54e   : > { %8630 = vmatmul.mubr.bf16.gmra.mrb[140].mxu1 %v13301_v31  ;;  %10774 = vmatmul.mubr.bf16.gmra.mrb[140].mxu0 %v13309_v32  ;;  %v911_v31 = vld [vmem:[%s16409_s28 + $0x1610] sm:$0xff] }
 0x54f   : > { %8637 = vmatprep.mubr.bf16.mxu1 %v13318_v33  ;;  %10781 = vmatprep.mubr.bf16.mxu0 %v13326_v34  ;;  %v919_v32 = vld [vmem:[%s16409_s28 + $0x1650] sm:$0xff] }
 0x550   : > { %v915_v33 = vld [vmem:[%s16409_s28 + $0x1630] sm:$0xff]  ;;  %v13446_v37 = vcombine.high %v911_v31, %v919_v32  ;;  %v13445_v45 = vcombine.low %v911_v31, %v919_v32  ;;  %v13558_v31 = vcombine.high %v1023_v25, %v1031_v26 }
 0x551   : > { %v923_v34 = vld [vmem:[%s16409_s28 + $0x1670] sm:$0xff] }
 0x552   : > { %v13454_v38 = vcombine.high %v915_v33, %v923_v34  ;;  %v13453_v46 = vcombine.low %v915_v33, %v923_v34  ;;  %v1039_v33 = vld [vmem:[%s16409_s28 + $0x1a10] sm:$0xff] }
 0x553   : > { %v1047_v34 = vld [vmem:[%s16409_s28 + $0x1a50] sm:$0xff] }
 0x554   : > { %v13574_v39 = vcombine.high %v1039_v33, %v1047_v34 }
 0x556   : > { %8638 = vmatmul.mubr.bf16.gmra.mrb[144].mxu1 %v13317_v41  ;;  %10782 = vmatmul.mubr.bf16.gmra.mrb[144].mxu0 %v13325_v42  ;;  %v927_v41 = vld [vmem:[%s16409_s28 + $0x1690] sm:$0xff] }
 0x557   : > { %8645 = vmatprep.mubr.bf16.mxu1 %v13334_v43  ;;  %10789 = vmatprep.mubr.bf16.mxu0 %v13342_v44  ;;  %v935_v42 = vld [vmem:[%s16409_s28 + $0x16d0] sm:$0xff] }
 0x558   : > { %v931_v43 = vld [vmem:[%s16409_s28 + $0x16b0] sm:$0xff]  ;;  %v13462_v47 = vcombine.high %v927_v41, %v935_v42  ;;  %v13461_v53 = vcombine.low %v927_v41, %v935_v42 }
 0x559   : > { %v939_v44 = vld [vmem:[%s16409_s28 + $0x16f0] sm:$0xff] }
 0x55a   : > { %v13470_v48 = vcombine.high %v931_v43, %v939_v44  ;;  %v13469_v54 = vcombine.low %v931_v43, %v939_v44  ;;  %v1055_v41 = vld [vmem:[%s16409_s28 + $0x1a90] sm:$0xff] }
 0x55b   : > { %v1063_v42 = vld [vmem:[%s16409_s28 + $0x1ad0] sm:$0xff] }
 0x55c   : > { %v1059_v43 = vld [vmem:[%s16409_s28 + $0x1ab0] sm:$0xff] }
 0x55d   : > { %v1067_v44 = vld [vmem:[%s16409_s28 + $0x1af0] sm:$0xff] }
 0x55e   : > { %8646 = vmatmul.mubr.bf16.gmra.mrb[148].mxu1 %v13333_v49  ;;  %10790 = vmatmul.mubr.bf16.gmra.mrb[148].mxu0 %v13341_v50  ;;  %v943_v49 = vld [vmem:[%s16409_s28 + $0x1710] sm:$0xff] }
 0x55f   : > { %8653 = vmatprep.mubr.bf16.mxu1 %v13350_v51  ;;  %10797 = vmatprep.mubr.bf16.mxu0 %v13358_v52  ;;  %v951_v50 = vld [vmem:[%s16409_s28 + $0x1750] sm:$0xff] }
 0x560   : > { %v947_v51 = vld [vmem:[%s16409_s28 + $0x1730] sm:$0xff]  ;;  %v13478_v55 = vcombine.high %v943_v49, %v951_v50  ;;  %v13477_v61 = vcombine.low %v943_v49, %v951_v50 }
 0x561   : > { %v955_v52 = vld [vmem:[%s16409_s28 + $0x1770] sm:$0xff] }
 0x562   : > { %v13486_v56 = vcombine.high %v947_v51, %v955_v52  ;;  %v13485_v62 = vcombine.low %v947_v51, %v955_v52  ;;  %v1071_v49 = vld [vmem:[%s16409_s28 + $0x1b10] sm:$0xff] }
 0x563   : > { %v1079_v50 = vld [vmem:[%s16409_s28 + $0x1b50] sm:$0xff] }
 0x564   : > { %v1075_v51 = vld [vmem:[%s16409_s28 + $0x1b30] sm:$0xff] }
 0x565   : > { %v1083_v52 = vld [vmem:[%s16409_s28 + $0x1b70] sm:$0xff] }
 0x566   : > { %8654 = vmatmul.mubr.bf16.gmra.mrb[152].mxu1 %v13349_v57  ;;  %10798 = vmatmul.mubr.bf16.gmra.mrb[152].mxu0 %v13357_v58  ;;  %v959_v57 = vld [vmem:[%s16409_s28 + $0x1790] sm:$0xff] }
 0x567   : > { %8661 = vmatprep.mubr.bf16.mxu1 %v13366_v59  ;;  %10805 = vmatprep.mubr.bf16.mxu0 %v13374_v60  ;;  %v967_v58 = vld [vmem:[%s16409_s28 + $0x17d0] sm:$0xff] }
 0x568   : > { %v963_v59 = vld [vmem:[%s16409_s28 + $0x17b0] sm:$0xff]  ;;  %v13494_v63 = vcombine.high %v959_v57, %v967_v58  ;;  %v13493_v6 = vcombine.low %v959_v57, %v967_v58 }
 0x569   : > { %v971_v60 = vld [vmem:[%s16409_s28 + $0x17f0] sm:$0xff] }
 0x56a   : > { %v13502_v0 = vcombine.high %v963_v59, %v971_v60  ;;  %v13501_v7 = vcombine.low %v963_v59, %v971_v60  ;;  %v1087_v57 = vld [vmem:[%s16409_s28 + $0x1b90] sm:$0xff] }
 0x56b   : > { %v1095_v58 = vld [vmem:[%s16409_s28 + $0x1bd0] sm:$0xff] }
 0x56c   : > { %v1091_v59 = vld [vmem:[%s16409_s28 + $0x1bb0] sm:$0xff] }
 0x56d   : > { %v1099_v60 = vld [vmem:[%s16409_s28 + $0x1bf0] sm:$0xff] }
 0x56e   : > { %8662 = vmatmul.mubr.bf16.gmra.mrb[156].mxu1 %v13365_v2  ;;  %10806 = vmatmul.mubr.bf16.gmra.mrb[156].mxu0 %v13373_v3  ;;  %v975_v2 = vld [vmem:[%s16409_s28 + $0x1810] sm:$0xff] }
 0x56f   : > { %8669 = vmatprep.mubr.bf16.mxu1 %v13382_v4  ;;  %10813 = vmatprep.mubr.bf16.mxu0 %v13390_v5  ;;  %v983_v3 = vld [vmem:[%s16409_s28 + $0x1850] sm:$0xff] }
 0x570   : > { %v979_v4 = vld [vmem:[%s16409_s28 + $0x1830] sm:$0xff]  ;;  %v13510_v8 = vcombine.high %v975_v2, %v983_v3 }
 0x571   : > { %v987_v5 = vld [vmem:[%s16409_s28 + $0x1870] sm:$0xff] }
 0x572   : > { %v13518_v9 = vcombine.high %v979_v4, %v987_v5 }
 0x576   : > { %8670 = vmatmul.mubr.bf16.gmra.mrb[160].mxu1 %v13381_v12  ;;  %10814 = vmatmul.mubr.bf16.gmra.mrb[160].mxu0 %v13389_v13  ;;  %v995_v12 = vld [vmem:[%s16409_s28 + $0x18b0] sm:$0xff] }
 0x577   : > { %8677 = vmatprep.mubr.bf16.mxu1 %v13398_v14  ;;  %10821 = vmatprep.mubr.bf16.mxu0 %v13406_v15  ;;  %v1003_v13 = vld [vmem:[%s16409_s28 + $0x18f0] sm:$0xff]  ;;  %v13509_v14 = vcombine.low %v975_v2, %v983_v3  ;;  %v13517_v15 = vcombine.low %v979_v4, %v987_v5 }
 0x578   : > { %v13534_v17 = vcombine.high %v995_v12, %v1003_v13  ;;  %v1103_v2 = vld [vmem:[%s16409_s28 + $0x1c10] sm:$0xff] }
 0x579   : > { %v1111_v3 = vld [vmem:[%s16409_s28 + $0x1c50] sm:$0xff] }
 0x57a   : > { %v1107_v4 = vld [vmem:[%s16409_s28 + $0x1c30] sm:$0xff] }
 0x57b   : > { %v1115_v5 = vld [vmem:[%s16409_s28 + $0x1c70] sm:$0xff] }
 0x57e   : > { %8678 = vmatmul.mubr.bf16.gmra.mrb[164].mxu1 %v13397_v20  ;;  %10822 = vmatmul.mubr.bf16.gmra.mrb[164].mxu0 %v13405_v21  ;;  %v1011_v20 = vld [vmem:[%s16409_s28 + $0x1930] sm:$0xff] }
 0x57f   : > { %8685 = vmatprep.mubr.bf16.mxu1 %v13414_v22  ;;  %10829 = vmatprep.mubr.bf16.mxu0 %v13422_v23  ;;  %v1019_v21 = vld [vmem:[%s16409_s28 + $0x1970] sm:$0xff]  ;;  %v13525_v22 = vcombine.low %v991_v10, %v999_v11  ;;  %v13533_v23 = vcombine.low %v995_v12, %v1003_v13 }
 0x580   : > { %v13550_v24 = vcombine.high %v1011_v20, %v1019_v21  ;;  %v1119_v10 = vld [vmem:[%s16409_s28 + $0x1c90] sm:$0xff] }
 0x581   : > { %v1127_v11 = vld [vmem:[%s16409_s28 + $0x1cd0] sm:$0xff] }
 0x582   : > { %v1123_v12 = vld [vmem:[%s16409_s28 + $0x1cb0] sm:$0xff] }
 0x583   : > { %v1131_v13 = vld [vmem:[%s16409_s28 + $0x1cf0] sm:$0xff] }
 0x586   : > { %8686 = vmatmul.mubr.bf16.gmra.mrb[168].mxu1 %v13413_v27  ;;  %10830 = vmatmul.mubr.bf16.gmra.mrb[168].mxu0 %v13421_v28  ;;  %v1027_v27 = vld [vmem:[%s16409_s28 + $0x19b0] sm:$0xff] }
 0x587   : > { %8693 = vmatprep.mubr.bf16.mxu1 %v13430_v29  ;;  %10837 = vmatprep.mubr.bf16.mxu0 %v13438_v30  ;;  %v1035_v28 = vld [vmem:[%s16409_s28 + $0x19f0] sm:$0xff]  ;;  %v13541_v29 = vcombine.low %v1007_v18, %v1015_v19  ;;  %v13549_v30 = vcombine.low %v1011_v20, %v1019_v21 }
 0x588   : > { %v13566_v32 = vcombine.high %v1027_v27, %v1035_v28  ;;  %v1135_v18 = vld [vmem:[%s16409_s28 + $0x1d10] sm:$0xff] }
 0x589   : > { %v1143_v19 = vld [vmem:[%s16409_s28 + $0x1d50] sm:$0xff] }
 0x58a   : > { %v1139_v20 = vld [vmem:[%s16409_s28 + $0x1d30] sm:$0xff] }
 0x58b   : > { %v1147_v21 = vld [vmem:[%s16409_s28 + $0x1d70] sm:$0xff] }
 0x58e   : > { %8694 = vmatmul.mubr.bf16.gmra.mrb[172].mxu1 %v13429_v35  ;;  %10838 = vmatmul.mubr.bf16.gmra.mrb[172].mxu0 %v13437_v36  ;;  %v1043_v35 = vld [vmem:[%s16409_s28 + $0x1a30] sm:$0xff] }
 0x58f   : > { %8701 = vmatprep.mubr.bf16.mxu1 %v13446_v37  ;;  %10845 = vmatprep.mubr.bf16.mxu0 %v13454_v38  ;;  %v1051_v36 = vld [vmem:[%s16409_s28 + $0x1a70] sm:$0xff]  ;;  %v13557_v37 = vcombine.low %v1023_v25, %v1031_v26  ;;  %v13565_v38 = vcombine.low %v1027_v27, %v1035_v28 }
 0x590   : > { %v13582_v40 = vcombine.high %v1043_v35, %v1051_v36  ;;  %v1151_v25 = vld [vmem:[%s16409_s28 + $0x1d90] sm:$0xff] }
 0x591   : > { %v1159_v26 = vld [vmem:[%s16409_s28 + $0x1dd0] sm:$0xff] }
 0x592   : > { %v1155_v27 = vld [vmem:[%s16409_s28 + $0x1db0] sm:$0xff] }
 0x593   : > { %v1163_v28 = vld [vmem:[%s16409_s28 + $0x1df0] sm:$0xff] }
 0x596   : > { %8702 = vmatmul.mubr.bf16.gmra.mrb[176].mxu1 %v13445_v45  ;;  %10846 = vmatmul.mubr.bf16.gmra.mrb[176].mxu0 %v13453_v46  ;;  %v13573_v45 = vcombine.low %v1039_v33, %v1047_v34  ;;  %v13581_v46 = vcombine.low %v1043_v35, %v1051_v36  ;;  %v1167_v33 = vld [vmem:[%s16409_s28 + $0x1e10] sm:$0xff] }
 0x597   : > { %8709 = vmatprep.mubr.bf16.mxu1 %v13462_v47  ;;  %10853 = vmatprep.mubr.bf16.mxu0 %v13470_v48  ;;  %v13590_v47 = vcombine.high %v1055_v41, %v1063_v42  ;;  %v13598_v48 = vcombine.high %v1059_v43, %v1067_v44  ;;  %v1175_v34 = vld [vmem:[%s16409_s28 + $0x1e50] sm:$0xff] }
 0x598   : > { %v1171_v35 = vld [vmem:[%s16409_s28 + $0x1e30] sm:$0xff] }
 0x599   : > { %v1179_v36 = vld [vmem:[%s16409_s28 + $0x1e70] sm:$0xff] }
 0x59e   : > { %8710 = vmatmul.mubr.bf16.gmra.mrb[180].mxu1 %v13461_v53  ;;  %10854 = vmatmul.mubr.bf16.gmra.mrb[180].mxu0 %v13469_v54  ;;  %v13589_v53 = vcombine.low %v1055_v41, %v1063_v42  ;;  %v13597_v54 = vcombine.low %v1059_v43, %v1067_v44  ;;  %v1183_v41 = vld [vmem:[%s16409_s28 + $0x1e90] sm:$0xff] }
 0x59f   : > { %8717 = vmatprep.mubr.bf16.mxu1 %v13478_v55  ;;  %10861 = vmatprep.mubr.bf16.mxu0 %v13486_v56  ;;  %v13606_v55 = vcombine.high %v1071_v49, %v1079_v50  ;;  %v13614_v56 = vcombine.high %v1075_v51, %v1083_v52  ;;  %v1191_v42 = vld [vmem:[%s16409_s28 + $0x1ed0] sm:$0xff] }
 0x5a0   : > { %v1187_v43 = vld [vmem:[%s16409_s28 + $0x1eb0] sm:$0xff] }
 0x5a1   : > { %v1195_v44 = vld [vmem:[%s16409_s28 + $0x1ef0] sm:$0xff] }
 0x5a6   : > { %8718 = vmatmul.mubr.bf16.gmra.mrb[184].mxu1 %v13477_v61  ;;  %10862 = vmatmul.mubr.bf16.gmra.mrb[184].mxu0 %v13485_v62  ;;  %v13605_v61 = vcombine.low %v1071_v49, %v1079_v50  ;;  %v13613_v62 = vcombine.low %v1075_v51, %v1083_v52  ;;  %v1199_v49 = vld [vmem:[%s16409_s28 + $0x1f10] sm:$0xff]  ;;  %v13717_v51 = vcombine.low %v1183_v41, %v1191_v42 }
 0x5a7   : > { %8725 = vmatprep.mubr.bf16.mxu1 %v13494_v63  ;;  %10869 = vmatprep.mubr.bf16.mxu0 %v13502_v0  ;;  %v13622_v63 = vcombine.high %v1087_v57, %v1095_v58  ;;  %v13630_v0 = vcombine.high %v1091_v59, %v1099_v60  ;;  %v1203_v50 = vld [vmem:[%s16409_s28 + $0x1f30] sm:$0xff]  ;;  %v13725_v52 = vcombine.low %v1187_v43, %v1195_v44 }
 0x5ae   : > { %8726 = vmatmul.mubr.bf16.gmra.mrb[188].mxu1 %v13493_v6  ;;  %10870 = vmatmul.mubr.bf16.gmra.mrb[188].mxu0 %v13501_v7  ;;  %v13621_v6 = vcombine.low %v1087_v57, %v1095_v58  ;;  %v13629_v7 = vcombine.low %v1091_v59, %v1099_v60  ;;  %v212_v57 = vld [vmem:[%s16409_s28 + $0x38] sm:$0xff]  ;;  %v13733_v59 = vcombine.low %v1199_v49, %v1199_v49 }
 0x5af   : > { %8733 = vmatprep.mubr.bf16.mxu1 %v13510_v8  ;;  %10877 = vmatprep.mubr.bf16.mxu0 %v13518_v9  ;;  %v13638_v8 = vcombine.high %v1103_v2, %v1111_v3  ;;  %v13646_v9 = vcombine.high %v1107_v4, %v1115_v5  ;;  %v220_v58 = vld [vmem:[%s16409_s28 + $0x78] sm:$0xff]  ;;  %v13741_v60 = vcombine.low %v1203_v50, %v1203_v50 }
 0x5b6   : > { %8734 = vmatmul.mubr.bf16.gmra.mrb[192].mxu1 %v13509_v14  ;;  %10878 = vmatmul.mubr.bf16.gmra.mrb[192].mxu0 %v13517_v15  ;;  %v13637_v14 = vcombine.low %v1103_v2, %v1111_v3  ;;  %v13645_v15 = vcombine.low %v1107_v4, %v1115_v5  ;;  %v228_v2 = vld [vmem:[%s16409_s28 + $0xb8] sm:$0xff]  ;;  %v12751_v5 = vcombine.low %v212_v57, %v220_v58 }
 0x5b7   : > { %8741 = vmatprep.mubr.bf16.mxu1 %v13526_v16  ;;  %10885 = vmatprep.mubr.bf16.mxu0 %v13534_v17  ;;  %v13654_v16 = vcombine.high %v1119_v10, %v1127_v11  ;;  %v13662_v17 = vcombine.high %v1123_v12, %v1131_v13  ;;  %v236_v3 = vld [vmem:[%s16409_s28 + $0xf8] sm:$0xff] }
 0x5be   : > { %8742 = vmatmul.mubr.bf16.gmra.mrb[196].mxu1 %v13525_v22  ;;  %10886 = vmatmul.mubr.bf16.gmra.mrb[196].mxu0 %v13533_v23  ;;  %v13653_v22 = vcombine.low %v1119_v10, %v1127_v11  ;;  %v13661_v23 = vcombine.low %v1123_v12, %v1131_v13  ;;  %v244_v10 = vld [vmem:[%s16409_s28 + $0x138] sm:$0xff]  ;;  %v12767_v13 = vcombine.low %v228_v2, %v236_v3 }
 0x5bf   : > { %8749 = vmatprep.mubr.bf16.mxu1 %v13542_v1  ;;  %10893 = vmatprep.mubr.bf16.mxu0 %v13550_v24  ;;  %v13670_v1 = vcombine.high %v1135_v18, %v1143_v19  ;;  %v13678_v24 = vcombine.high %v1139_v20, %v1147_v21  ;;  %v252_v11 = vld [vmem:[%s16409_s28 + $0x178] sm:$0xff] }
 0x5c6   : > { %8750 = vmatmul.mubr.bf16.gmra.mrb[200].mxu1 %v13541_v29  ;;  %10894 = vmatmul.mubr.bf16.gmra.mrb[200].mxu0 %v13549_v30  ;;  %v13669_v29 = vcombine.low %v1135_v18, %v1143_v19  ;;  %v13677_v30 = vcombine.low %v1139_v20, %v1147_v21  ;;  %v260_v18 = vld [vmem:[%s16409_s28 + $0x1b8] sm:$0xff]  ;;  %v12783_v21 = vcombine.low %v244_v10, %v252_v11 }
 0x5c7   : > { %8757 = vmatprep.mubr.bf16.mxu1 %v13558_v31  ;;  %10901 = vmatprep.mubr.bf16.mxu0 %v13566_v32  ;;  %v13686_v31 = vcombine.high %v1151_v25, %v1159_v26  ;;  %v13694_v32 = vcombine.high %v1155_v27, %v1163_v28  ;;  %v268_v19 = vld [vmem:[%s16409_s28 + $0x1f8] sm:$0xff] }
 0x5ce   : > { %8758 = vmatmul.mubr.bf16.gmra.mrb[204].mxu1 %v13557_v37  ;;  %10902 = vmatmul.mubr.bf16.gmra.mrb[204].mxu0 %v13565_v38  ;;  %v13685_v37 = vcombine.low %v1151_v25, %v1159_v26  ;;  %v13693_v38 = vcombine.low %v1155_v27, %v1163_v28  ;;  %v276_v25 = vld [vmem:[%s16409_s28 + $0x238] sm:$0xff]  ;;  %v12799_v28 = vcombine.low %v260_v18, %v268_v19 }
 0x5cf   : > { %8765 = vmatprep.mubr.bf16.mxu1 %v13574_v39  ;;  %10909 = vmatprep.mubr.bf16.mxu0 %v13582_v40  ;;  %v13702_v39 = vcombine.high %v1167_v33, %v1175_v34  ;;  %v13710_v40 = vcombine.high %v1171_v35, %v1179_v36  ;;  %v284_v26 = vld [vmem:[%s16409_s28 + $0x278] sm:$0xff] }
 0x5d6   : > { %8766 = vmatmul.mubr.bf16.gmra.mrb[208].mxu1 %v13573_v45  ;;  %10910 = vmatmul.mubr.bf16.gmra.mrb[208].mxu0 %v13581_v46  ;;  %v13701_v45 = vcombine.low %v1167_v33, %v1175_v34  ;;  %v13709_v46 = vcombine.low %v1171_v35, %v1179_v36  ;;  %v292_v33 = vld [vmem:[%s16409_s28 + $0x2b8] sm:$0xff]  ;;  %v12815_v36 = vcombine.low %v276_v25, %v284_v26 }
 0x5d7   : > { %8773 = vmatprep.mubr.bf16.mxu1 %v13590_v47  ;;  %10917 = vmatprep.mubr.bf16.mxu0 %v13598_v48  ;;  %v13718_v47 = vcombine.high %v1183_v41, %v1191_v42  ;;  %v13726_v48 = vcombine.high %v1187_v43, %v1195_v44  ;;  %v300_v34 = vld [vmem:[%s16409_s28 + $0x2f8] sm:$0xff] }
 0x5d8   : > { %v308_v41 = vld [vmem:[%s16409_s28 + $0x338] sm:$0xff]  ;;  %v12831_v44 = vcombine.low %v292_v33, %v300_v34 }
 0x5d9   : > { %v316_v42 = vld [vmem:[%s16409_s28 + $0x378] sm:$0xff] }
 0x5de   : > { %8774 = vmatmul.mubr.bf16.gmra.mrb[212].mxu1 %v13589_v53  ;;  %10918 = vmatmul.mubr.bf16.gmra.mrb[212].mxu0 %v13597_v54  ;;  %v13734_v53 = vcombine.high %v1199_v49, %v1199_v49  ;;  %v13742_v54 = vcombine.high %v1203_v50, %v1203_v50  ;;  %v324_v49 = vld [vmem:[%s16409_s28 + $0x3b8] sm:$0xff] }
 0x5df   : > { %8781 = vmatprep.mubr.bf16.mxu1 %v13606_v55  ;;  %10925 = vmatprep.mubr.bf16.mxu0 %v13614_v56  ;;  %v208_v55 = vld [vmem:[%s16409_s28 + $0x18] sm:$0xff] }
 0x5e0   : > { %v216_v56 = vld [vmem:[%s16409_s28 + $0x58] sm:$0xff] }
 0x5e1   : > { %v12743_v4 = vcombine.low %v208_v55, %v216_v56  ;;  %v332_v50 = vld [vmem:[%s16409_s28 + $0x3f8] sm:$0xff] }
 0x5e6   : > { %8782 = vmatmul.mubr.bf16.gmra.mrb[216].mxu1 %v13605_v61  ;;  %10926 = vmatmul.mubr.bf16.gmra.mrb[216].mxu0 %v13613_v62  ;;  %v12744_v61 = vcombine.high %v208_v55, %v216_v56  ;;  %v12752_v62 = vcombine.high %v212_v57, %v220_v58  ;;  %v336_v55 = vld [vmem:[%s16409_s28 + $0x418] sm:$0xff] }
 0x5e7   : > { %8789 = vmatprep.mubr.bf16.mxu1 %v13622_v63  ;;  %10933 = vmatprep.mubr.bf16.mxu0 %v13630_v0  ;;  %v224_v63 = vld [vmem:[%s16409_s28 + $0x98] sm:$0xff] }
 0x5e8   : > { %v232_v0 = vld [vmem:[%s16409_s28 + $0xd8] sm:$0xff] }
 0x5e9   : > { %v12759_v12 = vcombine.low %v224_v63, %v232_v0  ;;  %v344_v56 = vld [vmem:[%s16409_s28 + $0x458] sm:$0xff] }
 0x5ea   : > { %v340_v57 = vld [vmem:[%s16409_s28 + $0x438] sm:$0xff] }
 0x5eb   : > { %v348_v58 = vld [vmem:[%s16409_s28 + $0x478] sm:$0xff] }
 0x5ee   : > { %8790 = vmatmul.mubr.bf16.gmra.mrb[220].mxu1 %v13621_v6  ;;  %10934 = vmatmul.mubr.bf16.gmra.mrb[220].mxu0 %v13629_v7  ;;  %v12760_v6 = vcombine.high %v224_v63, %v232_v0  ;;  %v12768_v7 = vcombine.high %v228_v2, %v236_v3  ;;  %v352_v63 = vld [vmem:[%s16409_s28 + $0x498] sm:$0xff] }
 0x5ef   : > { %8797 = vmatprep.mubr.bf16.mxu1 %v13638_v8  ;;  %10941 = vmatprep.mubr.bf16.mxu0 %v13646_v9  ;;  %v240_v8 = vld [vmem:[%s16409_s28 + $0x118] sm:$0xff] }
 0x5f0   : > { %v248_v9 = vld [vmem:[%s16409_s28 + $0x158] sm:$0xff] }
 0x5f1   : > { %v12775_v20 = vcombine.low %v240_v8, %v248_v9  ;;  %v360_v0 = vld [vmem:[%s16409_s28 + $0x4d8] sm:$0xff] }
 0x5f2   : > { %v356_v2 = vld [vmem:[%s16409_s28 + $0x4b8] sm:$0xff] }
 0x5f3   : > { %v364_v3 = vld [vmem:[%s16409_s28 + $0x4f8] sm:$0xff] }
 0x5f6   : > { %8798 = vmatmul.mubr.bf16.gmra.mrb[224].mxu1 %v13637_v14  ;;  %10942 = vmatmul.mubr.bf16.gmra.mrb[224].mxu0 %v13645_v15  ;;  %v12776_v14 = vcombine.high %v240_v8, %v248_v9  ;;  %v12784_v15 = vcombine.high %v244_v10, %v252_v11  ;;  %v368_v8 = vld [vmem:[%s16409_s28 + $0x518] sm:$0xff] }
 0x5f7   : > { %8805 = vmatprep.mubr.bf16.mxu1 %v13654_v16  ;;  %10949 = vmatprep.mubr.bf16.mxu0 %v13662_v17  ;;  %v256_v16 = vld [vmem:[%s16409_s28 + $0x198] sm:$0xff] }
 0x5f8   : > { %v264_v17 = vld [vmem:[%s16409_s28 + $0x1d8] sm:$0xff] }
 0x5f9   : > { %v12791_v27 = vcombine.low %v256_v16, %v264_v17  ;;  %v376_v9 = vld [vmem:[%s16409_s28 + $0x558] sm:$0xff] }
 0x5fa   : > { %v372_v10 = vld [vmem:[%s16409_s28 + $0x538] sm:$0xff] }
 0x5fb   : > { %v380_v11 = vld [vmem:[%s16409_s28 + $0x578] sm:$0xff] }
 0x5fe   : > { %8806 = vmatmul.mubr.bf16.gmra.mrb[228].mxu1 %v13653_v22  ;;  %10950 = vmatmul.mubr.bf16.gmra.mrb[228].mxu0 %v13661_v23  ;;  %v12792_v22 = vcombine.high %v256_v16, %v264_v17  ;;  %v12800_v23 = vcombine.high %v260_v18, %v268_v19  ;;  %v384_v16 = vld [vmem:[%s16409_s28 + $0x598] sm:$0xff] }
 0x5ff   : > { %8813 = vmatprep.mubr.bf16.mxu1 %v13670_v1  ;;  %10957 = vmatprep.mubr.bf16.mxu0 %v13678_v24  ;;  %v272_v1 = vld [vmem:[%s16409_s28 + $0x218] sm:$0xff] }
 0x600   : > { %v280_v24 = vld [vmem:[%s16409_s28 + $0x258] sm:$0xff] }
 0x601   : > { %v12807_v35 = vcombine.low %v272_v1, %v280_v24  ;;  %v392_v17 = vld [vmem:[%s16409_s28 + $0x5d8] sm:$0xff] }
 0x602   : > { %v388_v18 = vld [vmem:[%s16409_s28 + $0x5b8] sm:$0xff] }
 0x603   : > { %v396_v19 = vld [vmem:[%s16409_s28 + $0x5f8] sm:$0xff] }
 0x606   : > { %8814 = vmatmul.mubr.bf16.gmra.mrb[232].mxu1 %v13669_v29  ;;  %10958 = vmatmul.mubr.bf16.gmra.mrb[232].mxu0 %v13677_v30  ;;  %v12808_v29 = vcombine.high %v272_v1, %v280_v24  ;;  %v12816_v30 = vcombine.high %v276_v25, %v284_v26  ;;  %v400_v1 = vld [vmem:[%s16409_s28 + $0x618] sm:$0xff] }
 0x607   : > { %8821 = vmatprep.mubr.bf16.mxu1 %v13686_v31  ;;  %10965 = vmatprep.mubr.bf16.mxu0 %v13694_v32  ;;  %v288_v31 = vld [vmem:[%s16409_s28 + $0x298] sm:$0xff] }
 0x608   : > { %v296_v32 = vld [vmem:[%s16409_s28 + $0x2d8] sm:$0xff] }
 0x609   : > { %v12823_v43 = vcombine.low %v288_v31, %v296_v32  ;;  %v408_v24 = vld [vmem:[%s16409_s28 + $0x658] sm:$0xff] }
 0x60a   : > { %v404_v25 = vld [vmem:[%s16409_s28 + $0x638] sm:$0xff] }
 0x60b   : > { %v412_v26 = vld [vmem:[%s16409_s28 + $0x678] sm:$0xff] }
 0x60e   : > { %8822 = vmatmul.mubr.bf16.gmra.mrb[236].mxu1 %v13685_v37  ;;  %10966 = vmatmul.mubr.bf16.gmra.mrb[236].mxu0 %v13693_v38  ;;  %v12824_v37 = vcombine.high %v288_v31, %v296_v32  ;;  %v12832_v38 = vcombine.high %v292_v33, %v300_v34  ;;  %v416_v31 = vld [vmem:[%s16409_s28 + $0x698] sm:$0xff] }
 0x60f   : > { %8829 = vmatprep.mubr.bf16.mxu1 %v13702_v39  ;;  %10973 = vmatprep.mubr.bf16.mxu0 %v13710_v40  ;;  %v304_v39 = vld [vmem:[%s16409_s28 + $0x318] sm:$0xff] }
 0x610   : > { %v312_v40 = vld [vmem:[%s16409_s28 + $0x358] sm:$0xff] }
 0x611   : > { %v424_v32 = vld [vmem:[%s16409_s28 + $0x6d8] sm:$0xff] }
 0x612   : > { %v420_v33 = vld [vmem:[%s16409_s28 + $0x6b8] sm:$0xff] }
 0x613   : > { %v428_v34 = vld [vmem:[%s16409_s28 + $0x6f8] sm:$0xff] }
 0x616   : > { %8830 = vmatmul.mubr.bf16.gmra.mrb[240].mxu1 %v13701_v45  ;;  %10974 = vmatmul.mubr.bf16.gmra.mrb[240].mxu0 %v13709_v46  ;;  %v12840_v45 = vcombine.high %v304_v39, %v312_v40  ;;  %v12848_v46 = vcombine.high %v308_v41, %v316_v42 }
 0x617   : > { %8837 = vmatprep.mubr.bf16.mxu1 %v13718_v47  ;;  %10981 = vmatprep.mubr.bf16.mxu0 %v13726_v48  ;;  %v320_v47 = vld [vmem:[%s16409_s28 + $0x398] sm:$0xff] }
 0x618   : > { %v328_v48 = vld [vmem:[%s16409_s28 + $0x3d8] sm:$0xff] }
 0x61e   : > { %8838 = vmatmul.mubr.bf16.gmra.mrb[244].mxu1 %v13717_v51  ;;  %10982 = vmatmul.mubr.bf16.gmra.mrb[244].mxu0 %v13725_v52  ;;  %v12839_v51 = vcombine.low %v304_v39, %v312_v40  ;;  %v12847_v52 = vcombine.low %v308_v41, %v316_v42  ;;  %v432_v39 = vld [vmem:[%s16409_s28 + $0x718] sm:$0xff] }
 0x61f   : > { %8845 = vmatprep.mubr.bf16.mxu1 %v13734_v53  ;;  %10989 = vmatprep.mubr.bf16.mxu0 %v13742_v54  ;;  %v12856_v53 = vcombine.high %v320_v47, %v328_v48  ;;  %v12864_v54 = vcombine.high %v324_v49, %v332_v50  ;;  %v440_v40 = vld [vmem:[%s16409_s28 + $0x758] sm:$0xff] }
 0x620   : > { %v436_v41 = vld [vmem:[%s16409_s28 + $0x738] sm:$0xff] }
 0x621   : > { %v444_v42 = vld [vmem:[%s16409_s28 + $0x778] sm:$0xff] }
 0x626   : > { %8846 = vmatmul.mubr.bf16.gmra.mrb[248].mxu1 %v13733_v59  ;;  %10990 = vmatmul.mubr.bf16.gmra.mrb[248].mxu0 %v13741_v60  ;;  %v12855_v59 = vcombine.low %v320_v47, %v328_v48  ;;  %v12863_v60 = vcombine.low %v324_v49, %v332_v50  ;;  %v448_v47 = vld [vmem:[%s16409_s28 + $0x798] sm:$0xff] }
 0x627   : > { %8885 = vmatprep.mubr.bf16.mxu1 %v12744_v61  ;;  %11029 = vmatprep.mubr.bf16.mxu0 %v12752_v62  ;;  %v12872_v61 = vcombine.high %v336_v55, %v344_v56  ;;  %v12880_v62 = vcombine.high %v340_v57, %v348_v58  ;;  %v456_v48 = vld [vmem:[%s16409_s28 + $0x7d8] sm:$0xff] }
 0x628   : > { %v452_v49 = vld [vmem:[%s16409_s28 + $0x7b8] sm:$0xff] }
 0x629   : > { %v460_v50 = vld [vmem:[%s16409_s28 + $0x7f8] sm:$0xff] }
 0x62e   : > { %8886 = vmatmul.mubr.bf16.vlgmr.msra.gmra.mrb[0].mxu1 %v12743_v4  ;;  %11030 = vmatmul.mubr.bf16.vlgmr.msra.gmra.mrb[0].mxu0 %v12751_v5  ;;  %v12871_v4 = vcombine.low %v336_v55, %v344_v56  ;;  %v12879_v5 = vcombine.low %v340_v57, %v348_v58  ;;  %v464_v55 = vld [vmem:[%s16409_s28 + $0x818] sm:$0xff] }
 0x62f   : > { %8893 = vmatprep.mubr.bf16.mxu1 %v12760_v6  ;;  %11037 = vmatprep.mubr.bf16.mxu0 %v12768_v7  ;;  %v12888_v6 = vcombine.high %v352_v63, %v360_v0  ;;  %v12896_v7 = vcombine.high %v356_v2, %v364_v3  ;;  %v472_v56 = vld [vmem:[%s16409_s28 + $0x858] sm:$0xff] }
 0x630   : > { %v468_v57 = vld [vmem:[%s16409_s28 + $0x838] sm:$0xff] }
 0x631   : > { %v476_v58 = vld [vmem:[%s16409_s28 + $0x878] sm:$0xff] }
 0x636   : > { %8894 = vmatmul.mubr.bf16.gmra.mrb[4].mxu1 %v12759_v12  ;;  %11038 = vmatmul.mubr.bf16.gmra.mrb[4].mxu0 %v12767_v13  ;;  %v12887_v12 = vcombine.low %v352_v63, %v360_v0  ;;  %v12895_v13 = vcombine.low %v356_v2, %v364_v3  ;;  %v480_v63 = vld [vmem:[%s16409_s28 + $0x898] sm:$0xff] }
 0x637   : > { %8901 = vmatprep.mubr.bf16.mxu1 %v12776_v14  ;;  %11045 = vmatprep.mubr.bf16.mxu0 %v12784_v15  ;;  %v12904_v14 = vcombine.high %v368_v8, %v376_v9  ;;  %v12912_v15 = vcombine.high %v372_v10, %v380_v11  ;;  %v488_v0 = vld [vmem:[%s16409_s28 + $0x8d8] sm:$0xff] }
 0x638   : > { %v484_v2 = vld [vmem:[%s16409_s28 + $0x8b8] sm:$0xff] }
 0x639   : > { %v492_v3 = vld [vmem:[%s16409_s28 + $0x8f8] sm:$0xff] }
 0x63e   : > { %8902 = vmatmul.mubr.bf16.gmra.mrb[8].mxu1 %v12775_v20  ;;  %11046 = vmatmul.mubr.bf16.gmra.mrb[8].mxu0 %v12783_v21  ;;  %v12903_v20 = vcombine.low %v368_v8, %v376_v9  ;;  %v12911_v21 = vcombine.low %v372_v10, %v380_v11  ;;  %v496_v8 = vld [vmem:[%s16409_s28 + $0x918] sm:$0xff] }
 0x63f   : > { %8909 = vmatprep.mubr.bf16.mxu1 %v12792_v22  ;;  %11053 = vmatprep.mubr.bf16.mxu0 %v12800_v23  ;;  %v12920_v22 = vcombine.high %v384_v16, %v392_v17  ;;  %v12928_v23 = vcombine.high %v388_v18, %v396_v19  ;;  %v504_v9 = vld [vmem:[%s16409_s28 + $0x958] sm:$0xff] }
 0x640   : > { %v500_v10 = vld [vmem:[%s16409_s28 + $0x938] sm:$0xff] }
 0x641   : > { %v508_v11 = vld [vmem:[%s16409_s28 + $0x978] sm:$0xff] }
 0x646   : > { %8910 = vmatmul.mubr.bf16.gmra.mrb[12].mxu1 %v12791_v27  ;;  %11054 = vmatmul.mubr.bf16.gmra.mrb[12].mxu0 %v12799_v28  ;;  %v12919_v27 = vcombine.low %v384_v16, %v392_v17  ;;  %v12927_v28 = vcombine.low %v388_v18, %v396_v19  ;;  %v512_v16 = vld [vmem:[%s16409_s28 + $0x998] sm:$0xff] }
 0x647   : > { %8917 = vmatprep.mubr.bf16.mxu1 %v12808_v29  ;;  %11061 = vmatprep.mubr.bf16.mxu0 %v12816_v30  ;;  %v12936_v29 = vcombine.high %v400_v1, %v408_v24  ;;  %v12944_v30 = vcombine.high %v404_v25, %v412_v26  ;;  %v520_v17 = vld [vmem:[%s16409_s28 + $0x9d8] sm:$0xff] }
 0x648   : > { %v516_v18 = vld [vmem:[%s16409_s28 + $0x9b8] sm:$0xff] }
 0x649   : > { %v524_v19 = vld [vmem:[%s16409_s28 + $0x9f8] sm:$0xff] }
 0x64e   : > { %8918 = vmatmul.mubr.bf16.gmra.mrb[16].mxu1 %v12807_v35  ;;  %11062 = vmatmul.mubr.bf16.gmra.mrb[16].mxu0 %v12815_v36  ;;  %v12935_v35 = vcombine.low %v400_v1, %v408_v24  ;;  %v12943_v36 = vcombine.low %v404_v25, %v412_v26  ;;  %v528_v1 = vld [vmem:[%s16409_s28 + $0xa18] sm:$0xff] }
 0x64f   : > { %8925 = vmatprep.mubr.bf16.mxu1 %v12824_v37  ;;  %11069 = vmatprep.mubr.bf16.mxu0 %v12832_v38  ;;  %v12952_v37 = vcombine.high %v416_v31, %v424_v32  ;;  %v12960_v38 = vcombine.high %v420_v33, %v428_v34  ;;  %v536_v24 = vld [vmem:[%s16409_s28 + $0xa58] sm:$0xff] }
 0x650   : > { %v532_v25 = vld [vmem:[%s16409_s28 + $0xa38] sm:$0xff] }
 0x651   : > { %v540_v26 = vld [vmem:[%s16409_s28 + $0xa78] sm:$0xff] }
 0x656   : > { %8926 = vmatmul.mubr.bf16.gmra.mrb[20].mxu1 %v12823_v43  ;;  %11070 = vmatmul.mubr.bf16.gmra.mrb[20].mxu0 %v12831_v44  ;;  %v12951_v43 = vcombine.low %v416_v31, %v424_v32  ;;  %v12959_v44 = vcombine.low %v420_v33, %v428_v34  ;;  %v544_v31 = vld [vmem:[%s16409_s28 + $0xa98] sm:$0xff] }
 0x657   : > { %8933 = vmatprep.mubr.bf16.mxu1 %v12840_v45  ;;  %11077 = vmatprep.mubr.bf16.mxu0 %v12848_v46  ;;  %v12968_v45 = vcombine.high %v432_v39, %v440_v40  ;;  %v12976_v46 = vcombine.high %v436_v41, %v444_v42  ;;  %v552_v32 = vld [vmem:[%s16409_s28 + $0xad8] sm:$0xff] }
 0x658   : > { %v548_v33 = vld [vmem:[%s16409_s28 + $0xab8] sm:$0xff] }
 0x659   : > { %v556_v34 = vld [vmem:[%s16409_s28 + $0xaf8] sm:$0xff] }
 0x65e   : > { %8934 = vmatmul.mubr.bf16.gmra.mrb[24].mxu1 %v12839_v51  ;;  %11078 = vmatmul.mubr.bf16.gmra.mrb[24].mxu0 %v12847_v52  ;;  %v12967_v51 = vcombine.low %v432_v39, %v440_v40  ;;  %v12975_v52 = vcombine.low %v436_v41, %v444_v42  ;;  %v560_v39 = vld [vmem:[%s16409_s28 + $0xb18] sm:$0xff] }
 0x65f   : > { %8941 = vmatprep.mubr.bf16.mxu1 %v12856_v53  ;;  %11085 = vmatprep.mubr.bf16.mxu0 %v12864_v54  ;;  %v12984_v53 = vcombine.high %v448_v47, %v456_v48  ;;  %v12992_v54 = vcombine.high %v452_v49, %v460_v50  ;;  %v568_v40 = vld [vmem:[%s16409_s28 + $0xb58] sm:$0xff] }
 0x660   : > { %v564_v41 = vld [vmem:[%s16409_s28 + $0xb38] sm:$0xff] }
 0x661   : > { %v572_v42 = vld [vmem:[%s16409_s28 + $0xb78] sm:$0xff] }
 0x666   : > { %8942 = vmatmul.mubr.bf16.gmra.mrb[28].mxu1 %v12855_v59  ;;  %11086 = vmatmul.mubr.bf16.gmra.mrb[28].mxu0 %v12863_v60  ;;  %v12983_v59 = vcombine.low %v448_v47, %v456_v48  ;;  %v12991_v60 = vcombine.low %v452_v49, %v460_v50  ;;  %v576_v47 = vld [vmem:[%s16409_s28 + $0xb98] sm:$0xff] }
 0x667   : > { %8949 = vmatprep.mubr.bf16.mxu1 %v12872_v61  ;;  %11093 = vmatprep.mubr.bf16.mxu0 %v12880_v62  ;;  %v13000_v61 = vcombine.high %v464_v55, %v472_v56  ;;  %v13008_v62 = vcombine.high %v468_v57, %v476_v58  ;;  %v584_v48 = vld [vmem:[%s16409_s28 + $0xbd8] sm:$0xff] }
 0x668   : > { %v580_v49 = vld [vmem:[%s16409_s28 + $0xbb8] sm:$0xff] }
 0x669   : > { %v588_v50 = vld [vmem:[%s16409_s28 + $0xbf8] sm:$0xff] }
 0x66e   : > { %8950 = vmatmul.mubr.bf16.gmra.mrb[32].mxu1 %v12871_v4  ;;  %11094 = vmatmul.mubr.bf16.gmra.mrb[32].mxu0 %v12879_v5  ;;  %v12999_v4 = vcombine.low %v464_v55, %v472_v56  ;;  %v13007_v5 = vcombine.low %v468_v57, %v476_v58  ;;  %v592_v55 = vld [vmem:[%s16409_s28 + $0xc18] sm:$0xff] }
 0x66f   : > { %8957 = vmatprep.mubr.bf16.mxu1 %v12888_v6  ;;  %11101 = vmatprep.mubr.bf16.mxu0 %v12896_v7  ;;  %v13016_v6 = vcombine.high %v480_v63, %v488_v0  ;;  %v13024_v7 = vcombine.high %v484_v2, %v492_v3  ;;  %v600_v56 = vld [vmem:[%s16409_s28 + $0xc58] sm:$0xff] }
 0x670   : > { %v596_v57 = vld [vmem:[%s16409_s28 + $0xc38] sm:$0xff] }
 0x671   : > { %v604_v58 = vld [vmem:[%s16409_s28 + $0xc78] sm:$0xff] }
 0x676   : > { %8958 = vmatmul.mubr.bf16.gmra.mrb[36].mxu1 %v12887_v12  ;;  %11102 = vmatmul.mubr.bf16.gmra.mrb[36].mxu0 %v12895_v13  ;;  %v13015_v12 = vcombine.low %v480_v63, %v488_v0  ;;  %v13023_v13 = vcombine.low %v484_v2, %v492_v3  ;;  %v608_v63 = vld [vmem:[%s16409_s28 + $0xc98] sm:$0xff] }
 0x677   : > { %8965 = vmatprep.mubr.bf16.mxu1 %v12904_v14  ;;  %11109 = vmatprep.mubr.bf16.mxu0 %v12912_v15  ;;  %v13032_v14 = vcombine.high %v496_v8, %v504_v9  ;;  %v13040_v15 = vcombine.high %v500_v10, %v508_v11  ;;  %v616_v0 = vld [vmem:[%s16409_s28 + $0xcd8] sm:$0xff] }
 0x678   : > { %v612_v2 = vld [vmem:[%s16409_s28 + $0xcb8] sm:$0xff] }
 0x679   : > { %v620_v3 = vld [vmem:[%s16409_s28 + $0xcf8] sm:$0xff] }
 0x67e   : > { %8966 = vmatmul.mubr.bf16.gmra.mrb[40].mxu1 %v12903_v20  ;;  %11110 = vmatmul.mubr.bf16.gmra.mrb[40].mxu0 %v12911_v21  ;;  %v13031_v20 = vcombine.low %v496_v8, %v504_v9  ;;  %v13039_v21 = vcombine.low %v500_v10, %v508_v11  ;;  %v624_v8 = vld [vmem:[%s16409_s28 + $0xd18] sm:$0xff] }
 0x67f   : > { %8973 = vmatprep.mubr.bf16.mxu1 %v12920_v22  ;;  %11117 = vmatprep.mubr.bf16.mxu0 %v12928_v23  ;;  %v13048_v22 = vcombine.high %v512_v16, %v520_v17  ;;  %v13056_v23 = vcombine.high %v516_v18, %v524_v19  ;;  %v632_v9 = vld [vmem:[%s16409_s28 + $0xd58] sm:$0xff] }
 0x680   : > { %v628_v10 = vld [vmem:[%s16409_s28 + $0xd38] sm:$0xff] }
 0x681   : > { %v636_v11 = vld [vmem:[%s16409_s28 + $0xd78] sm:$0xff] }
 0x686   : > { %8974 = vmatmul.mubr.bf16.gmra.mrb[44].mxu1 %v12919_v27  ;;  %11118 = vmatmul.mubr.bf16.gmra.mrb[44].mxu0 %v12927_v28  ;;  %v13047_v27 = vcombine.low %v512_v16, %v520_v17  ;;  %v13055_v28 = vcombine.low %v516_v18, %v524_v19  ;;  %v640_v16 = vld [vmem:[%s16409_s28 + $0xd98] sm:$0xff] }
 0x687   : > { %8981 = vmatprep.mubr.bf16.mxu1 %v12936_v29  ;;  %11125 = vmatprep.mubr.bf16.mxu0 %v12944_v30  ;;  %v13064_v29 = vcombine.high %v528_v1, %v536_v24  ;;  %v13072_v30 = vcombine.high %v532_v25, %v540_v26  ;;  %v648_v17 = vld [vmem:[%s16409_s28 + $0xdd8] sm:$0xff] }
 0x688   : > { %v644_v18 = vld [vmem:[%s16409_s28 + $0xdb8] sm:$0xff] }
 0x689   : > { %v652_v19 = vld [vmem:[%s16409_s28 + $0xdf8] sm:$0xff] }
 0x68e   : > { %8982 = vmatmul.mubr.bf16.gmra.mrb[48].mxu1 %v12935_v35  ;;  %11126 = vmatmul.mubr.bf16.gmra.mrb[48].mxu0 %v12943_v36  ;;  %v13063_v35 = vcombine.low %v528_v1, %v536_v24  ;;  %v13071_v36 = vcombine.low %v532_v25, %v540_v26  ;;  %v656_v1 = vld [vmem:[%s16409_s28 + $0xe18] sm:$0xff] }
 0x68f   : > { %8989 = vmatprep.mubr.bf16.mxu1 %v12952_v37  ;;  %11133 = vmatprep.mubr.bf16.mxu0 %v12960_v38  ;;  %v13080_v37 = vcombine.high %v544_v31, %v552_v32  ;;  %v13088_v38 = vcombine.high %v548_v33, %v556_v34  ;;  %v664_v24 = vld [vmem:[%s16409_s28 + $0xe58] sm:$0xff] }
 0x690   : > { %v660_v26 = vld [vmem:[%s16409_s28 + $0xe38] sm:$0xff] }
 0x696   : > { %8990 = vmatmul.mubr.bf16.gmra.mrb[52].mxu1 %v12951_v43  ;;  %11134 = vmatmul.mubr.bf16.gmra.mrb[52].mxu0 %v12959_v44  ;;  %v13079_v43 = vcombine.low %v544_v31, %v552_v32  ;;  %v13087_v44 = vcombine.low %v548_v33, %v556_v34  ;;  %v13175_v31 = vcombine.low %v640_v16, %v648_v17 }
 0x697   : > { %8997 = vmatprep.mubr.bf16.mxu1 %v12968_v45  ;;  %11141 = vmatprep.mubr.bf16.mxu0 %v12976_v46  ;;  %v13096_v45 = vcombine.high %v560_v39, %v568_v40  ;;  %v13104_v46 = vcombine.high %v564_v41, %v572_v42 }
 0x69e   : > { %8998 = vmatmul.mubr.bf16.gmra.mrb[56].mxu1 %v12967_v51  ;;  %11142 = vmatmul.mubr.bf16.gmra.mrb[56].mxu0 %v12975_v52  ;;  %v13095_v51 = vcombine.low %v560_v39, %v568_v40  ;;  %v13103_v52 = vcombine.low %v564_v41, %v572_v42 }
 0x69f   : > { %9005 = vmatprep.mubr.bf16.mxu1 %v12984_v53  ;;  %11149 = vmatprep.mubr.bf16.mxu0 %v12992_v54  ;;  %v13112_v53 = vcombine.high %v576_v47, %v584_v48  ;;  %v13120_v54 = vcombine.high %v580_v49, %v588_v50 }
 0x6a6   : > { %9006 = vmatmul.mubr.bf16.gmra.mrb[60].mxu1 %v12983_v59  ;;  %11150 = vmatmul.mubr.bf16.gmra.mrb[60].mxu0 %v12991_v60  ;;  %v13111_v59 = vcombine.low %v576_v47, %v584_v48  ;;  %v13119_v60 = vcombine.low %v580_v49, %v588_v50  ;;  %v680_v47 = vld [vmem:[%s16409_s28 + $0xed8] sm:$0xff] }
 0x6a7   : > { %9013 = vmatprep.mubr.bf16.mxu1 %v13000_v61  ;;  %11157 = vmatprep.mubr.bf16.mxu0 %v13008_v62  ;;  %v13128_v61 = vcombine.high %v592_v55, %v600_v56  ;;  %v13136_v62 = vcombine.high %v596_v57, %v604_v58 }
 0x6ae   : > { %9014 = vmatmul.mubr.bf16.gmra.mrb[64].mxu1 %v12999_v4  ;;  %11158 = vmatmul.mubr.bf16.gmra.mrb[64].mxu0 %v13007_v5  ;;  %v13127_v4 = vcombine.low %v592_v55, %v600_v56  ;;  %v13135_v5 = vcombine.low %v596_v57, %v604_v58  ;;  %v13191_v55 = vcombine.low %v656_v1, %v664_v24 }
 0x6af   : > { %9021 = vmatprep.mubr.bf16.mxu1 %v13016_v6  ;;  %11165 = vmatprep.mubr.bf16.mxu0 %v13024_v7  ;;  %v13144_v6 = vcombine.high %v608_v63, %v616_v0  ;;  %v13152_v7 = vcombine.high %v612_v2, %v620_v3 }
 0x6b6   : > { %9022 = vmatmul.mubr.bf16.gmra.mrb[68].mxu1 %v13015_v12  ;;  %11166 = vmatmul.mubr.bf16.gmra.mrb[68].mxu0 %v13023_v13  ;;  %v13143_v12 = vcombine.low %v608_v63, %v616_v0  ;;  %v13151_v13 = vcombine.low %v612_v2, %v620_v3 }
 0x6b7   : > { %9029 = vmatprep.mubr.bf16.mxu1 %v13032_v14  ;;  %11173 = vmatprep.mubr.bf16.mxu0 %v13040_v15  ;;  %v13160_v14 = vcombine.high %v624_v8, %v632_v9  ;;  %v13168_v15 = vcombine.high %v628_v10, %v636_v11 }
 0x6be   : > { %9030 = vmatmul.mubr.bf16.gmra.mrb[72].mxu1 %v13031_v20  ;;  %11174 = vmatmul.mubr.bf16.gmra.mrb[72].mxu0 %v13039_v21  ;;  %v13159_v20 = vcombine.low %v624_v8, %v632_v9  ;;  %v13167_v21 = vcombine.low %v628_v10, %v636_v11  ;;  %v688_v10 = vld [vmem:[%s16409_s28 + $0xf18] sm:$0xff] }
 0x6bf   : > { %9037 = vmatprep.mubr.bf16.mxu1 %v13048_v22  ;;  %11181 = vmatprep.mubr.bf16.mxu0 %v13056_v23  ;;  %v13176_v22 = vcombine.high %v640_v16, %v648_v17  ;;  %v13184_v23 = vcombine.high %v644_v18, %v652_v19  ;;  %v696_v11 = vld [vmem:[%s16409_s28 + $0xf58] sm:$0xff] }
 0x6c0   : > { %v700_v16 = vld [vmem:[%s16409_s28 + $0xf78] sm:$0xff] }
 0x6c6   : > { %9038 = vmatmul.mubr.bf16.gmra.mrb[76].mxu1 %v13047_v27  ;;  %11182 = vmatmul.mubr.bf16.gmra.mrb[76].mxu0 %v13055_v28  ;;  %v668_v27 = vld [vmem:[%s16409_s28 + $0xe78] sm:$0xff] }
 0x6c7   : > { %9045 = vmatprep.mubr.bf16.mxu1 %v13064_v29  ;;  %11189 = vmatprep.mubr.bf16.mxu0 %v13072_v30  ;;  %v17744_v29 = vld [vmem:[%s18239_s2] ss:$0 sm:$0xff]  ;;  %v13200_v40 = vcombine.high %v660_v26, %v668_v27 }
 0x6ce   : > { %9046 = vmatmul.mubr.bf16.gmra.mrb[80].mxu1 %v13063_v35  ;;  %11190 = vmatmul.mubr.bf16.gmra.mrb[80].mxu0 %v13071_v36  ;;  %v13183_v35 = vcombine.low %v644_v18, %v652_v19  ;;  %v13192_v36 = vcombine.high %v656_v1, %v664_v24  ;;  %v13224_v24 = vcombine.high %v688_v10, %v696_v11 }
 0x6cf   : > { %9053 = vmatprep.mubr.bf16.mxu1 %v13080_v37  ;;  %11197 = vmatprep.mubr.bf16.mxu0 %v13088_v38  ;;  %v17749_v37 = vld [vmem:[%s18240_s3] ss:$0 sm:$0xff] }
 0x6d6   : > { %9054 = vmatmul.mubr.bf16.gmra.mrb[84].mxu1 %v13079_v43  ;;  %11198 = vmatmul.mubr.bf16.gmra.mrb[84].mxu0 %v13087_v44 }
 0x6d7   : > { %9061 = vmatprep.mubr.bf16.mxu1 %v13096_v45  ;;  %11205 = vmatprep.mubr.bf16.mxu0 %v13104_v46  ;;  %v672_v46 = vld [vmem:[%s16409_s28 + $0xe98] sm:$0xff] }
 0x6d8   : > { %v13207_v19 = vcombine.low %v672_v46, %v680_v47 }
 0x6de   : > { %9062 = vmatmul.mubr.bf16.gmra.mrb[88].mxu1 %v13095_v51  ;;  %11206 = vmatmul.mubr.bf16.gmra.mrb[88].mxu0 %v13103_v52  ;;  %v676_v51 = vld [vmem:[%s16409_s28 + $0xeb8] sm:$0xff] }
 0x6df   : > { %9069 = vmatprep.mubr.bf16.mxu1 %v13112_v53  ;;  %11213 = vmatprep.mubr.bf16.mxu0 %v13120_v54  ;;  %v684_v52 = vld [vmem:[%s16409_s28 + $0xef8] sm:$0xff] }
 0x6e0   : > { %v13216_v0 = vcombine.high %v676_v51, %v684_v52  ;;  %v13215_v1 = vcombine.low %v676_v51, %v684_v52 }
 0x6e6   : > { %9070 = vmatmul.mubr.bf16.gmra.mrb[92].mxu1 %v13111_v59  ;;  %11214 = vmatmul.mubr.bf16.gmra.mrb[92].mxu0 %v13119_v60  ;;  %v13199_v60 = vcombine.low %v660_v26, %v668_v27 }
 0x6e7   : > { %9077 = vmatprep.mubr.bf16.mxu1 %v13128_v61  ;;  %11221 = vmatprep.mubr.bf16.mxu0 %v13136_v62  ;;  %v13208_v61 = vcombine.high %v672_v46, %v680_v47  ;;  %v13223_v47 = vcombine.low %v688_v10, %v696_v11 }
 0x6ee   : > { %9078 = vmatmul.mubr.bf16.gmra.mrb[96].mxu1 %v13127_v4  ;;  %11222 = vmatmul.mubr.bf16.gmra.mrb[96].mxu0 %v13135_v5 }
 0x6ef   : > { %9085 = vmatprep.mubr.bf16.mxu1 %v13144_v6  ;;  %11229 = vmatprep.mubr.bf16.mxu0 %v13152_v7 }
 0x6f6   : > { %9086 = vmatmul.mubr.bf16.gmra.mrb[100].mxu1 %v13143_v12  ;;  %11230 = vmatmul.mubr.bf16.gmra.mrb[100].mxu0 %v13151_v13 }
 0x6f7   : > { %9093 = vmatprep.mubr.bf16.mxu1 %v13160_v14  ;;  %11237 = vmatprep.mubr.bf16.mxu0 %v13168_v15  ;;  %v692_v15 = vld [vmem:[%s16409_s28 + $0xf38] sm:$0xff] }
 0x6f8   : > { %v13232_v27 = vcombine.high %v692_v15, %v700_v16  ;;  %v13231_v52 = vcombine.low %v692_v15, %v700_v16 }
 0x6fe   : > { %9094 = vmatmul.mubr.bf16.gmra.mrb[104].mxu1 %v13159_v20  ;;  %11238 = vmatmul.mubr.bf16.gmra.mrb[104].mxu0 %v13167_v21 }
 0x6ff   : > { %9101 = vmatprep.mubr.bf16.mxu1 %v13176_v22  ;;  %11245 = vmatprep.mubr.bf16.mxu0 %v13184_v23 }
 0x701   : > { %v8887_v25 = vpop.f32.mrb[0].mxu1  ;;  %v11031_v28 = vpop.f32.mrb[0].mxu0 }
 0x702   : > { %v8889_v30 = vpop.f32.mrb[1].mxu1  ;;  %v14499_v32 = vadd.f32 %v11031_v28, %v8887_v25  ;;  %v11033_v33 = vpop.f32.mrb[1].mxu0 }
 0x703   : > { %v8890_v34 = vpop.f32.mrb[2].mxu1  ;;  %v11034_v38 = vpop.f32.mrb[2].mxu0 }
 0x704   : > { %v8892_v39 = vpop.f32.mrb[3].mxu1  ;;  %v11540_v41 = vmul.f32 %v14499_v32, %v17744_v29  ;;  %v14500_v42 = vadd.f32 %v11034_v38, %v8890_v34  ;;  %v11036_v43 = vpop.f32.mrb[3].mxu0  ;;  %v704_v38 = vld [vmem:[%s16409_s28 + $0xf98] sm:$0xff] }
 0x705   : > { %v712_v39 = vld [vmem:[%s16409_s28 + $0xfd8] sm:$0xff] }
 0x706   : > { %9102 = vmatmul.mubr.bf16.gmra.mrb[108].mxu1 %v13175_v31  ;;  %v11672_v44 = vadd.f32 %v17749_v37, %v11540_v41  ;;  %v11541_v45 = vmul.f32 %v14500_v42, %v17744_v29  ;;  %11246 = vmatmul.mubr.bf16.gmra.mrb[108].mxu0 %v13183_v35  ;;  %v708_v43 = vld [vmem:[%s16409_s28 + $0xfb8] sm:$0xff]  ;;  %v13239_v11 = vcombine.low %v704_v38, %v712_v39 }
 0x707   : > { %9109 = vmatprep.mubr.bf16.mxu1 %v13192_v36  ;;  %11253 = vmatprep.mubr.bf16.mxu0 %v13200_v40 }
 0x708   : > { %v11797_v48 = vmul.f32 0.1, %v11672_v44  ;;  %v11673_v49 = vadd.f32 %v17749_v37, %v11541_v45 }
 0x709   : > { %v8895_v50 = vpop.f32.mrb[4].mxu1  ;;  %v11039_v53 = vpop.f32.mrb[4].mxu0 }
 0x70a   : > { %v8897_v54 = vpop.f32.mrb[5].mxu1  ;;  %v11798_v56 = vmul.f32 0.1, %v11673_v49  ;;  %v14501_v57 = vadd.f32 %v11039_v53, %v8895_v50  ;;  %v11041_v58 = vpop.f32.mrb[5].mxu0  ;;  %v11922_v2 = vmax.f32 %v11672_v44, %v11797_v48  ;;  %v716_v44 = vld [vmem:[%s16409_s28 + $0xff8] sm:$0xff]  ;;  %v13240_v53 = vcombine.high %v704_v38, %v712_v39 }
 0x70b   : > { %v8898_v59 = vpop.f32.mrb[6].mxu1  ;;  %v11042_v62 = vpop.f32.mrb[6].mxu0  ;;  %v13247_v16 = vcombine.low %v708_v43, %v716_v44 }
 0x70c   : > { %v8900_v63 = vpop.f32.mrb[7].mxu1  ;;  %v11923_v3 = vmax.f32 %v11673_v49, %v11798_v56  ;;  %v11542_v4 = vmul.f32 %v14501_v57, %v17744_v29  ;;  %v14502_v5 = vadd.f32 %v11042_v62, %v8898_v59  ;;  %v11044_v6 = vpop.f32.mrb[7].mxu0  ;;  %v13248_v56 = vcombine.high %v708_v43, %v716_v44 }
 0x70e   : > { %9110 = vmatmul.mubr.bf16.gmra.mrb[112].mxu1 %v13191_v55  ;;  %v14131_v7 = vpack.c.bf16 %v11923_v3, %v11922_v2  ;;  %v11674_v8 = vadd.f32 %v17749_v37, %v11542_v4  ;;  %v11543_v9 = vmul.f32 %v14502_v5, %v17744_v29  ;;  %11254 = vmatmul.mubr.bf16.gmra.mrb[112].mxu0 %v13199_v60  ;;  %v720_v2 = vld [vmem:[%s16409_s28 + $0x1018] sm:$0xff] }
 0x70f   : > { %9117 = vmatprep.mubr.bf16.mxu1 %v13208_v61  ;;  %11261 = vmatprep.mubr.bf16.mxu0 %v13216_v0  ;;  %v728_v3 = vld [vmem:[%s16409_s28 + $0x1058] sm:$0xff] }
 0x710   : > { %14132 = vst [vmem:[%s17764_s29] sm:$0xff] %v14131_v7   ;;  %v11799_v12 = vmul.f32 0.1, %v11674_v8  ;;  %v11675_v13 = vadd.f32 %v17749_v37, %v11543_v9  ;;  %v724_v7 = vld [vmem:[%s16409_s28 + $0x1038] sm:$0xff]  ;;  %v13255_v39 = vcombine.low %v720_v2, %v728_v3 }
 0x711   : > { %v8903_v14 = vpop.f32.mrb[8].mxu1  ;;  %v11047_v17 = vpop.f32.mrb[8].mxu0 }
 0x712   : > { %v8905_v18 = vpop.f32.mrb[9].mxu1  ;;  %v11800_v20 = vmul.f32 0.1, %v11675_v13  ;;  %v14503_v21 = vadd.f32 %v11047_v17, %v8903_v14  ;;  %v11049_v22 = vpop.f32.mrb[9].mxu0  ;;  %v11924_v28 = vmax.f32 %v11674_v8, %v11799_v12  ;;  %v732_v8 = vld [vmem:[%s16409_s28 + $0x1078] sm:$0xff]  ;;  %v13256_v17 = vcombine.high %v720_v2, %v728_v3 }
 0x713   : > { %v8906_v23 = vpop.f32.mrb[10].mxu1  ;;  %v11050_v25 = vpop.f32.mrb[10].mxu0  ;;  %v13263_v44 = vcombine.low %v724_v7, %v732_v8 }
 0x714   : > { %v8908_v26 = vpop.f32.mrb[11].mxu1  ;;  %v11925_v30 = vmax.f32 %v11675_v13, %v11800_v20  ;;  %v11544_v31 = vmul.f32 %v14503_v21, %v17744_v29  ;;  %v14504_v32 = vadd.f32 %v11050_v25, %v8906_v23  ;;  %v11052_v33 = vpop.f32.mrb[11].mxu0  ;;  %v13264_v20 = vcombine.high %v724_v7, %v732_v8 }
 0x716   : > { %9118 = vmatmul.mubr.bf16.gmra.mrb[116].mxu1 %v13207_v19  ;;  %v14136_v34 = vpack.c.bf16 %v11925_v30, %v11924_v28  ;;  %v11676_v35 = vadd.f32 %v17749_v37, %v11544_v31  ;;  %v11545_v36 = vmul.f32 %v14504_v32, %v17744_v29  ;;  %11262 = vmatmul.mubr.bf16.gmra.mrb[116].mxu0 %v13215_v1  ;;  %v736_v28 = vld [vmem:[%s16409_s28 + $0x1098] sm:$0xff] }
 0x717   : > { %9125 = vmatprep.mubr.bf16.mxu1 %v13224_v24  ;;  %11269 = vmatprep.mubr.bf16.mxu0 %v13232_v27  ;;  %v744_v30 = vld [vmem:[%s16409_s28 + $0x10d8] sm:$0xff] }
 0x718   : > { %14438 = vst [vmem:[%s17764_s29 + $0x8] sm:$0xff] %v14136_v34   ;;  %v11801_v40 = vmul.f32 0.1, %v11676_v35  ;;  %v11677_v41 = vadd.f32 %v17749_v37, %v11545_v36  ;;  %v740_v34 = vld [vmem:[%s16409_s28 + $0x10b8] sm:$0xff]  ;;  %v13271_v3 = vcombine.low %v736_v28, %v744_v30 }
 0x719   : > { %v8911_v42 = vpop.f32.mrb[12].mxu1  ;;  %v11055_v45 = vpop.f32.mrb[12].mxu0 }
 0x71a   : > { %v8913_v46 = vpop.f32.mrb[13].mxu1  ;;  %v11802_v48 = vmul.f32 0.1, %v11677_v41  ;;  %v14505_v49 = vadd.f32 %v11055_v45, %v8911_v42  ;;  %v11057_v50 = vpop.f32.mrb[13].mxu0  ;;  %v11926_v57 = vmax.f32 %v11676_v35, %v11801_v40  ;;  %v748_v35 = vld [vmem:[%s16409_s28 + $0x10f8] sm:$0xff]  ;;  %v13272_v45 = vcombine.high %v736_v28, %v744_v30 }
 0x71b   : > { %v8914_v51 = vpop.f32.mrb[14].mxu1  ;;  %v11058_v54 = vpop.f32.mrb[14].mxu0  ;;  %v13279_v8 = vcombine.low %v740_v34, %v748_v35 }
 0x71c   : > { %v8916_v55 = vpop.f32.mrb[15].mxu1  ;;  %v11927_v58 = vmax.f32 %v11677_v41, %v11802_v48  ;;  %v11546_v59 = vmul.f32 %v14505_v49, %v17744_v29  ;;  %v14506_v60 = vadd.f32 %v11058_v54, %v8914_v51  ;;  %v11060_v61 = vpop.f32.mrb[15].mxu0  ;;  %v13280_v48 = vcombine.high %v740_v34, %v748_v35 }
 0x71e   : > { %9126 = vmatmul.mubr.bf16.gmra.mrb[120].mxu1 %v13223_v47  ;;  %v14141_v62 = vpack.c.bf16 %v11927_v58, %v11926_v57  ;;  %v11678_v63 = vadd.f32 %v17749_v37, %v11546_v59  ;;  %v11547_v0 = vmul.f32 %v14506_v60, %v17744_v29  ;;  %11270 = vmatmul.mubr.bf16.gmra.mrb[120].mxu0 %v13231_v52  ;;  %v752_v57 = vld [vmem:[%s16409_s28 + $0x1118] sm:$0xff] }
 0x71f   : > { %9133 = vmatprep.mubr.bf16.mxu1 %v13240_v53  ;;  %11277 = vmatprep.mubr.bf16.mxu0 %v13248_v56  ;;  %v760_v58 = vld [vmem:[%s16409_s28 + $0x1158] sm:$0xff] }
 0x720   : > { %14439 = vst [vmem:[%s17764_s29 + $0x10] sm:$0xff] %v14141_v62   ;;  %v11803_v4 = vmul.f32 0.1, %v11678_v63  ;;  %v11679_v5 = vadd.f32 %v17749_v37, %v11547_v0  ;;  %v756_v62 = vld [vmem:[%s16409_s28 + $0x1138] sm:$0xff]  ;;  %v13287_v30 = vcombine.low %v752_v57, %v760_v58 }
 0x721   : > { %v8919_v6 = vpop.f32.mrb[16].mxu1  ;;  %v11063_v9 = vpop.f32.mrb[16].mxu0 }
 0x722   : > { %v8921_v10 = vpop.f32.mrb[17].mxu1  ;;  %v11804_v12 = vmul.f32 0.1, %v11679_v5  ;;  %v14507_v13 = vadd.f32 %v11063_v9, %v8919_v6  ;;  %v11065_v14 = vpop.f32.mrb[17].mxu0  ;;  %v11928_v21 = vmax.f32 %v11678_v63, %v11803_v4  ;;  %v764_v63 = vld [vmem:[%s16409_s28 + $0x1178] sm:$0xff]  ;;  %v13288_v9 = vcombine.high %v752_v57, %v760_v58 }
 0x723   : > { %v8922_v15 = vpop.f32.mrb[18].mxu1  ;;  %v11066_v18 = vpop.f32.mrb[18].mxu0  ;;  %v13295_v35 = vcombine.low %v756_v62, %v764_v63 }
 0x724   : > { %v8924_v19 = vpop.f32.mrb[19].mxu1  ;;  %v11929_v22 = vmax.f32 %v11679_v5, %v11804_v12  ;;  %v11548_v23 = vmul.f32 %v14507_v13, %v17744_v29  ;;  %v14508_v1 = vadd.f32 %v11066_v18, %v8922_v15  ;;  %v11068_v24 = vpop.f32.mrb[19].mxu0  ;;  %v13296_v12 = vcombine.high %v756_v62, %v764_v63 }
 0x726   : > { %9134 = vmatmul.mubr.bf16.gmra.mrb[124].mxu1 %v13239_v11  ;;  %v14146_v25 = vpack.c.bf16 %v11929_v22, %v11928_v21  ;;  %v11680_v26 = vadd.f32 %v17749_v37, %v11548_v23  ;;  %v11549_v27 = vmul.f32 %v14508_v1, %v17744_v29  ;;  %11278 = vmatmul.mubr.bf16.gmra.mrb[124].mxu0 %v13247_v16  ;;  %v768_v21 = vld [vmem:[%s16409_s28 + $0x1198] sm:$0xff] }
 0x727   : > { %9141 = vmatprep.mubr.bf16.mxu1 %v13256_v17  ;;  %11285 = vmatprep.mubr.bf16.mxu0 %v13264_v20  ;;  %v776_v22 = vld [vmem:[%s16409_s28 + $0x11d8] sm:$0xff] }
 0x728   : > { %14440 = vst [vmem:[%s17764_s29 + $0x18] sm:$0xff] %v14146_v25   ;;  %v11805_v31 = vmul.f32 0.1, %v11680_v26  ;;  %v11681_v32 = vadd.f32 %v17749_v37, %v11549_v27  ;;  %v772_v25 = vld [vmem:[%s16409_s28 + $0x11b8] sm:$0xff]  ;;  %v13303_v58 = vcombine.low %v768_v21, %v776_v22 }
 0x729   : > { %v8927_v33 = vpop.f32.mrb[20].mxu1  ;;  %v11071_v36 = vpop.f32.mrb[20].mxu0 }
 0x72a   : > { %v8929_v38 = vpop.f32.mrb[21].mxu1  ;;  %v11806_v40 = vmul.f32 0.1, %v11681_v32  ;;  %v14509_v41 = vadd.f32 %v11071_v36, %v8927_v33  ;;  %v11073_v42 = vpop.f32.mrb[21].mxu0  ;;  %v11930_v49 = vmax.f32 %v11680_v26, %v11805_v31  ;;  %v780_v26 = vld [vmem:[%s16409_s28 + $0x11f8] sm:$0xff]  ;;  %v13304_v36 = vcombine.high %v768_v21, %v776_v22 }
 0x72b   : > { %v8930_v43 = vpop.f32.mrb[22].mxu1  ;;  %v11074_v46 = vpop.f32.mrb[22].mxu0  ;;  %v13311_v63 = vcombine.low %v772_v25, %v780_v26 }
 0x72c   : > { %v8932_v47 = vpop.f32.mrb[23].mxu1  ;;  %v11931_v50 = vmax.f32 %v11681_v32, %v11806_v40  ;;  %v11550_v51 = vmul.f32 %v14509_v41, %v17744_v29  ;;  %v14510_v52 = vadd.f32 %v11074_v46, %v8930_v43  ;;  %v11076_v53 = vpop.f32.mrb[23].mxu0  ;;  %v13312_v40 = vcombine.high %v772_v25, %v780_v26 }
 0x72e   : > { %9142 = vmatmul.mubr.bf16.gmra.mrb[128].mxu1 %v13255_v39  ;;  %v14151_v54 = vpack.c.bf16 %v11931_v50, %v11930_v49  ;;  %v11682_v55 = vadd.f32 %v17749_v37, %v11550_v51  ;;  %v11551_v56 = vmul.f32 %v14510_v52, %v17744_v29  ;;  %11286 = vmatmul.mubr.bf16.gmra.mrb[128].mxu0 %v13263_v44  ;;  %v784_v49 = vld [vmem:[%s16409_s28 + $0x1218] sm:$0xff] }
 0x72f   : > { %9149 = vmatprep.mubr.bf16.mxu1 %v13272_v45  ;;  %11293 = vmatprep.mubr.bf16.mxu0 %v13280_v48  ;;  %v792_v50 = vld [vmem:[%s16409_s28 + $0x1258] sm:$0xff] }
 0x730   : > { %14441 = vst [vmem:[%s17764_s29 + $0x20] sm:$0xff] %v14151_v54   ;;  %v11807_v59 = vmul.f32 0.1, %v11682_v55  ;;  %v11683_v60 = vadd.f32 %v17749_v37, %v11551_v56  ;;  %v788_v54 = vld [vmem:[%s16409_s28 + $0x1238] sm:$0xff]  ;;  %v13319_v22 = vcombine.low %v784_v49, %v792_v50 }
 0x731   : > { %v8935_v61 = vpop.f32.mrb[24].mxu1  ;;  %v11079_v0 = vpop.f32.mrb[24].mxu0 }
 0x732   : > { %v8937_v2 = vpop.f32.mrb[25].mxu1  ;;  %v11808_v4 = vmul.f32 0.1, %v11683_v60  ;;  %v14511_v5 = vadd.f32 %v11079_v0, %v8935_v61  ;;  %v11081_v6 = vpop.f32.mrb[25].mxu0  ;;  %v11932_v13 = vmax.f32 %v11682_v55, %v11807_v59  ;;  %v796_v55 = vld [vmem:[%s16409_s28 + $0x1278] sm:$0xff]  ;;  %v13320_v0 = vcombine.high %v784_v49, %v792_v50 }
 0x733   : > { %v8938_v7 = vpop.f32.mrb[26].mxu1  ;;  %v11082_v10 = vpop.f32.mrb[26].mxu0  ;;  %v13327_v26 = vcombine.low %v788_v54, %v796_v55 }
 0x734   : > { %v8940_v11 = vpop.f32.mrb[27].mxu1  ;;  %v11933_v14 = vmax.f32 %v11683_v60, %v11808_v4  ;;  %v11552_v15 = vmul.f32 %v14511_v5, %v17744_v29  ;;  %v14512_v16 = vadd.f32 %v11082_v10, %v8938_v7  ;;  %v11084_v17 = vpop.f32.mrb[27].mxu0  ;;  %v13328_v4 = vcombine.high %v788_v54, %v796_v55 }
 0x736   : > { %9150 = vmatmul.mubr.bf16.gmra.mrb[132].mxu1 %v13271_v3  ;;  %v14156_v18 = vpack.c.bf16 %v11933_v14, %v11932_v13  ;;  %v11684_v19 = vadd.f32 %v17749_v37, %v11552_v15  ;;  %v11553_v20 = vmul.f32 %v14512_v16, %v17744_v29  ;;  %11294 = vmatmul.mubr.bf16.gmra.mrb[132].mxu0 %v13279_v8  ;;  %v800_v13 = vld [vmem:[%s16409_s28 + $0x1298] sm:$0xff] }
 0x737   : > { %9157 = vmatprep.mubr.bf16.mxu1 %v13288_v9  ;;  %11301 = vmatprep.mubr.bf16.mxu0 %v13296_v12  ;;  %v808_v14 = vld [vmem:[%s16409_s28 + $0x12d8] sm:$0xff] }
 0x738   : > { %14442 = vst [vmem:[%s17764_s29 + $0x28] sm:$0xff] %v14156_v18   ;;  %v11809_v23 = vmul.f32 0.1, %v11684_v19  ;;  %v11685_v1 = vadd.f32 %v17749_v37, %v11553_v20  ;;  %v804_v18 = vld [vmem:[%s16409_s28 + $0x12b8] sm:$0xff]  ;;  %v13335_v50 = vcombine.low %v800_v13, %v808_v14 }
 0x739   : > { %v8943_v24 = vpop.f32.mrb[28].mxu1  ;;  %v11087_v27 = vpop.f32.mrb[28].mxu0 }
 0x73a   : > { %v8945_v28 = vpop.f32.mrb[29].mxu1  ;;  %v11810_v31 = vmul.f32 0.1, %v11685_v1  ;;  %v14513_v32 = vadd.f32 %v11087_v27, %v8943_v24  ;;  %v11089_v33 = vpop.f32.mrb[29].mxu0  ;;  %v11934_v41 = vmax.f32 %v11684_v19, %v11809_v23  ;;  %v812_v19 = vld [vmem:[%s16409_s28 + $0x12f8] sm:$0xff]  ;;  %v13336_v27 = vcombine.high %v800_v13, %v808_v14 }
 0x73b   : > { %v8946_v34 = vpop.f32.mrb[30].mxu1  ;;  %v11090_v38 = vpop.f32.mrb[30].mxu0  ;;  %v13343_v55 = vcombine.low %v804_v18, %v812_v19 }
 0x73c   : > { %v8948_v39 = vpop.f32.mrb[31].mxu1  ;;  %v11935_v42 = vmax.f32 %v11685_v1, %v11810_v31  ;;  %v11554_v43 = vmul.f32 %v14513_v32, %v17744_v29  ;;  %v14514_v44 = vadd.f32 %v11090_v38, %v8946_v34  ;;  %v11092_v45 = vpop.f32.mrb[31].mxu0  ;;  %v13344_v31 = vcombine.high %v804_v18, %v812_v19 }
 0x73e   : > { %9158 = vmatmul.mubr.bf16.gmra.mrb[136].mxu1 %v13287_v30  ;;  %v14161_v46 = vpack.c.bf16 %v11935_v42, %v11934_v41  ;;  %v11686_v47 = vadd.f32 %v17749_v37, %v11554_v43  ;;  %v11555_v48 = vmul.f32 %v14514_v44, %v17744_v29  ;;  %11302 = vmatmul.mubr.bf16.gmra.mrb[136].mxu0 %v13295_v35  ;;  %v816_v41 = vld [vmem:[%s16409_s28 + $0x1318] sm:$0xff] }
 0x73f   : > { %9165 = vmatprep.mubr.bf16.mxu1 %v13304_v36  ;;  %11309 = vmatprep.mubr.bf16.mxu0 %v13312_v40  ;;  %v824_v42 = vld [vmem:[%s16409_s28 + $0x1358] sm:$0xff] }
 0x740   : > { %14443 = vst [vmem:[%s17764_s29 + $0x30] sm:$0xff] %v14161_v46   ;;  %v11811_v51 = vmul.f32 0.1, %v11686_v47  ;;  %v11687_v52 = vadd.f32 %v17749_v37, %v11555_v48  ;;  %v820_v46 = vld [vmem:[%s16409_s28 + $0x1338] sm:$0xff]  ;;  %v13351_v14 = vcombine.low %v816_v41, %v824_v42 }
 0x741   : > { %v8951_v53 = vpop.f32.mrb[32].mxu1  ;;  %v11095_v56 = vpop.f32.mrb[32].mxu0 }
 0x742   : > { %v8953_v57 = vpop.f32.mrb[33].mxu1  ;;  %v11812_v59 = vmul.f32 0.1, %v11687_v52  ;;  %v14515_v60 = vadd.f32 %v11095_v56, %v8951_v53  ;;  %v11097_v61 = vpop.f32.mrb[33].mxu0  ;;  %v11936_v5 = vmax.f32 %v11686_v47, %v11811_v51  ;;  %v828_v47 = vld [vmem:[%s16409_s28 + $0x1378] sm:$0xff]  ;;  %v13352_v56 = vcombine.high %v816_v41, %v824_v42 }
 0x743   : > { %v8954_v62 = vpop.f32.mrb[34].mxu1  ;;  %v11098_v2 = vpop.f32.mrb[34].mxu0  ;;  %v13359_v19 = vcombine.low %v820_v46, %v828_v47 }
 0x744   : > { %v8956_v3 = vpop.f32.mrb[35].mxu1  ;;  %v11937_v6 = vmax.f32 %v11687_v52, %v11812_v59  ;;  %v11556_v7 = vmul.f32 %v14515_v60, %v17744_v29  ;;  %v14516_v8 = vadd.f32 %v11098_v2, %v8954_v62  ;;  %v11100_v9 = vpop.f32.mrb[35].mxu0  ;;  %v13360_v59 = vcombine.high %v820_v46, %v828_v47 }
 0x746   : > { %9166 = vmatmul.mubr.bf16.gmra.mrb[140].mxu1 %v13303_v58  ;;  %v14166_v10 = vpack.c.bf16 %v11937_v6, %v11936_v5  ;;  %v11688_v11 = vadd.f32 %v17749_v37, %v11556_v7  ;;  %v11557_v12 = vmul.f32 %v14516_v8, %v17744_v29  ;;  %11310 = vmatmul.mubr.bf16.gmra.mrb[140].mxu0 %v13311_v63  ;;  %v832_v5 = vld [vmem:[%s16409_s28 + $0x1398] sm:$0xff] }
 0x747   : > { %9173 = vmatprep.mubr.bf16.mxu1 %v13320_v0  ;;  %11317 = vmatprep.mubr.bf16.mxu0 %v13328_v4  ;;  %v840_v6 = vld [vmem:[%s16409_s28 + $0x13d8] sm:$0xff] }
 0x748   : > { %14444 = vst [vmem:[%s17764_s29 + $0x38] sm:$0xff] %v14166_v10   ;;  %v11813_v15 = vmul.f32 0.1, %v11688_v11  ;;  %v11689_v16 = vadd.f32 %v17749_v37, %v11557_v12  ;;  %v836_v10 = vld [vmem:[%s16409_s28 + $0x13b8] sm:$0xff]  ;;  %v13367_v42 = vcombine.low %v832_v5, %v840_v6 }
 0x749   : > { %v8959_v17 = vpop.f32.mrb[36].mxu1  ;;  %v11103_v20 = vpop.f32.mrb[36].mxu0 }
 0x74a   : > { %v8961_v21 = vpop.f32.mrb[37].mxu1  ;;  %v11814_v23 = vmul.f32 0.1, %v11689_v16  ;;  %v14517_v1 = vadd.f32 %v11103_v20, %v8959_v17  ;;  %v11105_v24 = vpop.f32.mrb[37].mxu0  ;;  %v11938_v32 = vmax.f32 %v11688_v11, %v11813_v15  ;;  %v844_v11 = vld [vmem:[%s16409_s28 + $0x13f8] sm:$0xff]  ;;  %v13368_v20 = vcombine.high %v832_v5, %v840_v6 }
 0x74b   : > { %v8962_v25 = vpop.f32.mrb[38].mxu1  ;;  %v11106_v28 = vpop.f32.mrb[38].mxu0  ;;  %v13375_v47 = vcombine.low %v836_v10, %v844_v11 }
 0x74c   : > { %v8964_v30 = vpop.f32.mrb[39].mxu1  ;;  %v11939_v33 = vmax.f32 %v11689_v16, %v11814_v23  ;;  %v11558_v34 = vmul.f32 %v14517_v1, %v17744_v29  ;;  %v14518_v35 = vadd.f32 %v11106_v28, %v8962_v25  ;;  %v11108_v36 = vpop.f32.mrb[39].mxu0  ;;  %v13376_v23 = vcombine.high %v836_v10, %v844_v11 }
 0x74e   : > { %9174 = vmatmul.mubr.bf16.gmra.mrb[144].mxu1 %v13319_v22  ;;  %v14171_v38 = vpack.c.bf16 %v11939_v33, %v11938_v32  ;;  %v11690_v39 = vadd.f32 %v17749_v37, %v11558_v34  ;;  %v11559_v40 = vmul.f32 %v14518_v35, %v17744_v29  ;;  %11318 = vmatmul.mubr.bf16.gmra.mrb[144].mxu0 %v13327_v26  ;;  %v848_v32 = vld [vmem:[%s16409_s28 + $0x1418] sm:$0xff] }
 0x74f   : > { %9181 = vmatprep.mubr.bf16.mxu1 %v13336_v27  ;;  %11325 = vmatprep.mubr.bf16.mxu0 %v13344_v31  ;;  %v856_v33 = vld [vmem:[%s16409_s28 + $0x1458] sm:$0xff] }
 0x750   : > { %14445 = vst [vmem:[%s17764_s29 + $0x40] sm:$0xff] %v14171_v38   ;;  %v11815_v43 = vmul.f32 0.1, %v11690_v39  ;;  %v11691_v44 = vadd.f32 %v17749_v37, %v11559_v40  ;;  %v852_v38 = vld [vmem:[%s16409_s28 + $0x1438] sm:$0xff]  ;;  %v13383_v6 = vcombine.low %v848_v32, %v856_v33 }
 0x751   : > { %v8967_v45 = vpop.f32.mrb[40].mxu1  ;;  %v11111_v48 = vpop.f32.mrb[40].mxu0 }
 0x752   : > { %v8969_v49 = vpop.f32.mrb[41].mxu1  ;;  %v11816_v51 = vmul.f32 0.1, %v11691_v44  ;;  %v14519_v52 = vadd.f32 %v11111_v48, %v8967_v45  ;;  %v11113_v53 = vpop.f32.mrb[41].mxu0  ;;  %v11940_v60 = vmax.f32 %v11690_v39, %v11815_v43  ;;  %v860_v39 = vld [vmem:[%s16409_s28 + $0x1478] sm:$0xff]  ;;  %v13384_v48 = vcombine.high %v848_v32, %v856_v33 }
 0x753   : > { %v8970_v54 = vpop.f32.mrb[42].mxu1  ;;  %v11114_v57 = vpop.f32.mrb[42].mxu0  ;;  %v13391_v11 = vcombine.low %v852_v38, %v860_v39 }
 0x754   : > { %v8972_v58 = vpop.f32.mrb[43].mxu1  ;;  %v11941_v61 = vmax.f32 %v11691_v44, %v11816_v51  ;;  %v11560_v62 = vmul.f32 %v14519_v52, %v17744_v29  ;;  %v14520_v63 = vadd.f32 %v11114_v57, %v8970_v54  ;;  %v11116_v0 = vpop.f32.mrb[43].mxu0  ;;  %v13392_v51 = vcombine.high %v852_v38, %v860_v39 }
 0x756   : > { %9182 = vmatmul.mubr.bf16.gmra.mrb[148].mxu1 %v13335_v50  ;;  %v14176_v2 = vpack.c.bf16 %v11941_v61, %v11940_v60  ;;  %v11692_v3 = vadd.f32 %v17749_v37, %v11560_v62  ;;  %v11561_v4 = vmul.f32 %v14520_v63, %v17744_v29  ;;  %11326 = vmatmul.mubr.bf16.gmra.mrb[148].mxu0 %v13343_v55  ;;  %v864_v60 = vld [vmem:[%s16409_s28 + $0x1498] sm:$0xff] }
 0x757   : > { %9189 = vmatprep.mubr.bf16.mxu1 %v13352_v56  ;;  %11333 = vmatprep.mubr.bf16.mxu0 %v13360_v59  ;;  %v872_v61 = vld [vmem:[%s16409_s28 + $0x14d8] sm:$0xff] }
 0x758   : > { %14446 = vst [vmem:[%s17764_s29 + $0x48] sm:$0xff] %v14176_v2   ;;  %v11817_v7 = vmul.f32 0.1, %v11692_v3  ;;  %v11693_v8 = vadd.f32 %v17749_v37, %v11561_v4  ;;  %v868_v2 = vld [vmem:[%s16409_s28 + $0x14b8] sm:$0xff]  ;;  %v13399_v33 = vcombine.low %v864_v60, %v872_v61 }
 0x759   : > { %v8975_v9 = vpop.f32.mrb[44].mxu1  ;;  %v11119_v12 = vpop.f32.mrb[44].mxu0 }
 0x75a   : > { %v8977_v13 = vpop.f32.mrb[45].mxu1  ;;  %v11818_v15 = vmul.f32 0.1, %v11693_v8  ;;  %v14521_v16 = vadd.f32 %v11119_v12, %v8975_v9  ;;  %v11121_v17 = vpop.f32.mrb[45].mxu0  ;;  %v11942_v1 = vmax.f32 %v11692_v3, %v11817_v7  ;;  %v876_v3 = vld [vmem:[%s16409_s28 + $0x14f8] sm:$0xff]  ;;  %v13400_v12 = vcombine.high %v864_v60, %v872_v61 }
 0x75b   : > { %v8978_v18 = vpop.f32.mrb[46].mxu1  ;;  %v11122_v21 = vpop.f32.mrb[46].mxu0  ;;  %v13407_v39 = vcombine.low %v868_v2, %v876_v3 }
 0x75c   : > { %v8980_v22 = vpop.f32.mrb[47].mxu1  ;;  %v11943_v24 = vmax.f32 %v11693_v8, %v11818_v15  ;;  %v11562_v25 = vmul.f32 %v14521_v16, %v17744_v29  ;;  %v14522_v26 = vadd.f32 %v11122_v21, %v8978_v18  ;;  %v11124_v27 = vpop.f32.mrb[47].mxu0  ;;  %v13408_v15 = vcombine.high %v868_v2, %v876_v3 }
 0x75e   : > { %9190 = vmatmul.mubr.bf16.gmra.mrb[152].mxu1 %v13351_v14  ;;  %v14181_v28 = vpack.c.bf16 %v11943_v24, %v11942_v1  ;;  %v11694_v30 = vadd.f32 %v17749_v37, %v11562_v25  ;;  %v11563_v31 = vmul.f32 %v14522_v26, %v17744_v29  ;;  %11334 = vmatmul.mubr.bf16.gmra.mrb[152].mxu0 %v13359_v19  ;;  %v880_v1 = vld [vmem:[%s16409_s28 + $0x1518] sm:$0xff] }
 0x75f   : > { %9197 = vmatprep.mubr.bf16.mxu1 %v13368_v20  ;;  %11341 = vmatprep.mubr.bf16.mxu0 %v13376_v23  ;;  %v888_v24 = vld [vmem:[%s16409_s28 + $0x1558] sm:$0xff] }
 0x760   : > { %14447 = vst [vmem:[%s17764_s29 + $0x50] sm:$0xff] %v14181_v28   ;;  %v11819_v34 = vmul.f32 0.1, %v11694_v30  ;;  %v11695_v35 = vadd.f32 %v17749_v37, %v11563_v31  ;;  %v884_v28 = vld [vmem:[%s16409_s28 + $0x1538] sm:$0xff]  ;;  %v13415_v61 = vcombine.low %v880_v1, %v888_v24 }
 0x761   : > { %v8983_v36 = vpop.f32.mrb[48].mxu1  ;;  %v11127_v40 = vpop.f32.mrb[48].mxu0 }
 0x762   : > { %v8985_v41 = vpop.f32.mrb[49].mxu1  ;;  %v11820_v43 = vmul.f32 0.1, %v11695_v35  ;;  %v14523_v44 = vadd.f32 %v11127_v40, %v8983_v36  ;;  %v11129_v45 = vpop.f32.mrb[49].mxu0  ;;  %v11944_v52 = vmax.f32 %v11694_v30, %v11819_v34  ;;  %v892_v30 = vld [vmem:[%s16409_s28 + $0x1578] sm:$0xff]  ;;  %v13416_v40 = vcombine.high %v880_v1, %v888_v24 }
 0x763   : > { %v8986_v46 = vpop.f32.mrb[50].mxu1  ;;  %v11130_v49 = vpop.f32.mrb[50].mxu0  ;;  %v13423_v3 = vcombine.low %v884_v28, %v892_v30 }
 0x764   : > { %v8988_v50 = vpop.f32.mrb[51].mxu1  ;;  %v11945_v53 = vmax.f32 %v11695_v35, %v11820_v43  ;;  %v11564_v54 = vmul.f32 %v14523_v44, %v17744_v29  ;;  %v14524_v55 = vadd.f32 %v11130_v49, %v8986_v46  ;;  %v11132_v56 = vpop.f32.mrb[51].mxu0  ;;  %v13424_v43 = vcombine.high %v884_v28, %v892_v30 }
 0x766   : > { %9198 = vmatmul.mubr.bf16.gmra.mrb[156].mxu1 %v13367_v42  ;;  %v14186_v57 = vpack.c.bf16 %v11945_v53, %v11944_v52  ;;  %v11696_v58 = vadd.f32 %v17749_v37, %v11564_v54  ;;  %v11565_v59 = vmul.f32 %v14524_v55, %v17744_v29  ;;  %11342 = vmatmul.mubr.bf16.gmra.mrb[156].mxu0 %v13375_v47  ;;  %v896_v52 = vld [vmem:[%s16409_s28 + $0x1598] sm:$0xff] }
 0x767   : > { %9205 = vmatprep.mubr.bf16.mxu1 %v13384_v48  ;;  %11349 = vmatprep.mubr.bf16.mxu0 %v13392_v51  ;;  %v904_v53 = vld [vmem:[%s16409_s28 + $0x15d8] sm:$0xff] }
 0x768   : > { %14448 = vst [vmem:[%s17764_s29 + $0x58] sm:$0xff] %v14186_v57   ;;  %v11821_v62 = vmul.f32 0.1, %v11696_v58  ;;  %v11697_v63 = vadd.f32 %v17749_v37, %v11565_v59  ;;  %v900_v57 = vld [vmem:[%s16409_s28 + $0x15b8] sm:$0xff]  ;;  %v13431_v24 = vcombine.low %v896_v52, %v904_v53 }
 0x769   : > { %v8991_v0 = vpop.f32.mrb[52].mxu1  ;;  %v11135_v4 = vpop.f32.mrb[52].mxu0 }
 0x76a   : > { %v8993_v5 = vpop.f32.mrb[53].mxu1  ;;  %v11822_v7 = vmul.f32 0.1, %v11697_v63  ;;  %v14525_v8 = vadd.f32 %v11135_v4, %v8991_v0  ;;  %v11137_v9 = vpop.f32.mrb[53].mxu0  ;;  %v11946_v16 = vmax.f32 %v11696_v58, %v11821_v62  ;;  %v908_v58 = vld [vmem:[%s16409_s28 + $0x15f8] sm:$0xff]  ;;  %v13432_v4 = vcombine.high %v896_v52, %v904_v53 }
 0x76b   : > { %v8994_v10 = vpop.f32.mrb[54].mxu1  ;;  %v11138_v13 = vpop.f32.mrb[54].mxu0 }
 0x76c   : > { %v8996_v14 = vpop.f32.mrb[55].mxu1  ;;  %v11947_v17 = vmax.f32 %v11697_v63, %v11822_v7  ;;  %v11566_v18 = vmul.f32 %v14525_v8, %v17744_v29  ;;  %v14526_v19 = vadd.f32 %v11138_v13, %v8994_v10  ;;  %v11140_v20 = vpop.f32.mrb[55].mxu0  ;;  %v13440_v7 = vcombine.high %v900_v57, %v908_v58 }
 0x76e   : > { %9206 = vmatmul.mubr.bf16.gmra.mrb[160].mxu1 %v13383_v6  ;;  %v14191_v21 = vpack.c.bf16 %v11947_v17, %v11946_v16  ;;  %v11698_v22 = vadd.f32 %v17749_v37, %v11566_v18  ;;  %v11567_v23 = vmul.f32 %v14526_v19, %v17744_v29  ;;  %11350 = vmatmul.mubr.bf16.gmra.mrb[160].mxu0 %v13391_v11  ;;  %v912_v16 = vld [vmem:[%s16409_s28 + $0x1618] sm:$0xff] }
 0x76f   : > { %9213 = vmatprep.mubr.bf16.mxu1 %v13400_v12  ;;  %11357 = vmatprep.mubr.bf16.mxu0 %v13408_v15  ;;  %v920_v17 = vld [vmem:[%s16409_s28 + $0x1658] sm:$0xff] }
 0x770   : > { %14449 = vst [vmem:[%s17764_s29 + $0x60] sm:$0xff] %v14191_v21   ;;  %v11823_v25 = vmul.f32 0.1, %v11698_v22  ;;  %v11699_v26 = vadd.f32 %v17749_v37, %v11567_v23  ;;  %v916_v21 = vld [vmem:[%s16409_s28 + $0x1638] sm:$0xff]  ;;  %v13448_v30 = vcombine.high %v912_v16, %v920_v17  ;;  %v13447_v53 = vcombine.low %v912_v16, %v920_v17 }
 0x771   : > { %v8999_v27 = vpop.f32.mrb[56].mxu1  ;;  %v11143_v31 = vpop.f32.mrb[56].mxu0 }
 0x772   : > { %v9001_v32 = vpop.f32.mrb[57].mxu1  ;;  %v11824_v34 = vmul.f32 0.1, %v11699_v26  ;;  %v14527_v35 = vadd.f32 %v11143_v31, %v8999_v27  ;;  %v11145_v36 = vpop.f32.mrb[57].mxu0  ;;  %v11948_v44 = vmax.f32 %v11698_v22, %v11823_v25  ;;  %v924_v22 = vld [vmem:[%s16409_s28 + $0x1678] sm:$0xff] }
 0x773   : > { %v9002_v38 = vpop.f32.mrb[58].mxu1  ;;  %v11146_v41 = vpop.f32.mrb[58].mxu0 }
 0x774   : > { %v9004_v42 = vpop.f32.mrb[59].mxu1  ;;  %v11949_v45 = vmax.f32 %v11699_v26, %v11824_v34  ;;  %v11568_v46 = vmul.f32 %v14527_v35, %v17744_v29  ;;  %v14528_v47 = vadd.f32 %v11146_v41, %v9002_v38  ;;  %v11148_v48 = vpop.f32.mrb[59].mxu0  ;;  %v17903_v35 = vld [vmem:[%s18239_s2] ss:$0 sm:$0xff] }
 0x775   : > { %v17909_v41 = vld [vmem:[%s18240_s3] ss:$0 sm:$0xff] }
 0x776   : > { %9214 = vmatmul.mubr.bf16.gmra.mrb[164].mxu1 %v13399_v33  ;;  %v14196_v49 = vpack.c.bf16 %v11949_v45, %v11948_v44  ;;  %v11700_v50 = vadd.f32 %v17749_v37, %v11568_v46  ;;  %v11569_v51 = vmul.f32 %v14528_v47, %v17744_v29  ;;  %11358 = vmatmul.mubr.bf16.gmra.mrb[164].mxu0 %v13407_v39  ;;  %v928_v44 = vld [vmem:[%s16409_s28 + $0x1698] sm:$0xff] }
 0x777   : > { %9221 = vmatprep.mubr.bf16.mxu1 %v13416_v40  ;;  %11365 = vmatprep.mubr.bf16.mxu0 %v13424_v43  ;;  %v13456_v33 = vcombine.high %v916_v21, %v924_v22  ;;  %v936_v45 = vld [vmem:[%s16409_s28 + $0x16d8] sm:$0xff] }
 0x778   : > { %14450 = vst [vmem:[%s17764_s29 + $0x68] sm:$0xff] %v14196_v49   ;;  %v11825_v54 = vmul.f32 0.1, %v11700_v50  ;;  %v11701_v55 = vadd.f32 %v17749_v37, %v11569_v51  ;;  %v932_v49 = vld [vmem:[%s16409_s28 + $0x16b8] sm:$0xff]  ;;  %v13463_v17 = vcombine.low %v928_v44, %v936_v45 }
 0x779   : > { %v9007_v56 = vpop.f32.mrb[60].mxu1  ;;  %v11151_v59 = vpop.f32.mrb[60].mxu0 }
 0x77a   : > { %v9009_v60 = vpop.f32.mrb[61].mxu1  ;;  %v11826_v62 = vmul.f32 0.1, %v11701_v55  ;;  %v14529_v63 = vadd.f32 %v11151_v59, %v9007_v56  ;;  %v11153_v0 = vpop.f32.mrb[61].mxu0  ;;  %v11950_v8 = vmax.f32 %v11700_v50, %v11825_v54  ;;  %v940_v50 = vld [vmem:[%s16409_s28 + $0x16f8] sm:$0xff]  ;;  %v13464_v59 = vcombine.high %v928_v44, %v936_v45 }
 0x77b   : > { %v9010_v2 = vpop.f32.mrb[62].mxu1  ;;  %v11154_v5 = vpop.f32.mrb[62].mxu0 }
 0x77c   : > { %v9012_v6 = vpop.f32.mrb[63].mxu1  ;;  %v11951_v9 = vmax.f32 %v11701_v55, %v11826_v62  ;;  %v11570_v10 = vmul.f32 %v14529_v63, %v17744_v29  ;;  %v14530_v11 = vadd.f32 %v11154_v5, %v9010_v2  ;;  %v11156_v12 = vpop.f32.mrb[63].mxu0  ;;  %v13472_v62 = vcombine.high %v932_v49, %v940_v50 }
 0x77e   : > { %9222 = vmatmul.mubr.bf16.gmra.mrb[168].mxu1 %v13415_v61  ;;  %v14201_v13 = vpack.c.bf16 %v11951_v9, %v11950_v8  ;;  %v11702_v14 = vadd.f32 %v17749_v37, %v11570_v10  ;;  %v11571_v15 = vmul.f32 %v14530_v11, %v17744_v29  ;;  %11366 = vmatmul.mubr.bf16.gmra.mrb[168].mxu0 %v13423_v3  ;;  %v944_v8 = vld [vmem:[%s16409_s28 + $0x1718] sm:$0xff] }
 0x77f   : > { %9229 = vmatprep.mubr.bf16.mxu1 %v13432_v4  ;;  %11373 = vmatprep.mubr.bf16.mxu0 %v13440_v7  ;;  %v13439_v29 = vcombine.low %v900_v57, %v908_v58  ;;  %v13455_v58 = vcombine.low %v916_v21, %v924_v22  ;;  %v952_v9 = vld [vmem:[%s16409_s28 + $0x1758] sm:$0xff]  ;;  %v13471_v22 = vcombine.low %v932_v49, %v940_v50 }
 0x780   : > { %14451 = vst [vmem:[%s17764_s29 + $0x70] sm:$0xff] %v14201_v13   ;;  %v11827_v18 = vmul.f32 0.1, %v11702_v14  ;;  %v11703_v19 = vadd.f32 %v17749_v37, %v11571_v15  ;;  %v948_v13 = vld [vmem:[%s16409_s28 + $0x1738] sm:$0xff]  ;;  %v13479_v45 = vcombine.low %v944_v8, %v952_v9 }
 0x781   : > { %v9015_v20 = vpop.f32.mrb[64].mxu1  ;;  %v11159_v23 = vpop.f32.mrb[64].mxu0 }
 0x782   : > { %v9017_v1 = vpop.f32.mrb[65].mxu1  ;;  %v11828_v25 = vmul.f32 0.1, %v11703_v19  ;;  %v14531_v26 = vadd.f32 %v11159_v23, %v9015_v20  ;;  %v11161_v27 = vpop.f32.mrb[65].mxu0  ;;  %v11952_v34 = vmax.f32 %v11702_v14, %v11827_v18  ;;  %v956_v14 = vld [vmem:[%s16409_s28 + $0x1778] sm:$0xff]  ;;  %v13480_v23 = vcombine.high %v944_v8, %v952_v9 }
 0x783   : > { %v9018_v28 = vpop.f32.mrb[66].mxu1  ;;  %v11162_v31 = vpop.f32.mrb[66].mxu0  ;;  %v13487_v50 = vcombine.low %v948_v13, %v956_v14 }
 0x784   : > { %v9020_v32 = vpop.f32.mrb[67].mxu1  ;;  %v11953_v37 = vmax.f32 %v11703_v19, %v11828_v25  ;;  %v11572_v36 = vmul.f32 %v17903_v35, %v14531_v26  ;;  %v14532_v38 = vadd.f32 %v11162_v31, %v9018_v28  ;;  %v11164_v39 = vpop.f32.mrb[67].mxu0  ;;  %v13488_v25 = vcombine.high %v948_v13, %v956_v14 }
 0x786   : > { %9230 = vmatmul.mubr.bf16.gmra.mrb[172].mxu1 %v13431_v24  ;;  %v14206_v40 = vpack.c.bf16 %v11953_v37, %v11952_v34  ;;  %v11704_v42 = vadd.f32 %v17909_v41, %v11572_v36  ;;  %v11573_v43 = vmul.f32 %v17903_v35, %v14532_v38  ;;  %11374 = vmatmul.mubr.bf16.gmra.mrb[172].mxu0 %v13439_v29  ;;  %v960_v34 = vld [vmem:[%s16409_s28 + $0x1798] sm:$0xff] }
 0x787   : > { %9237 = vmatprep.mubr.bf16.mxu1 %v13448_v30  ;;  %11381 = vmatprep.mubr.bf16.mxu0 %v13456_v33  ;;  %v968_v37 = vld [vmem:[%s16409_s28 + $0x17d8] sm:$0xff] }
 0x788   : > { %14452 = vst [vmem:[%s17764_s29 + $0x78] sm:$0xff] %v14206_v40   ;;  %v11829_v46 = vmul.f32 0.1, %v11704_v42  ;;  %v11705_v47 = vadd.f32 %v17909_v41, %v11573_v43  ;;  %v964_v40 = vld [vmem:[%s16409_s28 + $0x17b8] sm:$0xff]  ;;  %v13495_v9 = vcombine.low %v960_v34, %v968_v37 }
 0x789   : > { %v9023_v48 = vpop.f32.mrb[68].mxu1  ;;  %v11167_v51 = vpop.f32.mrb[68].mxu0 }
 0x78a   : > { %v9025_v52 = vpop.f32.mrb[69].mxu1  ;;  %v11830_v54 = vmul.f32 0.1, %v11705_v47  ;;  %v14533_v55 = vadd.f32 %v11167_v51, %v9023_v48  ;;  %v11169_v56 = vpop.f32.mrb[69].mxu0  ;;  %v11954_v63 = vmax.f32 %v11704_v42, %v11829_v46  ;;  %v972_v42 = vld [vmem:[%s16409_s28 + $0x17f8] sm:$0xff]  ;;  %v13496_v51 = vcombine.high %v960_v34, %v968_v37 }
 0x78b   : > { %v9026_v57 = vpop.f32.mrb[70].mxu1  ;;  %v11170_v60 = vpop.f32.mrb[70].mxu0  ;;  %v13503_v14 = vcombine.low %v964_v40, %v972_v42 }
 0x78c   : > { %v9028_v61 = vpop.f32.mrb[71].mxu1  ;;  %v11955_v0 = vmax.f32 %v11705_v47, %v11830_v54  ;;  %v11574_v2 = vmul.f32 %v17903_v35, %v14533_v55  ;;  %v14534_v3 = vadd.f32 %v11170_v60, %v9026_v57  ;;  %v11172_v4 = vpop.f32.mrb[71].mxu0  ;;  %v13504_v54 = vcombine.high %v964_v40, %v972_v42 }
 0x78e   : > { %9238 = vmatmul.mubr.bf16.gmra.mrb[176].mxu1 %v13447_v53  ;;  %v14211_v5 = vpack.c.bf16 %v11955_v0, %v11954_v63  ;;  %v11706_v6 = vadd.f32 %v17909_v41, %v11574_v2  ;;  %v11575_v7 = vmul.f32 %v17903_v35, %v14534_v3  ;;  %11382 = vmatmul.mubr.bf16.gmra.mrb[176].mxu0 %v13455_v58  ;;  %v976_v63 = vld [vmem:[%s16409_s28 + $0x1818] sm:$0xff] }
 0x78f   : > { %9245 = vmatprep.mubr.bf16.mxu1 %v13464_v59  ;;  %11389 = vmatprep.mubr.bf16.mxu0 %v13472_v62  ;;  %v984_v0 = vld [vmem:[%s16409_s28 + $0x1858] sm:$0xff] }
 0x790   : > { %14453 = vst [vmem:[%s17764_s29 + $0x80] sm:$0xff] %v14211_v5   ;;  %v11831_v10 = vmul.f32 0.1, %v11706_v6  ;;  %v11707_v11 = vadd.f32 %v17909_v41, %v11575_v7  ;;  %v980_v5 = vld [vmem:[%s16409_s28 + $0x1838] sm:$0xff]  ;;  %v13511_v37 = vcombine.low %v976_v63, %v984_v0 }
 0x791   : > { %v9031_v12 = vpop.f32.mrb[72].mxu1  ;;  %v11175_v15 = vpop.f32.mrb[72].mxu0 }
 0x792   : > { %v9033_v16 = vpop.f32.mrb[73].mxu1  ;;  %v11832_v18 = vmul.f32 0.1, %v11707_v11  ;;  %v14535_v19 = vadd.f32 %v11175_v15, %v9031_v12  ;;  %v11177_v20 = vpop.f32.mrb[73].mxu0  ;;  %v11956_v26 = vmax.f32 %v11706_v6, %v11831_v10  ;;  %v988_v6 = vld [vmem:[%s16409_s28 + $0x1878] sm:$0xff]  ;;  %v13512_v15 = vcombine.high %v976_v63, %v984_v0 }
 0x793   : > { %v9034_v21 = vpop.f32.mrb[74].mxu1  ;;  %v11178_v1 = vpop.f32.mrb[74].mxu0  ;;  %v13519_v42 = vcombine.low %v980_v5, %v988_v6 }
 0x794   : > { %v9036_v24 = vpop.f32.mrb[75].mxu1  ;;  %v11957_v27 = vmax.f32 %v11707_v11, %v11832_v18  ;;  %v11576_v28 = vmul.f32 %v17903_v35, %v14535_v19  ;;  %v14536_v29 = vadd.f32 %v11178_v1, %v9034_v21  ;;  %v11180_v30 = vpop.f32.mrb[75].mxu0  ;;  %v13520_v18 = vcombine.high %v980_v5, %v988_v6 }
 0x796   : > { %9246 = vmatmul.mubr.bf16.gmra.mrb[180].mxu1 %v13463_v17  ;;  %v14216_v31 = vpack.c.bf16 %v11957_v27, %v11956_v26  ;;  %v11708_v32 = vadd.f32 %v17909_v41, %v11576_v28  ;;  %v11577_v33 = vmul.f32 %v17903_v35, %v14536_v29  ;;  %11390 = vmatmul.mubr.bf16.gmra.mrb[180].mxu0 %v13471_v22  ;;  %v992_v26 = vld [vmem:[%s16409_s28 + $0x1898] sm:$0xff] }
 0x797   : > { %9253 = vmatprep.mubr.bf16.mxu1 %v13480_v23  ;;  %11397 = vmatprep.mubr.bf16.mxu0 %v13488_v25  ;;  %v1000_v27 = vld [vmem:[%s16409_s28 + $0x18d8] sm:$0xff] }
 0x798   : > { %14454 = vst [vmem:[%s17764_s29 + $0x88] sm:$0xff] %v14216_v31   ;;  %v11833_v36 = vmul.f32 0.1, %v11708_v32  ;;  %v11709_v38 = vadd.f32 %v17909_v41, %v11577_v33  ;;  %v996_v31 = vld [vmem:[%s16409_s28 + $0x18b8] sm:$0xff]  ;;  %v13527_v0 = vcombine.low %v992_v26, %v1000_v27 }
 0x799   : > { %v9039_v39 = vpop.f32.mrb[76].mxu1  ;;  %v11183_v43 = vpop.f32.mrb[76].mxu0 }
 0x79a   : > { %v9041_v44 = vpop.f32.mrb[77].mxu1  ;;  %v11834_v46 = vmul.f32 0.1, %v11709_v38  ;;  %v14537_v47 = vadd.f32 %v11183_v43, %v9039_v39  ;;  %v11185_v48 = vpop.f32.mrb[77].mxu0  ;;  %v11958_v55 = vmax.f32 %v11708_v32, %v11833_v36  ;;  %v1004_v32 = vld [vmem:[%s16409_s28 + $0x18f8] sm:$0xff]  ;;  %v13528_v43 = vcombine.high %v992_v26, %v1000_v27 }
 0x79b   : > { %v9042_v49 = vpop.f32.mrb[78].mxu1  ;;  %v11186_v52 = vpop.f32.mrb[78].mxu0  ;;  %v13535_v6 = vcombine.low %v996_v31, %v1004_v32 }
 0x79c   : > { %v9044_v53 = vpop.f32.mrb[79].mxu1  ;;  %v11959_v56 = vmax.f32 %v11709_v38, %v11834_v46  ;;  %v11578_v57 = vmul.f32 %v17903_v35, %v14537_v47  ;;  %v14538_v58 = vadd.f32 %v11186_v52, %v9042_v49  ;;  %v11188_v59 = vpop.f32.mrb[79].mxu0  ;;  %v13536_v46 = vcombine.high %v996_v31, %v1004_v32 }
 0x79e   : > { %9254 = vmatmul.mubr.bf16.gmra.mrb[184].mxu1 %v13479_v45  ;;  %v14221_v60 = vpack.c.bf16 %v11959_v56, %v11958_v55  ;;  %v11710_v61 = vadd.f32 %v17909_v41, %v11578_v57  ;;  %v11579_v62 = vmul.f32 %v17903_v35, %v14538_v58  ;;  %11398 = vmatmul.mubr.bf16.gmra.mrb[184].mxu0 %v13487_v50  ;;  %v1008_v55 = vld [vmem:[%s16409_s28 + $0x1918] sm:$0xff] }
 0x79f   : > { %9261 = vmatprep.mubr.bf16.mxu1 %v13496_v51  ;;  %11405 = vmatprep.mubr.bf16.mxu0 %v13504_v54  ;;  %v1016_v56 = vld [vmem:[%s16409_s28 + $0x1958] sm:$0xff] }
 0x7a0   : > { %14455 = vst [vmem:[%s17764_s29 + $0x90] sm:$0xff] %v14221_v60   ;;  %v11835_v2 = vmul.f32 0.1, %v11710_v61  ;;  %v11711_v3 = vadd.f32 %v17909_v41, %v11579_v62  ;;  %v1012_v60 = vld [vmem:[%s16409_s28 + $0x1938] sm:$0xff]  ;;  %v13543_v27 = vcombine.low %v1008_v55, %v1016_v56 }
 0x7a1   : > { %v9047_v4 = vpop.f32.mrb[80].mxu1  ;;  %v11191_v7 = vpop.f32.mrb[80].mxu0 }
 0x7a2   : > { %v9049_v8 = vpop.f32.mrb[81].mxu1  ;;  %v11836_v10 = vmul.f32 0.1, %v11711_v3  ;;  %v14539_v11 = vadd.f32 %v11191_v7, %v9047_v4  ;;  %v11193_v12 = vpop.f32.mrb[81].mxu0  ;;  %v11960_v19 = vmax.f32 %v11710_v61, %v11835_v2  ;;  %v1020_v61 = vld [vmem:[%s16409_s28 + $0x1978] sm:$0xff]  ;;  %v13544_v7 = vcombine.high %v1008_v55, %v1016_v56 }
 0x7a3   : > { %v9050_v13 = vpop.f32.mrb[82].mxu1  ;;  %v11194_v16 = vpop.f32.mrb[82].mxu0  ;;  %v13551_v32 = vcombine.low %v1012_v60, %v1020_v61 }
 0x7a4   : > { %v9052_v17 = vpop.f32.mrb[83].mxu1  ;;  %v11961_v20 = vmax.f32 %v11711_v3, %v11836_v10  ;;  %v11580_v21 = vmul.f32 %v17903_v35, %v14539_v11  ;;  %v14540_v22 = vadd.f32 %v11194_v16, %v9050_v13  ;;  %v11196_v23 = vpop.f32.mrb[83].mxu0  ;;  %v13552_v10 = vcombine.high %v1012_v60, %v1020_v61 }
 0x7a6   : > { %9262 = vmatmul.mubr.bf16.gmra.mrb[188].mxu1 %v13495_v9  ;;  %v14226_v1 = vpack.c.bf16 %v11961_v20, %v11960_v19  ;;  %v11712_v24 = vadd.f32 %v17909_v41, %v11580_v21  ;;  %v11581_v25 = vmul.f32 %v17903_v35, %v14540_v22  ;;  %11406 = vmatmul.mubr.bf16.gmra.mrb[188].mxu0 %v13503_v14  ;;  %v1024_v19 = vld [vmem:[%s16409_s28 + $0x1998] sm:$0xff] }
 0x7a7   : > { %9269 = vmatprep.mubr.bf16.mxu1 %v13512_v15  ;;  %11413 = vmatprep.mubr.bf16.mxu0 %v13520_v18  ;;  %v1032_v20 = vld [vmem:[%s16409_s28 + $0x19d8] sm:$0xff] }
 0x7a8   : > { %14456 = vst [vmem:[%s17764_s29 + $0x98] sm:$0xff] %v14226_v1   ;;  %v11837_v28 = vmul.f32 0.1, %v11712_v24  ;;  %v11713_v29 = vadd.f32 %v17909_v41, %v11581_v25  ;;  %v1028_v1 = vld [vmem:[%s16409_s28 + $0x19b8] sm:$0xff]  ;;  %v13559_v56 = vcombine.low %v1024_v19, %v1032_v20 }
 0x7a9   : > { %v9055_v30 = vpop.f32.mrb[84].mxu1  ;;  %v11199_v33 = vpop.f32.mrb[84].mxu0 }
 0x7aa   : > { %v9057_v34 = vpop.f32.mrb[85].mxu1  ;;  %v11838_v36 = vmul.f32 0.1, %v11713_v29  ;;  %v14541_v38 = vadd.f32 %v11199_v33, %v9055_v30  ;;  %v11201_v39 = vpop.f32.mrb[85].mxu0  ;;  %v11962_v47 = vmax.f32 %v11712_v24, %v11837_v28  ;;  %v1036_v24 = vld [vmem:[%s16409_s28 + $0x19f8] sm:$0xff]  ;;  %v13560_v33 = vcombine.high %v1024_v19, %v1032_v20 }
 0x7ab   : > { %v9058_v40 = vpop.f32.mrb[86].mxu1  ;;  %v11202_v44 = vpop.f32.mrb[86].mxu0  ;;  %v13567_v61 = vcombine.low %v1028_v1, %v1036_v24 }
 0x7ac   : > { %v9060_v45 = vpop.f32.mrb[87].mxu1  ;;  %v11963_v48 = vmax.f32 %v11713_v29, %v11838_v36  ;;  %v11582_v49 = vmul.f32 %v17903_v35, %v14541_v38  ;;  %v14542_v50 = vadd.f32 %v11202_v44, %v9058_v40  ;;  %v11204_v51 = vpop.f32.mrb[87].mxu0  ;;  %v13568_v36 = vcombine.high %v1028_v1, %v1036_v24 }
 0x7ae   : > { %9270 = vmatmul.mubr.bf16.gmra.mrb[192].mxu1 %v13511_v37  ;;  %v14231_v52 = vpack.c.bf16 %v11963_v48, %v11962_v47  ;;  %v11714_v53 = vadd.f32 %v17909_v41, %v11582_v49  ;;  %v11583_v54 = vmul.f32 %v17903_v35, %v14542_v50  ;;  %11414 = vmatmul.mubr.bf16.gmra.mrb[192].mxu0 %v13519_v42  ;;  %v1040_v47 = vld [vmem:[%s16409_s28 + $0x1a18] sm:$0xff] }
 0x7af   : > { %9277 = vmatprep.mubr.bf16.mxu1 %v13528_v43  ;;  %11421 = vmatprep.mubr.bf16.mxu0 %v13536_v46  ;;  %v1048_v48 = vld [vmem:[%s16409_s28 + $0x1a58] sm:$0xff] }
 0x7b0   : > { %14457 = vst [vmem:[%s17764_s29 + $0xa0] sm:$0xff] %v14231_v52   ;;  %v11839_v57 = vmul.f32 0.1, %v11714_v53  ;;  %v11715_v58 = vadd.f32 %v17909_v41, %v11583_v54  ;;  %v1044_v52 = vld [vmem:[%s16409_s28 + $0x1a38] sm:$0xff]  ;;  %v13575_v20 = vcombine.low %v1040_v47, %v1048_v48 }
 0x7b1   : > { %v9063_v59 = vpop.f32.mrb[88].mxu1  ;;  %v11207_v62 = vpop.f32.mrb[88].mxu0 }
 0x7b2   : > { %v9065_v63 = vpop.f32.mrb[89].mxu1  ;;  %v11840_v2 = vmul.f32 0.1, %v11715_v58  ;;  %v14543_v3 = vadd.f32 %v11207_v62, %v9063_v59  ;;  %v11209_v4 = vpop.f32.mrb[89].mxu0  ;;  %v11964_v11 = vmax.f32 %v11714_v53, %v11839_v57  ;;  %v1052_v53 = vld [vmem:[%s16409_s28 + $0x1a78] sm:$0xff]  ;;  %v13576_v62 = vcombine.high %v1040_v47, %v1048_v48 }
 0x7b3   : > { %v9066_v5 = vpop.f32.mrb[90].mxu1  ;;  %v11210_v8 = vpop.f32.mrb[90].mxu0  ;;  %v13583_v24 = vcombine.low %v1044_v52, %v1052_v53 }
 0x7b4   : > { %v9068_v9 = vpop.f32.mrb[91].mxu1  ;;  %v11965_v12 = vmax.f32 %v11715_v58, %v11840_v2  ;;  %v11584_v13 = vmul.f32 %v17903_v35, %v14543_v3  ;;  %v14544_v14 = vadd.f32 %v11210_v8, %v9066_v5  ;;  %v11212_v15 = vpop.f32.mrb[91].mxu0  ;;  %v13584_v2 = vcombine.high %v1044_v52, %v1052_v53 }
 0x7b6   : > { %9278 = vmatmul.mubr.bf16.gmra.mrb[196].mxu1 %v13527_v0  ;;  %v14236_v16 = vpack.c.bf16 %v11965_v12, %v11964_v11  ;;  %v11716_v17 = vadd.f32 %v17909_v41, %v11584_v13  ;;  %v11585_v18 = vmul.f32 %v17903_v35, %v14544_v14  ;;  %11422 = vmatmul.mubr.bf16.gmra.mrb[196].mxu0 %v13535_v6  ;;  %v1056_v11 = vld [vmem:[%s16409_s28 + $0x1a98] sm:$0xff] }
 0x7b7   : > { %9285 = vmatprep.mubr.bf16.mxu1 %v13544_v7  ;;  %11429 = vmatprep.mubr.bf16.mxu0 %v13552_v10  ;;  %v1064_v12 = vld [vmem:[%s16409_s28 + $0x1ad8] sm:$0xff] }
 0x7b8   : > { %14458 = vst [vmem:[%s17764_s29 + $0xa8] sm:$0xff] %v14236_v16   ;;  %v11841_v21 = vmul.f32 0.1, %v11716_v17  ;;  %v11717_v22 = vadd.f32 %v17909_v41, %v11585_v18  ;;  %v1060_v16 = vld [vmem:[%s16409_s28 + $0x1ab8] sm:$0xff]  ;;  %v13591_v48 = vcombine.low %v1056_v11, %v1064_v12 }
 0x7b9   : > { %v9071_v23 = vpop.f32.mrb[92].mxu1  ;;  %v11215_v25 = vpop.f32.mrb[92].mxu0 }
 0x7ba   : > { %v9073_v26 = vpop.f32.mrb[93].mxu1  ;;  %v11842_v28 = vmul.f32 0.1, %v11717_v22  ;;  %v14545_v29 = vadd.f32 %v11215_v25, %v9071_v23  ;;  %v11217_v30 = vpop.f32.mrb[93].mxu0  ;;  %v11966_v38 = vmax.f32 %v11716_v17, %v11841_v21  ;;  %v1068_v17 = vld [vmem:[%s16409_s28 + $0x1af8] sm:$0xff]  ;;  %v13592_v25 = vcombine.high %v1056_v11, %v1064_v12 }
 0x7bb   : > { %v9074_v31 = vpop.f32.mrb[94].mxu1  ;;  %v11218_v34 = vpop.f32.mrb[94].mxu0  ;;  %v13599_v53 = vcombine.low %v1060_v16, %v1068_v17 }
 0x7bc   : > { %v9076_v37 = vpop.f32.mrb[95].mxu1  ;;  %v11967_v39 = vmax.f32 %v11717_v22, %v11842_v28  ;;  %v11586_v40 = vmul.f32 %v17903_v35, %v14545_v29  ;;  %v14546_v42 = vadd.f32 %v11218_v34, %v9074_v31  ;;  %v11220_v43 = vpop.f32.mrb[95].mxu0  ;;  %v13600_v28 = vcombine.high %v1060_v16, %v1068_v17 }
 0x7be   : > { %9286 = vmatmul.mubr.bf16.gmra.mrb[200].mxu1 %v13543_v27  ;;  %v14241_v44 = vpack.c.bf16 %v11967_v39, %v11966_v38  ;;  %v11718_v45 = vadd.f32 %v17909_v41, %v11586_v40  ;;  %v11587_v46 = vmul.f32 %v17903_v35, %v14546_v42  ;;  %11430 = vmatmul.mubr.bf16.gmra.mrb[200].mxu0 %v13551_v32  ;;  %v1072_v38 = vld [vmem:[%s16409_s28 + $0x1b18] sm:$0xff] }
 0x7bf   : > { %9293 = vmatprep.mubr.bf16.mxu1 %v13560_v33  ;;  %11437 = vmatprep.mubr.bf16.mxu0 %v13568_v36  ;;  %v1080_v39 = vld [vmem:[%s16409_s28 + $0x1b58] sm:$0xff] }
 0x7c0   : > { %14459 = vst [vmem:[%s17764_s29 + $0xb0] sm:$0xff] %v14241_v44   ;;  %v11843_v49 = vmul.f32 0.1, %v11718_v45  ;;  %v11719_v50 = vadd.f32 %v17909_v41, %v11587_v46  ;;  %v1076_v44 = vld [vmem:[%s16409_s28 + $0x1b38] sm:$0xff]  ;;  %v13607_v12 = vcombine.low %v1072_v38, %v1080_v39 }
 0x7c1   : > { %v9079_v51 = vpop.f32.mrb[96].mxu1  ;;  %v11223_v54 = vpop.f32.mrb[96].mxu0 }
 0x7c2   : > { %v9081_v55 = vpop.f32.mrb[97].mxu1  ;;  %v11844_v57 = vmul.f32 0.1, %v11719_v50  ;;  %v14547_v58 = vadd.f32 %v11223_v54, %v9079_v51  ;;  %v11225_v59 = vpop.f32.mrb[97].mxu0  ;;  %v11968_v3 = vmax.f32 %v11718_v45, %v11843_v49  ;;  %v1084_v45 = vld [vmem:[%s16409_s28 + $0x1b78] sm:$0xff]  ;;  %v13608_v54 = vcombine.high %v1072_v38, %v1080_v39 }
 0x7c3   : > { %v9082_v60 = vpop.f32.mrb[98].mxu1  ;;  %v11226_v63 = vpop.f32.mrb[98].mxu0  ;;  %v13615_v17 = vcombine.low %v1076_v44, %v1084_v45 }
 0x7c4   : > { %v9084_v0 = vpop.f32.mrb[99].mxu1  ;;  %v11969_v4 = vmax.f32 %v11719_v50, %v11844_v57  ;;  %v11588_v5 = vmul.f32 %v17903_v35, %v14547_v58  ;;  %v14548_v6 = vadd.f32 %v11226_v63, %v9082_v60  ;;  %v11228_v7 = vpop.f32.mrb[99].mxu0  ;;  %v13616_v57 = vcombine.high %v1076_v44, %v1084_v45 }
 0x7c6   : > { %9294 = vmatmul.mubr.bf16.gmra.mrb[204].mxu1 %v13559_v56  ;;  %v14246_v8 = vpack.c.bf16 %v11969_v4, %v11968_v3  ;;  %v11720_v9 = vadd.f32 %v17909_v41, %v11588_v5  ;;  %v11589_v10 = vmul.f32 %v17903_v35, %v14548_v6  ;;  %11438 = vmatmul.mubr.bf16.gmra.mrb[204].mxu0 %v13567_v61  ;;  %v1088_v3 = vld [vmem:[%s16409_s28 + $0x1b98] sm:$0xff] }
 0x7c7   : > { %9301 = vmatprep.mubr.bf16.mxu1 %v13576_v62  ;;  %11445 = vmatprep.mubr.bf16.mxu0 %v13584_v2  ;;  %v1096_v4 = vld [vmem:[%s16409_s28 + $0x1bd8] sm:$0xff] }
 0x7c8   : > { %14460 = vst [vmem:[%s17764_s29 + $0xb8] sm:$0xff] %v14246_v8   ;;  %v11845_v13 = vmul.f32 0.1, %v11720_v9  ;;  %v11721_v14 = vadd.f32 %v17909_v41, %v11589_v10  ;;  %v1092_v8 = vld [vmem:[%s16409_s28 + $0x1bb8] sm:$0xff]  ;;  %v13623_v39 = vcombine.low %v1088_v3, %v1096_v4 }
 0x7c9   : > { %v9087_v15 = vpop.f32.mrb[100].mxu1  ;;  %v11231_v18 = vpop.f32.mrb[100].mxu0 }
 0x7ca   : > { %v9089_v19 = vpop.f32.mrb[101].mxu1  ;;  %v11846_v21 = vmul.f32 0.1, %v11721_v14  ;;  %v14549_v22 = vadd.f32 %v11231_v18, %v9087_v15  ;;  %v11233_v23 = vpop.f32.mrb[101].mxu0  ;;  %v11970_v29 = vmax.f32 %v11720_v9, %v11845_v13  ;;  %v1100_v9 = vld [vmem:[%s16409_s28 + $0x1bf8] sm:$0xff]  ;;  %v13624_v18 = vcombine.high %v1088_v3, %v1096_v4 }
 0x7cb   : > { %v9090_v1 = vpop.f32.mrb[102].mxu1  ;;  %v11234_v26 = vpop.f32.mrb[102].mxu0  ;;  %v13631_v45 = vcombine.low %v1092_v8, %v1100_v9 }
 0x7cc   : > { %v9092_v27 = vpop.f32.mrb[103].mxu1  ;;  %v11971_v30 = vmax.f32 %v11721_v14, %v11846_v21  ;;  %v11590_v31 = vmul.f32 %v17903_v35, %v14549_v22  ;;  %v14550_v32 = vadd.f32 %v11234_v26, %v9090_v1  ;;  %v11236_v33 = vpop.f32.mrb[103].mxu0  ;;  %v13632_v21 = vcombine.high %v1092_v8, %v1100_v9 }
 0x7ce   : > { %9302 = vmatmul.mubr.bf16.gmra.mrb[208].mxu1 %v13575_v20  ;;  %v14251_v34 = vpack.c.bf16 %v11971_v30, %v11970_v29  ;;  %v11722_v37 = vadd.f32 %v17909_v41, %v11590_v31  ;;  %v11591_v36 = vmul.f32 %v17903_v35, %v14550_v32  ;;  %11446 = vmatmul.mubr.bf16.gmra.mrb[208].mxu0 %v13583_v24  ;;  %v1104_v29 = vld [vmem:[%s16409_s28 + $0x1c18] sm:$0xff] }
 0x7cf   : > { %9309 = vmatprep.mubr.bf16.mxu1 %v13592_v25  ;;  %11453 = vmatprep.mubr.bf16.mxu0 %v13600_v28  ;;  %v1112_v30 = vld [vmem:[%s16409_s28 + $0x1c58] sm:$0xff] }
 0x7d0   : > { %14461 = vst [vmem:[%s17764_s29 + $0xc0] sm:$0xff] %v14251_v34   ;;  %v11847_v40 = vmul.f32 0.1, %v11722_v37  ;;  %v11723_v42 = vadd.f32 %v17909_v41, %v11591_v36  ;;  %v1108_v34 = vld [vmem:[%s16409_s28 + $0x1c38] sm:$0xff]  ;;  %v13639_v4 = vcombine.low %v1104_v29, %v1112_v30 }
 0x7d1   : > { %v9095_v43 = vpop.f32.mrb[104].mxu1  ;;  %v11239_v46 = vpop.f32.mrb[104].mxu0 }
 0x7d2   : > { %v9097_v47 = vpop.f32.mrb[105].mxu1  ;;  %v11848_v49 = vmul.f32 0.1, %v11723_v42  ;;  %v14551_v50 = vadd.f32 %v11239_v46, %v9095_v43  ;;  %v11241_v51 = vpop.f32.mrb[105].mxu0  ;;  %v11972_v58 = vmax.f32 %v11722_v37, %v11847_v40  ;;  %v1116_v37 = vld [vmem:[%s16409_s28 + $0x1c78] sm:$0xff]  ;;  %v13640_v46 = vcombine.high %v1104_v29, %v1112_v30 }
 0x7d3   : > { %v9098_v52 = vpop.f32.mrb[106].mxu1  ;;  %v11242_v55 = vpop.f32.mrb[106].mxu0  ;;  %v13647_v9 = vcombine.low %v1108_v34, %v1116_v37 }
 0x7d4   : > { %v9100_v56 = vpop.f32.mrb[107].mxu1  ;;  %v11973_v59 = vmax.f32 %v11723_v42, %v11848_v49  ;;  %v11592_v60 = vmul.f32 %v17903_v35, %v14551_v50  ;;  %v14552_v61 = vadd.f32 %v11242_v55, %v9098_v52  ;;  %v11244_v62 = vpop.f32.mrb[107].mxu0  ;;  %v13648_v49 = vcombine.high %v1108_v34, %v1116_v37 }
 0x7d6   : > { %9310 = vmatmul.mubr.bf16.gmra.mrb[212].mxu1 %v13591_v48  ;;  %v14256_v63 = vpack.c.bf16 %v11973_v59, %v11972_v58  ;;  %v11724_v0 = vadd.f32 %v17909_v41, %v11592_v60  ;;  %v11593_v2 = vmul.f32 %v17903_v35, %v14552_v61  ;;  %11454 = vmatmul.mubr.bf16.gmra.mrb[212].mxu0 %v13599_v53  ;;  %v1120_v58 = vld [vmem:[%s16409_s28 + $0x1c98] sm:$0xff] }
 0x7d7   : > { %9317 = vmatprep.mubr.bf16.mxu1 %v13608_v54  ;;  %11461 = vmatprep.mubr.bf16.mxu0 %v13616_v57  ;;  %v1128_v59 = vld [vmem:[%s16409_s28 + $0x1cd8] sm:$0xff] }
 0x7d8   : > { %14462 = vst [vmem:[%s17764_s29 + $0xc8] sm:$0xff] %v14256_v63   ;;  %v11849_v5 = vmul.f32 0.1, %v11724_v0  ;;  %v11725_v6 = vadd.f32 %v17909_v41, %v11593_v2  ;;  %v1124_v63 = vld [vmem:[%s16409_s28 + $0x1cb8] sm:$0xff]  ;;  %v13655_v30 = vcombine.low %v1120_v58, %v1128_v59 }
 0x7d9   : > { %v9103_v7 = vpop.f32.mrb[108].mxu1  ;;  %v11247_v10 = vpop.f32.mrb[108].mxu0 }
 0x7da   : > { %v9105_v11 = vpop.f32.mrb[109].mxu1  ;;  %v11850_v13 = vmul.f32 0.1, %v11725_v6  ;;  %v14553_v14 = vadd.f32 %v11247_v10, %v9103_v7  ;;  %v11249_v15 = vpop.f32.mrb[109].mxu0  ;;  %v11974_v22 = vmax.f32 %v11724_v0, %v11849_v5  ;;  %v1132_v0 = vld [vmem:[%s16409_s28 + $0x1cf8] sm:$0xff]  ;;  %v13656_v10 = vcombine.high %v1120_v58, %v1128_v59 }
 0x7db   : > { %v9106_v16 = vpop.f32.mrb[110].mxu1  ;;  %v11250_v19 = vpop.f32.mrb[110].mxu0  ;;  %v13663_v37 = vcombine.low %v1124_v63, %v1132_v0 }
 0x7dc   : > { %v9108_v20 = vpop.f32.mrb[111].mxu1  ;;  %v11975_v23 = vmax.f32 %v11725_v6, %v11850_v13  ;;  %v11594_v1 = vmul.f32 %v17903_v35, %v14553_v14  ;;  %v14554_v24 = vadd.f32 %v11250_v19, %v9106_v16  ;;  %v11252_v25 = vpop.f32.mrb[111].mxu0  ;;  %v13664_v13 = vcombine.high %v1124_v63, %v1132_v0 }
 0x7de   : > { %9318 = vmatmul.mubr.bf16.gmra.mrb[216].mxu1 %v13607_v12  ;;  %v14261_v26 = vpack.c.bf16 %v11975_v23, %v11974_v22  ;;  %v11726_v27 = vadd.f32 %v17909_v41, %v11594_v1  ;;  %v11595_v28 = vmul.f32 %v17903_v35, %v14554_v24  ;;  %11462 = vmatmul.mubr.bf16.gmra.mrb[216].mxu0 %v13615_v17  ;;  %v1136_v22 = vld [vmem:[%s16409_s28 + $0x1d18] sm:$0xff] }
 0x7df   : > { %9325 = vmatprep.mubr.bf16.mxu1 %v13624_v18  ;;  %11469 = vmatprep.mubr.bf16.mxu0 %v13632_v21  ;;  %v1144_v23 = vld [vmem:[%s16409_s28 + $0x1d58] sm:$0xff] }
 0x7e0   : > { %14463 = vst [vmem:[%s17764_s29 + $0xd0] sm:$0xff] %v14261_v26   ;;  %v11851_v31 = vmul.f32 0.1, %v11726_v27  ;;  %v11727_v32 = vadd.f32 %v17909_v41, %v11595_v28  ;;  %v1140_v26 = vld [vmem:[%s16409_s28 + $0x1d38] sm:$0xff]  ;;  %v13671_v59 = vcombine.low %v1136_v22, %v1144_v23 }
 0x7e1   : > { %v9111_v33 = vpop.f32.mrb[112].mxu1  ;;  %v11255_v36 = vpop.f32.mrb[112].mxu0 }
 0x7e2   : > { %v9113_v38 = vpop.f32.mrb[113].mxu1  ;;  %v11852_v40 = vmul.f32 0.1, %v11727_v32  ;;  %v14555_v42 = vadd.f32 %v11255_v36, %v9111_v33  ;;  %v11257_v43 = vpop.f32.mrb[113].mxu0  ;;  %v11976_v50 = vmax.f32 %v11726_v27, %v11851_v31  ;;  %v1148_v27 = vld [vmem:[%s16409_s28 + $0x1d78] sm:$0xff]  ;;  %v13672_v36 = vcombine.high %v1136_v22, %v1144_v23 }
 0x7e3   : > { %v9114_v44 = vpop.f32.mrb[114].mxu1  ;;  %v11258_v47 = vpop.f32.mrb[114].mxu0  ;;  %v13679_v0 = vcombine.low %v1140_v26, %v1148_v27 }
 0x7e4   : > { %v9116_v48 = vpop.f32.mrb[115].mxu1  ;;  %v11977_v51 = vmax.f32 %v11727_v32, %v11852_v40  ;;  %v11596_v52 = vmul.f32 %v17903_v35, %v14555_v42  ;;  %v14556_v53 = vadd.f32 %v11258_v47, %v9114_v44  ;;  %v11260_v54 = vpop.f32.mrb[115].mxu0  ;;  %v13680_v40 = vcombine.high %v1140_v26, %v1148_v27 }
 0x7e6   : > { %9326 = vmatmul.mubr.bf16.gmra.mrb[220].mxu1 %v13623_v39  ;;  %v14266_v55 = vpack.c.bf16 %v11977_v51, %v11976_v50  ;;  %v11728_v56 = vadd.f32 %v17909_v41, %v11596_v52  ;;  %v11597_v57 = vmul.f32 %v17903_v35, %v14556_v53  ;;  %11470 = vmatmul.mubr.bf16.gmra.mrb[220].mxu0 %v13631_v45  ;;  %v1152_v50 = vld [vmem:[%s16409_s28 + $0x1d98] sm:$0xff] }
 0x7e7   : > { %9333 = vmatprep.mubr.bf16.mxu1 %v13640_v46  ;;  %11477 = vmatprep.mubr.bf16.mxu0 %v13648_v49  ;;  %v1160_v51 = vld [vmem:[%s16409_s28 + $0x1dd8] sm:$0xff] }
 0x7e8   : > { %14464 = vst [vmem:[%s17764_s29 + $0xd8] sm:$0xff] %v14266_v55   ;;  %v11853_v60 = vmul.f32 0.1, %v11728_v56  ;;  %v11729_v61 = vadd.f32 %v17909_v41, %v11597_v57  ;;  %v1156_v55 = vld [vmem:[%s16409_s28 + $0x1db8] sm:$0xff]  ;;  %v13687_v23 = vcombine.low %v1152_v50, %v1160_v51 }
 0x7e9   : > { %v9119_v62 = vpop.f32.mrb[116].mxu1  ;;  %v11263_v2 = vpop.f32.mrb[116].mxu0 }
 0x7ea   : > { %v9121_v3 = vpop.f32.mrb[117].mxu1  ;;  %v11854_v5 = vmul.f32 0.1, %v11729_v61  ;;  %v14557_v6 = vadd.f32 %v11263_v2, %v9119_v62  ;;  %v11265_v7 = vpop.f32.mrb[117].mxu0  ;;  %v11978_v14 = vmax.f32 %v11728_v56, %v11853_v60  ;;  %v1164_v56 = vld [vmem:[%s16409_s28 + $0x1df8] sm:$0xff]  ;;  %v13688_v2 = vcombine.high %v1152_v50, %v1160_v51 }
 0x7eb   : > { %v9122_v8 = vpop.f32.mrb[118].mxu1  ;;  %v11266_v11 = vpop.f32.mrb[118].mxu0 }
 0x7ec   : > { %v9124_v12 = vpop.f32.mrb[119].mxu1  ;;  %v11979_v15 = vmax.f32 %v11729_v61, %v11854_v5  ;;  %v11598_v16 = vmul.f32 %v17903_v35, %v14557_v6  ;;  %v14558_v17 = vadd.f32 %v11266_v11, %v9122_v8  ;;  %v11268_v18 = vpop.f32.mrb[119].mxu0  ;;  %v13696_v5 = vcombine.high %v1156_v55, %v1164_v56 }
 0x7ee   : > { %9334 = vmatmul.mubr.bf16.gmra.mrb[224].mxu1 %v13639_v4  ;;  %v14271_v19 = vpack.c.bf16 %v11979_v15, %v11978_v14  ;;  %v11730_v20 = vadd.f32 %v17909_v41, %v11598_v16  ;;  %v11599_v21 = vmul.f32 %v17903_v35, %v14558_v17  ;;  %11478 = vmatmul.mubr.bf16.gmra.mrb[224].mxu0 %v13647_v9  ;;  %v1168_v14 = vld [vmem:[%s16409_s28 + $0x1e18] sm:$0xff] }
 0x7ef   : > { %9341 = vmatprep.mubr.bf16.mxu1 %v13656_v10  ;;  %11485 = vmatprep.mubr.bf16.mxu0 %v13664_v13  ;;  %v1176_v15 = vld [vmem:[%s16409_s28 + $0x1e58] sm:$0xff] }
 0x7f0   : > { %14465 = vst [vmem:[%s17764_s29 + $0xe0] sm:$0xff] %v14271_v19   ;;  %v11855_v1 = vmul.f32 0.1, %v11730_v20  ;;  %v11731_v24 = vadd.f32 %v17909_v41, %v11599_v21  ;;  %v1172_v19 = vld [vmem:[%s16409_s28 + $0x1e38] sm:$0xff]  ;;  %v13704_v27 = vcombine.high %v1168_v14, %v1176_v15  ;;  %v13703_v51 = vcombine.low %v1168_v14, %v1176_v15 }
 0x7f1   : > { %v9127_v25 = vpop.f32.mrb[120].mxu1  ;;  %v11271_v28 = vpop.f32.mrb[120].mxu0 }
 0x7f2   : > { %v9129_v29 = vpop.f32.mrb[121].mxu1  ;;  %v11856_v31 = vmul.f32 0.1, %v11731_v24  ;;  %v14559_v32 = vadd.f32 %v11271_v28, %v9127_v25  ;;  %v11273_v33 = vpop.f32.mrb[121].mxu0  ;;  %v11980_v42 = vmax.f32 %v11730_v20, %v11855_v1  ;;  %v1180_v20 = vld [vmem:[%s16409_s28 + $0x1e78] sm:$0xff] }
 0x7f3   : > { %v9130_v34 = vpop.f32.mrb[122].mxu1  ;;  %v11274_v38 = vpop.f32.mrb[122].mxu0 }
 0x7f4   : > { %v9132_v39 = vpop.f32.mrb[123].mxu1  ;;  %v11981_v43 = vmax.f32 %v11731_v24, %v11856_v31  ;;  %v11600_v44 = vmul.f32 %v17903_v35, %v14559_v32  ;;  %v14560_v45 = vadd.f32 %v11274_v38, %v9130_v34  ;;  %v11276_v46 = vpop.f32.mrb[123].mxu0  ;;  %v18057_v32 = vld [vmem:[%s18239_s2] ss:$0 sm:$0xff] }
 0x7f5   : > { %v18063_v38 = vld [vmem:[%s18240_s3] ss:$0 sm:$0xff] }
 0x7f6   : > { %9342 = vmatmul.mubr.bf16.gmra.mrb[228].mxu1 %v13655_v30  ;;  %v14276_v47 = vpack.c.bf16 %v11981_v43, %v11980_v42  ;;  %v11732_v48 = vadd.f32 %v17909_v41, %v11600_v44  ;;  %v11601_v49 = vmul.f32 %v17903_v35, %v14560_v45  ;;  %11486 = vmatmul.mubr.bf16.gmra.mrb[228].mxu0 %v13663_v37  ;;  %v1184_v42 = vld [vmem:[%s16409_s28 + $0x1e98] sm:$0xff] }
 0x7f7   : > { %9349 = vmatprep.mubr.bf16.mxu1 %v13672_v36  ;;  %11493 = vmatprep.mubr.bf16.mxu0 %v13680_v40  ;;  %v13712_v30 = vcombine.high %v1172_v19, %v1180_v20  ;;  %v1192_v43 = vld [vmem:[%s16409_s28 + $0x1ed8] sm:$0xff] }
 0x7f8   : > { %14466 = vst [vmem:[%s17764_s29 + $0xe8] sm:$0xff] %v14276_v47   ;;  %v11857_v52 = vmul.f32 0.1, %v11732_v48  ;;  %v11733_v53 = vadd.f32 %v17909_v41, %v11601_v49  ;;  %v1188_v47 = vld [vmem:[%s16409_s28 + $0x1eb8] sm:$0xff] }
 0x7f9   : > { %v9135_v54 = vpop.f32.mrb[124].mxu1  ;;  %v11279_v57 = vpop.f32.mrb[124].mxu0 }
 0x7fa   : > { %v9137_v58 = vpop.f32.mrb[125].mxu1  ;;  %v11858_v60 = vmul.f32 0.1, %v11733_v53  ;;  %v14561_v61 = vadd.f32 %v11279_v57, %v9135_v54  ;;  %v11281_v62 = vpop.f32.mrb[125].mxu0  ;;  %v11982_v6 = vmax.f32 %v11732_v48, %v11857_v52  ;;  %v1196_v48 = vld [vmem:[%s16409_s28 + $0x1ef8] sm:$0xff]  ;;  %v13720_v57 = vcombine.high %v1184_v42, %v1192_v43 }
 0x7fb   : > { %v9138_v63 = vpop.f32.mrb[126].mxu1  ;;  %v11282_v3 = vpop.f32.mrb[126].mxu0 }
 0x7fc   : > { %v9140_v4 = vpop.f32.mrb[127].mxu1  ;;  %v11983_v7 = vmax.f32 %v11733_v53, %v11858_v60  ;;  %v11602_v8 = vmul.f32 %v17903_v35, %v14561_v61  ;;  %v14562_v9 = vadd.f32 %v11282_v3, %v9138_v63  ;;  %v11284_v10 = vpop.f32.mrb[127].mxu0  ;;  %v13728_v60 = vcombine.high %v1188_v47, %v1196_v48 }
 0x7fd   : > { %v1204_v10 = vld [vmem:[%s16409_s28 + $0x1f38] sm:$0xff] }
 0x7fe   : > { %9350 = vmatmul.mubr.bf16.gmra.mrb[232].mxu1 %v13671_v59  ;;  %v14281_v11 = vpack.c.bf16 %v11983_v7, %v11982_v6  ;;  %v11734_v12 = vadd.f32 %v17909_v41, %v11602_v8  ;;  %v11603_v13 = vmul.f32 %v17903_v35, %v14562_v9  ;;  %11494 = vmatmul.mubr.bf16.gmra.mrb[232].mxu0 %v13679_v0  ;;  %v1200_v6 = vld [vmem:[%s16409_s28 + $0x1f18] sm:$0xff] }
 0x7ff   : > { %9357 = vmatprep.mubr.bf16.mxu1 %v13688_v2  ;;  %11501 = vmatprep.mubr.bf16.mxu0 %v13696_v5  ;;  %v13695_v35 = vcombine.low %v1156_v55, %v1164_v56  ;;  %v13711_v56 = vcombine.low %v1172_v19, %v1180_v20  ;;  %v13736_v19 = vcombine.high %v1200_v6, %v1200_v6 }
 0x800   : > { %14467 = vst [vmem:[%s17764_s29 + $0xf0] sm:$0xff] %v14281_v11   ;;  %v11859_v16 = vmul.f32 0.1, %v11734_v12  ;;  %v11735_v17 = vadd.f32 %v17909_v41, %v11603_v13  ;;  %v13719_v13 = vcombine.low %v1184_v42, %v1192_v43  ;;  %v13743_v42 = vcombine.low %v1204_v10, %v1204_v10 }
 0x801   : > { %v9143_v18 = vpop.f32.mrb[128].mxu1  ;;  %v11287_v21 = vpop.f32.mrb[128].mxu0 }
 0x802   : > { %v9145_v22 = vpop.f32.mrb[129].mxu1  ;;  %v11860_v1 = vmul.f32 0.1, %v11735_v17  ;;  %v14563_v24 = vadd.f32 %v11287_v21, %v9143_v18  ;;  %v11289_v25 = vpop.f32.mrb[129].mxu0  ;;  %v11984_v31 = vmax.f32 %v11734_v12, %v11859_v16  ;;  %v13727_v18 = vcombine.low %v1188_v47, %v1196_v48 }
 0x803   : > { %v9146_v26 = vpop.f32.mrb[130].mxu1  ;;  %v11290_v28 = vpop.f32.mrb[130].mxu0  ;;  %v13744_v22 = vcombine.high %v1204_v10, %v1204_v10 }
 0x804   : > { %v9148_v29 = vpop.f32.mrb[131].mxu1  ;;  %v11985_v41 = vmax.f32 %v11735_v17, %v11860_v1  ;;  %v11604_v33 = vmul.f32 %v18057_v32, %v14563_v24  ;;  %v14564_v34 = vadd.f32 %v11290_v28, %v9146_v26  ;;  %v11292_v37 = vpop.f32.mrb[131].mxu0 }
 0x806   : > { %9358 = vmatmul.mubr.bf16.gmra.mrb[236].mxu1 %v13687_v23  ;;  %v14286_v36 = vpack.c.bf16 %v11985_v41, %v11984_v31  ;;  %v11736_v39 = vadd.f32 %v18063_v38, %v11604_v33  ;;  %v11605_v40 = vmul.f32 %v18057_v32, %v14564_v34  ;;  %11502 = vmatmul.mubr.bf16.gmra.mrb[236].mxu0 %v13695_v35 }
 0x807   : > { %9365 = vmatprep.mubr.bf16.mxu1 %v13704_v27  ;;  %11509 = vmatprep.mubr.bf16.mxu0 %v13712_v30  ;;  %v13735_v34 = vcombine.low %v1200_v6, %v1200_v6 }
 0x808   : > { %14468 = vst [vmem:[%s17764_s29 + $0xf8] sm:$0xff] %v14286_v36   ;;  %v11861_v44 = vmul.f32 0.1, %v11736_v39  ;;  %v11737_v45 = vadd.f32 %v18063_v38, %v11605_v40 }
 0x809   : > { %v9151_v46 = vpop.f32.mrb[132].mxu1  ;;  %v11295_v49 = vpop.f32.mrb[132].mxu0 }
 0x80a   : > { %v9153_v50 = vpop.f32.mrb[133].mxu1  ;;  %v11862_v52 = vmul.f32 0.1, %v11737_v45  ;;  %v14565_v53 = vadd.f32 %v11295_v49, %v9151_v46  ;;  %v11297_v54 = vpop.f32.mrb[133].mxu0  ;;  %v11986_v61 = vmax.f32 %v11736_v39, %v11861_v44 }
 0x80b   : > { %v9154_v55 = vpop.f32.mrb[134].mxu1  ;;  %v11298_v58 = vpop.f32.mrb[134].mxu0 }
 0x80c   : > { %v9156_v59 = vpop.f32.mrb[135].mxu1  ;;  %v11987_v62 = vmax.f32 %v11737_v45, %v11862_v52  ;;  %v11606_v63 = vmul.f32 %v18057_v32, %v14565_v53  ;;  %v14566_v0 = vadd.f32 %v11298_v58, %v9154_v55  ;;  %v11300_v2 = vpop.f32.mrb[135].mxu0 }
 0x80e   : > { %9366 = vmatmul.mubr.bf16.gmra.mrb[240].mxu1 %v13703_v51  ;;  %v14291_v3 = vpack.c.bf16 %v11987_v62, %v11986_v61  ;;  %v11738_v4 = vadd.f32 %v18063_v38, %v11606_v63  ;;  %v11607_v5 = vmul.f32 %v18057_v32, %v14566_v0  ;;  %11510 = vmatmul.mubr.bf16.gmra.mrb[240].mxu0 %v13711_v56 }
 0x80f   : > { %9373 = vmatprep.mubr.bf16.mxu1 %v13720_v57  ;;  %11517 = vmatprep.mubr.bf16.mxu0 %v13728_v60 }
 0x810   : > { %14469 = vst [vmem:[%s17764_s29 + $0x100] sm:$0xff] %v14291_v3   ;;  %v11863_v7 = vmul.f32 0.1, %v11738_v4  ;;  %v11739_v8 = vadd.f32 %v18063_v38, %v11607_v5 }
 0x811   : > { %v9159_v9 = vpop.f32.mrb[136].mxu1  ;;  %v11303_v11 = vpop.f32.mrb[136].mxu0 }
 0x812   : > { %v9161_v12 = vpop.f32.mrb[137].mxu1  ;;  %v11864_v14 = vmul.f32 0.1, %v11739_v8  ;;  %v14567_v15 = vadd.f32 %v11303_v11, %v9159_v9  ;;  %v11305_v16 = vpop.f32.mrb[137].mxu0  ;;  %v11988_v23 = vmax.f32 %v11738_v4, %v11863_v7 }
 0x813   : > { %v9162_v17 = vpop.f32.mrb[138].mxu1  ;;  %v11306_v20 = vpop.f32.mrb[138].mxu0 }
 0x814   : > { %v9164_v21 = vpop.f32.mrb[139].mxu1  ;;  %v11989_v1 = vmax.f32 %v11739_v8, %v11864_v14  ;;  %v11608_v24 = vmul.f32 %v18057_v32, %v14567_v15  ;;  %v14568_v25 = vadd.f32 %v11306_v20, %v9162_v17  ;;  %v11308_v26 = vpop.f32.mrb[139].mxu0 }
 0x816   : > { %9374 = vmatmul.mubr.bf16.gmra.mrb[244].mxu1 %v13719_v13  ;;  %v14296_v35 = vpack.c.bf16 %v11989_v1, %v11988_v23  ;;  %v11740_v27 = vadd.f32 %v18063_v38, %v11608_v24  ;;  %v11609_v28 = vmul.f32 %v18057_v32, %v14568_v25  ;;  %11518 = vmatmul.mubr.bf16.gmra.mrb[244].mxu0 %v13727_v18 }
 0x817   : > { %9381 = vmatprep.mubr.bf16.mxu1 %v13736_v19  ;;  %11525 = vmatprep.mubr.bf16.mxu0 %v13744_v22 }
 0x818   : > { %14470 = vst [vmem:[%s17764_s29 + $0x108] sm:$0xff] %v14296_v35   ;;  %v11865_v29 = vmul.f32 0.1, %v11740_v27  ;;  %v11741_v30 = vadd.f32 %v18063_v38, %v11609_v28 }
 0x819   : > { %v9167_v31 = vpop.f32.mrb[140].mxu1  ;;  %v11311_v41 = vpop.f32.mrb[140].mxu0 }
 0x81a   : > { %v9169_v33 = vpop.f32.mrb[141].mxu1  ;;  %v11866_v37 = vmul.f32 0.1, %v11741_v30  ;;  %v14569_v36 = vadd.f32 %v11311_v41, %v9167_v31  ;;  %v11313_v39 = vpop.f32.mrb[141].mxu0  ;;  %v11990_v45 = vmax.f32 %v11740_v27, %v11865_v29 }
 0x81b   : > { %v9170_v40 = vpop.f32.mrb[142].mxu1  ;;  %v11314_v43 = vpop.f32.mrb[142].mxu0 }
 0x81c   : > { %v9172_v44 = vpop.f32.mrb[143].mxu1  ;;  %v11991_v46 = vmax.f32 %v11741_v30, %v11866_v37  ;;  %v11610_v47 = vmul.f32 %v18057_v32, %v14569_v36  ;;  %v14570_v48 = vadd.f32 %v11314_v43, %v9170_v40  ;;  %v11316_v49 = vpop.f32.mrb[143].mxu0 }
 0x81e   : > { %9382 = vmatmul.mubr.bf16.gmra.mrb[248].mxu1 %v13735_v34  ;;  %v14301_v50 = vpack.c.bf16 %v11991_v46, %v11990_v45  ;;  %v11742_v51 = vadd.f32 %v18063_v38, %v11610_v47  ;;  %v11611_v52 = vmul.f32 %v18057_v32, %v14570_v48  ;;  %11526 = vmatmul.mubr.bf16.gmra.mrb[248].mxu0 %v13743_v42 }
 0x820   : > { %14471 = vst [vmem:[%s17764_s29 + $0x110] sm:$0xff] %v14301_v50   ;;  %v11867_v53 = vmul.f32 0.1, %v11742_v51  ;;  %v11743_v54 = vadd.f32 %v18063_v38, %v11611_v52 }
 0x821   : > { %v9175_v55 = vpop.f32.mrb[144].mxu1  ;;  %v11319_v56 = vpop.f32.mrb[144].mxu0 }
 0x822   : > { %v9177_v57 = vpop.f32.mrb[145].mxu1  ;;  %v11868_v58 = vmul.f32 0.1, %v11743_v54  ;;  %v14571_v59 = vadd.f32 %v11319_v56, %v9175_v55  ;;  %v11321_v60 = vpop.f32.mrb[145].mxu0  ;;  %v11992_v0 = vmax.f32 %v11742_v51, %v11867_v53 }
 0x823   : > { %v9178_v61 = vpop.f32.mrb[146].mxu1  ;;  %v11322_v62 = vpop.f32.mrb[146].mxu0 }
 0x824   : > { %v9180_v63 = vpop.f32.mrb[147].mxu1  ;;  %v11993_v2 = vmax.f32 %v11743_v54, %v11868_v58  ;;  %v11612_v3 = vmul.f32 %v18057_v32, %v14571_v59  ;;  %v14572_v4 = vadd.f32 %v11322_v62, %v9178_v61  ;;  %v11324_v5 = vpop.f32.mrb[147].mxu0 }
 0x826   : > { %v14306_v6 = vpack.c.bf16 %v11993_v2, %v11992_v0  ;;  %v11744_v7 = vadd.f32 %v18063_v38, %v11612_v3  ;;  %v11613_v8 = vmul.f32 %v18057_v32, %v14572_v4 }
 0x828   : > { %14472 = vst [vmem:[%s17764_s29 + $0x118] sm:$0xff] %v14306_v6   ;;  %v11869_v9 = vmul.f32 0.1, %v11744_v7  ;;  %v11745_v10 = vadd.f32 %v18063_v38, %v11613_v8 }
 0x829   : > { %v9183_v11 = vpop.f32.mrb[148].mxu1  ;;  %v11327_v12 = vpop.f32.mrb[148].mxu0 }
 0x82a   : > { %v9185_v13 = vpop.f32.mrb[149].mxu1  ;;  %v11870_v14 = vmul.f32 0.1, %v11745_v10  ;;  %v14573_v15 = vadd.f32 %v11327_v12, %v9183_v11  ;;  %v11329_v16 = vpop.f32.mrb[149].mxu0  ;;  %v11994_v20 = vmax.f32 %v11744_v7, %v11869_v9 }
 0x82b   : > { %v9186_v17 = vpop.f32.mrb[150].mxu1  ;;  %v11330_v18 = vpop.f32.mrb[150].mxu0 }
 0x82c   : > { %v9188_v19 = vpop.f32.mrb[151].mxu1  ;;  %v11995_v21 = vmax.f32 %v11745_v10, %v11870_v14  ;;  %v11614_v22 = vmul.f32 %v18057_v32, %v14573_v15  ;;  %v14574_v23 = vadd.f32 %v11330_v18, %v9186_v17  ;;  %v11332_v1 = vpop.f32.mrb[151].mxu0 }
 0x82e   : > { %v14311_v24 = vpack.c.bf16 %v11995_v21, %v11994_v20  ;;  %v11746_v25 = vadd.f32 %v18063_v38, %v11614_v22  ;;  %v11615_v26 = vmul.f32 %v18057_v32, %v14574_v23 }
 0x830   : > { %14473 = vst [vmem:[%s17764_s29 + $0x120] sm:$0xff] %v14311_v24   ;;  %v11871_v35 = vmul.f32 0.1, %v11746_v25  ;;  %v11747_v27 = vadd.f32 %v18063_v38, %v11615_v26 }
 0x831   : > { %v9191_v28 = vpop.f32.mrb[152].mxu1  ;;  %v11335_v29 = vpop.f32.mrb[152].mxu0 }
 0x832   : > { %v9193_v30 = vpop.f32.mrb[153].mxu1  ;;  %v11872_v31 = vmul.f32 0.1, %v11747_v27  ;;  %v14575_v41 = vadd.f32 %v11335_v29, %v9191_v28  ;;  %v11337_v33 = vpop.f32.mrb[153].mxu0  ;;  %v11996_v39 = vmax.f32 %v11746_v25, %v11871_v35 }
 0x833   : > { %v9194_v34 = vpop.f32.mrb[154].mxu1  ;;  %v11338_v37 = vpop.f32.mrb[154].mxu0 }
 0x834   : > { %v9196_v36 = vpop.f32.mrb[155].mxu1  ;;  %v11997_v40 = vmax.f32 %v11747_v27, %v11872_v31  ;;  %v11616_v42 = vmul.f32 %v18057_v32, %v14575_v41  ;;  %v14576_v43 = vadd.f32 %v11338_v37, %v9194_v34  ;;  %v11340_v44 = vpop.f32.mrb[155].mxu0 }
 0x836   : > { %v14316_v45 = vpack.c.bf16 %v11997_v40, %v11996_v39  ;;  %v11748_v46 = vadd.f32 %v18063_v38, %v11616_v42  ;;  %v11617_v47 = vmul.f32 %v18057_v32, %v14576_v43 }
 0x838   : > { %14474 = vst [vmem:[%s17764_s29 + $0x128] sm:$0xff] %v14316_v45   ;;  %v11873_v48 = vmul.f32 0.1, %v11748_v46  ;;  %v11749_v49 = vadd.f32 %v18063_v38, %v11617_v47 }
 0x839   : > { %v9199_v50 = vpop.f32.mrb[156].mxu1  ;;  %v11343_v51 = vpop.f32.mrb[156].mxu0 }
 0x83a   : > { %v9201_v52 = vpop.f32.mrb[157].mxu1  ;;  %v11874_v53 = vmul.f32 0.1, %v11749_v49  ;;  %v14577_v54 = vadd.f32 %v11343_v51, %v9199_v50  ;;  %v11345_v55 = vpop.f32.mrb[157].mxu0  ;;  %v11998_v59 = vmax.f32 %v11748_v46, %v11873_v48 }
 0x83b   : > { %v9202_v56 = vpop.f32.mrb[158].mxu1  ;;  %v11346_v57 = vpop.f32.mrb[158].mxu0 }
 0x83c   : > { %v9204_v58 = vpop.f32.mrb[159].mxu1  ;;  %v11999_v60 = vmax.f32 %v11749_v49, %v11874_v53  ;;  %v11618_v61 = vmul.f32 %v18057_v32, %v14577_v54  ;;  %v14578_v62 = vadd.f32 %v11346_v57, %v9202_v56  ;;  %v11348_v63 = vpop.f32.mrb[159].mxu0 }
 0x83e   : > { %v14321_v0 = vpack.c.bf16 %v11999_v60, %v11998_v59  ;;  %v11750_v2 = vadd.f32 %v18063_v38, %v11618_v61  ;;  %v11619_v3 = vmul.f32 %v18057_v32, %v14578_v62 }
 0x840   : > { %14475 = vst [vmem:[%s17764_s29 + $0x130] sm:$0xff] %v14321_v0   ;;  %v11875_v4 = vmul.f32 0.1, %v11750_v2  ;;  %v11751_v5 = vadd.f32 %v18063_v38, %v11619_v3 }
 0x841   : > { %v9207_v6 = vpop.f32.mrb[160].mxu1  ;;  %v11351_v7 = vpop.f32.mrb[160].mxu0 }
 0x842   : > { %v9209_v8 = vpop.f32.mrb[161].mxu1  ;;  %v11876_v9 = vmul.f32 0.1, %v11751_v5  ;;  %v14579_v10 = vadd.f32 %v11351_v7, %v9207_v6  ;;  %v11353_v11 = vpop.f32.mrb[161].mxu0  ;;  %v12000_v15 = vmax.f32 %v11750_v2, %v11875_v4 }
 0x843   : > { %v9210_v12 = vpop.f32.mrb[162].mxu1  ;;  %v11354_v13 = vpop.f32.mrb[162].mxu0 }
 0x844   : > { %v9212_v14 = vpop.f32.mrb[163].mxu1  ;;  %v12001_v16 = vmax.f32 %v11751_v5, %v11876_v9  ;;  %v11620_v17 = vmul.f32 %v18057_v32, %v14579_v10  ;;  %v14580_v18 = vadd.f32 %v11354_v13, %v9210_v12  ;;  %v11356_v19 = vpop.f32.mrb[163].mxu0 }
 0x846   : > { %v14326_v20 = vpack.c.bf16 %v12001_v16, %v12000_v15  ;;  %v11752_v21 = vadd.f32 %v18063_v38, %v11620_v17  ;;  %v11621_v22 = vmul.f32 %v18057_v32, %v14580_v18 }
 0x848   : > { %14476 = vst [vmem:[%s17764_s29 + $0x138] sm:$0xff] %v14326_v20   ;;  %v11877_v23 = vmul.f32 0.1, %v11752_v21  ;;  %v11753_v1 = vadd.f32 %v18063_v38, %v11621_v22 }
 0x849   : > { %v9215_v24 = vpop.f32.mrb[164].mxu1  ;;  %v11359_v25 = vpop.f32.mrb[164].mxu0 }
 0x84a   : > { %v9217_v26 = vpop.f32.mrb[165].mxu1  ;;  %v11878_v35 = vmul.f32 0.1, %v11753_v1  ;;  %v14581_v27 = vadd.f32 %v11359_v25, %v9215_v24  ;;  %v11361_v28 = vpop.f32.mrb[165].mxu0  ;;  %v12002_v41 = vmax.f32 %v11752_v21, %v11877_v23 }
 0x84b   : > { %v9218_v29 = vpop.f32.mrb[166].mxu1  ;;  %v11362_v30 = vpop.f32.mrb[166].mxu0 }
 0x84c   : > { %v9220_v31 = vpop.f32.mrb[167].mxu1  ;;  %v12003_v33 = vmax.f32 %v11753_v1, %v11878_v35  ;;  %v11622_v34 = vmul.f32 %v18057_v32, %v14581_v27  ;;  %v14582_v37 = vadd.f32 %v11362_v30, %v9218_v29  ;;  %v11364_v36 = vpop.f32.mrb[167].mxu0 }
 0x84e   : > { %v14331_v39 = vpack.c.bf16 %v12003_v33, %v12002_v41  ;;  %v11754_v40 = vadd.f32 %v18063_v38, %v11622_v34  ;;  %v11623_v42 = vmul.f32 %v18057_v32, %v14582_v37 }
 0x850   : > { %14477 = vst [vmem:[%s17764_s29 + $0x140] sm:$0xff] %v14331_v39   ;;  %v11879_v43 = vmul.f32 0.1, %v11754_v40  ;;  %v11755_v44 = vadd.f32 %v18063_v38, %v11623_v42 }
 0x851   : > { %v9223_v45 = vpop.f32.mrb[168].mxu1  ;;  %v11367_v46 = vpop.f32.mrb[168].mxu0 }
 0x852   : > { %v9225_v47 = vpop.f32.mrb[169].mxu1  ;;  %v11880_v48 = vmul.f32 0.1, %v11755_v44  ;;  %v14583_v49 = vadd.f32 %v11367_v46, %v9223_v45  ;;  %v11369_v50 = vpop.f32.mrb[169].mxu0  ;;  %v12004_v54 = vmax.f32 %v11754_v40, %v11879_v43 }
 0x853   : > { %v9226_v51 = vpop.f32.mrb[170].mxu1  ;;  %v11370_v52 = vpop.f32.mrb[170].mxu0 }
 0x854   : > { %v9228_v53 = vpop.f32.mrb[171].mxu1  ;;  %v12005_v55 = vmax.f32 %v11755_v44, %v11880_v48  ;;  %v11624_v56 = vmul.f32 %v18057_v32, %v14583_v49  ;;  %v14584_v57 = vadd.f32 %v11370_v52, %v9226_v51  ;;  %v11372_v58 = vpop.f32.mrb[171].mxu0 }
 0x856   : > { %v14336_v59 = vpack.c.bf16 %v12005_v55, %v12004_v54  ;;  %v11756_v60 = vadd.f32 %v18063_v38, %v11624_v56  ;;  %v11625_v61 = vmul.f32 %v18057_v32, %v14584_v57 }
 0x858   : > { %14478 = vst [vmem:[%s17764_s29 + $0x148] sm:$0xff] %v14336_v59   ;;  %v11881_v62 = vmul.f32 0.1, %v11756_v60  ;;  %v11757_v63 = vadd.f32 %v18063_v38, %v11625_v61 }
 0x859   : > { %v9231_v0 = vpop.f32.mrb[172].mxu1  ;;  %v11375_v2 = vpop.f32.mrb[172].mxu0 }
 0x85a   : > { %v9233_v3 = vpop.f32.mrb[173].mxu1  ;;  %v11882_v4 = vmul.f32 0.1, %v11757_v63  ;;  %v14585_v5 = vadd.f32 %v11375_v2, %v9231_v0  ;;  %v11377_v6 = vpop.f32.mrb[173].mxu0  ;;  %v12006_v10 = vmax.f32 %v11756_v60, %v11881_v62 }
 0x85b   : > { %v9234_v7 = vpop.f32.mrb[174].mxu1  ;;  %v11378_v8 = vpop.f32.mrb[174].mxu0 }
 0x85c   : > { %v9236_v9 = vpop.f32.mrb[175].mxu1  ;;  %v12007_v11 = vmax.f32 %v11757_v63, %v11882_v4  ;;  %v11626_v12 = vmul.f32 %v18057_v32, %v14585_v5  ;;  %v14586_v13 = vadd.f32 %v11378_v8, %v9234_v7  ;;  %v11380_v14 = vpop.f32.mrb[175].mxu0 }
 0x85e   : > { %v14341_v15 = vpack.c.bf16 %v12007_v11, %v12006_v10  ;;  %v11758_v16 = vadd.f32 %v18063_v38, %v11626_v12  ;;  %v11627_v17 = vmul.f32 %v18057_v32, %v14586_v13 }
 0x860   : > { %14479 = vst [vmem:[%s17764_s29 + $0x150] sm:$0xff] %v14341_v15   ;;  %v11883_v18 = vmul.f32 0.1, %v11758_v16  ;;  %v11759_v19 = vadd.f32 %v18063_v38, %v11627_v17 }
 0x861   : > { %v9239_v20 = vpop.f32.mrb[176].mxu1  ;;  %v11383_v21 = vpop.f32.mrb[176].mxu0 }
 0x862   : > { %v9241_v22 = vpop.f32.mrb[177].mxu1  ;;  %v11884_v23 = vmul.f32 0.1, %v11759_v19  ;;  %v14587_v1 = vadd.f32 %v11383_v21, %v9239_v20  ;;  %v11385_v24 = vpop.f32.mrb[177].mxu0  ;;  %v12008_v27 = vmax.f32 %v11758_v16, %v11883_v18 }
 0x863   : > { %v9242_v25 = vpop.f32.mrb[178].mxu1  ;;  %v11386_v26 = vpop.f32.mrb[178].mxu0 }
 0x864   : > { %v9244_v35 = vpop.f32.mrb[179].mxu1  ;;  %v12009_v28 = vmax.f32 %v11759_v19, %v11884_v23  ;;  %v11628_v29 = vmul.f32 %v18057_v32, %v14587_v1  ;;  %v14588_v30 = vadd.f32 %v11386_v26, %v9242_v25  ;;  %v11388_v31 = vpop.f32.mrb[179].mxu0 }
 0x866   : > { %v14346_v41 = vpack.c.bf16 %v12009_v28, %v12008_v27  ;;  %v11760_v33 = vadd.f32 %v18063_v38, %v11628_v29  ;;  %v11629_v34 = vmul.f32 %v18057_v32, %v14588_v30 }
 0x868   : > { %14480 = vst [vmem:[%s17764_s29 + $0x158] sm:$0xff] %v14346_v41   ;;  %v11885_v37 = vmul.f32 0.1, %v11760_v33  ;;  %v11761_v36 = vadd.f32 %v18063_v38, %v11629_v34 }
 0x869   : > { %v9247_v39 = vpop.f32.mrb[180].mxu1  ;;  %v11391_v40 = vpop.f32.mrb[180].mxu0 }
 0x86a   : > { %v9249_v42 = vpop.f32.mrb[181].mxu1  ;;  %v11886_v43 = vmul.f32 0.1, %v11761_v36  ;;  %v14589_v44 = vadd.f32 %v11391_v40, %v9247_v39  ;;  %v11393_v45 = vpop.f32.mrb[181].mxu0  ;;  %v12010_v49 = vmax.f32 %v11760_v33, %v11885_v37 }
 0x86b   : > { %v9250_v46 = vpop.f32.mrb[182].mxu1  ;;  %v11394_v47 = vpop.f32.mrb[182].mxu0 }
 0x86c   : > { %v9252_v48 = vpop.f32.mrb[183].mxu1  ;;  %v12011_v50 = vmax.f32 %v11761_v36, %v11886_v43  ;;  %v11630_v51 = vmul.f32 %v18057_v32, %v14589_v44  ;;  %v14590_v52 = vadd.f32 %v11394_v47, %v9250_v46  ;;  %v11396_v53 = vpop.f32.mrb[183].mxu0 }
 0x86e   : > { %v14351_v54 = vpack.c.bf16 %v12011_v50, %v12010_v49  ;;  %v11762_v55 = vadd.f32 %v18063_v38, %v11630_v51  ;;  %v11631_v56 = vmul.f32 %v18057_v32, %v14590_v52 }
 0x870   : > { %14481 = vst [vmem:[%s17764_s29 + $0x160] sm:$0xff] %v14351_v54   ;;  %v11887_v57 = vmul.f32 0.1, %v11762_v55  ;;  %v11763_v58 = vadd.f32 %v18063_v38, %v11631_v56 }
 0x871   : > { %v9255_v59 = vpop.f32.mrb[184].mxu1  ;;  %v11399_v60 = vpop.f32.mrb[184].mxu0 }
 0x872   : > { %v9257_v61 = vpop.f32.mrb[185].mxu1  ;;  %v11888_v62 = vmul.f32 0.1, %v11763_v58  ;;  %v14591_v63 = vadd.f32 %v11399_v60, %v9255_v59  ;;  %v11401_v0 = vpop.f32.mrb[185].mxu0  ;;  %v12012_v5 = vmax.f32 %v11762_v55, %v11887_v57 }
 0x873   : > { %v9258_v2 = vpop.f32.mrb[186].mxu1  ;;  %v11402_v3 = vpop.f32.mrb[186].mxu0 }
 0x874   : > { %v9260_v4 = vpop.f32.mrb[187].mxu1  ;;  %v12013_v6 = vmax.f32 %v11763_v58, %v11888_v62  ;;  %v11632_v7 = vmul.f32 %v18057_v32, %v14591_v63  ;;  %v14592_v8 = vadd.f32 %v11402_v3, %v9258_v2  ;;  %v11404_v9 = vpop.f32.mrb[187].mxu0 }
 0x876   : > { %v14356_v10 = vpack.c.bf16 %v12013_v6, %v12012_v5  ;;  %v11764_v11 = vadd.f32 %v18063_v38, %v11632_v7  ;;  %v11633_v12 = vmul.f32 %v18057_v32, %v14592_v8 }
 0x878   : > { %14482 = vst [vmem:[%s17764_s29 + $0x168] sm:$0xff] %v14356_v10   ;;  %v11889_v13 = vmul.f32 0.1, %v11764_v11  ;;  %v11765_v14 = vadd.f32 %v18063_v38, %v11633_v12 }
 0x879   : > { %v9263_v15 = vpop.f32.mrb[188].mxu1  ;;  %v11407_v16 = vpop.f32.mrb[188].mxu0 }
 0x87a   : > { %v9265_v17 = vpop.f32.mrb[189].mxu1  ;;  %v11890_v18 = vmul.f32 0.1, %v11765_v14  ;;  %v14593_v19 = vadd.f32 %v11407_v16, %v9263_v15  ;;  %v11409_v20 = vpop.f32.mrb[189].mxu0  ;;  %v12014_v1 = vmax.f32 %v11764_v11, %v11889_v13 }
 0x87b   : > { %v9266_v21 = vpop.f32.mrb[190].mxu1  ;;  %v11410_v22 = vpop.f32.mrb[190].mxu0 }
 0x87c   : > { %v9268_v23 = vpop.f32.mrb[191].mxu1  ;;  %v12015_v24 = vmax.f32 %v11765_v14, %v11890_v18  ;;  %v11634_v25 = vmul.f32 %v18057_v32, %v14593_v19  ;;  %v14594_v26 = vadd.f32 %v11410_v22, %v9266_v21  ;;  %v11412_v35 = vpop.f32.mrb[191].mxu0 }
 0x87e   : > { %v14361_v27 = vpack.c.bf16 %v12015_v24, %v12014_v1  ;;  %v11766_v28 = vadd.f32 %v18063_v38, %v11634_v25  ;;  %v11635_v29 = vmul.f32 %v18057_v32, %v14594_v26 }
 0x880   : > { %14483 = vst [vmem:[%s17764_s29 + $0x170] sm:$0xff] %v14361_v27   ;;  %v11891_v30 = vmul.f32 0.1, %v11766_v28  ;;  %v11767_v31 = vadd.f32 %v18063_v38, %v11635_v29 }
 0x881   : > { %v9271_v41 = vpop.f32.mrb[192].mxu1  ;;  %v11415_v33 = vpop.f32.mrb[192].mxu0 }
 0x882   : > { %v9273_v34 = vpop.f32.mrb[193].mxu1  ;;  %v11892_v37 = vmul.f32 0.1, %v11767_v31  ;;  %v14595_v36 = vadd.f32 %v11415_v33, %v9271_v41  ;;  %v11417_v39 = vpop.f32.mrb[193].mxu0  ;;  %v12016_v44 = vmax.f32 %v11766_v28, %v11891_v30 }
 0x883   : > { %v9274_v40 = vpop.f32.mrb[194].mxu1  ;;  %v11418_v42 = vpop.f32.mrb[194].mxu0 }
 0x884   : > { %v9276_v43 = vpop.f32.mrb[195].mxu1  ;;  %v12017_v45 = vmax.f32 %v11767_v31, %v11892_v37  ;;  %v11636_v46 = vmul.f32 %v18057_v32, %v14595_v36  ;;  %v14596_v47 = vadd.f32 %v11418_v42, %v9274_v40  ;;  %v11420_v48 = vpop.f32.mrb[195].mxu0 }
 0x886   : > { %v14366_v49 = vpack.c.bf16 %v12017_v45, %v12016_v44  ;;  %v11768_v50 = vadd.f32 %v18063_v38, %v11636_v46  ;;  %v11637_v51 = vmul.f32 %v18057_v32, %v14596_v47 }
 0x888   : > { %14484 = vst [vmem:[%s17764_s29 + $0x178] sm:$0xff] %v14366_v49   ;;  %v11893_v52 = vmul.f32 0.1, %v11768_v50  ;;  %v11769_v53 = vadd.f32 %v18063_v38, %v11637_v51 }
 0x889   : > { %v9279_v54 = vpop.f32.mrb[196].mxu1  ;;  %v11423_v55 = vpop.f32.mrb[196].mxu0 }
 0x88a   : > { %v9281_v56 = vpop.f32.mrb[197].mxu1  ;;  %v11894_v57 = vmul.f32 0.1, %v11769_v53  ;;  %v14597_v58 = vadd.f32 %v11423_v55, %v9279_v54  ;;  %v11425_v59 = vpop.f32.mrb[197].mxu0  ;;  %v12018_v63 = vmax.f32 %v11768_v50, %v11893_v52 }
 0x88b   : > { %v9282_v60 = vpop.f32.mrb[198].mxu1  ;;  %v11426_v61 = vpop.f32.mrb[198].mxu0 }
 0x88c   : > { %v9284_v62 = vpop.f32.mrb[199].mxu1  ;;  %v12019_v0 = vmax.f32 %v11769_v53, %v11894_v57  ;;  %v11638_v2 = vmul.f32 %v18057_v32, %v14597_v58  ;;  %v14598_v3 = vadd.f32 %v11426_v61, %v9282_v60  ;;  %v11428_v4 = vpop.f32.mrb[199].mxu0 }
 0x88e   : > { %v14371_v5 = vpack.c.bf16 %v12019_v0, %v12018_v63  ;;  %v11770_v6 = vadd.f32 %v18063_v38, %v11638_v2  ;;  %v11639_v7 = vmul.f32 %v18057_v32, %v14598_v3 }
 0x890   : > { %14485 = vst [vmem:[%s17764_s29 + $0x180] sm:$0xff] %v14371_v5   ;;  %v11895_v8 = vmul.f32 0.1, %v11770_v6  ;;  %v11771_v9 = vadd.f32 %v18063_v38, %v11639_v7 }
 0x891   : > { %v9287_v10 = vpop.f32.mrb[200].mxu1  ;;  %v11431_v11 = vpop.f32.mrb[200].mxu0 }
 0x892   : > { %v9289_v12 = vpop.f32.mrb[201].mxu1  ;;  %v11896_v13 = vmul.f32 0.1, %v11771_v9  ;;  %v14599_v14 = vadd.f32 %v11431_v11, %v9287_v10  ;;  %v11433_v15 = vpop.f32.mrb[201].mxu0  ;;  %v12020_v19 = vmax.f32 %v11770_v6, %v11895_v8 }
 0x893   : > { %v9290_v16 = vpop.f32.mrb[202].mxu1  ;;  %v11434_v17 = vpop.f32.mrb[202].mxu0 }
 0x894   : > { %v9292_v18 = vpop.f32.mrb[203].mxu1  ;;  %v12021_v20 = vmax.f32 %v11771_v9, %v11896_v13  ;;  %v11640_v21 = vmul.f32 %v18057_v32, %v14599_v14  ;;  %v14600_v22 = vadd.f32 %v11434_v17, %v9290_v16  ;;  %v11436_v23 = vpop.f32.mrb[203].mxu0 }
 0x896   : > { %v14376_v1 = vpack.c.bf16 %v12021_v20, %v12020_v19  ;;  %v11772_v24 = vadd.f32 %v18063_v38, %v11640_v21  ;;  %v11641_v25 = vmul.f32 %v18057_v32, %v14600_v22 }
 0x898   : > { %14486 = vst [vmem:[%s17764_s29 + $0x188] sm:$0xff] %v14376_v1   ;;  %v11897_v26 = vmul.f32 0.1, %v11772_v24  ;;  %v11773_v35 = vadd.f32 %v18063_v38, %v11641_v25 }
 0x899   : > { %v9295_v27 = vpop.f32.mrb[204].mxu1  ;;  %v11439_v28 = vpop.f32.mrb[204].mxu0 }
 0x89a   : > { %v9297_v29 = vpop.f32.mrb[205].mxu1  ;;  %v11898_v30 = vmul.f32 0.1, %v11773_v35  ;;  %v14601_v31 = vadd.f32 %v11439_v28, %v9295_v27  ;;  %v11441_v41 = vpop.f32.mrb[205].mxu0  ;;  %v12022_v36 = vmax.f32 %v11772_v24, %v11897_v26 }
 0x89b   : > { %v9298_v33 = vpop.f32.mrb[206].mxu1  ;;  %v11442_v34 = vpop.f32.mrb[206].mxu0 }
 0x89c   : > { %v9300_v37 = vpop.f32.mrb[207].mxu1  ;;  %v12023_v39 = vmax.f32 %v11773_v35, %v11898_v30  ;;  %v11642_v40 = vmul.f32 %v18057_v32, %v14601_v31  ;;  %v14602_v42 = vadd.f32 %v11442_v34, %v9298_v33  ;;  %v11444_v43 = vpop.f32.mrb[207].mxu0 }
 0x89e   : > { %v14381_v44 = vpack.c.bf16 %v12023_v39, %v12022_v36  ;;  %v11774_v45 = vadd.f32 %v18063_v38, %v11642_v40  ;;  %v11643_v46 = vmul.f32 %v18057_v32, %v14602_v42 }
 0x8a0   : > { %14487 = vst [vmem:[%s17764_s29 + $0x190] sm:$0xff] %v14381_v44   ;;  %v11899_v47 = vmul.f32 0.1, %v11774_v45  ;;  %v11775_v48 = vadd.f32 %v18063_v38, %v11643_v46 }
 0x8a1   : > { %v9303_v49 = vpop.f32.mrb[208].mxu1  ;;  %v11447_v50 = vpop.f32.mrb[208].mxu0 }
 0x8a2   : > { %v9305_v51 = vpop.f32.mrb[209].mxu1  ;;  %v11900_v52 = vmul.f32 0.1, %v11775_v48  ;;  %v14603_v53 = vadd.f32 %v11447_v50, %v9303_v49  ;;  %v11449_v54 = vpop.f32.mrb[209].mxu0  ;;  %v12024_v58 = vmax.f32 %v11774_v45, %v11899_v47 }
 0x8a3   : > { %v9306_v55 = vpop.f32.mrb[210].mxu1  ;;  %v11450_v56 = vpop.f32.mrb[210].mxu0 }
 0x8a4   : > { %v9308_v57 = vpop.f32.mrb[211].mxu1  ;;  %v12025_v59 = vmax.f32 %v11775_v48, %v11900_v52  ;;  %v11644_v60 = vmul.f32 %v18057_v32, %v14603_v53  ;;  %v14604_v61 = vadd.f32 %v11450_v56, %v9306_v55  ;;  %v11452_v62 = vpop.f32.mrb[211].mxu0 }
 0x8a6   : > { %v14386_v63 = vpack.c.bf16 %v12025_v59, %v12024_v58  ;;  %v11776_v0 = vadd.f32 %v18063_v38, %v11644_v60  ;;  %v11645_v2 = vmul.f32 %v18057_v32, %v14604_v61 }
 0x8a8   : > { %14488 = vst [vmem:[%s17764_s29 + $0x198] sm:$0xff] %v14386_v63   ;;  %v11901_v3 = vmul.f32 0.1, %v11776_v0  ;;  %v11777_v4 = vadd.f32 %v18063_v38, %v11645_v2 }
 0x8a9   : > { %v9311_v5 = vpop.f32.mrb[212].mxu1  ;;  %v11455_v6 = vpop.f32.mrb[212].mxu0 }
 0x8aa   : > { %v9313_v7 = vpop.f32.mrb[213].mxu1  ;;  %v11902_v8 = vmul.f32 0.1, %v11777_v4  ;;  %v14605_v9 = vadd.f32 %v11455_v6, %v9311_v5  ;;  %v11457_v10 = vpop.f32.mrb[213].mxu0  ;;  %v12026_v14 = vmax.f32 %v11776_v0, %v11901_v3 }
 0x8ab   : > { %v9314_v11 = vpop.f32.mrb[214].mxu1  ;;  %v11458_v12 = vpop.f32.mrb[214].mxu0 }
 0x8ac   : > { %v9316_v13 = vpop.f32.mrb[215].mxu1  ;;  %v12027_v15 = vmax.f32 %v11777_v4, %v11902_v8  ;;  %v11646_v16 = vmul.f32 %v18057_v32, %v14605_v9  ;;  %v14606_v17 = vadd.f32 %v11458_v12, %v9314_v11  ;;  %v11460_v18 = vpop.f32.mrb[215].mxu0 }
 0x8ae   : > { %v14391_v19 = vpack.c.bf16 %v12027_v15, %v12026_v14  ;;  %v11778_v20 = vadd.f32 %v18063_v38, %v11646_v16  ;;  %v11647_v21 = vmul.f32 %v18057_v32, %v14606_v17  ;;  %v18195_v16 = vld [vmem:[%s18239_s2] ss:$0 sm:$0xff] }
 0x8b0   : > { %14489 = vst [vmem:[%s17764_s29 + $0x1a0] sm:$0xff] %v14391_v19   ;;  %v11903_v22 = vmul.f32 0.1, %v11778_v20  ;;  %v11779_v23 = vadd.f32 %v18063_v38, %v11647_v21  ;;  %v18202_v19 = vld [vmem:[%s18240_s3] ss:$0 sm:$0xff] }
 0x8b1   : > { %v9319_v1 = vpop.f32.mrb[216].mxu1  ;;  %v11463_v24 = vpop.f32.mrb[216].mxu0 }
 0x8b2   : > { %v9321_v25 = vpop.f32.mrb[217].mxu1  ;;  %v11904_v26 = vmul.f32 0.1, %v11779_v23  ;;  %v14607_v35 = vadd.f32 %v11463_v24, %v9319_v1  ;;  %v11465_v27 = vpop.f32.mrb[217].mxu0  ;;  %v12028_v31 = vmax.f32 %v11778_v20, %v11903_v22 }
 0x8b3   : > { %v9322_v28 = vpop.f32.mrb[218].mxu1  ;;  %v11466_v29 = vpop.f32.mrb[218].mxu0 }
 0x8b4   : > { %v9324_v30 = vpop.f32.mrb[219].mxu1  ;;  %v12029_v41 = vmax.f32 %v11779_v23, %v11904_v26  ;;  %v11648_v33 = vmul.f32 %v18057_v32, %v14607_v35  ;;  %v14608_v34 = vadd.f32 %v11466_v29, %v9322_v28  ;;  %v11468_v37 = vpop.f32.mrb[219].mxu0 }
 0x8b6   : > { %v14396_v36 = vpack.c.bf16 %v12029_v41, %v12028_v31  ;;  %v11780_v39 = vadd.f32 %v18063_v38, %v11648_v33  ;;  %v11649_v40 = vmul.f32 %v18057_v32, %v14608_v34 }
 0x8b8   : > { %14490 = vst [vmem:[%s17764_s29 + $0x1a8] sm:$0xff] %v14396_v36   ;;  %v11905_v42 = vmul.f32 0.1, %v11780_v39  ;;  %v11781_v43 = vadd.f32 %v18063_v38, %v11649_v40 }
 0x8b9   : > { %v9327_v44 = vpop.f32.mrb[220].mxu1  ;;  %v11471_v45 = vpop.f32.mrb[220].mxu0 }
 0x8ba   : > { %v9329_v46 = vpop.f32.mrb[221].mxu1  ;;  %v11906_v47 = vmul.f32 0.1, %v11781_v43  ;;  %v14609_v48 = vadd.f32 %v11471_v45, %v9327_v44  ;;  %v11473_v49 = vpop.f32.mrb[221].mxu0  ;;  %v12030_v53 = vmax.f32 %v11780_v39, %v11905_v42 }
 0x8bb   : > { %v9330_v50 = vpop.f32.mrb[222].mxu1  ;;  %v11474_v51 = vpop.f32.mrb[222].mxu0 }
 0x8bc   : > { %v9332_v52 = vpop.f32.mrb[223].mxu1  ;;  %v12031_v54 = vmax.f32 %v11781_v43, %v11906_v47  ;;  %v11650_v55 = vmul.f32 %v18057_v32, %v14609_v48  ;;  %v14610_v56 = vadd.f32 %v11474_v51, %v9330_v50  ;;  %v11476_v57 = vpop.f32.mrb[223].mxu0 }
 0x8be   : > { %v14401_v58 = vpack.c.bf16 %v12031_v54, %v12030_v53  ;;  %v11782_v59 = vadd.f32 %v18063_v38, %v11650_v55  ;;  %v11651_v60 = vmul.f32 %v18057_v32, %v14610_v56 }
 0x8c0   : > { %14491 = vst [vmem:[%s17764_s29 + $0x1b0] sm:$0xff] %v14401_v58   ;;  %v11907_v61 = vmul.f32 0.1, %v11782_v59  ;;  %v11783_v62 = vadd.f32 %v18063_v38, %v11651_v60 }
 0x8c1   : > { %v9335_v63 = vpop.f32.mrb[224].mxu1  ;;  %v11479_v0 = vpop.f32.mrb[224].mxu0 }
 0x8c2   : > { %v9337_v2 = vpop.f32.mrb[225].mxu1  ;;  %v11908_v3 = vmul.f32 0.1, %v11783_v62  ;;  %v14611_v4 = vadd.f32 %v11479_v0, %v9335_v63  ;;  %v11481_v5 = vpop.f32.mrb[225].mxu0  ;;  %v12032_v9 = vmax.f32 %v11782_v59, %v11907_v61 }
 0x8c3   : > { %v9338_v6 = vpop.f32.mrb[226].mxu1  ;;  %v11482_v7 = vpop.f32.mrb[226].mxu0 }
 0x8c4   : > { %v9340_v8 = vpop.f32.mrb[227].mxu1  ;;  %v12033_v10 = vmax.f32 %v11783_v62, %v11908_v3  ;;  %v11652_v11 = vmul.f32 %v18057_v32, %v14611_v4  ;;  %v14612_v12 = vadd.f32 %v11482_v7, %v9338_v6  ;;  %v11484_v13 = vpop.f32.mrb[227].mxu0 }
 0x8c6   : > { %v14406_v14 = vpack.c.bf16 %v12033_v10, %v12032_v9  ;;  %v11784_v15 = vadd.f32 %v18063_v38, %v11652_v11  ;;  %v11653_v17 = vmul.f32 %v18195_v16, %v14612_v12 }
 0x8c8   : > { %14492 = vst [vmem:[%s17764_s29 + $0x1b8] sm:$0xff] %v14406_v14   ;;  %v11909_v18 = vmul.f32 0.1, %v11784_v15  ;;  %v11785_v32 = vadd.f32 %v18202_v19, %v11653_v17 }
 0x8c9   : > { %v9343_v20 = vpop.f32.mrb[228].mxu1  ;;  %v11487_v21 = vpop.f32.mrb[228].mxu0 }
 0x8ca   : > { %v9345_v38 = vpop.f32.mrb[229].mxu1  ;;  %v11910_v22 = vmul.f32 0.1, %v11785_v32  ;;  %v14613_v23 = vadd.f32 %v11487_v21, %v9343_v20  ;;  %v11489_v1 = vpop.f32.mrb[229].mxu0  ;;  %v12034_v35 = vmax.f32 %v11784_v15, %v11909_v18 }
 0x8cb   : > { %v9346_v24 = vpop.f32.mrb[230].mxu1  ;;  %v11490_v25 = vpop.f32.mrb[230].mxu0 }
 0x8cc   : > { %v9348_v26 = vpop.f32.mrb[231].mxu1  ;;  %v12035_v27 = vmax.f32 %v11785_v32, %v11910_v22  ;;  %v11654_v28 = vmul.f32 %v18195_v16, %v14613_v23  ;;  %v14614_v29 = vadd.f32 %v11490_v25, %v9346_v24  ;;  %v11492_v30 = vpop.f32.mrb[231].mxu0 }
 0x8ce   : > { %v14411_v31 = vpack.c.bf16 %v12035_v27, %v12034_v35  ;;  %v11786_v41 = vadd.f32 %v18202_v19, %v11654_v28  ;;  %v11655_v33 = vmul.f32 %v18195_v16, %v14614_v29 }
 0x8d0   : > { %14493 = vst [vmem:[%s17764_s29 + $0x1c0] sm:$0xff] %v14411_v31   ;;  %v11911_v34 = vmul.f32 0.1, %v11786_v41  ;;  %v11787_v37 = vadd.f32 %v18202_v19, %v11655_v33 }
 0x8d1   : > { %v9351_v36 = vpop.f32.mrb[232].mxu1  ;;  %v11495_v39 = vpop.f32.mrb[232].mxu0 }
 0x8d2   : > { %v9353_v40 = vpop.f32.mrb[233].mxu1  ;;  %v11912_v42 = vmul.f32 0.1, %v11787_v37  ;;  %v14615_v43 = vadd.f32 %v11495_v39, %v9351_v36  ;;  %v11497_v44 = vpop.f32.mrb[233].mxu0  ;;  %v12036_v48 = vmax.f32 %v11786_v41, %v11911_v34 }
 0x8d3   : > { %v9354_v45 = vpop.f32.mrb[234].mxu1  ;;  %v11498_v46 = vpop.f32.mrb[234].mxu0 }
 0x8d4   : > { %v9356_v47 = vpop.f32.mrb[235].mxu1  ;;  %v12037_v49 = vmax.f32 %v11787_v37, %v11912_v42  ;;  %v11656_v50 = vmul.f32 %v18195_v16, %v14615_v43  ;;  %v14616_v51 = vadd.f32 %v11498_v46, %v9354_v45  ;;  %v11500_v52 = vpop.f32.mrb[235].mxu0 }
 0x8d6   : > { %v14416_v53 = vpack.c.bf16 %v12037_v49, %v12036_v48  ;;  %v11788_v54 = vadd.f32 %v18202_v19, %v11656_v50  ;;  %v11657_v55 = vmul.f32 %v18195_v16, %v14616_v51 }
 0x8d8   : > { %14494 = vst [vmem:[%s17764_s29 + $0x1c8] sm:$0xff] %v14416_v53   ;;  %v11913_v56 = vmul.f32 0.1, %v11788_v54  ;;  %v11789_v57 = vadd.f32 %v18202_v19, %v11657_v55 }
 0x8d9   : > { %v9359_v58 = vpop.f32.mrb[236].mxu1  ;;  %v11503_v59 = vpop.f32.mrb[236].mxu0 }
 0x8da   : > { %v9361_v60 = vpop.f32.mrb[237].mxu1  ;;  %v11914_v61 = vmul.f32 0.1, %v11789_v57  ;;  %v14617_v62 = vadd.f32 %v11503_v59, %v9359_v58  ;;  %v11505_v63 = vpop.f32.mrb[237].mxu0  ;;  %v12038_v4 = vmax.f32 %v11788_v54, %v11913_v56 }
 0x8db   : > { %v9362_v0 = vpop.f32.mrb[238].mxu1  ;;  %v11506_v2 = vpop.f32.mrb[238].mxu0 }
 0x8dc   : > { %v9364_v3 = vpop.f32.mrb[239].mxu1  ;;  %v12039_v5 = vmax.f32 %v11789_v57, %v11914_v61  ;;  %v11658_v6 = vmul.f32 %v18195_v16, %v14617_v62  ;;  %v14618_v7 = vadd.f32 %v11506_v2, %v9362_v0  ;;  %v11508_v8 = vpop.f32.mrb[239].mxu0 }
 0x8de   : > { %v14421_v9 = vpack.c.bf16 %v12039_v5, %v12038_v4  ;;  %v11790_v10 = vadd.f32 %v18202_v19, %v11658_v6  ;;  %v11659_v11 = vmul.f32 %v18195_v16, %v14618_v7 }
 0x8e0   : > { %14495 = vst [vmem:[%s17764_s29 + $0x1d0] sm:$0xff] %v14421_v9   ;;  %v11915_v12 = vmul.f32 0.1, %v11790_v10  ;;  %v11791_v13 = vadd.f32 %v18202_v19, %v11659_v11 }
 0x8e1   : > { %v9367_v14 = vpop.f32.mrb[240].mxu1  ;;  %v11511_v15 = vpop.f32.mrb[240].mxu0 }
 0x8e2   : > { %v9369_v17 = vpop.f32.mrb[241].mxu1  ;;  %v11916_v18 = vmul.f32 0.1, %v11791_v13  ;;  %v14619_v32 = vadd.f32 %v11511_v15, %v9367_v14  ;;  %v11513_v20 = vpop.f32.mrb[241].mxu0  ;;  %v12040_v23 = vmax.f32 %v11790_v10, %v11915_v12 }
 0x8e3   : > { %v9370_v21 = vpop.f32.mrb[242].mxu1  ;;  %v11514_v38 = vpop.f32.mrb[242].mxu0 }
 0x8e4   : > { %v9372_v22 = vpop.f32.mrb[243].mxu1  ;;  %v12041_v1 = vmax.f32 %v11791_v13, %v11916_v18  ;;  %v11660_v24 = vmul.f32 %v18195_v16, %v14619_v32  ;;  %v14620_v25 = vadd.f32 %v11514_v38, %v9370_v21  ;;  %v11516_v26 = vpop.f32.mrb[243].mxu0 }
 0x8e6   : > { %v14426_v35 = vpack.c.bf16 %v12041_v1, %v12040_v23  ;;  %v11792_v27 = vadd.f32 %v18202_v19, %v11660_v24  ;;  %v11661_v28 = vmul.f32 %v18195_v16, %v14620_v25 }
 0x8e8   : > { %14496 = vst [vmem:[%s17764_s29 + $0x1d8] sm:$0xff] %v14426_v35   ;;  %v11917_v29 = vmul.f32 0.1, %v11792_v27  ;;  %v11793_v30 = vadd.f32 %v18202_v19, %v11661_v28 }
 0x8e9   : > { %v9375_v31 = vpop.f32.mrb[244].mxu1  ;;  %v11519_v41 = vpop.f32.mrb[244].mxu0 }
 0x8ea   : > { %v9377_v33 = vpop.f32.mrb[245].mxu1  ;;  %v11918_v34 = vmul.f32 0.1, %v11793_v30  ;;  %v14621_v37 = vadd.f32 %v11519_v41, %v9375_v31  ;;  %v11521_v36 = vpop.f32.mrb[245].mxu0  ;;  %v12042_v43 = vmax.f32 %v11792_v27, %v11917_v29 }
 0x8eb   : > { %v9378_v39 = vpop.f32.mrb[246].mxu1  ;;  %v11522_v40 = vpop.f32.mrb[246].mxu0 }
 0x8ec   : > { %v9380_v42 = vpop.f32.mrb[247].mxu1  ;;  %v12043_v44 = vmax.f32 %v11793_v30, %v11918_v34  ;;  %v11662_v45 = vmul.f32 %v18195_v16, %v14621_v37  ;;  %v14622_v46 = vadd.f32 %v11522_v40, %v9378_v39  ;;  %v11524_v47 = vpop.f32.mrb[247].mxu0 }
 0x8ee   : > { %v14431_v48 = vpack.c.bf16 %v12043_v44, %v12042_v43  ;;  %v11794_v49 = vadd.f32 %v18202_v19, %v11662_v45  ;;  %v11663_v50 = vmul.f32 %v18195_v16, %v14622_v46 }
 0x8f0   : > { %14497 = vst [vmem:[%s17764_s29 + $0x1e0] sm:$0xff] %v14431_v48   ;;  %v11919_v51 = vmul.f32 0.1, %v11794_v49  ;;  %v11795_v52 = vadd.f32 %v18202_v19, %v11663_v50 }
 0x8f1   : > { %v9383_v53 = vpop.f32.mrb[248].mxu1  ;;  %v11527_v54 = vpop.f32.mrb[248].mxu0 }
 0x8f2   : > { %v9385_v55 = vpop.f32.mrb[249].mxu1  ;;  %v11920_v56 = vmul.f32 0.1, %v11795_v52  ;;  %v14623_v57 = vadd.f32 %v11527_v54, %v9383_v53  ;;  %v11529_v58 = vpop.f32.mrb[249].mxu0  ;;  %v12044_v62 = vmax.f32 %v11794_v49, %v11919_v51 }
 0x8f3   : > { %v9386_v59 = vpop.f32.mrb[250].mxu1  ;;  %v11530_v60 = vpop.f32.mrb[250].mxu0 }
 0x8f4   : > { %v9387_v61 = vpop.f32.mrb[251].mxu1  ;;  %v12045_v63 = vmax.f32 %v11795_v52, %v11920_v56  ;;  %v11664_v0 = vmul.f32 %v18195_v16, %v14623_v57  ;;  %v11531_v2 = vpop.f32.mrb[251].mxu0 }
 0x8f6   : > { %v14436_v3 = vpack.c.bf16 %v12045_v63, %v12044_v62  ;;  %v11796_v4 = vadd.f32 %v18202_v19, %v11664_v0 }
 0x8f8   : > { %14498 = vst [vmem:[%s17764_s29 + $0x1e8] sm:$0xff] %v14436_v3   ;;  %v11921_v5 = vmul.f32 0.1, %v11796_v4 }
 0x8fa   : > { %v12046_v6 = vmax.f32 %v11796_v4, %v11921_v5 }
 0x8fc   : > { %v14127_v7 = vpack.c.bf16 %v12046_v6, %v12046_v6 }
 0x8fe   : > { %12672 = vst [vmem:[%s17764_s29 + $0x1f0] sm:$0xf] %v14127_v7 }
 0x8ff PF: > { %s14_s15 = sadd.s32 1, %s16301_s15  }
 0x900   : > { %p11_p4 = scmp.ge.s32.totalorder %s14_s15, 7  }
 0x902   :  { %13 = sbr.rel (!%p11_p4) target bundleno = 1 (0x1), region = 66 }

// kernel: gat_forward.5
= control target key start
LH: loop header
LB: loop body
LE: loop exit
PB: predicated region body
PF: predicated region fallthrough
CT: control target
= control target key end

     0   :  { %v328_v0 = vmov 0   ;;  %v329_v2 = vmov 1   ;;  %vm27_vm0 = vcmask 15360   ;;  %v330_v4 = vmov -1e+30   ;;  %s331_s22 = smov 64   ;;  %s411_s2 = inlined_call_operand.vmem [shape: f32[8,2], index: 2, kind: input, shape index: {}]   ;;  %s412_s0 = inlined_call_operand.vmem [shape: bf16[8,128], index: 0, kind: input, shape index: {}]   ;;  %s413_s3 = inlined_call_operand.vmem [shape: bf16[8,8], index: 3, kind: input, shape index: {}]   ;;  %s414_s1 = inlined_call_operand.vmem [shape: f32[2,8], index: 1, kind: input, shape index: {}]   ;;  %s415_s4 = inlined_call_operand.vmem [shape: f32[1,128], index: 4, kind: input, shape index: {}]   ;;  %s416_s5 = inlined_call_operand.vmem [shape: f32[8,128], index: 5, kind: output, shape index: {}]  }
   0x1   :  { %309 = vset.pattern.permute.xlu0 %v328_v0  ;;  %v34_v1 = vld [vmem:[%s411_s2] sm:$0xff]  ;;  %311 = vset.pattern.permute.xlu1 %v329_v2  ;;  %28 = vst.msk [vmem:[#allocation2] sm:$0xff] %vm27_vm0, %v330_v4  ;;  %vm52_vm3 = vcmask 64512   ;;  %v332_v22 = vmov 0.0   ;;  %vm74_vm4 = vcmask 7168   ;;  %vm173_vm5 = vcmask 15368  }
   0x2   :  { %37 = vperm.xlu0 %309, %v34_v1   ;;  %v315_v3 = vld [vmem:[%s412_s0] ss:$0 sps:$4 sm:$0xff]   ;;  %v282_v12 = vld [vmem:[%s414_s1 + $0x1] ss:$0 sm:$0xff]  ;;  %30 = vst [vmem:[#allocation4] sm:$0xff] %v332_v22  ;;  %291 = vmatprep.subr.bf16.mxu0 %v332_v22  ;;  %29 = vst.msk [vmem:[#allocation3] sm:$0xff] %vm27_vm0, %v332_v22 }
   0x3   :  { %v31_v5 = vld [vmem:[%s413_s3] sm:$0xf]  ;;  %297 = vmatprep.subr.bf16.mxu1 %v332_v22  ;;  %vm88_vm6 = vcmask 1043456   ;;  %vm333_vm7 = vmmov 0   ;;  %vm133_vm8 = vcmask 523264   ;;  %vm240_vm9 = vcmask 1048064  }
   0x4   :  { %vm32_vm1 = vcmp.gt.bf16.partialorder %v31_v5, 0  ;;  %v280_v7 = vld [vmem:[%s414_s1] ss:$0 sm:$0xff]  ;;  %293 = vmatprep.mubr.msk.bf16.mxu0 %vm333_vm7, %v332_v22  ;;  %299 = vmatprep.mubr.msk.bf16.mxu1 %vm333_vm7, %v332_v22 }
   0x5   :  { %v47_v6 = vsel %vm32_vm1, 65537, %v328_v0  ;;  %v84_v31 = vld [vmem:[%s412_s0] sm:$0xf] }
   0x6   :  { %310 = vset.pattern.permute.xlu0 %v329_v2  ;;  %v48_v9 = vunpack.c.l.b16 %v47_v6  ;;  %v90_v32 = vsel %vm88_vm6, %v84_v31, 0 }
   0x7   :  { %140 = vperm.xlu0 %310, %v34_v1   ;;  %292 = vmatpush3.bf16.msra.mxu0 %v90_v32 }
   0x8   :  { %vm49_vm2 = vcmp.ne.s32.totalorder %v48_v9, 0  ;;  %v51_v23 = vld [vmem:[#allocation2] sm:$0xff] }
   0x9   :  { %v68_v51 = vld [vmem:[#allocation3] sm:$0xff] }
   0xb   :  { %312 = vset.pattern.permute.xlu0 %v328_v0 }
   0xc   :  { %187 = vrot.lane.b32.xlu0 %v315_v3, %s331_s22 }
  0x81   :  { %v38_v8 = vpop.permute.xlu0 %37 }
  0x82   :  { %v44_v10 = vadd.f32 %v280_v7, %v38_v8 }
  0x84   :  { %v45_v11 = vmul.f32 0.2, %v44_v10 }
  0x86   :  { %v46_v13 = vmax.f32 %v44_v10, %v45_v11  ;;  %v141_v14 = vpop.permute.xlu0 %140 }
  0x87   :  { %v147_v15 = vadd.f32 %v282_v12, %v141_v14 }
  0x88   :  { %v50_v16 = vsel %vm49_vm2, %v46_v13, -1e+30 }
  0x89   :  { %v148_v17 = vmul.f32 0.2, %v147_v15  ;;  %v53_v18 = vsel %vm52_vm3, %v50_v16, -inf }
  0x8a   :  { %54 = vmax.xlane.f32.xlu1 %v53_v18  ;;  %v188_v33 = vpop.permute.xlu0 %187 }
  0x8b   :  { %v149_v19 = vmax.f32 %v147_v15, %v148_v17  ;;  %v193_v34 = vsel %vm88_vm6, %v188_v33, 0  ;;  %v285_v17 = vld [vmem:[%s415_s4] ss:$0 sm:$0xff] }
  0x8c   :  { %298 = vmatpush3.bf16.msra.mxu1 %v193_v34 }
  0x8d   :  { %v150_v20 = vsel %vm49_vm2, %v149_v19, -1e+30 }
  0x8e   :  { %v152_v21 = vsel %vm52_vm3, %v150_v20, -inf }
  0x8f   :  { %153 = vmax.xlane.f32.xlu1 %v152_v21 }
 0x117   :  { %v55_v24 = vpop.xlane.xlu1 %54 }
 0x118   :  { %v56_v25 = vmax.f32 %v51_v23, %v55_v24 }
 0x11a   :  { %v57_v26 = vsub.f32 %v51_v23, %v56_v25  ;;  %135 = vst.msk [vmem:[#allocation2] sm:$0xff] %vm74_vm4, %v56_v25  ;;  %62 = vperm.xlu0 %312, %v56_v25  }
 0x11c   :  { %v154_v28 = vpop.xlane.xlu1 %153  ;;  %v58_v44 = vmul.f32 1.442695, %v57_v26 }
 0x121   :  { %v151_v27 = vld [vmem:[#allocation2] sm:$0xff] }
 0x122   :  { %v155_v29 = vmax.f32 %v151_v27, %v154_v28 }
 0x124   :  { %v156_v30 = vsub.f32 %v151_v27, %v155_v29  ;;  %242 = vst.msk [vmem:[#allocation2] sm:$0xff] %vm173_vm5, %v155_v29  ;;  %161 = vperm.xlu1 %311, %v155_v29  }
 0x126   :  { %v157_v48 = vmul.f32 1.442695, %v156_v30 }
 0x199   :  { %v63_v35 = vpop.permute.xlu0 %62 }
 0x19a   :  { %v65_v36 = vsub.f32 %v50_v16, %v63_v35 }
 0x19c   :  { %v66_v37 = vmul.f32 1.442695, %v65_v36 }
 0x19e   :  { %316 = vpow2.f32 %v66_v37 }
 0x1a3   :  { %v162_v38 = vpop.permute.xlu1 %161 }
 0x1a4   :  { %v164_v39 = vsub.f32 %v150_v20, %v162_v38 }
 0x1a6   :  { %v165_v40 = vmul.f32 1.442695, %v164_v39 }
 0x1a8   :  { %v317_v41 = vpop.eup %316  ;;  %318 = vpow2.f32 %v165_v40 }
 0x1a9   :  { %v70_v42 = vsel %vm52_vm3, %v317_v41, 0.0  ;;  %v83_v43 = vpack.c.bf16 %v317_v41, %v317_v41  ;;  %320 = vpow2.f32 %v58_v44 }
 0x1aa   :  { %71 = vadd.xlane.f32.xlu0 %v70_v42  ;;  %322 = vpow2.f32 %v157_v48 }
 0x1ab   :  { %294 = vmatmul.mubr.msk.bf16.vlgmr.msra.gmra.mrb[0].mxu0 %vm52_vm3, %v83_v43 }
 0x1b2   :  { %v319_v45 = vpop.eup %318 }
 0x1b3   :  { %v169_v46 = vsel %vm52_vm3, %v319_v45, 0.0  ;;  %v182_v47 = vpack.c.bf16 %v319_v45, %v319_v45  ;;  %v321_v49 = vpop.eup %320 }
 0x1b4   :  { %170 = vadd.xlane.f32.xlu1 %v169_v46  ;;  %v323_v50 = vpop.eup %322  ;;  %v69_v52 = vmul.f32 %v321_v49, %v68_v51 }
 0x1b5   :  { %300 = vmatmul.mubr.msk.bf16.vlgmr.msra.gmra.mrb[0].mxu1 %vm52_vm3, %v182_v47 }
 0x1c0   :  { %79 = vperm.xlu0 %312, %v321_v49  }
 0x1c4   :  { %314 = vset.pattern.permute.xlu0 %v329_v2 }
 0x1c5   :  { %178 = vperm.xlu1 %311, %v323_v50  }
 0x1c9   :  { %313 = vset.pattern.permute.xlu1 %v328_v0 }
 0x237   :  { %v72_v53 = vpop.xlane.xlu0 %71 }
 0x238   :  { %v73_v54 = vadd.f32 %v72_v53, %v69_v52 }
 0x23a   :  { %75 = vst.msk [vmem:[#allocation3] sm:$0xff] %vm74_vm4, %v73_v54 }
 0x23f   :  { %v80_v62 = vpop.permute.xlu0 %79 }
 0x240   :  { %v82_v63 = vmul.f32 0.0, %v80_v62 }
 0x241   :  { %v167_v55 = vld [vmem:[#allocation3] sm:$0xff]  ;;  %v171_v57 = vpop.xlane.xlu1 %170 }
 0x242   :  { %v168_v56 = vmul.f32 %v323_v50, %v167_v55 }
 0x244   :  { %v172_v58 = vadd.f32 %v171_v57, %v168_v56 }
 0x245   :  { %v179_v10 = vpop.permute.xlu1 %178 }
 0x246   :  { %174 = vst.msk [vmem:[#allocation3] sm:$0xff] %vm173_vm5, %v172_v58 }
 0x24d   :  { %v246_v59 = vld [vmem:[#allocation3] sm:$0xff] }
 0x24e   :  { %v247_v60 = vmax.f32 %v246_v59, 1e-20 }
 0x250   :  { %324 = vrcp.f32 %v247_v60 }
 0x25a   :  { %v325_v61 = vpop.eup %324 }
 0x25b   :  { %252 = vperm.xlu1 %313, %v325_v61  }
 0x27e   :  { %v126_v0 = vpop.f32.mrb[0].mxu0 }
 0x27f   :  { %v132_v1 = vadd.f32 %v126_v0, %v82_v63  ;;  %v295_v2 = vpop.f32.mrb[1].mxu0 }
 0x280   :  { %v129_v3 = vpop.f32.mrb[2].mxu0 }
 0x281   :  { %134 = vst.msk [vmem:[#allocation4] sm:$0xff] %vm133_vm8, %v132_v1  ;;  %v296_v4 = vpop.f32.mrb[3].mxu0 }
 0x288   :  { %v229_v5 = vpop.f32.mrb[0].mxu1  ;;  %v175_v9 = vld [vmem:[#allocation4] sm:$0xff] }
 0x289   :  { %v301_v6 = vpop.f32.mrb[1].mxu1  ;;  %236 = vrot.lane.b32.xlu0 %v229_v5, %s331_s22  ;;  %v181_v11 = vmul.f32 %v179_v10, %v175_v9 }
 0x28a   :  { %v232_v7 = vpop.f32.mrb[2].mxu1 }
 0x28b   :  { %v302_v8 = vpop.f32.mrb[3].mxu1 }
 0x28d   :  { %257 = vperm.xlu0 %314, %v325_v61  }
 0x2da   :  { %v253_v15 = vpop.permute.xlu1 %252 }
 0x2fb   :  { %v237_v12 = vpop.permute.xlu0 %236 }
 0x2fc   :  { %v239_v13 = vadd.f32 %v237_v12, %v181_v11 }
 0x2fe   :  { %241 = vst.msk [vmem:[#allocation4] sm:$0xff] %vm240_vm9, %v239_v13 }
 0x305   :  { %v249_v14 = vld [vmem:[#allocation4] sm:$0xff] }
 0x306   :  { %v255_v18 = vmul.f32 %v253_v15, %v249_v14 }
 0x30c   :  { %v258_v16 = vpop.permute.xlu0 %257 }
 0x30d   :  { %v260_v19 = vmul.f32 %v258_v16, %v249_v14 }
 0x30f   :  { %v261_v20 = vsel %vm133_vm8, %v255_v18, %v260_v19 }
 0x310   :  { %v269_v21 = vadd.f32 %v285_v17, %v261_v20 }
 0x312   :  { %v271_v22 = vmul.f32 1.442695, %v269_v21  ;;  %vm270_vm10 = vcmp.gt.f32.partialorder %v269_v21, 0.0 }
 0x314   :  { %326 = vpow2.f32 %v271_v22 }
 0x31e   :  { %v327_v23 = vpop.eup %326 }
 0x31f   :  { %v286_v24 = vadd.f32 -1.0, %v327_v23 }
 0x321   :  { %v274_v25 = vsel %vm270_vm10, %v269_v21, %v286_v24 }
 0x322   :  { %275 = vst [vmem:[%s416_s5] sm:$0xff] %v274_v25 }

// kernel: gat_forward.7
= control target key start
LH: loop header
LB: loop body
LE: loop exit
PB: predicated region body
PF: predicated region fallthrough
CT: control target
= control target key end

     0   :  { %v187_v0 = vmov 0   ;;  %vm27_vm0 = vcmask 7168   ;;  %v188_v2 = vmov -1e+30   ;;  %vm30_vm3 = vcmask 64512   ;;  %s249_s2 = inlined_call_operand.vmem [shape: f32[8,1], index: 2, kind: input, shape index: {}]   ;;  %s250_s3 = inlined_call_operand.vmem [shape: bf16[8,8], index: 3, kind: input, shape index: {}]   ;;  %s251_s1 = inlined_call_operand.vmem [shape: f32[1,8], index: 1, kind: input, shape index: {}]   ;;  %s252_s0 = inlined_call_operand.vmem [shape: bf16[8,8], index: 0, kind: input, shape index: {}]   ;;  %s253_s4 = inlined_call_operand.vmem [shape: f32[1,8], index: 4, kind: input, shape index: {}]   ;;  %s254_s5 = inlined_call_operand.vmem [shape: f32[8,8], index: 5, kind: output, shape index: {}]  }
   0x1   :  { %179 = vset.pattern.permute.xlu0 %v187_v0  ;;  %v35_v1 = vld [vmem:[%s249_s2] sm:$0xff]  ;;  %180 = vset.pattern.permute.xlu1 %v187_v0  ;;  %28 = vst.msk [vmem:[#allocation2] sm:$0xff] %vm27_vm0, %v188_v2  ;;  %v189_v13 = vmov 0.0   ;;  %vm91_vm4 = vcmask 1043456   ;;  %vm190_vm5 = vmmov 0  }
   0x2   :  { %38 = vperm.xlu0 %179, %v35_v1   ;;  %v32_v3 = vld [vmem:[%s250_s3] sm:$0xf]  ;;  %29 = vst.msk [vmem:[#allocation3] sm:$0xff] %vm27_vm0, %v189_v13  ;;  %169 = vmatprep.subr.bf16.mxu0 %v189_v13 }
   0x3   :  { %vm33_vm1 = vcmp.gt.bf16.partialorder %v32_v3, 0  ;;  %v164_v5 = vld [vmem:[%s251_s1] ss:$0 sm:$0xff]  ;;  %31 = vst.msk [vmem:[#allocation4] sm:$0xff] %vm30_vm3, %v189_v13  ;;  %171 = vmatprep.mubr.msk.bf16.mxu0 %vm190_vm5, %v189_v13 }
   0x4   :  { %v50_v4 = vsel %vm33_vm1, 65537, %v187_v0  ;;  %v87_v19 = vld [vmem:[%s252_s0] sm:$0xf] }
   0x5   :  { %v51_v7 = vunpack.c.l.b16 %v50_v4  ;;  %v93_v20 = vsel %vm91_vm4, %v87_v19, 0  ;;  %v166_v43 = vld [vmem:[%s253_s4] ss:$0 sm:$0xff] }
   0x6   :  { %170 = vmatpush3.bf16.msra.mxu0 %v93_v20 }
   0x7   :  { %vm52_vm2 = vcmp.ne.s32.totalorder %v51_v7, 0 }
   0x8   :  { %v54_v14 = vld [vmem:[#allocation2] sm:$0xff] }
   0x9   :  { %v71_v28 = vld [vmem:[#allocation3] sm:$0xff] }
   0xa   :  { %v79_v35 = vld [vmem:[#allocation4] sm:$0xff] }
  0x81   :  { %v39_v6 = vpop.permute.xlu0 %38 }
  0x82   :  { %v47_v8 = vadd.f32 %v164_v5, %v39_v6 }
  0x84   :  { %v48_v9 = vmul.f32 0.2, %v47_v8 }
  0x86   :  { %v49_v10 = vmax.f32 %v47_v8, %v48_v9 }
  0x88   :  { %v53_v11 = vsel %vm52_vm2, %v49_v10, -1e+30 }
  0x89   :  { %v56_v12 = vsel %vm30_vm3, %v53_v11, -inf }
  0x8a   :  { %57 = vmax.xlane.f32.xlu0 %v56_v12 }
 0x117   :  { %v58_v15 = vpop.xlane.xlu0 %57 }
 0x118   :  { %v59_v16 = vmax.f32 %v54_v14, %v58_v15 }
 0x11a   :  { %v60_v17 = vsub.f32 %v54_v14, %v59_v16  ;;  %137 = vst.msk [vmem:[#allocation2] sm:$0xff] %vm27_vm0, %v59_v16  ;;  %65 = vperm.xlu1 %180, %v59_v16  }
 0x11c   :  { %v61_v18 = vmul.f32 1.442695, %v60_v17 }
 0x11e   :  { %181 = vpow2.f32 %v61_v18 }
 0x128   :  { %v182_v21 = vpop.eup %181 }
 0x129   :  { %82 = vperm.xlu0 %179, %v182_v21   ;;  %v72_v29 = vmul.f32 %v182_v21, %v71_v28 }
 0x199   :  { %v66_v22 = vpop.permute.xlu1 %65 }
 0x19a   :  { %v68_v23 = vsub.f32 %v53_v11, %v66_v22 }
 0x19c   :  { %v69_v24 = vmul.f32 1.442695, %v68_v23 }
 0x19e   :  { %183 = vpow2.f32 %v69_v24 }
 0x1a8   :  { %v184_v25 = vpop.eup %183  ;;  %v83_v36 = vpop.permute.xlu0 %82 }
 0x1a9   :  { %v73_v26 = vsel %vm30_vm3, %v184_v25, 0.0  ;;  %v86_v27 = vpack.c.bf16 %v184_v25, %v184_v25  ;;  %v85_v37 = vmul.f32 %v83_v36, %v79_v35 }
 0x1aa   :  { %74 = vadd.xlane.f32.xlu1 %v73_v26 }
 0x1ab   :  { %172 = vmatmul.mubr.msk.bf16.vlgmr.msra.gmra.mrb[0].mxu0 %vm30_vm3, %v86_v27 }
 0x237   :  { %v75_v30 = vpop.xlane.xlu1 %74 }
 0x238   :  { %v76_v31 = vadd.f32 %v75_v30, %v72_v29 }
 0x23a   :  { %78 = vst.msk [vmem:[#allocation3] sm:$0xff] %vm27_vm0, %v76_v31 }
 0x241   :  { %v141_v32 = vld [vmem:[#allocation3] sm:$0xff] }
 0x242   :  { %v142_v33 = vmax.f32 %v141_v32, 1e-20 }
 0x244   :  { %185 = vrcp.f32 %v142_v33 }
 0x24e   :  { %v186_v34 = vpop.eup %185 }
 0x24f   :  { %147 = vperm.xlu1 %180, %v186_v34  }
 0x27e   :  { %v129_v38 = vpop.f32.mrb[0].mxu0 }
 0x27f   :  { %v135_v39 = vadd.f32 %v129_v38, %v85_v37  ;;  %v173_v40 = vpop.f32.mrb[1].mxu0 }
 0x280   :  { %v132_v41 = vpop.f32.mrb[2].mxu0 }
 0x281   :  { %136 = vst.msk [vmem:[#allocation4] sm:$0xff] %vm30_vm3, %v135_v39  ;;  %v174_v42 = vpop.f32.mrb[3].mxu0 }
 0x288   :  { %v144_v45 = vld [vmem:[#allocation4] sm:$0xff] }
 0x2ce   :  { %v148_v44 = vpop.permute.xlu1 %147 }
 0x2cf   :  { %v150_v46 = vmul.f32 %v148_v44, %v144_v45 }
 0x2d1   :  { %v158_v47 = vadd.f32 %v166_v43, %v150_v46 }
 0x2d3   :  { %159 = vst.msk [vmem:[%s254_s5] sm:$0xff] %vm30_vm3, %v158_v47 }

</bundles_post_ra>
